<compile_context>
chip_gen: v7x
topology: tpu7x:2x2x1
jax: 0.10.0
libtpu: 0.0.40
codegen_flags: <defaults>
</compile_context>

<pallas_src>
import functools
import numpy as np

import jax
import jax.numpy as jnp
from jax.experimental import pallas as pl
from jax.experimental.pallas import tpu as pltpu


# ----------------------------------------------------------------------------
# configuration
# ----------------------------------------------------------------------------
CFG = dict(
    embed_dim=32, num_heads=4, depth=12,
    img_chans=3, patch=8, img_hw=(32, 128),
    F_lens=[32, 16, 8, 4, 64],           # scaled [256,128,64,32,512]
    scales_up=[4, 8, 16, 32],
    pre_in_chans=[8, 16, 32, 64],        # scaled [64,128,256,512]
    pre_kh=[16, 8, 4, 2],                # scaled [128,64,32,16]
    pre_hw=[(16, 32), (8, 16), (4, 8), (2, 4)],
    ech_h=4,                             # pyramid levels == ECH conv input height
)

LN_EPS = 1e-6   # timm ViT LayerNorm eps (torch.nn.LayerNorm default is 1e-5)


# ----------------------------------------------------------------------------
# shared math helpers (traced both inside Pallas kernels and in the reference)
# ----------------------------------------------------------------------------
def _ln(x, g, b, eps=LN_EPS):
    mu = jnp.mean(x, axis=-1, keepdims=True)
    xc = x - mu
    var = jnp.mean(xc * xc, axis=-1, keepdims=True)
    return xc * jax.lax.rsqrt(var + eps) * g + b


def _gelu_tanh(x):
    # TODO(synk): tanh-approx GELU (EUP-friendly); torch nn.GELU default is exact erf.
    c0 = np.float32(0.7978845608028654)   # sqrt(2/pi)
    c1 = np.float32(0.044715)
    return 0.5 * x * (1.0 + jnp.tanh(c0 * (x + c1 * x * x * x)))


# ----------------------------------------------------------------------------
# Pallas kernels
# ----------------------------------------------------------------------------
def _vit_stack_kernel(x_ref, pos_ref,
                      ln1g_ref, ln1b_ref, wqkv_ref, bqkv_ref,
                      wproj_ref, bproj_ref, ln2g_ref, ln2b_ref,
                      wfc1_ref, bfc1_ref, wfc2_ref, bfc2_ref,
                      o_ref, *, num_heads, eps, l_real):
    """All 12 transformer blocks for one batch element, weights VMEM-resident."""
    L, D = x_ref.shape[1], x_ref.shape[2]
    hd = D // num_heads
    scale = float(hd) ** -0.5
    depth = wqkv_ref.shape[0]
    bf16 = jnp.bfloat16

    # tokens + 'sin' positional encoding (pad rows stay ~zero)
    x0 = x_ref[0] + pos_ref[0]                                       # (L, D) f32

    # static key-padding mask for the L=124 -> 128 pad columns
    col = jax.lax.broadcasted_iota(jnp.int32, (L, L), 1)
    kmask = jnp.where(col < l_real, 0.0, -1e9).astype(jnp.float32)   # (L, L)

    def block(d, x):
        # ---- LN1 -> fused QKV -> per-head softmax(QK^T)V -> merged projection ----
        h1 = _ln(x, ln1g_ref[d], ln1b_ref[d], eps)
        qkv = jnp.dot(h1.astype(bf16), wqkv_ref[d],
                      preferred_element_type=jnp.float32) + bqkv_ref[d]
        heads = []
        for hh in range(num_heads):                    # short static unroll
            c = hh * hd
            q = (qkv[:, c:c + hd] * scale).astype(bf16)
            k = qkv[:, D + c:D + c + hd].astype(bf16)
            v = qkv[:, 2 * D + c:2 * D + c + hd].astype(bf16)
            s = jax.lax.dot_general(q, k, (((1,), (1,)), ((), ())),
                                    preferred_element_type=jnp.float32) + kmask
            m = jnp.max(s, axis=-1, keepdims=True)
            p = jnp.exp(s - m)
            p = p * pl.reciprocal(jnp.sum(p, axis=-1, keepdims=True))   # exact 1/x
            heads.append(jnp.dot(p.astype(bf16), v,
                                 preferred_element_type=jnp.float32))   # (L, hd)
        attn = jnp.concatenate(heads, axis=-1).astype(bf16)             # (L, D)
        proj = jnp.dot(attn, wproj_ref[d],
                       preferred_element_type=jnp.float32) + bproj_ref[d]
        x = x + proj

        # ---- LN2 -> MLP (GELU fused) -> residual ----
        h2 = _ln(x, ln2g_ref[d], ln2b_ref[d], eps)
        f1 = jnp.dot(h2.astype(bf16), wfc1_ref[d],
                     preferred_element_type=jnp.float32) + bfc1_ref[d]
        f1 = _gelu_tanh(f1).astype(bf16)
        f2 = jnp.dot(f1, wfc2_ref[d],
                     preferred_element_type=jnp.float32) + bfc2_ref[d]
        return x + f2

    o_ref[0] = jax.lax.fori_loop(0, depth, block, x0)


def _conv3x3_cm(a, w_ref, s, t, h_dim, w_dim):
    """Channel-major 3x3 conv (pad 1) + folded BN + ReLU.

    a: (Cin, H*W) f32;  w_ref: (Cout, 9*Cin) bf16 (tap-major);  s, t: (Cout, 1).
    Builds a 9-tap im2col slab with pltpu.roll (lane shifts, XLU) + iota masks and
    does ONE wide-K matmul.  Returns (Cout, H*W) f32."""
    cin, hw = a.shape
    j = jax.lax.broadcasted_iota(jnp.int32, (1, hw), 1)
    wcol = j % w_dim
    taps = []
    for dh in (-1, 0, 1):
        for dw in (-1, 0, 1):
            k = dh * w_dim + dw
            if k == 0:
                shifted = a
            else:
                # shifted[:, j] = a[:, j + k]  (wrapped; wrap positions masked below)
                shifted = pltpu.roll(a, (-k) % hw, axis=1)
            valid = ((wcol + dw >= 0) & (wcol + dw < w_dim) &
                     (j + k >= 0) & (j + k < hw))
            taps.append(jnp.where(valid, shifted, 0.0).astype(jnp.bfloat16))
    slab = jnp.concatenate(taps, axis=0)                      # (9*Cin, H*W) bf16
    out = jnp.dot(w_ref[...], slab, preferred_element_type=jnp.float32)
    return jnp.maximum(out * s + t, 0.0)


def _ech_kernel(x_ref, mt_ref, w1_ref, s1_ref, t1_ref,
                w2_ref, s2_ref, t2_ref, dw_ref, o_ref, *, h_dim, w_dim):
    """Pyramid bilinear upsample + ECH1 + ECH2 + depthwise (h,1) height compression,
    channel-major (lane-dense) end to end, one batch element per grid step."""
    x_b = x_ref[0].astype(jnp.bfloat16)                       # (L_pad, D)

    # channel-major pyramid upsample: a[c, hw] = sum_l x[l, c] * mt[l, hw]
    a = jax.lax.dot_general(x_b, mt_ref[...], (((0,), (0,)), ((), ())),
                            preferred_element_type=jnp.float32)   # (D, H*W)

    a = _conv3x3_cm(a, w1_ref, s1_ref[...], t1_ref[...], h_dim, w_dim)  # (C2, H*W)
    a = _conv3x3_cm(a, w2_ref, s2_ref[...], t2_ref[...], h_dim, w_dim)  # (C2, H*W)

    # depthwise (h_dim, 1) conv collapsing the pyramid-level axis
    c2 = a.shape[0]
    dwk = dw_ref[...]                                          # (C2, h_dim)
    y = jnp.zeros((c2, w_dim), jnp.float32)
    for h in range(h_dim):
        y = y + a[:, h * w_dim:(h + 1) * w_dim] * dwk[:, h:h + 1]
    o_ref[0] = y.astype(o_ref.dtype)                           # (C2, W4) lane-dense


# ----------------------------------------------------------------------------
# Pallas wrappers
# ----------------------------------------------------------------------------
def _replicated_spec(a):
    """Full-array block, same block for every grid step (DMA'd once, kept resident)."""
    n = a.ndim
    return pl.BlockSpec(tuple(a.shape), lambda b, _n=n: (0,) * _n)


def vit_stack(x, pos, sp, cfg, l_real):
    """Pos-embed add + all 12 encoder blocks in one pallas_call, grid=(B,)."""
    B, L_pad, D = x.shape
    names = ["ln1_g", "ln1_b", "w_qkv", "b_qkv", "w_proj", "b_proj",
             "ln2_g", "ln2_b", "w_fc1", "b_fc1", "w_fc2", "b_fc2"]
    arrs = [sp[n] for n in names]

    xspec = pl.BlockSpec((1, L_pad, D), lambda b: (b, 0, 0))
    pspec = pl.BlockSpec((1, L_pad, D), lambda b: (0, 0, 0))
    kern = functools.partial(_vit_stack_kernel, num_heads=cfg["num_heads"],
                             eps=LN_EPS, l_real=l_real)
    return pl.pallas_call(
        kern,
        grid=(B,),
        in_specs=[xspec, pspec] + [_replicated_spec(a) for a in arrs],
        out_specs=xspec,
        out_shape=jax.ShapeDtypeStruct((B, L_pad, D), jnp.float32),
        compiler_params=pltpu.CompilerParams(
            dimension_semantics=("parallel",)),   # TODO(synk): try CORE_PARALLEL on v7x
    )(x, pos, *arrs)


def ech_head(x, ep, cfg):
    """Fused pyramid-upsample + ECH1 + ECH2 + height compression -> (B, 2D, W4)."""
    B, L_pad, D = x.shape
    C2 = ep["w1"].shape[0]
    w4 = cfg["F_lens"][0] * cfg["scales_up"][0]
    kern = functools.partial(_ech_kernel, h_dim=cfg["ech_h"], w_dim=w4)
    return pl.pallas_call(
        kern,
        grid=(B,),
        in_specs=[pl.BlockSpec((1, L_pad, D), lambda b: (b, 0, 0)),
                  _replicated_spec(ep["mt"]),
                  _replicated_spec(ep["w1"]), _replicated_spec(ep["s1"]),
                  _replicated_spec(ep["t1"]),
                  _replicated_spec(ep["w2"]), _replicated_spec(ep["s2"]),
                  _replicated_spec(ep["t2"]),
                  _replicated_spec(ep["dw"])],
        out_specs=pl.BlockSpec((1, C2, w4), lambda b: (b, 0, 0)),
        out_shape=jax.ShapeDtypeStruct((B, C2, w4), jnp.float32),
        compiler_params=pltpu.CompilerParams(dimension_semantics=("parallel",)),
    )(x, ep["mt"], ep["w1"], ep["s1"], ep["t1"],
      ep["w2"], ep["s2"], ep["t2"], ep["dw"])


# ----------------------------------------------------------------------------
# plain-JAX / NumPy glue
# ----------------------------------------------------------------------------
def linear_interp_matrix(w_in, scale):
    """(w_in, w_in*scale) matrix matching F.interpolate(bilinear, align_corners=False)
    along W (the height dim is 1, so the 2D bilinear reduces to this exactly)."""
    w_out = w_in * scale
    j = np.arange(w_out, dtype=np.float64)
    src = np.maximum((j + 0.5) / scale - 0.5, 0.0)
    x0 = np.minimum(np.floor(src).astype(np.int64), w_in - 1)
    x1 = np.minimum(x0 + 1, w_in - 1)
    lam = src - x0
    m = np.zeros((w_in, w_out), dtype=np.float32)
    ji = j.astype(np.int64)
    np.add.at(m, (x0, ji), (1.0 - lam).astype(np.float32))
    np.add.at(m, (x1, ji), lam.astype(np.float32))
    return m


def build_pyramid_matrix_cm(cfg, l_pad):
    """(L_pad, 4*W4) matrix: token l (within the first sum(F_lens[:4]) tokens)
    contributes to flat pyramid position level*W4 + w_out; pad rows are zero."""
    f_lens, scales = cfg["F_lens"][:4], cfg["scales_up"]
    w4 = f_lens[0] * scales[0]
    m = np.zeros((l_pad, len(f_lens) * w4), np.float32)
    off = 0
    for i, (w_in, sc) in enumerate(zip(f_lens, scales)):
        assert w_in * sc == w4
        m[off:off + w_in, i * w4:(i + 1) * w4] = linear_interp_matrix(w_in, sc)
        off += w_in
    return jnp.asarray(m)


def patch_tokens(params, img, feats, cfg):
    """Patch-embed convs (pad (0,1)) + flatten(2).transpose(1,2), concatenated along
    the sequence.  Kept in XLA per perf review (5 tiny GEMMs == pure launch overhead
    as separate Pallas calls)."""
    dn = ("NCHW", "OIHW", "NCHW")
    hp = jax.lax.Precision.HIGHEST
    toks = []
    for feat, p in zip(feats, params["pre_net"]):
        kh = feat.shape[2]
        y = jax.lax.conv_general_dilated(feat, p["w"], (kh, 1), ((0, 0), (1, 1)),
                                         dimension_numbers=dn, precision=hp)
        y = y + p["b"][None, :, None, None]
        b, d, oh, ow = y.shape
        toks.append(y.reshape(b, d, oh * ow).transpose(0, 2, 1))
    pi = params["pre_image"]
    pch = cfg["patch"]
    y = jax.lax.conv_general_dilated(img, pi["w"], (pch, pch), ((0, 0), (1, 1)),
                                     dimension_numbers=dn, precision=hp)
    y = y + pi["b"][None, :, None, None]
    b, d, oh, ow = y.shape
    toks.append(y.reshape(b, d, oh * ow).transpose(0, 2, 1))
    return jnp.concatenate(toks, axis=1)                       # (B, L, D)


# ----------------------------------------------------------------------------
# parameters
# ----------------------------------------------------------------------------
def init_params(key, cfg):
    D = cfg["embed_dim"]
    depth = cfg["depth"]
    kit = iter(jax.random.split(key, 64))

    def nrm(shape, s=0.02):
        return jax.random.normal(next(kit), shape, dtype=jnp.float32) * s

    params = {}
    params["pre_net"] = [{"w": nrm((D, c, kh, 3)), "b": nrm((D,))}
                         for c, kh in zip(cfg["pre_in_chans"], cfg["pre_kh"])]
    p = cfg["patch"]
    params["pre_image"] = {"w": nrm((D, cfg["img_chans"], p, p)), "b": nrm((D,))}

    # 'sin' positional encoding
    L = int(np.sum(cfg["F_lens"]))
    position = np.arange(L, dtype=np.float32)[:, None]
    div = np.exp(np.arange(0, D, 2, dtype=np.float32) * (-np.log(10000.0) / D))
    pe = np.zeros((L, D), np.float32)
    pe[:, 0::2] = np.sin(position * div)
    pe[:, 1::2] = np.cos(position * div)
    params["pos"] = jnp.asarray(pe[None])                       # (1, L, D)

    # 12 transformer blocks, weights stacked along a leading depth axis
    # (linear weights stored (in, out), i.e. already transposed for x @ W)
    params["stack"] = {
        "ln1_g": jnp.ones((depth, 1, D), jnp.float32),
        "ln1_b": jnp.zeros((depth, 1, D), jnp.float32),
        "w_qkv": nrm((depth, D, 3 * D)), "b_qkv": nrm((depth, 1, 3 * D)),
        "w_proj": nrm((depth, D, D)), "b_proj": nrm((depth, 1, D)),
        "ln2_g": jnp.ones((depth, 1, D), jnp.float32),
        "ln2_b": jnp.zeros((depth, 1, D), jnp.float32),
        "w_fc1": nrm((depth, D, 4 * D)), "b_fc1": nrm((depth, 1, 4 * D)),
        "w_fc2": nrm((depth, 4 * D, D)), "b_fc2": nrm((depth, 1, D)),
    }

    # ECH head: raw conv weights + BatchNorm folded into per-channel scale/shift
    # (inference running stats), depthwise (4,1) kernel
    C1, C2 = D, 2 * D
    bn_eps = 1e-5

    def bn_affine(c):
        g = jnp.abs(nrm((c,), 1.0)) + 0.5
        beta = nrm((c,), 0.1)
        mean = nrm((c,), 0.1)
        var = jnp.abs(nrm((c,), 0.2)) + 0.5
        scale = g * jax.lax.rsqrt(var + bn_eps)
        return scale, beta - mean * scale

    s1, t1 = bn_affine(C2)
    s2, t2 = bn_affine(C2)
    params["ech"] = {
        "w1": nrm((C2, C1, 3, 3)), "s1": s1, "t1": t1,
        "w2": nrm((C2, C2, 3, 3)), "s2": s2, "t2": t2,
        "dw": nrm((C2, cfg["ech_h"])),     # depthwise Conv2d(C2, C2, (4,1), groups=C2)
    }
    return params


def prepare_kernel_params(params, cfg):
    """Reformat raw params into kernel layouts (bf16 MXU weights, tap-major conv
    matrices, padded pos / pyramid matrix).  Done once, outside jit."""
    bf = lambda a: a.astype(jnp.bfloat16)
    L = params["pos"].shape[1]
    L_pad = ((L + 127) // 128) * 128

    sp = params["stack"]
    stack_k = {
        "ln1_g": sp["ln1_g"], "ln1_b": sp["ln1_b"],
        "w_qkv": bf(sp["w_qkv"]), "b_qkv": sp["b_qkv"],
        "w_proj": bf(sp["w_proj"]), "b_proj": sp["b_proj"],
        "ln2_g": sp["ln2_g"], "ln2_b": sp["ln2_b"],
        "w_fc1": bf(sp["w_fc1"]), "b_fc1": sp["b_fc1"],
        "w_fc2": bf(sp["w_fc2"]), "b_fc2": sp["b_fc2"],
    }

    e = params["ech"]
    C2, C1 = e["w1"].shape[0], e["w1"].shape[1]
    ech_k = {
        # tap-major (Cout, 9*Cin): column index = (3*kh + kw)*Cin + cin
        "w1": bf(jnp.transpose(e["w1"], (0, 2, 3, 1)).reshape(C2, 9 * C1)),
        "s1": e["s1"].reshape(C2, 1), "t1": e["t1"].reshape(C2, 1),
        "w2": bf(jnp.transpose(e["w2"], (0, 2, 3, 1)).reshape(C2, 9 * C2)),
        "s2": e["s2"].reshape(C2, 1), "t2": e["t2"].reshape(C2, 1),
        "dw": e["dw"],
        "mt": bf(build_pyramid_matrix_cm(cfg, L_pad)),    # (L_pad, 4*W4), bf16-exact
    }
    return {
        "pos": jnp.pad(params["pos"], ((0, 0), (0, L_pad - L), (0, 0))),
        "stack": stack_k,
        "ech": ech_k,
    }


# ----------------------------------------------------------------------------
# forward (Pallas) and pure-JAX reference
# ----------------------------------------------------------------------------
def forward(params, kparams, img, feats):
    cfg = CFG
    x = patch_tokens(params, img, feats, cfg)                   # (B, 124, D) XLA glue
    B, L, D = x.shape
    L_pad = kparams["pos"].shape[1]
    x = jnp.pad(x, ((0, 0), (0, L_pad - L), (0, 0)))            # 124 -> 128 tokens
    x = vit_stack(x, kparams["pos"], kparams["stack"], cfg, l_real=L)   # (B, 128, D)
    y = ech_head(x, kparams["ech"], cfg)                        # (B, 2D, W4), channel-major
    return {"1D": y}


def forward_reference(params, img, feats):
    """Pure-JAX f32 reference (independent NCHW lax.conv formulation of the head)."""
    cfg = CFG
    with jax.default_matmul_precision("float32"):
        x = patch_tokens(params, img, feats, cfg)
        x = x + params["pos"]
        sp = params["stack"]
        B, L, D = x.shape
        H = cfg["num_heads"]
        hd = D // H
        for d in range(cfg["depth"]):
            h1 = _ln(x, sp["ln1_g"][d], sp["ln1_b"][d])
            qkv = h1 @ sp["w_qkv"][d] + sp["b_qkv"][d]
            q, k, v = jnp.split(qkv, 3, axis=-1)
            sh = lambda t: t.reshape(B, L, H, hd).transpose(0, 2, 1, 3)
            q, k, v = sh(q) * (float(hd) ** -0.5), sh(k), sh(v)
            att = jax.nn.softmax(jnp.einsum("bhqd,bhkd->bhqk", q, k), axis=-1)
            o = jnp.einsum("bhqk,bhkd->bhqd", att, v)
            o = o.transpose(0, 2, 1, 3).reshape(B, L, D)
            x = x + o @ sp["w_proj"][d] + sp["b_proj"][d]
            h2 = _ln(x, sp["ln2_g"][d], sp["ln2_b"][d])
            f = jax.nn.gelu(h2 @ sp["w_fc1"][d] + sp["b_fc1"][d], approximate=True)
            x = x + f @ sp["w_fc2"][d] + sp["b_fc2"][d]

        e = params["ech"]
        C2 = e["w1"].shape[0]
        xt = x.transpose(0, 2, 1)                               # (B, D, L)
        levels, off = [], 0
        for fl, sc in zip(cfg["F_lens"][:4], cfg["scales_up"]):
            m = jnp.asarray(linear_interp_matrix(fl, sc))
            levels.append(jnp.einsum("bcw,wx->bcx", xt[:, :, off:off + fl], m)[:, :, None, :])
            off += fl
        a = jnp.concatenate(levels, axis=2)                     # (B, D, 4, W4)
        dn = ("NCHW", "OIHW", "NCHW")
        a = jax.lax.conv_general_dilated(a, e["w1"], (1, 1), ((1, 1), (1, 1)),
                                         dimension_numbers=dn)
        a = jnp.maximum(a * e["s1"][None, :, None, None] + e["t1"][None, :, None, None], 0.0)
        a = jax.lax.conv_general_dilated(a, e["w2"], (1, 1), ((1, 1), (1, 1)),
                                         dimension_numbers=dn)
        a = jnp.maximum(a * e["s2"][None, :, None, None] + e["t2"][None, :, None, None], 0.0)
        a = jax.lax.conv_general_dilated(a, e["dw"].reshape(C2, 1, cfg["ech_h"], 1),
                                         (1, 1), ((0, 0), (0, 0)),
                                         dimension_numbers=dn, feature_group_count=C2)
        return {"1D": a.reshape(B, C2, -1)}


# ----------------------------------------------------------------------------
if __name__ == "__main__":
    key = jax.random.PRNGKey(0)
    kp_, ki, k0, k1, k2, k3 = jax.random.split(key, 6)
    B = 2

    img = jax.random.normal(ki, (B, CFG["img_chans"], *CFG["img_hw"]), jnp.float32)
    feats = tuple(
        jax.random.normal(k, (B, c, h, w), jnp.float32)
        for k, c, (h, w) in zip([k0, k1, k2, k3], CFG["pre_in_chans"], CFG["pre_hw"])
    )

    params = init_params(kp_, CFG)
    kparams = prepare_kernel_params(params, CFG)

    fwd = jax.jit(forward)
    out = fwd(params, kparams, img, feats)
    a1d = jax.block_until_ready(out["1D"])

    expected = (B, 2 * CFG["embed_dim"], CFG["F_lens"][0] * CFG["scales_up"][0])
    assert a1d.shape == expected, (a1d.shape, expected)
    got = np.asarray(a1d)
    assert bool(np.isfinite(got).all())

    # numerical check vs the pure-JAX f32 reference (bf16 MXU inputs -> loose tol)
    ref = jax.jit(forward_reference)(params, img, feats)
    ref = np.asarray(jax.block_until_ready(ref["1D"]))
    rel = float(np.max(np.abs(got - ref)) / (np.max(np.abs(ref)) + 1e-6))
    assert rel < 0.1, f"max relative error vs reference too large: {rel}"

    print("KERNEL_OK")
</pallas_src>

<mosaic_0001>
module attributes {stable_mosaic.version = 11 : i64} {
  func.func @_vit_stack_kernel(%arg0: i32, %arg1: memref<1x128x32xf32, #tpu.memory_space<vmem>>, %arg2: memref<1x128x32xf32, #tpu.memory_space<vmem>>, %arg3: memref<12x1x32xf32, #tpu.memory_space<vmem>>, %arg4: memref<12x1x32xf32, #tpu.memory_space<vmem>>, %arg5: memref<12x32x96xbf16, #tpu.memory_space<vmem>>, %arg6: memref<12x1x96xf32, #tpu.memory_space<vmem>>, %arg7: memref<12x32x32xbf16, #tpu.memory_space<vmem>>, %arg8: memref<12x1x32xf32, #tpu.memory_space<vmem>>, %arg9: memref<12x1x32xf32, #tpu.memory_space<vmem>>, %arg10: memref<12x1x32xf32, #tpu.memory_space<vmem>>, %arg11: memref<12x32x128xbf16, #tpu.memory_space<vmem>>, %arg12: memref<12x1x128xf32, #tpu.memory_space<vmem>>, %arg13: memref<12x128x32xbf16, #tpu.memory_space<vmem>>, %arg14: memref<12x1x32xf32, #tpu.memory_space<vmem>>, %arg15: memref<1x128x32xf32, #tpu.memory_space<vmem>>) attributes {dimension_semantics = [#tpu.dimension_semantics<parallel>], iteration_bounds = array<i64: 2>, scalar_prefetch = 0 : i64, scratch_operands = 0 : i64, tpu.core_type = #tpu.core_type<tc>, window_params = [{transform_indices = @transform_0, window_bounds = array<i64: 1, 128, 32>}, {pipeline_mode = #tpu.pipeline_mode<synchronous>, transform_indices = @transform_1, window_bounds = array<i64: 1, 128, 32>}, {pipeline_mode = #tpu.pipeline_mode<synchronous>, transform_indices = @transform_2, window_bounds = array<i64: 12, 1, 32>}, {pipeline_mode = #tpu.pipeline_mode<synchronous>, transform_indices = @transform_3, window_bounds = array<i64: 12, 1, 32>}, {pipeline_mode = #tpu.pipeline_mode<synchronous>, transform_indices = @transform_4, window_bounds = array<i64: 12, 32, 96>}, {pipeline_mode = #tpu.pipeline_mode<synchronous>, transform_indices = @transform_5, window_bounds = array<i64: 12, 1, 96>}, {pipeline_mode = #tpu.pipeline_mode<synchronous>, transform_indices = @transform_6, window_bounds = array<i64: 12, 32, 32>}, {pipeline_mode = #tpu.pipeline_mode<synchronous>, transform_indices = @transform_7, window_bounds = array<i64: 12, 1, 32>}, {pipeline_mode = #tpu.pipeline_mode<synchronous>, transform_indices = @transform_8, window_bounds = array<i64: 12, 1, 32>}, {pipeline_mode = #tpu.pipeline_mode<synchronous>, transform_indices = @transform_9, window_bounds = array<i64: 12, 1, 32>}, {pipeline_mode = #tpu.pipeline_mode<synchronous>, transform_indices = @transform_10, window_bounds = array<i64: 12, 32, 128>}, {pipeline_mode = #tpu.pipeline_mode<synchronous>, transform_indices = @transform_11, window_bounds = array<i64: 12, 1, 128>}, {pipeline_mode = #tpu.pipeline_mode<synchronous>, transform_indices = @transform_12, window_bounds = array<i64: 12, 128, 32>}, {pipeline_mode = #tpu.pipeline_mode<synchronous>, transform_indices = @transform_13, window_bounds = array<i64: 12, 1, 32>}, {transform_indices = @transform_14, window_bounds = array<i64: 1, 128, 32>}]} {
    %c0 = arith.constant 0 : index
    %c0_0 = arith.constant 0 : index
    %c0_1 = arith.constant 0 : index
    %0 = vector.load %arg1[%c0, %c0_0, %c0_1] : memref<1x128x32xf32, #tpu.memory_space<vmem>>, vector<1x128x32xf32>
    %1 = vector.shape_cast %0 : vector<1x128x32xf32> to vector<128x32xf32>
    %c0_2 = arith.constant 0 : index
    %c0_3 = arith.constant 0 : index
    %c0_4 = arith.constant 0 : index
    %2 = vector.load %arg2[%c0_2, %c0_3, %c0_4] : memref<1x128x32xf32, #tpu.memory_space<vmem>>, vector<1x128x32xf32>
    %3 = vector.shape_cast %2 : vector<1x128x32xf32> to vector<128x32xf32>
    %4 = arith.addf %1, %3 : vector<128x32xf32>
    %5 = tpu.iota {dimensions = array<i32: 1>} : vector<128x128xi32>
    %c124_i32 = arith.constant 124 : i32
    %6 = vector.broadcast %c124_i32 : i32 to vector<128x128xi32>
    %7 = arith.cmpi slt, %5, %6 : vector<128x128xi32>
    %cst = arith.constant 0.000000e+00 : f32
    %cst_5 = arith.constant -1.000000e+09 : f32
    %8 = vector.broadcast %cst : f32 to vector<128x128xf32>
    %9 = vector.broadcast %cst_5 : f32 to vector<128x128xf32>
    %10 = arith.select %7, %8, %9 : vector<128x128xi1>, vector<128x128xf32>
    %c0_i32 = arith.constant 0 : i32
    %c12_i32 = arith.constant 12 : i32
    %11 = arith.addi %c0_i32, %c12_i32 : i32
    %c1_i32 = arith.constant 1 : i32
    %12 = scf.for %arg16 = %c0_i32 to %11 step %c1_i32 iter_args(%arg17 = %4) -> (vector<128x32xf32>)  : i32 {
      %16 = arith.index_cast %arg16 : i32 to index
      %c0_10 = arith.constant 0 : index
      %c0_11 = arith.constant 0 : index
      %17 = vector.load %arg3[%16, %c0_10, %c0_11] : memref<12x1x32xf32, #tpu.memory_space<vmem>>, vector<1x1x32xf32>
      %18 = vector.shape_cast %17 : vector<1x1x32xf32> to vector<1x32xf32>
      %19 = arith.index_cast %arg16 : i32 to index
      %c0_12 = arith.constant 0 : index
      %c0_13 = arith.constant 0 : index
      %20 = vector.load %arg4[%19, %c0_12, %c0_13] : memref<12x1x32xf32, #tpu.memory_space<vmem>>, vector<1x1x32xf32>
      %21 = vector.shape_cast %20 : vector<1x1x32xf32> to vector<1x32xf32>
      %cst_14 = arith.constant dense<0.000000e+00> : vector<128xf32>
      %22 = vector.multi_reduction <add>, %arg17, %cst_14 [1] : vector<128x32xf32> to vector<128xf32>
      %23 = vector.shape_cast %22 : vector<128xf32> to vector<128x1xf32>
      %cst_15 = arith.constant 3.200000e+01 : f32
      %24 = vector.broadcast %cst_15 : f32 to vector<128x1xf32>
      %25 = arith.divf %23, %24 : vector<128x1xf32>
      %26 = vector.broadcast %25 : vector<128x1xf32> to vector<128x32xf32>
      %27 = arith.subf %arg17, %26 : vector<128x32xf32>
      %28 = arith.mulf %27, %27 : vector<128x32xf32>
      %cst_16 = arith.constant dense<0.000000e+00> : vector<128xf32>
      %29 = vector.multi_reduction <add>, %28, %cst_16 [1] : vector<128x32xf32> to vector<128xf32>
      %30 = vector.shape_cast %29 : vector<128xf32> to vector<128x1xf32>
      %cst_17 = arith.constant 3.200000e+01 : f32
      %31 = vector.broadcast %cst_17 : f32 to vector<128x1xf32>
      %32 = arith.divf %30, %31 : vector<128x1xf32>
      %cst_18 = arith.constant 9.99999997E-7 : f32
      %33 = vector.broadcast %cst_18 : f32 to vector<128x1xf32>
      %34 = arith.addf %32, %33 : vector<128x1xf32>
      %35 = math.rsqrt %34 : vector<128x1xf32>
      %36 = vector.broadcast %35 : vector<128x1xf32> to vector<128x32xf32>
      %37 = arith.mulf %27, %36 : vector<128x32xf32>
      %38 = vector.broadcast %18 : vector<1x32xf32> to vector<128x32xf32>
      %39 = arith.mulf %37, %38 : vector<128x32xf32>
      %40 = vector.broadcast %21 : vector<1x32xf32> to vector<128x32xf32>
      %41 = arith.addf %39, %40 : vector<128x32xf32>
      %42 = arith.truncf %41 : vector<128x32xf32> to vector<128x32xbf16>
      %43 = arith.index_cast %arg16 : i32 to index
      %c0_19 = arith.constant 0 : index
      %c0_20 = arith.constant 0 : index
      %44 = vector.load %arg5[%43, %c0_19, %c0_20] : memref<12x32x96xbf16, #tpu.memory_space<vmem>>, vector<1x32x96xbf16>
      %45 = vector.shape_cast %44 : vector<1x32x96xbf16> to vector<32x96xbf16>
      %cst_21 = arith.constant dense<0.000000e+00> : vector<128x96xf32>
      %46 = tpu.matmul %42, %45, %cst_21 {dimension_numbers = #tpu.dot_dimension_numbers<[1], [0], [0], [1], [0, 0, 1, 1], [], []>} : vector<128x32xbf16>, vector<32x96xbf16>, vector<128x96xf32> -> vector<128x96xf32>
      %47 = arith.index_cast %arg16 : i32 to index
      %c0_22 = arith.constant 0 : index
      %c0_23 = arith.constant 0 : index
      %48 = vector.load %arg6[%47, %c0_22, %c0_23] : memref<12x1x96xf32, #tpu.memory_space<vmem>>, vector<1x1x96xf32>
      %49 = vector.shape_cast %48 : vector<1x1x96xf32> to vector<1x96xf32>
      %50 = vector.broadcast %49 : vector<1x96xf32> to vector<128x96xf32>
      %51 = arith.addf %46, %50 : vector<128x96xf32>
      %52 = vector.extract_strided_slice %51 {offsets = [0, 0], sizes = [128, 8], strides = [1, 1]} : vector<128x96xf32> to vector<128x8xf32>
      %cst_24 = arith.constant 0.353553385 : f32
      %53 = vector.broadcast %cst_24 : f32 to vector<128x8xf32>
      %54 = arith.mulf %52, %53 : vector<128x8xf32>
      %55 = arith.truncf %54 : vector<128x8xf32> to vector<128x8xbf16>
      %56 = vector.extract_strided_slice %51 {offsets = [0, 32], sizes = [128, 8], strides = [1, 1]} : vector<128x96xf32> to vector<128x8xf32>
      %57 = arith.truncf %56 : vector<128x8xf32> to vector<128x8xbf16>
      %58 = vector.extract_strided_slice %51 {offsets = [0, 64], sizes = [128, 8], strides = [1, 1]} : vector<128x96xf32> to vector<128x8xf32>
      %59 = arith.truncf %58 : vector<128x8xf32> to vector<128x8xbf16>
      %cst_25 = arith.constant dense<0.000000e+00> : vector<128x128xf32>
      %60 = tpu.matmul %55, %57, %cst_25 {dimension_numbers = #tpu.dot_dimension_numbers<[1], [1], [0], [0], [0, 0, 1, 0], [], []>} : vector<128x8xbf16>, vector<128x8xbf16>, vector<128x128xf32> -> vector<128x128xf32>
      %61 = arith.addf %60, %10 : vector<128x128xf32>
      %cst_26 = arith.constant dense<0xFF800000> : vector<128xf32>
      %62 = vector.multi_reduction <maximumf>, %61, %cst_26 [1] : vector<128x128xf32> to vector<128xf32>
      %63 = vector.shape_cast %62 : vector<128xf32> to vector<128x1xf32>
      %64 = vector.broadcast %63 : vector<128x1xf32> to vector<128x128xf32>
      %65 = arith.subf %61, %64 : vector<128x128xf32>
      %66 = math.exp %65 : vector<128x128xf32>
      %cst_27 = arith.constant dense<0.000000e+00> : vector<128xf32>
      %67 = vector.multi_reduction <add>, %66, %cst_27 [1] : vector<128x128xf32> to vector<128xf32>
      %68 = vector.shape_cast %67 : vector<128xf32> to vector<128x1xf32>
      %69 = tpu.reciprocal %68 : vector<128x1xf32> -> vector<128x1xf32>
      %70 = vector.broadcast %69 : vector<128x1xf32> to vector<128x128xf32>
      %71 = arith.mulf %66, %70 : vector<128x128xf32>
      %72 = arith.truncf %71 : vector<128x128xf32> to vector<128x128xbf16>
      %cst_28 = arith.constant dense<0.000000e+00> : vector<128x8xf32>
      %73 = tpu.matmul %72, %59, %cst_28 {dimension_numbers = #tpu.dot_dimension_numbers<[1], [0], [0], [1], [0, 0, 1, 1], [], []>} : vector<128x128xbf16>, vector<128x8xbf16>, vector<128x8xf32> -> vector<128x8xf32>
      %74 = vector.extract_strided_slice %51 {offsets = [0, 8], sizes = [128, 8], strides = [1, 1]} : vector<128x96xf32> to vector<128x8xf32>
      %cst_29 = arith.constant 0.353553385 : f32
      %75 = vector.broadcast %cst_29 : f32 to vector<128x8xf32>
      %76 = arith.mulf %74, %75 : vector<128x8xf32>
      %77 = arith.truncf %76 : vector<128x8xf32> to vector<128x8xbf16>
      %78 = vector.extract_strided_slice %51 {offsets = [0, 40], sizes = [128, 8], strides = [1, 1]} : vector<128x96xf32> to vector<128x8xf32>
      %79 = arith.truncf %78 : vector<128x8xf32> to vector<128x8xbf16>
      %80 = vector.extract_strided_slice %51 {offsets = [0, 72], sizes = [128, 8], strides = [1, 1]} : vector<128x96xf32> to vector<128x8xf32>
      %81 = arith.truncf %80 : vector<128x8xf32> to vector<128x8xbf16>
      %cst_30 = arith.constant dense<0.000000e+00> : vector<128x128xf32>
      %82 = tpu.matmul %77, %79, %cst_30 {dimension_numbers = #tpu.dot_dimension_numbers<[1], [1], [0], [0], [0, 0, 1, 0], [], []>} : vector<128x8xbf16>, vector<128x8xbf16>, vector<128x128xf32> -> vector<128x128xf32>
      %83 = arith.addf %82, %10 : vector<128x128xf32>
      %cst_31 = arith.constant dense<0xFF800000> : vector<128xf32>
      %84 = vector.multi_reduction <maximumf>, %83, %cst_31 [1] : vector<128x128xf32> to vector<128xf32>
      %85 = vector.shape_cast %84 : vector<128xf32> to vector<128x1xf32>
      %86 = vector.broadcast %85 : vector<128x1xf32> to vector<128x128xf32>
      %87 = arith.subf %83, %86 : vector<128x128xf32>
      %88 = math.exp %87 : vector<128x128xf32>
      %cst_32 = arith.constant dense<0.000000e+00> : vector<128xf32>
      %89 = vector.multi_reduction <add>, %88, %cst_32 [1] : vector<128x128xf32> to vector<128xf32>
      %90 = vector.shape_cast %89 : vector<128xf32> to vector<128x1xf32>
      %91 = tpu.reciprocal %90 : vector<128x1xf32> -> vector<128x1xf32>
      %92 = vector.broadcast %91 : vector<128x1xf32> to vector<128x128xf32>
      %93 = arith.mulf %88, %92 : vector<128x128xf32>
      %94 = arith.truncf %93 : vector<128x128xf32> to vector<128x128xbf16>
      %cst_33 = arith.constant dense<0.000000e+00> : vector<128x8xf32>
      %95 = tpu.matmul %94, %81, %cst_33 {dimension_numbers = #tpu.dot_dimension_numbers<[1], [0], [0], [1], [0, 0, 1, 1], [], []>} : vector<128x128xbf16>, vector<128x8xbf16>, vector<128x8xf32> -> vector<128x8xf32>
      %96 = vector.extract_strided_slice %51 {offsets = [0, 16], sizes = [128, 8], strides = [1, 1]} : vector<128x96xf32> to vector<128x8xf32>
      %cst_34 = arith.constant 0.353553385 : f32
      %97 = vector.broadcast %cst_34 : f32 to vector<128x8xf32>
      %98 = arith.mulf %96, %97 : vector<128x8xf32>
      %99 = arith.truncf %98 : vector<128x8xf32> to vector<128x8xbf16>
      %100 = vector.extract_strided_slice %51 {offsets = [0, 48], sizes = [128, 8], strides = [1, 1]} : vector<128x96xf32> to vector<128x8xf32>
      %101 = arith.truncf %100 : vector<128x8xf32> to vector<128x8xbf16>
      %102 = vector.extract_strided_slice %51 {offsets = [0, 80], sizes = [128, 8], strides = [1, 1]} : vector<128x96xf32> to vector<128x8xf32>
      %103 = arith.truncf %102 : vector<128x8xf32> to vector<128x8xbf16>
      %cst_35 = arith.constant dense<0.000000e+00> : vector<128x128xf32>
      %104 = tpu.matmul %99, %101, %cst_35 {dimension_numbers = #tpu.dot_dimension_numbers<[1], [1], [0], [0], [0, 0, 1, 0], [], []>} : vector<128x8xbf16>, vector<128x8xbf16>, vector<128x128xf32> -> vector<128x128xf32>
      %105 = arith.addf %104, %10 : vector<128x128xf32>
      %cst_36 = arith.constant dense<0xFF800000> : vector<128xf32>
      %106 = vector.multi_reduction <maximumf>, %105, %cst_36 [1] : vector<128x128xf32> to vector<128xf32>
      %107 = vector.shape_cast %106 : vector<128xf32> to vector<128x1xf32>
      %108 = vector.broadcast %107 : vector<128x1xf32> to vector<128x128xf32>
      %109 = arith.subf %105, %108 : vector<128x128xf32>
      %110 = math.exp %109 : vector<128x128xf32>
      %cst_37 = arith.constant dense<0.000000e+00> : vector<128xf32>
      %111 = vector.multi_reduction <add>, %110, %cst_37 [1] : vector<128x128xf32> to vector<128xf32>
      %112 = vector.shape_cast %111 : vector<128xf32> to vector<128x1xf32>
      %113 = tpu.reciprocal %112 : vector<128x1xf32> -> vector<128x1xf32>
      %114 = vector.broadcast %113 : vector<128x1xf32> to vector<128x128xf32>
      %115 = arith.mulf %110, %114 : vector<128x128xf32>
      %116 = arith.truncf %115 : vector<128x128xf32> to vector<128x128xbf16>
      %cst_38 = arith.constant dense<0.000000e+00> : vector<128x8xf32>
      %117 = tpu.matmul %116, %103, %cst_38 {dimension_numbers = #tpu.dot_dimension_numbers<[1], [0], [0], [1], [0, 0, 1, 1], [], []>} : vector<128x128xbf16>, vector<128x8xbf16>, vector<128x8xf32> -> vector<128x8xf32>
      %118 = vector.extract_strided_slice %51 {offsets = [0, 24], sizes = [128, 8], strides = [1, 1]} : vector<128x96xf32> to vector<128x8xf32>
      %cst_39 = arith.constant 0.353553385 : f32
      %119 = vector.broadcast %cst_39 : f32 to vector<128x8xf32>
      %120 = arith.mulf %118, %119 : vector<128x8xf32>
      %121 = arith.truncf %120 : vector<128x8xf32> to vector<128x8xbf16>
      %122 = vector.extract_strided_slice %51 {offsets = [0, 56], sizes = [128, 8], strides = [1, 1]} : vector<128x96xf32> to vector<128x8xf32>
      %123 = arith.truncf %122 : vector<128x8xf32> to vector<128x8xbf16>
      %124 = vector.extract_strided_slice %51 {offsets = [0, 88], sizes = [128, 8], strides = [1, 1]} : vector<128x96xf32> to vector<128x8xf32>
      %125 = arith.truncf %124 : vector<128x8xf32> to vector<128x8xbf16>
      %cst_40 = arith.constant dense<0.000000e+00> : vector<128x128xf32>
      %126 = tpu.matmul %121, %123, %cst_40 {dimension_numbers = #tpu.dot_dimension_numbers<[1], [1], [0], [0], [0, 0, 1, 0], [], []>} : vector<128x8xbf16>, vector<128x8xbf16>, vector<128x128xf32> -> vector<128x128xf32>
      %127 = arith.addf %126, %10 : vector<128x128xf32>
      %cst_41 = arith.constant dense<0xFF800000> : vector<128xf32>
      %128 = vector.multi_reduction <maximumf>, %127, %cst_41 [1] : vector<128x128xf32> to vector<128xf32>
      %129 = vector.shape_cast %128 : vector<128xf32> to vector<128x1xf32>
      %130 = vector.broadcast %129 : vector<128x1xf32> to vector<128x128xf32>
      %131 = arith.subf %127, %130 : vector<128x128xf32>
      %132 = math.exp %131 : vector<128x128xf32>
      %cst_42 = arith.constant dense<0.000000e+00> : vector<128xf32>
      %133 = vector.multi_reduction <add>, %132, %cst_42 [1] : vector<128x128xf32> to vector<128xf32>
      %134 = vector.shape_cast %133 : vector<128xf32> to vector<128x1xf32>
      %135 = tpu.reciprocal %134 : vector<128x1xf32> -> vector<128x1xf32>
      %136 = vector.broadcast %135 : vector<128x1xf32> to vector<128x128xf32>
      %137 = arith.mulf %132, %136 : vector<128x128xf32>
      %138 = arith.truncf %137 : vector<128x128xf32> to vector<128x128xbf16>
      %cst_43 = arith.constant dense<0.000000e+00> : vector<128x8xf32>
      %139 = tpu.matmul %138, %125, %cst_43 {dimension_numbers = #tpu.dot_dimension_numbers<[1], [0], [0], [1], [0, 0, 1, 1], [], []>} : vector<128x128xbf16>, vector<128x8xbf16>, vector<128x8xf32> -> vector<128x8xf32>
      %140 = tpu.concatenate %73, %95, %117, %139 in 1 : vector<128x8xf32>, vector<128x8xf32>, vector<128x8xf32>, vector<128x8xf32> -> vector<128x32xf32>
      %141 = arith.truncf %140 : vector<128x32xf32> to vector<128x32xbf16>
      %142 = arith.index_cast %arg16 : i32 to index
      %c0_44 = arith.constant 0 : index
      %c0_45 = arith.constant 0 : index
      %143 = vector.load %arg7[%142, %c0_44, %c0_45] : memref<12x32x32xbf16, #tpu.memory_space<vmem>>, vector<1x32x32xbf16>
      %144 = vector.shape_cast %143 : vector<1x32x32xbf16> to vector<32x32xbf16>
      %cst_46 = arith.constant dense<0.000000e+00> : vector<128x32xf32>
      %145 = tpu.matmul %141, %144, %cst_46 {dimension_numbers = #tpu.dot_dimension_numbers<[1], [0], [0], [1], [0, 0, 1, 1], [], []>} : vector<128x32xbf16>, vector<32x32xbf16>, vector<128x32xf32> -> vector<128x32xf32>
      %146 = arith.index_cast %arg16 : i32 to index
      %c0_47 = arith.constant 0 : index
      %c0_48 = arith.constant 0 : index
      %147 = vector.load %arg8[%146, %c0_47, %c0_48] : memref<12x1x32xf32, #tpu.memory_space<vmem>>, vector<1x1x32xf32>
      %148 = vector.shape_cast %147 : vector<1x1x32xf32> to vector<1x32xf32>
      %149 = vector.broadcast %148 : vector<1x32xf32> to vector<128x32xf32>
      %150 = arith.addf %145, %149 : vector<128x32xf32>
      %151 = arith.addf %arg17, %150 : vector<128x32xf32>
      %152 = arith.index_cast %arg16 : i32 to index
      %c0_49 = arith.constant 0 : index
      %c0_50 = arith.constant 0 : index
      %153 = vector.load %arg9[%152, %c0_49, %c0_50] : memref<12x1x32xf32, #tpu.memory_space<vmem>>, vector<1x1x32xf32>
      %154 = vector.shape_cast %153 : vector<1x1x32xf32> to vector<1x32xf32>
      %155 = arith.index_cast %arg16 : i32 to index
      %c0_51 = arith.constant 0 : index
      %c0_52 = arith.constant 0 : index
      %156 = vector.load %arg10[%155, %c0_51, %c0_52] : memref<12x1x32xf32, #tpu.memory_space<vmem>>, vector<1x1x32xf32>
      %157 = vector.shape_cast %156 : vector<1x1x32xf32> to vector<1x32xf32>
      %cst_53 = arith.constant dense<0.000000e+00> : vector<128xf32>
      %158 = vector.multi_reduction <add>, %151, %cst_53 [1] : vector<128x32xf32> to vector<128xf32>
      %159 = vector.shape_cast %158 : vector<128xf32> to vector<128x1xf32>
      %cst_54 = arith.constant 3.200000e+01 : f32
      %160 = vector.broadcast %cst_54 : f32 to vector<128x1xf32>
      %161 = arith.divf %159, %160 : vector<128x1xf32>
      %162 = vector.broadcast %161 : vector<128x1xf32> to vector<128x32xf32>
      %163 = arith.subf %151, %162 : vector<128x32xf32>
      %164 = arith.mulf %163, %163 : vector<128x32xf32>
      %cst_55 = arith.constant dense<0.000000e+00> : vector<128xf32>
      %165 = vector.multi_reduction <add>, %164, %cst_55 [1] : vector<128x32xf32> to vector<128xf32>
      %166 = vector.shape_cast %165 : vector<128xf32> to vector<128x1xf32>
      %cst_56 = arith.constant 3.200000e+01 : f32
      %167 = vector.broadcast %cst_56 : f32 to vector<128x1xf32>
      %168 = arith.divf %166, %167 : vector<128x1xf32>
      %cst_57 = arith.constant 9.99999997E-7 : f32
      %169 = vector.broadcast %cst_57 : f32 to vector<128x1xf32>
      %170 = arith.addf %168, %169 : vector<128x1xf32>
      %171 = math.rsqrt %170 : vector<128x1xf32>
      %172 = vector.broadcast %171 : vector<128x1xf32> to vector<128x32xf32>
      %173 = arith.mulf %163, %172 : vector<128x32xf32>
      %174 = vector.broadcast %154 : vector<1x32xf32> to vector<128x32xf32>
      %175 = arith.mulf %173, %174 : vector<128x32xf32>
      %176 = vector.broadcast %157 : vector<1x32xf32> to vector<128x32xf32>
      %177 = arith.addf %175, %176 : vector<128x32xf32>
      %178 = arith.truncf %177 : vector<128x32xf32> to vector<128x32xbf16>
      %179 = arith.index_cast %arg16 : i32 to index
      %c0_58 = arith.constant 0 : index
      %c0_59 = arith.constant 0 : index
      %180 = vector.load %arg11[%179, %c0_58, %c0_59] : memref<12x32x128xbf16, #tpu.memory_space<vmem>>, vector<1x32x128xbf16>
      %181 = vector.shape_cast %180 : vector<1x32x128xbf16> to vector<32x128xbf16>
      %cst_60 = arith.constant dense<0.000000e+00> : vector<128x128xf32>
      %182 = tpu.matmul %178, %181, %cst_60 {dimension_numbers = #tpu.dot_dimension_numbers<[1], [0], [0], [1], [0, 0, 1, 1], [], []>} : vector<128x32xbf16>, vector<32x128xbf16>, vector<128x128xf32> -> vector<128x128xf32>
      %183 = arith.index_cast %arg16 : i32 to index
      %c0_61 = arith.constant 0 : index
      %c0_62 = arith.constant 0 : index
      %184 = vector.load %arg12[%183, %c0_61, %c0_62] : memref<12x1x128xf32, #tpu.memory_space<vmem>>, vector<1x1x128xf32>
      %185 = vector.shape_cast %184 : vector<1x1x128xf32> to vector<1x128xf32>
      %186 = vector.broadcast %185 : vector<1x128xf32> to vector<128x128xf32>
      %187 = arith.addf %182, %186 : vector<128x128xf32>
      %cst_63 = arith.constant 5.000000e-01 : f32
      %188 = vector.broadcast %cst_63 : f32 to vector<128x128xf32>
      %189 = arith.mulf %188, %187 : vector<128x128xf32>
      %cst_64 = arith.constant 4.471500e-02 : f32
      %190 = vector.broadcast %cst_64 : f32 to vector<128x128xf32>
      %191 = arith.mulf %190, %187 : vector<128x128xf32>
      %192 = arith.mulf %191, %187 : vector<128x128xf32>
      %193 = arith.mulf %192, %187 : vector<128x128xf32>
      %194 = arith.addf %187, %193 : vector<128x128xf32>
      %cst_65 = arith.constant 0.797884583 : f32
      %195 = vector.broadcast %cst_65 : f32 to vector<128x128xf32>
      %196 = arith.mulf %195, %194 : vector<128x128xf32>
      %197 = math.tanh %196 : vector<128x128xf32>
      %cst_66 = arith.constant 1.000000e+00 : f32
      %198 = vector.broadcast %cst_66 : f32 to vector<128x128xf32>
      %199 = arith.addf %198, %197 : vector<128x128xf32>
      %200 = arith.mulf %189, %199 : vector<128x128xf32>
      %201 = arith.truncf %200 : vector<128x128xf32> to vector<128x128xbf16>
      %202 = arith.index_cast %arg16 : i32 to index
      %c0_67 = arith.constant 0 : index
      %c0_68 = arith.constant 0 : index
      %203 = vector.load %arg13[%202, %c0_67, %c0_68] : memref<12x128x32xbf16, #tpu.memory_space<vmem>>, vector<1x128x32xbf16>
      %204 = vector.shape_cast %203 : vector<1x128x32xbf16> to vector<128x32xbf16>
      %cst_69 = arith.constant dense<0.000000e+00> : vector<128x32xf32>
      %205 = tpu.matmul %201, %204, %cst_69 {dimension_numbers = #tpu.dot_dimension_numbers<[1], [0], [0], [1], [0, 0, 1, 1], [], []>} : vector<128x128xbf16>, vector<128x32xbf16>, vector<128x32xf32> -> vector<128x32xf32>
      %206 = arith.index_cast %arg16 : i32 to index
      %c0_70 = arith.constant 0 : index
      %c0_71 = arith.constant 0 : index
      %207 = vector.load %arg14[%206, %c0_70, %c0_71] : memref<12x1x32xf32, #tpu.memory_space<vmem>>, vector<1x1x32xf32>
      %208 = vector.shape_cast %207 : vector<1x1x32xf32> to vector<1x32xf32>
      %209 = vector.broadcast %208 : vector<1x32xf32> to vector<128x32xf32>
      %210 = arith.addf %205, %209 : vector<128x32xf32>
      %211 = arith.addf %151, %210 : vector<128x32xf32>
      scf.yield %211 : vector<128x32xf32>
    }
    %c12_i32_6 = arith.constant 12 : i32
    %c0_7 = arith.constant 0 : index
    %c0_8 = arith.constant 0 : index
    %c0_9 = arith.constant 0 : index
    %13 = vector.load %arg15[%c0_7, %c0_8, %c0_9] : memref<1x128x32xf32, #tpu.memory_space<vmem>>, vector<1x128x32xf32>
    %14 = vector.shape_cast %13 : vector<1x128x32xf32> to vector<128x32xf32>
    %15 = vector.shape_cast %12 : vector<128x32xf32> to vector<1x128x32xf32>
    tpu.vector_store %arg15[%c0_7, %c0_8, %c0_9], %15 {strides = array<i32>} : memref<1x128x32xf32, #tpu.memory_space<vmem>>, vector<1x128x32xf32>,
    return
  }
  func.func @transform_0(%arg0: i32) -> (i32, i32, i32) {
    %c0_i32 = arith.constant 0 : i32
    %c0_i32_0 = arith.constant 0 : i32
    %c0_i32_1 = arith.constant 0 : i32
    return %arg0, %c0_i32, %c0_i32_0 : i32, i32, i32
  }
  func.func @transform_1(%arg0: i32) -> (i32, i32, i32) {
    %c0_i32 = arith.constant 0 : i32
    %c0_i32_0 = arith.constant 0 : i32
    %c0_i32_1 = arith.constant 0 : i32
    %c0_i32_2 = arith.constant 0 : i32
    return %c0_i32, %c0_i32_0, %c0_i32_1 : i32, i32, i32
  }
  func.func @transform_2(%arg0: i32) -> (i32, i32, i32) {
    %c0_i32 = arith.constant 0 : i32
    %c0_i32_0 = arith.constant 0 : i32
    %c0_i32_1 = arith.constant 0 : i32
    %c0_i32_2 = arith.constant 0 : i32
    return %c0_i32, %c0_i32_0, %c0_i32_1 : i32, i32, i32
  }
  func.func @transform_3(%arg0: i32) -> (i32, i32, i32) {
    %c0_i32 = arith.constant 0 : i32
    %c0_i32_0 = arith.constant 0 : i32
    %c0_i32_1 = arith.constant 0 : i32
    %c0_i32_2 = arith.constant 0 : i32
    return %c0_i32, %c0_i32_0, %c0_i32_1 : i32, i32, i32
  }
  func.func @transform_4(%arg0: i32) -> (i32, i32, i32) {
    %c0_i32 = arith.constant 0 : i32
    %c0_i32_0 = arith.constant 0 : i32
    %c0_i32_1 = arith.constant 0 : i32
    %c0_i32_2 = arith.constant 0 : i32
    return %c0_i32, %c0_i32_0, %c0_i32_1 : i32, i32, i32
  }
  func.func @transform_5(%arg0: i32) -> (i32, i32, i32) {
    %c0_i32 = arith.constant 0 : i32
    %c0_i32_0 = arith.constant 0 : i32
    %c0_i32_1 = arith.constant 0 : i32
    %c0_i32_2 = arith.constant 0 : i32
    return %c0_i32, %c0_i32_0, %c0_i32_1 : i32, i32, i32
  }
  func.func @transform_6(%arg0: i32) -> (i32, i32, i32) {
    %c0_i32 = arith.constant 0 : i32
    %c0_i32_0 = arith.constant 0 : i32
    %c0_i32_1 = arith.constant 0 : i32
    %c0_i32_2 = arith.constant 0 : i32
    return %c0_i32, %c0_i32_0, %c0_i32_1 : i32, i32, i32
  }
  func.func @transform_7(%arg0: i32) -> (i32, i32, i32) {
    %c0_i32 = arith.constant 0 : i32
    %c0_i32_0 = arith.constant 0 : i32
    %c0_i32_1 = arith.constant 0 : i32
    %c0_i32_2 = arith.constant 0 : i32
    return %c0_i32, %c0_i32_0, %c0_i32_1 : i32, i32, i32
  }
  func.func @transform_8(%arg0: i32) -> (i32, i32, i32) {
    %c0_i32 = arith.constant 0 : i32
    %c0_i32_0 = arith.constant 0 : i32
    %c0_i32_1 = arith.constant 0 : i32
    %c0_i32_2 = arith.constant 0 : i32
    return %c0_i32, %c0_i32_0, %c0_i32_1 : i32, i32, i32
  }
  func.func @transform_9(%arg0: i32) -> (i32, i32, i32) {
    %c0_i32 = arith.constant 0 : i32
    %c0_i32_0 = arith.constant 0 : i32
    %c0_i32_1 = arith.constant 0 : i32
    %c0_i32_2 = arith.constant 0 : i32
    return %c0_i32, %c0_i32_0, %c0_i32_1 : i32, i32, i32
  }
  func.func @transform_10(%arg0: i32) -> (i32, i32, i32) {
    %c0_i32 = arith.constant 0 : i32
    %c0_i32_0 = arith.constant 0 : i32
    %c0_i32_1 = arith.constant 0 : i32
    %c0_i32_2 = arith.constant 0 : i32
    return %c0_i32, %c0_i32_0, %c0_i32_1 : i32, i32, i32
  }
  func.func @transform_11(%arg0: i32) -> (i32, i32, i32) {
    %c0_i32 = arith.constant 0 : i32
    %c0_i32_0 = arith.constant 0 : i32
    %c0_i32_1 = arith.constant 0 : i32
    %c0_i32_2 = arith.constant 0 : i32
    return %c0_i32, %c0_i32_0, %c0_i32_1 : i32, i32, i32
  }
  func.func @transform_12(%arg0: i32) -> (i32, i32, i32) {
    %c0_i32 = arith.constant 0 : i32
    %c0_i32_0 = arith.constant 0 : i32
    %c0_i32_1 = arith.constant 0 : i32
    %c0_i32_2 = arith.constant 0 : i32
    return %c0_i32, %c0_i32_0, %c0_i32_1 : i32, i32, i32
  }
  func.func @transform_13(%arg0: i32) -> (i32, i32, i32) {
    %c0_i32 = arith.constant 0 : i32
    %c0_i32_0 = arith.constant 0 : i32
    %c0_i32_1 = arith.constant 0 : i32
    %c0_i32_2 = arith.constant 0 : i32
    return %c0_i32, %c0_i32_0, %c0_i32_1 : i32, i32, i32
  }
  func.func @transform_14(%arg0: i32) -> (i32, i32, i32) {
    %c0_i32 = arith.constant 0 : i32
    %c0_i32_0 = arith.constant 0 : i32
    %c0_i32_1 = arith.constant 0 : i32
    return %arg0, %c0_i32, %c0_i32_0 : i32, i32, i32
  }
}

module attributes {stable_mosaic.version = 11 : i64} {
  func.func @_ech_kernel(%arg0: i32, %arg1: memref<1x128x32xf32, #tpu.memory_space<vmem>>, %arg2: memref<128x512xbf16, #tpu.memory_space<vmem>>, %arg3: memref<64x288xbf16, #tpu.memory_space<vmem>>, %arg4: memref<64x1xf32, #tpu.memory_space<vmem>>, %arg5: memref<64x1xf32, #tpu.memory_space<vmem>>, %arg6: memref<64x576xbf16, #tpu.memory_space<vmem>>, %arg7: memref<64x1xf32, #tpu.memory_space<vmem>>, %arg8: memref<64x1xf32, #tpu.memory_space<vmem>>, %arg9: memref<64x4xf32, #tpu.memory_space<vmem>>, %arg10: memref<1x64x128xf32, #tpu.memory_space<vmem>>) attributes {dimension_semantics = [#tpu.dimension_semantics<parallel>], iteration_bounds = array<i64: 2>, scalar_prefetch = 0 : i64, scratch_operands = 0 : i64, tpu.core_type = #tpu.core_type<tc>, window_params = [{transform_indices = @transform_0, window_bounds = array<i64: 1, 128, 32>}, {pipeline_mode = #tpu.pipeline_mode<synchronous>, transform_indices = @transform_1, window_bounds = array<i64: 128, 512>}, {pipeline_mode = #tpu.pipeline_mode<synchronous>, transform_indices = @transform_2, window_bounds = array<i64: 64, 288>}, {pipeline_mode = #tpu.pipeline_mode<synchronous>, transform_indices = @transform_3, window_bounds = array<i64: 64, 1>}, {pipeline_mode = #tpu.pipeline_mode<synchronous>, transform_indices = @transform_4, window_bounds = array<i64: 64, 1>}, {pipeline_mode = #tpu.pipeline_mode<synchronous>, transform_indices = @transform_5, window_bounds = array<i64: 64, 576>}, {pipeline_mode = #tpu.pipeline_mode<synchronous>, transform_indices = @transform_6, window_bounds = array<i64: 64, 1>}, {pipeline_mode = #tpu.pipeline_mode<synchronous>, transform_indices = @transform_7, window_bounds = array<i64: 64, 1>}, {pipeline_mode = #tpu.pipeline_mode<synchronous>, transform_indices = @transform_8, window_bounds = array<i64: 64, 4>}, {transform_indices = @transform_9, window_bounds = array<i64: 1, 64, 128>}]} {
    %c0 = arith.constant 0 : index
    %c0_0 = arith.constant 0 : index
    %c0_1 = arith.constant 0 : index
    %0 = vector.load %arg1[%c0, %c0_0, %c0_1] : memref<1x128x32xf32, #tpu.memory_space<vmem>>, vector<1x128x32xf32>
    %1 = vector.shape_cast %0 : vector<1x128x32xf32> to vector<128x32xf32>
    %2 = arith.truncf %1 : vector<128x32xf32> to vector<128x32xbf16>
    %c0_2 = arith.constant 0 : index
    %c0_3 = arith.constant 0 : index
    %3 = vector.load %arg2[%c0_2, %c0_3] : memref<128x512xbf16, #tpu.memory_space<vmem>>, vector<128x512xbf16>
    %cst = arith.constant dense<0.000000e+00> : vector<32x512xf32>
    %4 = tpu.matmul %2, %3, %cst {dimension_numbers = #tpu.dot_dimension_numbers<[0], [0], [1], [1], [0, 1, 1, 1], [], []>} : vector<128x32xbf16>, vector<128x512xbf16>, vector<32x512xf32> -> vector<32x512xf32>
    %c0_4 = arith.constant 0 : index
    %c0_5 = arith.constant 0 : index
    %5 = vector.load %arg4[%c0_4, %c0_5] : memref<64x1xf32, #tpu.memory_space<vmem>>, vector<64x1xf32>
    %c0_6 = arith.constant 0 : index
    %c0_7 = arith.constant 0 : index
    %6 = vector.load %arg5[%c0_6, %c0_7] : memref<64x1xf32, #tpu.memory_space<vmem>>, vector<64x1xf32>
    %7 = tpu.iota {dimensions = array<i32: 1>} : vector<1x512xi32>
    %c128_i32 = arith.constant 128 : i32
    %c0_i32 = arith.constant 0 : i32
    %8 = arith.cmpi eq, %c128_i32, %c0_i32 : i32
    %c1_i32 = arith.constant 1 : i32
    %9 = arith.select %8, %c1_i32, %c128_i32 : i32
    %10 = vector.broadcast %9 : i32 to vector<1x512xi32>
    %11 = arith.remsi %7, %10 : vector<1x512xi32>
    %c0_i32_8 = arith.constant 0 : i32
    %12 = vector.broadcast %c0_i32_8 : i32 to vector<1x512xi32>
    %13 = arith.cmpi ne, %11, %12 : vector<1x512xi32>
    %c0_i32_9 = arith.constant 0 : i32
    %14 = vector.broadcast %c0_i32_9 : i32 to vector<1x512xi32>
    %15 = arith.cmpi slt, %11, %14 : vector<1x512xi32>
    %c0_i32_10 = arith.constant 0 : i32
    %16 = arith.cmpi slt, %9, %c0_i32_10 : i32
    %17 = vector.broadcast %16 : i1 to vector<1x512xi1>
    %18 = vector.broadcast %17 : vector<1x512xi1> to vector<1x512xi1>
    %19 = arith.xori %15, %18 : vector<1x512xi1>
    %20 = arith.andi %19, %13 : vector<1x512xi1>
    %21 = vector.broadcast %9 : i32 to vector<1x512xi32>
    %22 = arith.addi %11, %21 : vector<1x512xi32>
    %23 = arith.select %20, %22, %11 : vector<1x512xi1>, vector<1x512xi32>
    %c129_i32 = arith.constant 129 : i32
    %24 = tpu.dynamic_rotate %4 by %c129_i32 dim 1 : vector<32x512xf32>, i32 -> vector<32x512xf32>
    %c-1_i32 = arith.constant -1 : i32
    %25 = vector.broadcast %c-1_i32 : i32 to vector<1x512xi32>
    %26 = arith.addi %23, %25 : vector<1x512xi32>
    %c0_i32_11 = arith.constant 0 : i32
    %27 = vector.broadcast %c0_i32_11 : i32 to vector<1x512xi32>
    %28 = arith.cmpi sge, %26, %27 : vector<1x512xi32>
    %c-1_i32_12 = arith.constant -1 : i32
    %29 = vector.broadcast %c-1_i32_12 : i32 to vector<1x512xi32>
    %30 = arith.addi %23, %29 : vector<1x512xi32>
    %c128_i32_13 = arith.constant 128 : i32
    %31 = vector.broadcast %c128_i32_13 : i32 to vector<1x512xi32>
    %32 = arith.cmpi slt, %30, %31 : vector<1x512xi32>
    %33 = arith.andi %28, %32 : vector<1x512xi1>
    %c-129_i32 = arith.constant -129 : i32
    %34 = vector.broadcast %c-129_i32 : i32 to vector<1x512xi32>
    %35 = arith.addi %7, %34 : vector<1x512xi32>
    %c0_i32_14 = arith.constant 0 : i32
    %36 = vector.broadcast %c0_i32_14 : i32 to vector<1x512xi32>
    %37 = arith.cmpi sge, %35, %36 : vector<1x512xi32>
    %38 = arith.andi %33, %37 : vector<1x512xi1>
    %c-129_i32_15 = arith.constant -129 : i32
    %39 = vector.broadcast %c-129_i32_15 : i32 to vector<1x512xi32>
    %40 = arith.addi %7, %39 : vector<1x512xi32>
    %c512_i32 = arith.constant 512 : i32
    %41 = vector.broadcast %c512_i32 : i32 to vector<1x512xi32>
    %42 = arith.cmpi slt, %40, %41 : vector<1x512xi32>
    %43 = arith.andi %38, %42 : vector<1x512xi1>
    %cst_16 = arith.constant 0.000000e+00 : f32
    %44 = vector.shape_cast %43 : vector<1x512xi1> to vector<1x512xi1>
    %45 = vector.broadcast %44 : vector<1x512xi1> to vector<32x512xi1>
    %46 = vector.broadcast %cst_16 : f32 to vector<32x512xf32>
    %47 = arith.select %45, %24, %46 : vector<32x512xi1>, vector<32x512xf32>
    %48 = arith.truncf %47 : vector<32x512xf32> to vector<32x512xbf16>
    %c128_i32_17 = arith.constant 128 : i32
    %49 = tpu.dynamic_rotate %4 by %c128_i32_17 dim 1 : vector<32x512xf32>, i32 -> vector<32x512xf32>
    %c0_i32_18 = arith.constant 0 : i32
    %50 = vector.broadcast %c0_i32_18 : i32 to vector<1x512xi32>
    %51 = arith.addi %23, %50 : vector<1x512xi32>
    %c0_i32_19 = arith.constant 0 : i32
    %52 = vector.broadcast %c0_i32_19 : i32 to vector<1x512xi32>
    %53 = arith.cmpi sge, %51, %52 : vector<1x512xi32>
    %c0_i32_20 = arith.constant 0 : i32
    %54 = vector.broadcast %c0_i32_20 : i32 to vector<1x512xi32>
    %55 = arith.addi %23, %54 : vector<1x512xi32>
    %c128_i32_21 = arith.constant 128 : i32
    %56 = vector.broadcast %c128_i32_21 : i32 to vector<1x512xi32>
    %57 = arith.cmpi slt, %55, %56 : vector<1x512xi32>
    %58 = arith.andi %53, %57 : vector<1x512xi1>
    %c-128_i32 = arith.constant -128 : i32
    %59 = vector.broadcast %c-128_i32 : i32 to vector<1x512xi32>
    %60 = arith.addi %7, %59 : vector<1x512xi32>
    %c0_i32_22 = arith.constant 0 : i32
    %61 = vector.broadcast %c0_i32_22 : i32 to vector<1x512xi32>
    %62 = arith.cmpi sge, %60, %61 : vector<1x512xi32>
    %63 = arith.andi %58, %62 : vector<1x512xi1>
    %c-128_i32_23 = arith.constant -128 : i32
    %64 = vector.broadcast %c-128_i32_23 : i32 to vector<1x512xi32>
    %65 = arith.addi %7, %64 : vector<1x512xi32>
    %c512_i32_24 = arith.constant 512 : i32
    %66 = vector.broadcast %c512_i32_24 : i32 to vector<1x512xi32>
    %67 = arith.cmpi slt, %65, %66 : vector<1x512xi32>
    %68 = arith.andi %63, %67 : vector<1x512xi1>
    %cst_25 = arith.constant 0.000000e+00 : f32
    %69 = vector.shape_cast %68 : vector<1x512xi1> to vector<1x512xi1>
    %70 = vector.broadcast %69 : vector<1x512xi1> to vector<32x512xi1>
    %71 = vector.broadcast %cst_25 : f32 to vector<32x512xf32>
    %72 = arith.select %70, %49, %71 : vector<32x512xi1>, vector<32x512xf32>
    %73 = arith.truncf %72 : vector<32x512xf32> to vector<32x512xbf16>
    %c127_i32 = arith.constant 127 : i32
    %74 = tpu.dynamic_rotate %4 by %c127_i32 dim 1 : vector<32x512xf32>, i32 -> vector<32x512xf32>
    %c1_i32_26 = arith.constant 1 : i32
    %75 = vector.broadcast %c1_i32_26 : i32 to vector<1x512xi32>
    %76 = arith.addi %23, %75 : vector<1x512xi32>
    %c0_i32_27 = arith.constant 0 : i32
    %77 = vector.broadcast %c0_i32_27 : i32 to vector<1x512xi32>
    %78 = arith.cmpi sge, %76, %77 : vector<1x512xi32>
    %c1_i32_28 = arith.constant 1 : i32
    %79 = vector.broadcast %c1_i32_28 : i32 to vector<1x512xi32>
    %80 = arith.addi %23, %79 : vector<1x512xi32>
    %c128_i32_29 = arith.constant 128 : i32
    %81 = vector.broadcast %c128_i32_29 : i32 to vector<1x512xi32>
    %82 = arith.cmpi slt, %80, %81 : vector<1x512xi32>
    %83 = arith.andi %78, %82 : vector<1x512xi1>
    %c-127_i32 = arith.constant -127 : i32
    %84 = vector.broadcast %c-127_i32 : i32 to vector<1x512xi32>
    %85 = arith.addi %7, %84 : vector<1x512xi32>
    %c0_i32_30 = arith.constant 0 : i32
    %86 = vector.broadcast %c0_i32_30 : i32 to vector<1x512xi32>
    %87 = arith.cmpi sge, %85, %86 : vector<1x512xi32>
    %88 = arith.andi %83, %87 : vector<1x512xi1>
    %c-127_i32_31 = arith.constant -127 : i32
    %89 = vector.broadcast %c-127_i32_31 : i32 to vector<1x512xi32>
    %90 = arith.addi %7, %89 : vector<1x512xi32>
    %c512_i32_32 = arith.constant 512 : i32
    %91 = vector.broadcast %c512_i32_32 : i32 to vector<1x512xi32>
    %92 = arith.cmpi slt, %90, %91 : vector<1x512xi32>
    %93 = arith.andi %88, %92 : vector<1x512xi1>
    %cst_33 = arith.constant 0.000000e+00 : f32
    %94 = vector.shape_cast %93 : vector<1x512xi1> to vector<1x512xi1>
    %95 = vector.broadcast %94 : vector<1x512xi1> to vector<32x512xi1>
    %96 = vector.broadcast %cst_33 : f32 to vector<32x512xf32>
    %97 = arith.select %95, %74, %96 : vector<32x512xi1>, vector<32x512xf32>
    %98 = arith.truncf %97 : vector<32x512xf32> to vector<32x512xbf16>
    %c1_i32_34 = arith.constant 1 : i32
    %99 = tpu.dynamic_rotate %4 by %c1_i32_34 dim 1 : vector<32x512xf32>, i32 -> vector<32x512xf32>
    %c-1_i32_35 = arith.constant -1 : i32
    %100 = vector.broadcast %c-1_i32_35 : i32 to vector<1x512xi32>
    %101 = arith.addi %23, %100 : vector<1x512xi32>
    %c0_i32_36 = arith.constant 0 : i32
    %102 = vector.broadcast %c0_i32_36 : i32 to vector<1x512xi32>
    %103 = arith.cmpi sge, %101, %102 : vector<1x512xi32>
    %c-1_i32_37 = arith.constant -1 : i32
    %104 = vector.broadcast %c-1_i32_37 : i32 to vector<1x512xi32>
    %105 = arith.addi %23, %104 : vector<1x512xi32>
    %c128_i32_38 = arith.constant 128 : i32
    %106 = vector.broadcast %c128_i32_38 : i32 to vector<1x512xi32>
    %107 = arith.cmpi slt, %105, %106 : vector<1x512xi32>
    %108 = arith.andi %103, %107 : vector<1x512xi1>
    %c-1_i32_39 = arith.constant -1 : i32
    %109 = vector.broadcast %c-1_i32_39 : i32 to vector<1x512xi32>
    %110 = arith.addi %7, %109 : vector<1x512xi32>
    %c0_i32_40 = arith.constant 0 : i32
    %111 = vector.broadcast %c0_i32_40 : i32 to vector<1x512xi32>
    %112 = arith.cmpi sge, %110, %111 : vector<1x512xi32>
    %113 = arith.andi %108, %112 : vector<1x512xi1>
    %c-1_i32_41 = arith.constant -1 : i32
    %114 = vector.broadcast %c-1_i32_41 : i32 to vector<1x512xi32>
    %115 = arith.addi %7, %114 : vector<1x512xi32>
    %c512_i32_42 = arith.constant 512 : i32
    %116 = vector.broadcast %c512_i32_42 : i32 to vector<1x512xi32>
    %117 = arith.cmpi slt, %115, %116 : vector<1x512xi32>
    %118 = arith.andi %113, %117 : vector<1x512xi1>
    %cst_43 = arith.constant 0.000000e+00 : f32
    %119 = vector.shape_cast %118 : vector<1x512xi1> to vector<1x512xi1>
    %120 = vector.broadcast %119 : vector<1x512xi1> to vector<32x512xi1>
    %121 = vector.broadcast %cst_43 : f32 to vector<32x512xf32>
    %122 = arith.select %120, %99, %121 : vector<32x512xi1>, vector<32x512xf32>
    %123 = arith.truncf %122 : vector<32x512xf32> to vector<32x512xbf16>
    %c0_i32_44 = arith.constant 0 : i32
    %124 = vector.broadcast %c0_i32_44 : i32 to vector<1x512xi32>
    %125 = arith.addi %23, %124 : vector<1x512xi32>
    %c0_i32_45 = arith.constant 0 : i32
    %126 = vector.broadcast %c0_i32_45 : i32 to vector<1x512xi32>
    %127 = arith.cmpi sge, %125, %126 : vector<1x512xi32>
    %c0_i32_46 = arith.constant 0 : i32
    %128 = vector.broadcast %c0_i32_46 : i32 to vector<1x512xi32>
    %129 = arith.addi %23, %128 : vector<1x512xi32>
    %c128_i32_47 = arith.constant 128 : i32
    %130 = vector.broadcast %c128_i32_47 : i32 to vector<1x512xi32>
    %131 = arith.cmpi slt, %129, %130 : vector<1x512xi32>
    %132 = arith.andi %127, %131 : vector<1x512xi1>
    %c0_i32_48 = arith.constant 0 : i32
    %133 = vector.broadcast %c0_i32_48 : i32 to vector<1x512xi32>
    %134 = arith.addi %7, %133 : vector<1x512xi32>
    %c0_i32_49 = arith.constant 0 : i32
    %135 = vector.broadcast %c0_i32_49 : i32 to vector<1x512xi32>
    %136 = arith.cmpi sge, %134, %135 : vector<1x512xi32>
    %137 = arith.andi %132, %136 : vector<1x512xi1>
    %c0_i32_50 = arith.constant 0 : i32
    %138 = vector.broadcast %c0_i32_50 : i32 to vector<1x512xi32>
    %139 = arith.addi %7, %138 : vector<1x512xi32>
    %c512_i32_51 = arith.constant 512 : i32
    %140 = vector.broadcast %c512_i32_51 : i32 to vector<1x512xi32>
    %141 = arith.cmpi slt, %139, %140 : vector<1x512xi32>
    %142 = arith.andi %137, %141 : vector<1x512xi1>
    %cst_52 = arith.constant 0.000000e+00 : f32
    %143 = vector.shape_cast %142 : vector<1x512xi1> to vector<1x512xi1>
    %144 = vector.broadcast %143 : vector<1x512xi1> to vector<32x512xi1>
    %145 = vector.broadcast %cst_52 : f32 to vector<32x512xf32>
    %146 = arith.select %144, %4, %145 : vector<32x512xi1>, vector<32x512xf32>
    %147 = arith.truncf %146 : vector<32x512xf32> to vector<32x512xbf16>
    %c511_i32 = arith.constant 511 : i32
    %148 = tpu.dynamic_rotate %4 by %c511_i32 dim 1 : vector<32x512xf32>, i32 -> vector<32x512xf32>
    %c1_i32_53 = arith.constant 1 : i32
    %149 = vector.broadcast %c1_i32_53 : i32 to vector<1x512xi32>
    %150 = arith.addi %23, %149 : vector<1x512xi32>
    %c0_i32_54 = arith.constant 0 : i32
    %151 = vector.broadcast %c0_i32_54 : i32 to vector<1x512xi32>
    %152 = arith.cmpi sge, %150, %151 : vector<1x512xi32>
    %c1_i32_55 = arith.constant 1 : i32
    %153 = vector.broadcast %c1_i32_55 : i32 to vector<1x512xi32>
    %154 = arith.addi %23, %153 : vector<1x512xi32>
    %c128_i32_56 = arith.constant 128 : i32
    %155 = vector.broadcast %c128_i32_56 : i32 to vector<1x512xi32>
    %156 = arith.cmpi slt, %154, %155 : vector<1x512xi32>
    %157 = arith.andi %152, %156 : vector<1x512xi1>
    %c1_i32_57 = arith.constant 1 : i32
    %158 = vector.broadcast %c1_i32_57 : i32 to vector<1x512xi32>
    %159 = arith.addi %7, %158 : vector<1x512xi32>
    %c0_i32_58 = arith.constant 0 : i32
    %160 = vector.broadcast %c0_i32_58 : i32 to vector<1x512xi32>
    %161 = arith.cmpi sge, %159, %160 : vector<1x512xi32>
    %162 = arith.andi %157, %161 : vector<1x512xi1>
    %c1_i32_59 = arith.constant 1 : i32
    %163 = vector.broadcast %c1_i32_59 : i32 to vector<1x512xi32>
    %164 = arith.addi %7, %163 : vector<1x512xi32>
    %c512_i32_60 = arith.constant 512 : i32
    %165 = vector.broadcast %c512_i32_60 : i32 to vector<1x512xi32>
    %166 = arith.cmpi slt, %164, %165 : vector<1x512xi32>
    %167 = arith.andi %162, %166 : vector<1x512xi1>
    %cst_61 = arith.constant 0.000000e+00 : f32
    %168 = vector.shape_cast %167 : vector<1x512xi1> to vector<1x512xi1>
    %169 = vector.broadcast %168 : vector<1x512xi1> to vector<32x512xi1>
    %170 = vector.broadcast %cst_61 : f32 to vector<32x512xf32>
    %171 = arith.select %169, %148, %170 : vector<32x512xi1>, vector<32x512xf32>
    %172 = arith.truncf %171 : vector<32x512xf32> to vector<32x512xbf16>
    %c385_i32 = arith.constant 385 : i32
    %173 = tpu.dynamic_rotate %4 by %c385_i32 dim 1 : vector<32x512xf32>, i32 -> vector<32x512xf32>
    %c-1_i32_62 = arith.constant -1 : i32
    %174 = vector.broadcast %c-1_i32_62 : i32 to vector<1x512xi32>
    %175 = arith.addi %23, %174 : vector<1x512xi32>
    %c0_i32_63 = arith.constant 0 : i32
    %176 = vector.broadcast %c0_i32_63 : i32 to vector<1x512xi32>
    %177 = arith.cmpi sge, %175, %176 : vector<1x512xi32>
    %c-1_i32_64 = arith.constant -1 : i32
    %178 = vector.broadcast %c-1_i32_64 : i32 to vector<1x512xi32>
    %179 = arith.addi %23, %178 : vector<1x512xi32>
    %c128_i32_65 = arith.constant 128 : i32
    %180 = vector.broadcast %c128_i32_65 : i32 to vector<1x512xi32>
    %181 = arith.cmpi slt, %179, %180 : vector<1x512xi32>
    %182 = arith.andi %177, %181 : vector<1x512xi1>
    %c127_i32_66 = arith.constant 127 : i32
    %183 = vector.broadcast %c127_i32_66 : i32 to vector<1x512xi32>
    %184 = arith.addi %7, %183 : vector<1x512xi32>
    %c0_i32_67 = arith.constant 0 : i32
    %185 = vector.broadcast %c0_i32_67 : i32 to vector<1x512xi32>
    %186 = arith.cmpi sge, %184, %185 : vector<1x512xi32>
    %187 = arith.andi %182, %186 : vector<1x512xi1>
    %c127_i32_68 = arith.constant 127 : i32
    %188 = vector.broadcast %c127_i32_68 : i32 to vector<1x512xi32>
    %189 = arith.addi %7, %188 : vector<1x512xi32>
    %c512_i32_69 = arith.constant 512 : i32
    %190 = vector.broadcast %c512_i32_69 : i32 to vector<1x512xi32>
    %191 = arith.cmpi slt, %189, %190 : vector<1x512xi32>
    %192 = arith.andi %187, %191 : vector<1x512xi1>
    %cst_70 = arith.constant 0.000000e+00 : f32
    %193 = vector.shape_cast %192 : vector<1x512xi1> to vector<1x512xi1>
    %194 = vector.broadcast %193 : vector<1x512xi1> to vector<32x512xi1>
    %195 = vector.broadcast %cst_70 : f32 to vector<32x512xf32>
    %196 = arith.select %194, %173, %195 : vector<32x512xi1>, vector<32x512xf32>
    %197 = arith.truncf %196 : vector<32x512xf32> to vector<32x512xbf16>
    %c384_i32 = arith.constant 384 : i32
    %198 = tpu.dynamic_rotate %4 by %c384_i32 dim 1 : vector<32x512xf32>, i32 -> vector<32x512xf32>
    %c0_i32_71 = arith.constant 0 : i32
    %199 = vector.broadcast %c0_i32_71 : i32 to vector<1x512xi32>
    %200 = arith.addi %23, %199 : vector<1x512xi32>
    %c0_i32_72 = arith.constant 0 : i32
    %201 = vector.broadcast %c0_i32_72 : i32 to vector<1x512xi32>
    %202 = arith.cmpi sge, %200, %201 : vector<1x512xi32>
    %c0_i32_73 = arith.constant 0 : i32
    %203 = vector.broadcast %c0_i32_73 : i32 to vector<1x512xi32>
    %204 = arith.addi %23, %203 : vector<1x512xi32>
    %c128_i32_74 = arith.constant 128 : i32
    %205 = vector.broadcast %c128_i32_74 : i32 to vector<1x512xi32>
    %206 = arith.cmpi slt, %204, %205 : vector<1x512xi32>
    %207 = arith.andi %202, %206 : vector<1x512xi1>
    %c128_i32_75 = arith.constant 128 : i32
    %208 = vector.broadcast %c128_i32_75 : i32 to vector<1x512xi32>
    %209 = arith.addi %7, %208 : vector<1x512xi32>
    %c0_i32_76 = arith.constant 0 : i32
    %210 = vector.broadcast %c0_i32_76 : i32 to vector<1x512xi32>
    %211 = arith.cmpi sge, %209, %210 : vector<1x512xi32>
    %212 = arith.andi %207, %211 : vector<1x512xi1>
    %c128_i32_77 = arith.constant 128 : i32
    %213 = vector.broadcast %c128_i32_77 : i32 to vector<1x512xi32>
    %214 = arith.addi %7, %213 : vector<1x512xi32>
    %c512_i32_78 = arith.constant 512 : i32
    %215 = vector.broadcast %c512_i32_78 : i32 to vector<1x512xi32>
    %216 = arith.cmpi slt, %214, %215 : vector<1x512xi32>
    %217 = arith.andi %212, %216 : vector<1x512xi1>
    %cst_79 = arith.constant 0.000000e+00 : f32
    %218 = vector.shape_cast %217 : vector<1x512xi1> to vector<1x512xi1>
    %219 = vector.broadcast %218 : vector<1x512xi1> to vector<32x512xi1>
    %220 = vector.broadcast %cst_79 : f32 to vector<32x512xf32>
    %221 = arith.select %219, %198, %220 : vector<32x512xi1>, vector<32x512xf32>
    %222 = arith.truncf %221 : vector<32x512xf32> to vector<32x512xbf16>
    %c383_i32 = arith.constant 383 : i32
    %223 = tpu.dynamic_rotate %4 by %c383_i32 dim 1 : vector<32x512xf32>, i32 -> vector<32x512xf32>
    %c1_i32_80 = arith.constant 1 : i32
    %224 = vector.broadcast %c1_i32_80 : i32 to vector<1x512xi32>
    %225 = arith.addi %23, %224 : vector<1x512xi32>
    %c0_i32_81 = arith.constant 0 : i32
    %226 = vector.broadcast %c0_i32_81 : i32 to vector<1x512xi32>
    %227 = arith.cmpi sge, %225, %226 : vector<1x512xi32>
    %c1_i32_82 = arith.constant 1 : i32
    %228 = vector.broadcast %c1_i32_82 : i32 to vector<1x512xi32>
    %229 = arith.addi %23, %228 : vector<1x512xi32>
    %c128_i32_83 = arith.constant 128 : i32
    %230 = vector.broadcast %c128_i32_83 : i32 to vector<1x512xi32>
    %231 = arith.cmpi slt, %229, %230 : vector<1x512xi32>
    %232 = arith.andi %227, %231 : vector<1x512xi1>
    %c129_i32_84 = arith.constant 129 : i32
    %233 = vector.broadcast %c129_i32_84 : i32 to vector<1x512xi32>
    %234 = arith.addi %7, %233 : vector<1x512xi32>
    %c0_i32_85 = arith.constant 0 : i32
    %235 = vector.broadcast %c0_i32_85 : i32 to vector<1x512xi32>
    %236 = arith.cmpi sge, %234, %235 : vector<1x512xi32>
    %237 = arith.andi %232, %236 : vector<1x512xi1>
    %c129_i32_86 = arith.constant 129 : i32
    %238 = vector.broadcast %c129_i32_86 : i32 to vector<1x512xi32>
    %239 = arith.addi %7, %238 : vector<1x512xi32>
    %c512_i32_87 = arith.constant 512 : i32
    %240 = vector.broadcast %c512_i32_87 : i32 to vector<1x512xi32>
    %241 = arith.cmpi slt, %239, %240 : vector<1x512xi32>
    %242 = arith.andi %237, %241 : vector<1x512xi1>
    %cst_88 = arith.constant 0.000000e+00 : f32
    %243 = vector.shape_cast %242 : vector<1x512xi1> to vector<1x512xi1>
    %244 = vector.broadcast %243 : vector<1x512xi1> to vector<32x512xi1>
    %245 = vector.broadcast %cst_88 : f32 to vector<32x512xf32>
    %246 = arith.select %244, %223, %245 : vector<32x512xi1>, vector<32x512xf32>
    %247 = arith.truncf %246 : vector<32x512xf32> to vector<32x512xbf16>
    %248 = tpu.concatenate %48, %73, %98, %123, %147, %172, %197, %222, %247 in 0 : vector<32x512xbf16>, vector<32x512xbf16>, vector<32x512xbf16>, vector<32x512xbf16>, vector<32x512xbf16>, vector<32x512xbf16>, vector<32x512xbf16>, vector<32x512xbf16>, vector<32x512xbf16> -> vector<288x512xbf16>
    %c0_89 = arith.constant 0 : index
    %c0_90 = arith.constant 0 : index
    %249 = vector.load %arg3[%c0_89, %c0_90] : memref<64x288xbf16, #tpu.memory_space<vmem>>, vector<64x288xbf16>
    %cst_91 = arith.constant dense<0.000000e+00> : vector<64x512xf32>
    %250 = tpu.matmul %249, %248, %cst_91 {dimension_numbers = #tpu.dot_dimension_numbers<[1], [0], [0], [1], [0, 0, 1, 1], [], []>} : vector<64x288xbf16>, vector<288x512xbf16>, vector<64x512xf32> -> vector<64x512xf32>
    %251 = vector.broadcast %5 : vector<64x1xf32> to vector<64x512xf32>
    %252 = arith.mulf %250, %251 : vector<64x512xf32>
    %253 = vector.broadcast %6 : vector<64x1xf32> to vector<64x512xf32>
    %254 = arith.addf %252, %253 : vector<64x512xf32>
    %cst_92 = arith.constant 0.000000e+00 : f32
    %255 = vector.broadcast %cst_92 : f32 to vector<64x512xf32>
    %256 = arith.maximumf %254, %255 : vector<64x512xf32>
    %c0_93 = arith.constant 0 : index
    %c0_94 = arith.constant 0 : index
    %257 = vector.load %arg7[%c0_93, %c0_94] : memref<64x1xf32, #tpu.memory_space<vmem>>, vector<64x1xf32>
    %c0_95 = arith.constant 0 : index
    %c0_96 = arith.constant 0 : index
    %258 = vector.load %arg8[%c0_95, %c0_96] : memref<64x1xf32, #tpu.memory_space<vmem>>, vector<64x1xf32>
    %259 = tpu.iota {dimensions = array<i32: 1>} : vector<1x512xi32>
    %c128_i32_97 = arith.constant 128 : i32
    %c0_i32_98 = arith.constant 0 : i32
    %260 = arith.cmpi eq, %c128_i32_97, %c0_i32_98 : i32
    %c1_i32_99 = arith.constant 1 : i32
    %261 = arith.select %260, %c1_i32_99, %c128_i32_97 : i32
    %262 = vector.broadcast %261 : i32 to vector<1x512xi32>
    %263 = arith.remsi %259, %262 : vector<1x512xi32>
    %c0_i32_100 = arith.constant 0 : i32
    %264 = vector.broadcast %c0_i32_100 : i32 to vector<1x512xi32>
    %265 = arith.cmpi ne, %263, %264 : vector<1x512xi32>
    %c0_i32_101 = arith.constant 0 : i32
    %266 = vector.broadcast %c0_i32_101 : i32 to vector<1x512xi32>
    %267 = arith.cmpi slt, %263, %266 : vector<1x512xi32>
    %c0_i32_102 = arith.constant 0 : i32
    %268 = arith.cmpi slt, %261, %c0_i32_102 : i32
    %269 = vector.broadcast %268 : i1 to vector<1x512xi1>
    %270 = vector.broadcast %269 : vector<1x512xi1> to vector<1x512xi1>
    %271 = arith.xori %267, %270 : vector<1x512xi1>
    %272 = arith.andi %271, %265 : vector<1x512xi1>
    %273 = vector.broadcast %261 : i32 to vector<1x512xi32>
    %274 = arith.addi %263, %273 : vector<1x512xi32>
    %275 = arith.select %272, %274, %263 : vector<1x512xi1>, vector<1x512xi32>
    %c129_i32_103 = arith.constant 129 : i32
    %276 = tpu.dynamic_rotate %256 by %c129_i32_103 dim 1 : vector<64x512xf32>, i32 -> vector<64x512xf32>
    %c-1_i32_104 = arith.constant -1 : i32
    %277 = vector.broadcast %c-1_i32_104 : i32 to vector<1x512xi32>
    %278 = arith.addi %275, %277 : vector<1x512xi32>
    %c0_i32_105 = arith.constant 0 : i32
    %279 = vector.broadcast %c0_i32_105 : i32 to vector<1x512xi32>
    %280 = arith.cmpi sge, %278, %279 : vector<1x512xi32>
    %c-1_i32_106 = arith.constant -1 : i32
    %281 = vector.broadcast %c-1_i32_106 : i32 to vector<1x512xi32>
    %282 = arith.addi %275, %281 : vector<1x512xi32>
    %c128_i32_107 = arith.constant 128 : i32
    %283 = vector.broadcast %c128_i32_107 : i32 to vector<1x512xi32>
    %284 = arith.cmpi slt, %282, %283 : vector<1x512xi32>
    %285 = arith.andi %280, %284 : vector<1x512xi1>
    %c-129_i32_108 = arith.constant -129 : i32
    %286 = vector.broadcast %c-129_i32_108 : i32 to vector<1x512xi32>
    %287 = arith.addi %259, %286 : vector<1x512xi32>
    %c0_i32_109 = arith.constant 0 : i32
    %288 = vector.broadcast %c0_i32_109 : i32 to vector<1x512xi32>
    %289 = arith.cmpi sge, %287, %288 : vector<1x512xi32>
    %290 = arith.andi %285, %289 : vector<1x512xi1>
    %c-129_i32_110 = arith.constant -129 : i32
    %291 = vector.broadcast %c-129_i32_110 : i32 to vector<1x512xi32>
    %292 = arith.addi %259, %291 : vector<1x512xi32>
    %c512_i32_111 = arith.constant 512 : i32
    %293 = vector.broadcast %c512_i32_111 : i32 to vector<1x512xi32>
    %294 = arith.cmpi slt, %292, %293 : vector<1x512xi32>
    %295 = arith.andi %290, %294 : vector<1x512xi1>
    %cst_112 = arith.constant 0.000000e+00 : f32
    %296 = vector.shape_cast %295 : vector<1x512xi1> to vector<1x512xi1>
    %297 = vector.broadcast %296 : vector<1x512xi1> to vector<64x512xi1>
    %298 = vector.broadcast %cst_112 : f32 to vector<64x512xf32>
    %299 = arith.select %297, %276, %298 : vector<64x512xi1>, vector<64x512xf32>
    %300 = arith.truncf %299 : vector<64x512xf32> to vector<64x512xbf16>
    %c128_i32_113 = arith.constant 128 : i32
    %301 = tpu.dynamic_rotate %256 by %c128_i32_113 dim 1 : vector<64x512xf32>, i32 -> vector<64x512xf32>
    %c0_i32_114 = arith.constant 0 : i32
    %302 = vector.broadcast %c0_i32_114 : i32 to vector<1x512xi32>
    %303 = arith.addi %275, %302 : vector<1x512xi32>
    %c0_i32_115 = arith.constant 0 : i32
    %304 = vector.broadcast %c0_i32_115 : i32 to vector<1x512xi32>
    %305 = arith.cmpi sge, %303, %304 : vector<1x512xi32>
    %c0_i32_116 = arith.constant 0 : i32
    %306 = vector.broadcast %c0_i32_116 : i32 to vector<1x512xi32>
    %307 = arith.addi %275, %306 : vector<1x512xi32>
    %c128_i32_117 = arith.constant 128 : i32
    %308 = vector.broadcast %c128_i32_117 : i32 to vector<1x512xi32>
    %309 = arith.cmpi slt, %307, %308 : vector<1x512xi32>
    %310 = arith.andi %305, %309 : vector<1x512xi1>
    %c-128_i32_118 = arith.constant -128 : i32
    %311 = vector.broadcast %c-128_i32_118 : i32 to vector<1x512xi32>
    %312 = arith.addi %259, %311 : vector<1x512xi32>
    %c0_i32_119 = arith.constant 0 : i32
    %313 = vector.broadcast %c0_i32_119 : i32 to vector<1x512xi32>
    %314 = arith.cmpi sge, %312, %313 : vector<1x512xi32>
    %315 = arith.andi %310, %314 : vector<1x512xi1>
    %c-128_i32_120 = arith.constant -128 : i32
    %316 = vector.broadcast %c-128_i32_120 : i32 to vector<1x512xi32>
    %317 = arith.addi %259, %316 : vector<1x512xi32>
    %c512_i32_121 = arith.constant 512 : i32
    %318 = vector.broadcast %c512_i32_121 : i32 to vector<1x512xi32>
    %319 = arith.cmpi slt, %317, %318 : vector<1x512xi32>
    %320 = arith.andi %315, %319 : vector<1x512xi1>
    %cst_122 = arith.constant 0.000000e+00 : f32
    %321 = vector.shape_cast %320 : vector<1x512xi1> to vector<1x512xi1>
    %322 = vector.broadcast %321 : vector<1x512xi1> to vector<64x512xi1>
    %323 = vector.broadcast %cst_122 : f32 to vector<64x512xf32>
    %324 = arith.select %322, %301, %323 : vector<64x512xi1>, vector<64x512xf32>
    %325 = arith.truncf %324 : vector<64x512xf32> to vector<64x512xbf16>
    %c127_i32_123 = arith.constant 127 : i32
    %326 = tpu.dynamic_rotate %256 by %c127_i32_123 dim 1 : vector<64x512xf32>, i32 -> vector<64x512xf32>
    %c1_i32_124 = arith.constant 1 : i32
    %327 = vector.broadcast %c1_i32_124 : i32 to vector<1x512xi32>
    %328 = arith.addi %275, %327 : vector<1x512xi32>
    %c0_i32_125 = arith.constant 0 : i32
    %329 = vector.broadcast %c0_i32_125 : i32 to vector<1x512xi32>
    %330 = arith.cmpi sge, %328, %329 : vector<1x512xi32>
    %c1_i32_126 = arith.constant 1 : i32
    %331 = vector.broadcast %c1_i32_126 : i32 to vector<1x512xi32>
    %332 = arith.addi %275, %331 : vector<1x512xi32>
    %c128_i32_127 = arith.constant 128 : i32
    %333 = vector.broadcast %c128_i32_127 : i32 to vector<1x512xi32>
    %334 = arith.cmpi slt, %332, %333 : vector<1x512xi32>
    %335 = arith.andi %330, %334 : vector<1x512xi1>
    %c-127_i32_128 = arith.constant -127 : i32
    %336 = vector.broadcast %c-127_i32_128 : i32 to vector<1x512xi32>
    %337 = arith.addi %259, %336 : vector<1x512xi32>
    %c0_i32_129 = arith.constant 0 : i32
    %338 = vector.broadcast %c0_i32_129 : i32 to vector<1x512xi32>
    %339 = arith.cmpi sge, %337, %338 : vector<1x512xi32>
    %340 = arith.andi %335, %339 : vector<1x512xi1>
    %c-127_i32_130 = arith.constant -127 : i32
    %341 = vector.broadcast %c-127_i32_130 : i32 to vector<1x512xi32>
    %342 = arith.addi %259, %341 : vector<1x512xi32>
    %c512_i32_131 = arith.constant 512 : i32
    %343 = vector.broadcast %c512_i32_131 : i32 to vector<1x512xi32>
    %344 = arith.cmpi slt, %342, %343 : vector<1x512xi32>
    %345 = arith.andi %340, %344 : vector<1x512xi1>
    %cst_132 = arith.constant 0.000000e+00 : f32
    %346 = vector.shape_cast %345 : vector<1x512xi1> to vector<1x512xi1>
    %347 = vector.broadcast %346 : vector<1x512xi1> to vector<64x512xi1>
    %348 = vector.broadcast %cst_132 : f32 to vector<64x512xf32>
    %349 = arith.select %347, %326, %348 : vector<64x512xi1>, vector<64x512xf32>
    %350 = arith.truncf %349 : vector<64x512xf32> to vector<64x512xbf16>
    %c1_i32_133 = arith.constant 1 : i32
    %351 = tpu.dynamic_rotate %256 by %c1_i32_133 dim 1 : vector<64x512xf32>, i32 -> vector<64x512xf32>
    %c-1_i32_134 = arith.constant -1 : i32
    %352 = vector.broadcast %c-1_i32_134 : i32 to vector<1x512xi32>
    %353 = arith.addi %275, %352 : vector<1x512xi32>
    %c0_i32_135 = arith.constant 0 : i32
    %354 = vector.broadcast %c0_i32_135 : i32 to vector<1x512xi32>
    %355 = arith.cmpi sge, %353, %354 : vector<1x512xi32>
    %c-1_i32_136 = arith.constant -1 : i32
    %356 = vector.broadcast %c-1_i32_136 : i32 to vector<1x512xi32>
    %357 = arith.addi %275, %356 : vector<1x512xi32>
    %c128_i32_137 = arith.constant 128 : i32
    %358 = vector.broadcast %c128_i32_137 : i32 to vector<1x512xi32>
    %359 = arith.cmpi slt, %357, %358 : vector<1x512xi32>
    %360 = arith.andi %355, %359 : vector<1x512xi1>
    %c-1_i32_138 = arith.constant -1 : i32
    %361 = vector.broadcast %c-1_i32_138 : i32 to vector<1x512xi32>
    %362 = arith.addi %259, %361 : vector<1x512xi32>
    %c0_i32_139 = arith.constant 0 : i32
    %363 = vector.broadcast %c0_i32_139 : i32 to vector<1x512xi32>
    %364 = arith.cmpi sge, %362, %363 : vector<1x512xi32>
    %365 = arith.andi %360, %364 : vector<1x512xi1>
    %c-1_i32_140 = arith.constant -1 : i32
    %366 = vector.broadcast %c-1_i32_140 : i32 to vector<1x512xi32>
    %367 = arith.addi %259, %366 : vector<1x512xi32>
    %c512_i32_141 = arith.constant 512 : i32
    %368 = vector.broadcast %c512_i32_141 : i32 to vector<1x512xi32>
    %369 = arith.cmpi slt, %367, %368 : vector<1x512xi32>
    %370 = arith.andi %365, %369 : vector<1x512xi1>
    %cst_142 = arith.constant 0.000000e+00 : f32
    %371 = vector.shape_cast %370 : vector<1x512xi1> to vector<1x512xi1>
    %372 = vector.broadcast %371 : vector<1x512xi1> to vector<64x512xi1>
    %373 = vector.broadcast %cst_142 : f32 to vector<64x512xf32>
    %374 = arith.select %372, %351, %373 : vector<64x512xi1>, vector<64x512xf32>
    %375 = arith.truncf %374 : vector<64x512xf32> to vector<64x512xbf16>
    %c0_i32_143 = arith.constant 0 : i32
    %376 = vector.broadcast %c0_i32_143 : i32 to vector<1x512xi32>
    %377 = arith.addi %275, %376 : vector<1x512xi32>
    %c0_i32_144 = arith.constant 0 : i32
    %378 = vector.broadcast %c0_i32_144 : i32 to vector<1x512xi32>
    %379 = arith.cmpi sge, %377, %378 : vector<1x512xi32>
    %c0_i32_145 = arith.constant 0 : i32
    %380 = vector.broadcast %c0_i32_145 : i32 to vector<1x512xi32>
    %381 = arith.addi %275, %380 : vector<1x512xi32>
    %c128_i32_146 = arith.constant 128 : i32
    %382 = vector.broadcast %c128_i32_146 : i32 to vector<1x512xi32>
    %383 = arith.cmpi slt, %381, %382 : vector<1x512xi32>
    %384 = arith.andi %379, %383 : vector<1x512xi1>
    %c0_i32_147 = arith.constant 0 : i32
    %385 = vector.broadcast %c0_i32_147 : i32 to vector<1x512xi32>
    %386 = arith.addi %259, %385 : vector<1x512xi32>
    %c0_i32_148 = arith.constant 0 : i32
    %387 = vector.broadcast %c0_i32_148 : i32 to vector<1x512xi32>
    %388 = arith.cmpi sge, %386, %387 : vector<1x512xi32>
    %389 = arith.andi %384, %388 : vector<1x512xi1>
    %c0_i32_149 = arith.constant 0 : i32
    %390 = vector.broadcast %c0_i32_149 : i32 to vector<1x512xi32>
    %391 = arith.addi %259, %390 : vector<1x512xi32>
    %c512_i32_150 = arith.constant 512 : i32
    %392 = vector.broadcast %c512_i32_150 : i32 to vector<1x512xi32>
    %393 = arith.cmpi slt, %391, %392 : vector<1x512xi32>
    %394 = arith.andi %389, %393 : vector<1x512xi1>
    %cst_151 = arith.constant 0.000000e+00 : f32
    %395 = vector.shape_cast %394 : vector<1x512xi1> to vector<1x512xi1>
    %396 = vector.broadcast %395 : vector<1x512xi1> to vector<64x512xi1>
    %397 = vector.broadcast %cst_151 : f32 to vector<64x512xf32>
    %398 = arith.select %396, %256, %397 : vector<64x512xi1>, vector<64x512xf32>
    %399 = arith.truncf %398 : vector<64x512xf32> to vector<64x512xbf16>
    %c511_i32_152 = arith.constant 511 : i32
    %400 = tpu.dynamic_rotate %256 by %c511_i32_152 dim 1 : vector<64x512xf32>, i32 -> vector<64x512xf32>
    %c1_i32_153 = arith.constant 1 : i32
    %401 = vector.broadcast %c1_i32_153 : i32 to vector<1x512xi32>
    %402 = arith.addi %275, %401 : vector<1x512xi32>
    %c0_i32_154 = arith.constant 0 : i32
    %403 = vector.broadcast %c0_i32_154 : i32 to vector<1x512xi32>
    %404 = arith.cmpi sge, %402, %403 : vector<1x512xi32>
    %c1_i32_155 = arith.constant 1 : i32
    %405 = vector.broadcast %c1_i32_155 : i32 to vector<1x512xi32>
    %406 = arith.addi %275, %405 : vector<1x512xi32>
    %c128_i32_156 = arith.constant 128 : i32
    %407 = vector.broadcast %c128_i32_156 : i32 to vector<1x512xi32>
    %408 = arith.cmpi slt, %406, %407 : vector<1x512xi32>
    %409 = arith.andi %404, %408 : vector<1x512xi1>
    %c1_i32_157 = arith.constant 1 : i32
    %410 = vector.broadcast %c1_i32_157 : i32 to vector<1x512xi32>
    %411 = arith.addi %259, %410 : vector<1x512xi32>
    %c0_i32_158 = arith.constant 0 : i32
    %412 = vector.broadcast %c0_i32_158 : i32 to vector<1x512xi32>
    %413 = arith.cmpi sge, %411, %412 : vector<1x512xi32>
    %414 = arith.andi %409, %413 : vector<1x512xi1>
    %c1_i32_159 = arith.constant 1 : i32
    %415 = vector.broadcast %c1_i32_159 : i32 to vector<1x512xi32>
    %416 = arith.addi %259, %415 : vector<1x512xi32>
    %c512_i32_160 = arith.constant 512 : i32
    %417 = vector.broadcast %c512_i32_160 : i32 to vector<1x512xi32>
    %418 = arith.cmpi slt, %416, %417 : vector<1x512xi32>
    %419 = arith.andi %414, %418 : vector<1x512xi1>
    %cst_161 = arith.constant 0.000000e+00 : f32
    %420 = vector.shape_cast %419 : vector<1x512xi1> to vector<1x512xi1>
    %421 = vector.broadcast %420 : vector<1x512xi1> to vector<64x512xi1>
    %422 = vector.broadcast %cst_161 : f32 to vector<64x512xf32>
    %423 = arith.select %421, %400, %422 : vector<64x512xi1>, vector<64x512xf32>
    %424 = arith.truncf %423 : vector<64x512xf32> to vector<64x512xbf16>
    %c385_i32_162 = arith.constant 385 : i32
    %425 = tpu.dynamic_rotate %256 by %c385_i32_162 dim 1 : vector<64x512xf32>, i32 -> vector<64x512xf32>
    %c-1_i32_163 = arith.constant -1 : i32
    %426 = vector.broadcast %c-1_i32_163 : i32 to vector<1x512xi32>
    %427 = arith.addi %275, %426 : vector<1x512xi32>
    %c0_i32_164 = arith.constant 0 : i32
    %428 = vector.broadcast %c0_i32_164 : i32 to vector<1x512xi32>
    %429 = arith.cmpi sge, %427, %428 : vector<1x512xi32>
    %c-1_i32_165 = arith.constant -1 : i32
    %430 = vector.broadcast %c-1_i32_165 : i32 to vector<1x512xi32>
    %431 = arith.addi %275, %430 : vector<1x512xi32>
    %c128_i32_166 = arith.constant 128 : i32
    %432 = vector.broadcast %c128_i32_166 : i32 to vector<1x512xi32>
    %433 = arith.cmpi slt, %431, %432 : vector<1x512xi32>
    %434 = arith.andi %429, %433 : vector<1x512xi1>
    %c127_i32_167 = arith.constant 127 : i32
    %435 = vector.broadcast %c127_i32_167 : i32 to vector<1x512xi32>
    %436 = arith.addi %259, %435 : vector<1x512xi32>
    %c0_i32_168 = arith.constant 0 : i32
    %437 = vector.broadcast %c0_i32_168 : i32 to vector<1x512xi32>
    %438 = arith.cmpi sge, %436, %437 : vector<1x512xi32>
    %439 = arith.andi %434, %438 : vector<1x512xi1>
    %c127_i32_169 = arith.constant 127 : i32
    %440 = vector.broadcast %c127_i32_169 : i32 to vector<1x512xi32>
    %441 = arith.addi %259, %440 : vector<1x512xi32>
    %c512_i32_170 = arith.constant 512 : i32
    %442 = vector.broadcast %c512_i32_170 : i32 to vector<1x512xi32>
    %443 = arith.cmpi slt, %441, %442 : vector<1x512xi32>
    %444 = arith.andi %439, %443 : vector<1x512xi1>
    %cst_171 = arith.constant 0.000000e+00 : f32
    %445 = vector.shape_cast %444 : vector<1x512xi1> to vector<1x512xi1>
    %446 = vector.broadcast %445 : vector<1x512xi1> to vector<64x512xi1>
    %447 = vector.broadcast %cst_171 : f32 to vector<64x512xf32>
    %448 = arith.select %446, %425, %447 : vector<64x512xi1>, vector<64x512xf32>
    %449 = arith.truncf %448 : vector<64x512xf32> to vector<64x512xbf16>
    %c384_i32_172 = arith.constant 384 : i32
    %450 = tpu.dynamic_rotate %256 by %c384_i32_172 dim 1 : vector<64x512xf32>, i32 -> vector<64x512xf32>
    %c0_i32_173 = arith.constant 0 : i32
    %451 = vector.broadcast %c0_i32_173 : i32 to vector<1x512xi32>
    %452 = arith.addi %275, %451 : vector<1x512xi32>
    %c0_i32_174 = arith.constant 0 : i32
    %453 = vector.broadcast %c0_i32_174 : i32 to vector<1x512xi32>
    %454 = arith.cmpi sge, %452, %453 : vector<1x512xi32>
    %c0_i32_175 = arith.constant 0 : i32
    %455 = vector.broadcast %c0_i32_175 : i32 to vector<1x512xi32>
    %456 = arith.addi %275, %455 : vector<1x512xi32>
    %c128_i32_176 = arith.constant 128 : i32
    %457 = vector.broadcast %c128_i32_176 : i32 to vector<1x512xi32>
    %458 = arith.cmpi slt, %456, %457 : vector<1x512xi32>
    %459 = arith.andi %454, %458 : vector<1x512xi1>
    %c128_i32_177 = arith.constant 128 : i32
    %460 = vector.broadcast %c128_i32_177 : i32 to vector<1x512xi32>
    %461 = arith.addi %259, %460 : vector<1x512xi32>
    %c0_i32_178 = arith.constant 0 : i32
    %462 = vector.broadcast %c0_i32_178 : i32 to vector<1x512xi32>
    %463 = arith.cmpi sge, %461, %462 : vector<1x512xi32>
    %464 = arith.andi %459, %463 : vector<1x512xi1>
    %c128_i32_179 = arith.constant 128 : i32
    %465 = vector.broadcast %c128_i32_179 : i32 to vector<1x512xi32>
    %466 = arith.addi %259, %465 : vector<1x512xi32>
    %c512_i32_180 = arith.constant 512 : i32
    %467 = vector.broadcast %c512_i32_180 : i32 to vector<1x512xi32>
    %468 = arith.cmpi slt, %466, %467 : vector<1x512xi32>
    %469 = arith.andi %464, %468 : vector<1x512xi1>
    %cst_181 = arith.constant 0.000000e+00 : f32
    %470 = vector.shape_cast %469 : vector<1x512xi1> to vector<1x512xi1>
    %471 = vector.broadcast %470 : vector<1x512xi1> to vector<64x512xi1>
    %472 = vector.broadcast %cst_181 : f32 to vector<64x512xf32>
    %473 = arith.select %471, %450, %472 : vector<64x512xi1>, vector<64x512xf32>
    %474 = arith.truncf %473 : vector<64x512xf32> to vector<64x512xbf16>
    %c383_i32_182 = arith.constant 383 : i32
    %475 = tpu.dynamic_rotate %256 by %c383_i32_182 dim 1 : vector<64x512xf32>, i32 -> vector<64x512xf32>
    %c1_i32_183 = arith.constant 1 : i32
    %476 = vector.broadcast %c1_i32_183 : i32 to vector<1x512xi32>
    %477 = arith.addi %275, %476 : vector<1x512xi32>
    %c0_i32_184 = arith.constant 0 : i32
    %478 = vector.broadcast %c0_i32_184 : i32 to vector<1x512xi32>
    %479 = arith.cmpi sge, %477, %478 : vector<1x512xi32>
    %c1_i32_185 = arith.constant 1 : i32
    %480 = vector.broadcast %c1_i32_185 : i32 to vector<1x512xi32>
    %481 = arith.addi %275, %480 : vector<1x512xi32>
    %c128_i32_186 = arith.constant 128 : i32
    %482 = vector.broadcast %c128_i32_186 : i32 to vector<1x512xi32>
    %483 = arith.cmpi slt, %481, %482 : vector<1x512xi32>
    %484 = arith.andi %479, %483 : vector<1x512xi1>
    %c129_i32_187 = arith.constant 129 : i32
    %485 = vector.broadcast %c129_i32_187 : i32 to vector<1x512xi32>
    %486 = arith.addi %259, %485 : vector<1x512xi32>
    %c0_i32_188 = arith.constant 0 : i32
    %487 = vector.broadcast %c0_i32_188 : i32 to vector<1x512xi32>
    %488 = arith.cmpi sge, %486, %487 : vector<1x512xi32>
    %489 = arith.andi %484, %488 : vector<1x512xi1>
    %c129_i32_189 = arith.constant 129 : i32
    %490 = vector.broadcast %c129_i32_189 : i32 to vector<1x512xi32>
    %491 = arith.addi %259, %490 : vector<1x512xi32>
    %c512_i32_190 = arith.constant 512 : i32
    %492 = vector.broadcast %c512_i32_190 : i32 to vector<1x512xi32>
    %493 = arith.cmpi slt, %491, %492 : vector<1x512xi32>
    %494 = arith.andi %489, %493 : vector<1x512xi1>
    %cst_191 = arith.constant 0.000000e+00 : f32
    %495 = vector.shape_cast %494 : vector<1x512xi1> to vector<1x512xi1>
    %496 = vector.broadcast %495 : vector<1x512xi1> to vector<64x512xi1>
    %497 = vector.broadcast %cst_191 : f32 to vector<64x512xf32>
    %498 = arith.select %496, %475, %497 : vector<64x512xi1>, vector<64x512xf32>
    %499 = arith.truncf %498 : vector<64x512xf32> to vector<64x512xbf16>
    %500 = tpu.concatenate %300, %325, %350, %375, %399, %424, %449, %474, %499 in 0 : vector<64x512xbf16>, vector<64x512xbf16>, vector<64x512xbf16>, vector<64x512xbf16>, vector<64x512xbf16>, vector<64x512xbf16>, vector<64x512xbf16>, vector<64x512xbf16>, vector<64x512xbf16> -> vector<576x512xbf16>
    %c0_192 = arith.constant 0 : index
    %c0_193 = arith.constant 0 : index
    %501 = vector.load %arg6[%c0_192, %c0_193] : memref<64x576xbf16, #tpu.memory_space<vmem>>, vector<64x576xbf16>
    %cst_194 = arith.constant dense<0.000000e+00> : vector<64x512xf32>
    %502 = tpu.matmul %501, %500, %cst_194 {dimension_numbers = #tpu.dot_dimension_numbers<[1], [0], [0], [1], [0, 0, 1, 1], [], []>} : vector<64x576xbf16>, vector<576x512xbf16>, vector<64x512xf32> -> vector<64x512xf32>
    %503 = vector.broadcast %257 : vector<64x1xf32> to vector<64x512xf32>
    %504 = arith.mulf %502, %503 : vector<64x512xf32>
    %505 = vector.broadcast %258 : vector<64x1xf32> to vector<64x512xf32>
    %506 = arith.addf %504, %505 : vector<64x512xf32>
    %cst_195 = arith.constant 0.000000e+00 : f32
    %507 = vector.broadcast %cst_195 : f32 to vector<64x512xf32>
    %508 = arith.maximumf %506, %507 : vector<64x512xf32>
    %c0_196 = arith.constant 0 : index
    %c0_197 = arith.constant 0 : index
    %509 = vector.load %arg9[%c0_196, %c0_197] : memref<64x4xf32, #tpu.memory_space<vmem>>, vector<64x4xf32>
    %cst_198 = arith.constant 0.000000e+00 : f32
    %510 = vector.broadcast %cst_198 : f32 to vector<64x128xf32>
    %511 = vector.extract_strided_slice %508 {offsets = [0, 0], sizes = [64, 128], strides = [1, 1]} : vector<64x512xf32> to vector<64x128xf32>
    %512 = vector.extract_strided_slice %509 {offsets = [0, 0], sizes = [64, 1], strides = [1, 1]} : vector<64x4xf32> to vector<64x1xf32>
    %513 = vector.broadcast %512 : vector<64x1xf32> to vector<64x128xf32>
    %514 = arith.mulf %511, %513 : vector<64x128xf32>
    %515 = arith.addf %510, %514 : vector<64x128xf32>
    %516 = vector.extract_strided_slice %508 {offsets = [0, 128], sizes = [64, 128], strides = [1, 1]} : vector<64x512xf32> to vector<64x128xf32>
    %517 = vector.extract_strided_slice %509 {offsets = [0, 1], sizes = [64, 1], strides = [1, 1]} : vector<64x4xf32> to vector<64x1xf32>
    %518 = vector.broadcast %517 : vector<64x1xf32> to vector<64x128xf32>
    %519 = arith.mulf %516, %518 : vector<64x128xf32>
    %520 = arith.addf %515, %519 : vector<64x128xf32>
    %521 = vector.extract_strided_slice %508 {offsets = [0, 256], sizes = [64, 128], strides = [1, 1]} : vector<64x512xf32> to vector<64x128xf32>
    %522 = vector.extract_strided_slice %509 {offsets = [0, 2], sizes = [64, 1], strides = [1, 1]} : vector<64x4xf32> to vector<64x1xf32>
    %523 = vector.broadcast %522 : vector<64x1xf32> to vector<64x128xf32>
    %524 = arith.mulf %521, %523 : vector<64x128xf32>
    %525 = arith.addf %520, %524 : vector<64x128xf32>
    %526 = vector.extract_strided_slice %508 {offsets = [0, 384], sizes = [64, 128], strides = [1, 1]} : vector<64x512xf32> to vector<64x128xf32>
    %527 = vector.extract_strided_slice %509 {offsets = [0, 3], sizes = [64, 1], strides = [1, 1]} : vector<64x4xf32> to vector<64x1xf32>
    %528 = vector.broadcast %527 : vector<64x1xf32> to vector<64x128xf32>
    %529 = arith.mulf %526, %528 : vector<64x128xf32>
    %530 = arith.addf %525, %529 : vector<64x128xf32>
    %c0_199 = arith.constant 0 : index
    %c0_200 = arith.constant 0 : index
    %c0_201 = arith.constant 0 : index
    %531 = vector.load %arg10[%c0_199, %c0_200, %c0_201] : memref<1x64x128xf32, #tpu.memory_space<vmem>>, vector<1x64x128xf32>
    %532 = vector.shape_cast %531 : vector<1x64x128xf32> to vector<64x128xf32>
    %533 = vector.shape_cast %530 : vector<64x128xf32> to vector<1x64x128xf32>
    tpu.vector_store %arg10[%c0_199, %c0_200, %c0_201], %533 {strides = array<i32>} : memref<1x64x128xf32, #tpu.memory_space<vmem>>, vector<1x64x128xf32>,
    return
  }
  func.func @transform_0(%arg0: i32) -> (i32, i32, i32) {
    %c0_i32 = arith.constant 0 : i32
    %c0_i32_0 = arith.constant 0 : i32
    %c0_i32_1 = arith.constant 0 : i32
    return %arg0, %c0_i32, %c0_i32_0 : i32, i32, i32
  }
  func.func @transform_1(%arg0: i32) -> (i32, i32) {
    %c0_i32 = arith.constant 0 : i32
    %c0_i32_0 = arith.constant 0 : i32
    %c0_i32_1 = arith.constant 0 : i32
    return %c0_i32, %c0_i32_0 : i32, i32
  }
  func.func @transform_2(%arg0: i32) -> (i32, i32) {
    %c0_i32 = arith.constant 0 : i32
    %c0_i32_0 = arith.constant 0 : i32
    %c0_i32_1 = arith.constant 0 : i32
    return %c0_i32, %c0_i32_0 : i32, i32
  }
  func.func @transform_3(%arg0: i32) -> (i32, i32) {
    %c0_i32 = arith.constant 0 : i32
    %c0_i32_0 = arith.constant 0 : i32
    %c0_i32_1 = arith.constant 0 : i32
    return %c0_i32, %c0_i32_0 : i32, i32
  }
  func.func @transform_4(%arg0: i32) -> (i32, i32) {
    %c0_i32 = arith.constant 0 : i32
    %c0_i32_0 = arith.constant 0 : i32
    %c0_i32_1 = arith.constant 0 : i32
    return %c0_i32, %c0_i32_0 : i32, i32
  }
  func.func @transform_5(%arg0: i32) -> (i32, i32) {
    %c0_i32 = arith.constant 0 : i32
    %c0_i32_0 = arith.constant 0 : i32
    %c0_i32_1 = arith.constant 0 : i32
    return %c0_i32, %c0_i32_0 : i32, i32
  }
  func.func @transform_6(%arg0: i32) -> (i32, i32) {
    %c0_i32 = arith.constant 0 : i32
    %c0_i32_0 = arith.constant 0 : i32
    %c0_i32_1 = arith.constant 0 : i32
    return %c0_i32, %c0_i32_0 : i32, i32
  }
  func.func @transform_7(%arg0: i32) -> (i32, i32) {
    %c0_i32 = arith.constant 0 : i32
    %c0_i32_0 = arith.constant 0 : i32
    %c0_i32_1 = arith.constant 0 : i32
    return %c0_i32, %c0_i32_0 : i32, i32
  }
  func.func @transform_8(%arg0: i32) -> (i32, i32) {
    %c0_i32 = arith.constant 0 : i32
    %c0_i32_0 = arith.constant 0 : i32
    %c0_i32_1 = arith.constant 0 : i32
    return %c0_i32, %c0_i32_0 : i32, i32
  }
  func.func @transform_9(%arg0: i32) -> (i32, i32, i32) {
    %c0_i32 = arith.constant 0 : i32
    %c0_i32_0 = arith.constant 0 : i32
    %c0_i32_1 = arith.constant 0 : i32
    return %arg0, %c0_i32, %c0_i32_0 : i32, i32, i32
  }
}

</mosaic_0001>

<bundles_post_ra>
// kernel: forward.2
= control target key start
LH: loop header
LB: loop body
LE: loop exit
PB: predicated region body
PF: predicated region fallthrough
CT: control target
= control target key end

     0   :  { %s5645_s29 = smov 0   ;;  %s7594_s0 = inlined_call_operand.vmem [shape: f32[2,128,32], index: 0, kind: input, shape index: {}]   ;;  %s7595_s1 = inlined_call_operand.vmem [shape: f32[1,128,32], index: 1, kind: input, shape index: {}]   ;;  %s7596_s2 = inlined_call_operand.vmem [shape: f32[12,1,32], index: 2, kind: input, shape index: {}]   ;;  %s7597_s3 = inlined_call_operand.vmem [shape: f32[12,1,32], index: 3, kind: input, shape index: {}]   ;;  %s7598_s4 = inlined_call_operand.vmem [shape: bf16[12,32,96], index: 4, kind: input, shape index: {}]   ;;  %s7599_s5 = inlined_call_operand.vmem [shape: f32[12,1,96], index: 5, kind: input, shape index: {}]   ;;  %s7600_s6 = inlined_call_operand.vmem [shape: bf16[12,32,32], index: 6, kind: input, shape index: {}]   ;;  %s7601_s7 = inlined_call_operand.vmem [shape: f32[12,1,32], index: 7, kind: input, shape index: {}]   ;;  %s7602_s8 = inlined_call_operand.vmem [shape: f32[12,1,32], index: 8, kind: input, shape index: {}]   ;;  %s7603_s9 = inlined_call_operand.vmem [shape: f32[12,1,32], index: 9, kind: input, shape index: {}]   ;;  %s7604_s10 = inlined_call_operand.vmem [shape: bf16[12,32,128], index: 10, kind: input, shape index: {}]   ;;  %s7605_s11 = inlined_call_operand.vmem [shape: f32[12,1,128], index: 11, kind: input, shape index: {}]   ;;  %s7606_s12 = inlined_call_operand.vmem [shape: bf16[12,128,32], index: 12, kind: input, shape index: {}]   ;;  %s7607_s13 = inlined_call_operand.vmem [shape: f32[12,1,32], index: 13, kind: input, shape index: {}]   ;;  %s7608_s14 = inlined_call_operand.vmem [shape: f32[2,128,32], index: 14, kind: output, shape index: {}]  }
   0x1 LB: > { %s4095_s30 = sadd.s32 4294967295, %s5485_s29   ;;  %p4099_p0 = scmp.ge.s32.totalorder %s5485_s29, 1  ;;  %s5485_s29 = sphi %s5645_s29, %s24_s29  }
   0x2   : > { %p412_p1 = scmp.lt.s32.totalorder %s5485_s29, 3 }
   0x4   : > { %p413_p2 = pnand %p4099_p0, %p412_p1 }
   0x5   : > { %p458_p3 = scmp.lt.s32.totalorder (!%p413_p2), %s4095_s30, 1  ;;  %v517_v0 = vlaneseq (!%p413_p2)  ;;  %v485_v1 = vld [vmem:[%s7595_s1] sm:$0xff] (!%p413_p2)  ;;  %v486_v2 = vld [vmem:[%s7595_s1 + $0x8] sm:$0xff] (!%p413_p2)  ;;  %v487_v3 = vld [vmem:[%s7595_s1 + $0x10] sm:$0xff] (!%p413_p2)  ;;  %v5555_v14 = vmov (!%p413_p2), -1e+09  }
   0x6   : > { %416 = sbr.rel (%p413_p2) target bundleno = 4570 (0x11da), region = 76  ;;  %v488_v5 = vld [vmem:[%s7595_s1 + $0x18] sm:$0xff] (!%p413_p2)  ;;  %v489_v6 = vld [vmem:[%s7595_s1 + $0x20] sm:$0xff] (!%p413_p2)  ;;  %v490_v7 = vld [vmem:[%s7595_s1 + $0x28] sm:$0xff] (!%p413_p2) }
   0x7   : > { %v518_v4 = vand.u32 (!%p413_p2), 127, %v517_v0  ;;  %v491_v8 = vld [vmem:[%s7595_s1 + $0x30] sm:$0xff] (!%p413_p2)  ;;  %v492_v9 = vld [vmem:[%s7595_s1 + $0x38] sm:$0xff] (!%p413_p2)  ;;  %v493_v10 = vld [vmem:[%s7595_s1 + $0x40] sm:$0xff] (!%p413_p2) }
   0x8   : > { %v494_v11 = vld [vmem:[%s7595_s1 + $0x48] sm:$0xff] (!%p413_p2)  ;;  %v495_v12 = vld [vmem:[%s7595_s1 + $0x50] sm:$0xff] (!%p413_p2)  ;;  %v496_v13 = vld [vmem:[%s7595_s1 + $0x58] sm:$0xff] (!%p413_p2) }
   0x9   : > { %vm519_vm0 = vcmp.lt.s32.totalorder (!%p413_p2), %v518_v4, 124  ;;  %v497_v19 = vld [vmem:[%s7595_s1 + $0x60] sm:$0xff] (!%p413_p2)  ;;  %v498_v20 = vld [vmem:[%s7595_s1 + $0x68] sm:$0xff] (!%p413_p2)  ;;  %v499_v21 = vld [vmem:[%s7595_s1 + $0x70] sm:$0xff] (!%p413_p2) }
   0xa   : > { %v5699_v15 = vsel (!%p413_p2), %vm519_vm0, 0.0, %v5555_v14  ;;  %v500_v25 = vld [vmem:[%s7595_s1 + $0x78] sm:$0xff] (!%p413_p2) }
   0xd   : > { %s7737_s30 = smov (!%p458_p3, %s4095_s30), 1 }
   0xe   : > { %s4190_s27 = sshll.u32 %s7737_s30, 7 }
   0xf   : > { %s5683_s22 = scalar_lea.vmem %s7594_s0, %s4190_s27  ;;  %s5688_s24 = scalar_lea.vmem %s7608_s14, %s4190_s27 }
  0x10   : > { %v469_v16 = vld [vmem:[%s5683_s22] sm:$0xff]  ;;  %v470_v17 = vld [vmem:[%s5683_s22 + $0x8] sm:$0xff]  ;;  %v471_v18 = vld [vmem:[%s5683_s22 + $0x10] sm:$0xff] }
  0x11   : > { %v472_v22 = vld [vmem:[%s5683_s22 + $0x18] sm:$0xff]  ;;  %v473_v23 = vld [vmem:[%s5683_s22 + $0x20] sm:$0xff]  ;;  %v474_v24 = vld [vmem:[%s5683_s22 + $0x28] sm:$0xff]  ;;  %v501_v26 = vadd.f32 %v485_v1, %v469_v16   ;;  %v502_v27 = vadd.f32 %v486_v2, %v470_v17   ;;  %v503_v28 = vadd.f32 %v487_v3, %v471_v18  }
  0x12   : > { %v475_v29 = vld [vmem:[%s5683_s22 + $0x30] sm:$0xff]  ;;  %v476_v30 = vld [vmem:[%s5683_s22 + $0x38] sm:$0xff]  ;;  %v477_v31 = vld [vmem:[%s5683_s22 + $0x40] sm:$0xff]  ;;  %v504_v32 = vadd.f32 %v488_v5, %v472_v22   ;;  %v505_v33 = vadd.f32 %v489_v6, %v473_v23   ;;  %v506_v34 = vadd.f32 %v490_v7, %v474_v24  }
  0x13   : > { %v478_v35 = vld [vmem:[%s5683_s22 + $0x48] sm:$0xff]  ;;  %v479_v36 = vld [vmem:[%s5683_s22 + $0x50] sm:$0xff]  ;;  %v480_v37 = vld [vmem:[%s5683_s22 + $0x58] sm:$0xff]  ;;  %v507_v38 = vadd.f32 %v491_v8, %v475_v29   ;;  %v508_v39 = vadd.f32 %v492_v9, %v476_v30   ;;  %v509_v40 = vadd.f32 %v493_v10, %v477_v31  }
  0x14   : > { %v481_v41 = vld [vmem:[%s5683_s22 + $0x60] sm:$0xff]  ;;  %v482_v42 = vld [vmem:[%s5683_s22 + $0x68] sm:$0xff]  ;;  %v483_v43 = vld [vmem:[%s5683_s22 + $0x70] sm:$0xff]  ;;  %v510_v44 = vadd.f32 %v494_v11, %v478_v35   ;;  %v511_v45 = vadd.f32 %v495_v12, %v479_v36   ;;  %v512_v46 = vadd.f32 %v496_v13, %v480_v37  }
  0x15   : > { %v484_v47 = vld [vmem:[%s5683_s22 + $0x78] sm:$0xff]  ;;  %v513_v48 = vadd.f32 %v497_v19, %v481_v41   ;;  %v514_v49 = vadd.f32 %v498_v20, %v482_v42   ;;  %v515_v50 = vadd.f32 %v499_v21, %v483_v43   ;;  %s5761_s22 = smov 0  }
  0x16   : > { %v516_v51 = vadd.f32 %v500_v25, %v484_v47  }
  0x17 LB: >> { %7630 = vst [vmem:[#allocation2_spill] sm:$0xff] %v5489_v51  ;;  %7631 = vst [vmem:[#allocation3_spill] sm:$0xff] %v5493_v50  ;;  %vm547_vm1 = vcmask 261120   ;;  %s5943_s26 = sshll.u32 %s5553_s22, 4  ;;  %s4195_s17 = sshll.u32 %s5553_s22, 6  ;;  %vm1013_vm2 = vcmask 64512   ;;  %s5553_s22 = sphi %s5761_s22, %s526_s22   ;;  %v5549_v26 = vphi %v501_v26, %v7735_v26   ;;  %v5545_v27 = vphi %v502_v27, %v7734_v27   ;;  %v5541_v28 = vphi %v503_v28, %v7733_v28   ;;  %v5537_v32 = vphi %v504_v32, %v7732_v32   ;;  %v5533_v33 = vphi %v505_v33, %v7731_v33   ;;  %v5529_v34 = vphi %v506_v34, %v7730_v34   ;;  %v5525_v38 = vphi %v507_v38, %v7729_v38   ;;  %v5521_v39 = vphi %v508_v39, %v7728_v39   ;;  %v5517_v40 = vphi %v509_v40, %v7727_v40   ;;  %v5513_v44 = vphi %v510_v44, %v7726_v44   ;;  %v5509_v45 = vphi %v511_v45, %v7725_v45   ;;  %v5505_v46 = vphi %v512_v46, %v7724_v46   ;;  %v5501_v48 = vphi %v513_v48, %v7723_v48   ;;  %v5497_v49 = vphi %v514_v49, %v7722_v49   ;;  %v5493_v50 = vphi %v515_v50, %v7721_v50   ;;  %v5489_v51 = vphi %v516_v51, %v7720_v51  }
  0x18   : >> { %7632 = vst [vmem:[#allocation4_spill] sm:$0xff] %v5497_v49  ;;  %7633 = vst [vmem:[#allocation5_spill] sm:$0xff] %v5501_v48  ;;  %v548_v52 = vsel %vm547_vm1, %v5549_v26, 0.0  ;;  %v554_v53 = vsel %vm547_vm1, %v5541_v28, 0.0  ;;  %v551_v54 = vsel %vm547_vm1, %v5545_v27, 0.0  ;;  %v557_v55 = vsel %vm547_vm1, %v5537_v32, 0.0  ;;  %s811_s16 = scalar_lea.vmem %s7598_s4, %s5943_s26  ;;  %s5953_s19 = scalar_lea.vmem %s7606_s12, %s4195_s17 }
  0x19   : >> { %7634 = vst [vmem:[#allocation6_spill] sm:$0xff] %v5505_v46  ;;  %7635 = vst [vmem:[#allocation7_spill] sm:$0xff] %v5509_v45  ;;  %549 = vadd.xlane.f32.xlu0 %v548_v52  ;;  %555 = vadd.xlane.f32.xlu1 %v554_v53  ;;  %v560_v56 = vsel %vm547_vm1, %v5533_v33, 0.0  ;;  %v563_v57 = vsel %vm547_vm1, %v5529_v34, 0.0  ;;  %v566_v58 = vsel %vm547_vm1, %v5525_v38, 0.0  ;;  %v569_v59 = vsel %vm547_vm1, %v5521_v39, 0.0  ;;  %s543_s23 = scalar_lea.vmem %s7596_s2, %s5553_s22  ;;  %s545_s28 = scalar_lea.vmem %s7597_s3, %s5553_s22 }
  0x1a   : >> { %7636 = vst [vmem:[#allocation8_spill] sm:$0xff] %v5513_v44  ;;  %7637 = vst [vmem:[#allocation9_spill] sm:$0xff] %v5517_v40  ;;  %v572_v60 = vsel %vm547_vm1, %v5517_v40, 0.0  ;;  %v575_v61 = vsel %vm547_vm1, %v5513_v44, 0.0  ;;  %v578_v62 = vsel %vm547_vm1, %v5509_v45, 0.0  ;;  %v581_v63 = vsel %vm547_vm1, %v5505_v46, 0.0  ;;  %s816_s17 = scalar_lea.vmem %s7599_s5, %s5553_s22 }
  0x1b   : >> { %7638 = vst [vmem:[#allocation10_spill] sm:$0xff] %v5521_v39  ;;  %7639 = vst [vmem:[#allocation11_spill] sm:$0xff] %v5525_v38  ;;  %v584_v0 = vsel %vm547_vm1, %v5501_v48, 0.0  ;;  %v587_v1 = vsel %vm547_vm1, %v5497_v49, 0.0  ;;  %v590_v2 = vsel %vm547_vm1, %v5493_v50, 0.0  ;;  %v593_v3 = vsel %vm547_vm1, %v5489_v51, 0.0 }
  0x1c   : >> { %7640 = vst [vmem:[#allocation12_spill] sm:$0xff] %v5529_v34  ;;  %7641 = vst [vmem:[#allocation13_spill] sm:$0xff] %v5533_v33  ;;  %s5556_s27 = smov 96   ;;  %s5557_s18 = smov 64   ;;  %vm2998_vm3 = vcmask 130048   ;;  %vm3015_vm4 = vcmask 195584  }
  0x1d   : >> { %7642 = vst [vmem:[#allocation14_spill] sm:$0xff] %v5537_v32  ;;  %7643 = vst [vmem:[#allocation15_spill] sm:$0xff] %v5541_v28  ;;  %552 = vadd.xlane.f32.xlu0 %v551_v54  ;;  %558 = vadd.xlane.f32.xlu1 %v557_v55  ;;  %s5558_s20 = smov 88   ;;  %s5559_s21 = smov 120  }
  0x1e   : >> { %7644 = vst [vmem:[#allocation16_spill] sm:$0xff] %v5545_v27  ;;  %7645 = vst [vmem:[#allocation17_spill] sm:$0xff] %v5549_v26  ;;  %s5561_s30 = smov 80   ;;  %s5562_s25 = smov 112  }
  0x1f   : >> { %s5564_s15 = smov 72  }
  0x21   : >> { %561 = vadd.xlane.f32.xlu0 %v560_v56  ;;  %564 = vadd.xlane.f32.xlu1 %v563_v57 }
  0x25   : >> { %567 = vadd.xlane.f32.xlu0 %v566_v58  ;;  %570 = vadd.xlane.f32.xlu1 %v569_v59 }
  0x29   : >> { %573 = vadd.xlane.f32.xlu0 %v572_v60  ;;  %576 = vadd.xlane.f32.xlu1 %v575_v61 }
  0x2d   : >> { %579 = vadd.xlane.f32.xlu0 %v578_v62  ;;  %582 = vadd.xlane.f32.xlu1 %v581_v63 }
  0x31   : >> { %585 = vadd.xlane.f32.xlu0 %v584_v0  ;;  %588 = vadd.xlane.f32.xlu1 %v587_v1 }
  0x35   : >> { %591 = vadd.xlane.f32.xlu0 %v590_v2  ;;  %594 = vadd.xlane.f32.xlu1 %v593_v3 }
  0xa6   : >> { %v550_v4 = vpop.xlane.xlu0 %549  ;;  %v556_v5 = vpop.xlane.xlu1 %555 }
  0xa7   : >> { %v597_v6 = vmul.f32 0.03125, %v550_v4  ;;  %v599_v7 = vmul.f32 0.03125, %v556_v5 }
  0xa9   : >> { %v5847_v8 = vsub.f32 %v5549_v26, %v597_v6  ;;  %v5850_v9 = vsub.f32 %v5541_v28, %v599_v7 }
  0xaa   : >> { %v553_v10 = vpop.xlane.xlu0 %552  ;;  %v559_v11 = vpop.xlane.xlu1 %558 }
  0xab   : >> { %v598_v12 = vmul.f32 0.03125, %v553_v10  ;;  %v600_v13 = vmul.f32 0.03125, %v559_v11  ;;  %v629_v14 = vmul.f32 %v5847_v8, %v5847_v8  ;;  %v631_v16 = vmul.f32 %v5850_v9, %v5850_v9 }
  0xad   : >> { %v5857_v17 = vsub.f32 %v5545_v27, %v598_v12  ;;  %v5860_v18 = vsub.f32 %v5537_v32, %v600_v13  ;;  %v645_v19 = vsel %vm547_vm1, %v629_v14, 0.0  ;;  %v651_v22 = vsel %vm547_vm1, %v631_v16, 0.0 }
  0xae   : >> { %v562_v20 = vpop.xlane.xlu0 %561  ;;  %646 = vadd.xlane.f32.xlu0 %v645_v19  ;;  %v565_v21 = vpop.xlane.xlu1 %564 }
  0xaf   : >> { %v601_v23 = vmul.f32 0.03125, %v562_v20  ;;  %v602_v24 = vmul.f32 0.03125, %v565_v21  ;;  %v630_v25 = vmul.f32 %v5857_v17, %v5857_v17  ;;  %v632_v29 = vmul.f32 %v5860_v18, %v5860_v18 }
  0xb1   : >> { %v5869_v30 = vsub.f32 %v5533_v33, %v601_v23  ;;  %v5872_v31 = vsub.f32 %v5529_v34, %v602_v24  ;;  %v648_v35 = vsel %vm547_vm1, %v630_v25, 0.0  ;;  %v654_v41 = vsel %vm547_vm1, %v632_v29, 0.0 }
  0xb2   : >> { %v568_v36 = vpop.xlane.xlu0 %567  ;;  %652 = vadd.xlane.f32.xlu0 %v651_v22  ;;  %649 = vadd.xlane.f32.xlu1 %v648_v35  ;;  %v571_v37 = vpop.xlane.xlu1 %570 }
  0xb3   : >> { %v603_v42 = vmul.f32 0.03125, %v568_v36  ;;  %v604_v43 = vmul.f32 0.03125, %v571_v37  ;;  %v633_v47 = vmul.f32 %v5869_v30, %v5869_v30  ;;  %v634_v52 = vmul.f32 %v5872_v31, %v5872_v31 }
  0xb5   : >> { %v5881_v53 = vsub.f32 %v5525_v38, %v603_v42  ;;  %v5884_v54 = vsub.f32 %v5521_v39, %v604_v43  ;;  %v657_v55 = vsel %vm547_vm1, %v633_v47, 0.0  ;;  %v660_v58 = vsel %vm547_vm1, %v634_v52, 0.0 }
  0xb6   : >> { %v574_v56 = vpop.xlane.xlu0 %573  ;;  %658 = vadd.xlane.f32.xlu0 %v657_v55  ;;  %655 = vadd.xlane.f32.xlu1 %v654_v41  ;;  %v577_v57 = vpop.xlane.xlu1 %576 }
  0xb7   : >> { %v605_v59 = vmul.f32 0.03125, %v574_v56  ;;  %v606_v60 = vmul.f32 0.03125, %v577_v57  ;;  %v635_v61 = vmul.f32 %v5881_v53, %v5881_v53  ;;  %v636_v62 = vmul.f32 %v5884_v54, %v5884_v54 }
  0xb9   : >> { %v5893_v63 = vsub.f32 %v5517_v40, %v605_v59  ;;  %v5896_v0 = vsub.f32 %v5513_v44, %v606_v60  ;;  %v663_v1 = vsel %vm547_vm1, %v635_v61, 0.0  ;;  %v666_v4 = vsel %vm547_vm1, %v636_v62, 0.0  ;;  %v5045_v62 = vld [vmem:[%s811_s16] sm:$0xff]  }
  0xba   : >> { %v580_v2 = vpop.xlane.xlu0 %579  ;;  %664 = vadd.xlane.f32.xlu0 %v663_v1  ;;  %661 = vadd.xlane.f32.xlu1 %v660_v58  ;;  %v583_v3 = vpop.xlane.xlu1 %582  ;;  %v5046_v1 = vld [vmem:[%s811_s16 + $0x8] sm:$0xff]   ;;  %s5565_s16 = smov 104  }
  0xbb   : >> { %v607_v5 = vmul.f32 0.03125, %v580_v2  ;;  %v608_v6 = vmul.f32 0.03125, %v583_v3  ;;  %v637_v7 = vmul.f32 %v5893_v63, %v5893_v63  ;;  %v638_v10 = vmul.f32 %v5896_v0, %v5896_v0  ;;  %4370 = vmatprep.subr.bf16.mxu0 %v5045_v62 }
  0xbc   : >> { %4371 = vmatpush3.bf16.msra.mxu0 %v5045_v62 }
  0xbd   : >> { %v5905_v11 = vsub.f32 %v5509_v45, %v607_v5  ;;  %v5908_v12 = vsub.f32 %v5505_v46, %v608_v6  ;;  %v669_v13 = vsel %vm547_vm1, %v637_v7, 0.0  ;;  %v672_v19 = vsel %vm547_vm1, %v638_v10, 0.0  ;;  %4372 = vmatprep.subr.bf16.mxu0 %v5046_v1 }
  0xbe   : >> { %v586_v14 = vpop.xlane.xlu0 %585  ;;  %670 = vadd.xlane.f32.xlu0 %v669_v13  ;;  %667 = vadd.xlane.f32.xlu1 %v666_v4  ;;  %v589_v16 = vpop.xlane.xlu1 %588 }
  0xbf   : >> { %v609_v20 = vmul.f32 0.03125, %v586_v14  ;;  %v610_v21 = vmul.f32 0.03125, %v589_v16  ;;  %v639_v22 = vmul.f32 %v5905_v11, %v5905_v11  ;;  %v640_v23 = vmul.f32 %v5908_v12, %v5908_v12 }
  0xc0   : >> { %4373 = vmatpush3.bf16.msra.mxu0 %v5046_v1 }
  0xc1   : >> { %v5917_v24 = vsub.f32 %v5501_v48, %v609_v20  ;;  %v5920_v25 = vsub.f32 %v5497_v49, %v610_v21  ;;  %v675_v29 = vsel %vm547_vm1, %v639_v22, 0.0  ;;  %v678_v36 = vsel %vm547_vm1, %v640_v23, 0.0 }
  0xc2   : >> { %676 = vadd.xlane.f32.xlu0 %v675_v29  ;;  %v592_v35 = vpop.xlane.xlu0 %591  ;;  %673 = vadd.xlane.f32.xlu1 %v672_v19  ;;  %v595_v37 = vpop.xlane.xlu1 %594 }
  0xc3   : >> { %v611_v41 = vmul.f32 0.03125, %v592_v35  ;;  %v641_v42 = vmul.f32 %v5917_v24, %v5917_v24  ;;  %v612_v43 = vmul.f32 0.03125, %v595_v37  ;;  %v642_v47 = vmul.f32 %v5920_v25, %v5920_v25 }
  0xc5   : >> { %v5929_v52 = vsub.f32 %v5493_v50, %v611_v41  ;;  %v681_v55 = vsel %vm547_vm1, %v641_v42, 0.0  ;;  %v5933_v56 = vsub.f32 %v5489_v51, %v612_v43  ;;  %v684_v58 = vsel %vm547_vm1, %v642_v47, 0.0 }
  0xc6   : >> { %682 = vadd.xlane.f32.xlu0 %v681_v55  ;;  %679 = vadd.xlane.f32.xlu1 %v678_v36 }
  0xc7   : >> { %v643_v57 = vmul.f32 %v5929_v52, %v5929_v52  ;;  %v644_v59 = vmul.f32 %v5933_v56, %v5933_v56 }
  0xc9   : >> { %v687_v60 = vsel %vm547_vm1, %v643_v57, 0.0  ;;  %v690_v61 = vsel %vm547_vm1, %v644_v59, 0.0 }
  0xca   : >> { %688 = vadd.xlane.f32.xlu0 %v687_v60  ;;  %685 = vadd.xlane.f32.xlu1 %v684_v58  ;;  %v5960_v60 = vld [vmem:[%s543_s23] ss:$0 sm:$0xff]  ;;  %s5560_s23 = smov 56  }
  0xce   : >> { %691 = vadd.xlane.f32.xlu1 %v690_v61 }
 0x13b   : >> { %v647_v2 = vpop.xlane.xlu0 %646 }
 0x13c   : >> { %v693_v3 = vmul.f32 0.03125, %v647_v2 }
 0x13e   : >> { %v709_v4 = vadd.f32 1e-06, %v693_v3 }
 0x13f   : >> { %v653_v5 = vpop.xlane.xlu0 %652  ;;  %v650_v6 = vpop.xlane.xlu1 %649 }
 0x140   : >> { %5059 = vrsqrt.f32 %v709_v4  ;;  %v695_v7 = vmul.f32 0.03125, %v653_v5  ;;  %v694_v10 = vmul.f32 0.03125, %v650_v6 }
 0x142   : >> { %v711_v13 = vadd.f32 1e-06, %v695_v7  ;;  %v710_v14 = vadd.f32 1e-06, %v694_v10  ;;  %v5967_v7 = vld [vmem:[%s545_s28] ss:$0 sm:$0xff] }
 0x143   : >> { %v659_v16 = vpop.xlane.xlu0 %658  ;;  %v656_v19 = vpop.xlane.xlu1 %655  ;;  %s5563_s28 = smov 48  }
 0x144   : >> { %5061 = vrsqrt.f32 %v711_v13  ;;  %v697_v20 = vmul.f32 0.03125, %v659_v16  ;;  %v696_v21 = vmul.f32 0.03125, %v656_v19 }
 0x145   : >> { %5063 = vrsqrt.f32 %v710_v14 }
 0x146   : >> { %v713_v22 = vadd.f32 1e-06, %v697_v20  ;;  %v712_v23 = vadd.f32 1e-06, %v696_v21 }
 0x147   : >> { %v665_v29 = vpop.xlane.xlu0 %664  ;;  %v662_v35 = vpop.xlane.xlu1 %661 }
 0x148   : >> { %5065 = vrsqrt.f32 %v713_v22  ;;  %v699_v36 = vmul.f32 0.03125, %v665_v29  ;;  %v698_v37 = vmul.f32 0.03125, %v662_v35 }
 0x149   : >> { %5067 = vrsqrt.f32 %v712_v23 }
 0x14a   : >> { %v5060_v41 = vpop.eup %5059  ;;  %v715_v42 = vadd.f32 1e-06, %v699_v36  ;;  %v714_v43 = vadd.f32 1e-06, %v698_v37 }
 0x14b   : >> { %v671_v47 = vpop.xlane.xlu0 %670  ;;  %v668_v55 = vpop.xlane.xlu1 %667  ;;  %v741_v57 = vmul.f32 %v5060_v41, %v5847_v8 }
 0x14c   : >> { %5069 = vrsqrt.f32 %v715_v42  ;;  %v701_v58 = vmul.f32 0.03125, %v671_v47  ;;  %v700_v59 = vmul.f32 0.03125, %v668_v55 }
 0x14d   : >> { %5071 = vrsqrt.f32 %v714_v43  ;;  %v763_v5 = vmul.f32 %v5960_v60, %v741_v57 }
 0x14e   : >> { %v5062_v61 = vpop.eup %5061  ;;  %v717_v62 = vadd.f32 1e-06, %v701_v58  ;;  %v716_v1 = vadd.f32 1e-06, %v700_v59 }
 0x14f   : >> { %v5064_v2 = vpop.eup %5063  ;;  %v677_v3 = vpop.xlane.xlu0 %676  ;;  %v743_v13 = vmul.f32 %v5062_v61, %v5850_v9  ;;  %v785_v29 = vadd.f32 %v5967_v7, %v763_v5 }
 0x150   : >> { %v674_v4 = vpop.xlane.xlu1 %673  ;;  %5073 = vrsqrt.f32 %v717_v62  ;;  %v703_v8 = vmul.f32 0.03125, %v677_v3  ;;  %v742_v10 = vmul.f32 %v5064_v2, %v5857_v17 }
 0x151   : >> { %v702_v6 = vmul.f32 0.03125, %v674_v4  ;;  %5075 = vrsqrt.f32 %v716_v1  ;;  %v765_v41 = vmul.f32 %v5960_v60, %v743_v13 }
 0x152   : >> { %v5066_v14 = vpop.eup %5065  ;;  %v719_v16 = vadd.f32 1e-06, %v703_v8  ;;  %v764_v20 = vmul.f32 %v5960_v60, %v742_v10 }
 0x153   : >> { %v718_v19 = vadd.f32 1e-06, %v702_v6  ;;  %v5068_v21 = vpop.eup %5067  ;;  %v683_v22 = vpop.xlane.xlu0 %682  ;;  %v745_v35 = vmul.f32 %v5066_v14, %v5869_v30  ;;  %v787_v3 = vadd.f32 %v5967_v7, %v765_v41 }
 0x154   : >> { %v680_v23 = vpop.xlane.xlu1 %679  ;;  %5077 = vrsqrt.f32 %v719_v16  ;;  %v705_v36 = vmul.f32 0.03125, %v683_v22  ;;  %v786_v17 = vadd.f32 %v5967_v7, %v764_v20  ;;  %v744_v9 = vmul.f32 %v5068_v21, %v5860_v18 }
 0x155   : >> { %v704_v37 = vmul.f32 0.03125, %v680_v23  ;;  %5079 = vrsqrt.f32 %v718_v19  ;;  %v767_v30 = vmul.f32 %v5960_v60, %v745_v35 }
 0x156   : >> { %v5070_v42 = vpop.eup %5069  ;;  %v721_v43 = vadd.f32 1e-06, %v705_v36  ;;  %v801_v55 = vpack.c.bf16 %v786_v17, %v785_v29  ;;  %v766_v61 = vmul.f32 %v5960_v60, %v744_v9 }
 0x157   : >> { %v720_v47 = vadd.f32 1e-06, %v704_v37  ;;  %v5072_v57 = vpop.eup %5071  ;;  %v689_v58 = vpop.xlane.xlu0 %688  ;;  %v747_v62 = vmul.f32 %v5070_v42, %v5881_v53  ;;  %v789_v16 = vadd.f32 %v5967_v7, %v767_v30 }
 0x158   : >> { %v686_v59 = vpop.xlane.xlu1 %685  ;;  %5081 = vrsqrt.f32 %v721_v43  ;;  %v707_v1 = vmul.f32 0.03125, %v689_v58  ;;  %4374 = vmatprep.mubr.msk.bf16.mxu0 %vm547_vm1, %v801_v55  ;;  %v746_v2 = vmul.f32 %v5072_v57, %v5872_v31  ;;  %v788_v4 = vadd.f32 %v5967_v7, %v766_v61 }
 0x159   : >> { %v706_v18 = vmul.f32 0.03125, %v686_v59  ;;  %5083 = vrsqrt.f32 %v720_v47  ;;  %v769_v19 = vmul.f32 %v5960_v60, %v747_v62 }
 0x15a   : >> { %v5074_v5 = vpop.eup %5073  ;;  %v723_v8 = vadd.f32 1e-06, %v707_v1  ;;  %v768_v10 = vmul.f32 %v5960_v60, %v746_v2  ;;  %v802_v14 = vpack.c.bf16 %v788_v4, %v787_v3 }
 0x15b   : >> { %v722_v6 = vadd.f32 1e-06, %v706_v18  ;;  %v5076_v13 = vpop.eup %5075  ;;  %v749_v20 = vmul.f32 %v5074_v5, %v5893_v63  ;;  %v791_v17 = vadd.f32 %v5967_v7, %v769_v19 }
 0x15c   : >> { %v692_v53 = vpop.xlane.xlu1 %691  ;;  %5085 = vrsqrt.f32 %v723_v8  ;;  %v790_v21 = vadd.f32 %v5967_v7, %v768_v10  ;;  %v748_v22 = vmul.f32 %v5076_v13, %v5884_v54  ;;  %4375 = vmatmul.mubr.msk.bf16.vlgmr.msra.gmra.mrb[0].mxu0 %vm547_vm1, %v802_v14 }
 0x15d   : >> { %v708_v31 = vmul.f32 0.03125, %v692_v53  ;;  %5087 = vrsqrt.f32 %v722_v6  ;;  %v771_v9 = vmul.f32 %v5960_v60, %v749_v20 }
 0x15e   : >> { %v5078_v23 = vpop.eup %5077  ;;  %v803_v35 = vpack.c.bf16 %v790_v21, %v789_v16  ;;  %v770_v36 = vmul.f32 %v5960_v60, %v748_v22 }
 0x15f   : >> { %v724_v29 = vadd.f32 1e-06, %v708_v31  ;;  %v5080_v37 = vpop.eup %5079  ;;  %v751_v41 = vmul.f32 %v5078_v23, %v5905_v11  ;;  %v793_v57 = vadd.f32 %v5967_v7, %v771_v9 }
 0x160   : >> { %4378 = vmatprep.mubr.msk.bf16.mxu0 %vm547_vm1, %v803_v35  ;;  %v792_v63 = vadd.f32 %v5967_v7, %v770_v36  ;;  %v750_v54 = vmul.f32 %v5080_v37, %v5896_v0 }
 0x161   : >> { %5089 = vrsqrt.f32 %v724_v29  ;;  %v773_v61 = vmul.f32 %v5960_v60, %v751_v41 }
 0x162   : >> { %v5082_v42 = vpop.eup %5081  ;;  %v804_v43 = vpack.c.bf16 %v792_v63, %v791_v17  ;;  %v772_v47 = vmul.f32 %v5960_v60, %v750_v54 }
 0x163   : >> { %v5084_v55 = vpop.eup %5083  ;;  %v753_v30 = vmul.f32 %v5082_v42, %v5917_v24  ;;  %v795_v2 = vadd.f32 %v5967_v7, %v773_v61 }
 0x164   : >> { %v794_v58 = vadd.f32 %v5967_v7, %v772_v47  ;;  %v752_v59 = vmul.f32 %v5084_v55, %v5908_v12  ;;  %4379 = vmatmul.mubr.msk.bf16.gmra.mrb[4].mxu0 %vm547_vm1, %v804_v43 }
 0x165   : >> { %v775_v4 = vmul.f32 %v5960_v60, %v753_v30 }
 0x166   : >> { %v5086_v0 = vpop.eup %5085  ;;  %v805_v62 = vpack.c.bf16 %v794_v58, %v793_v57  ;;  %v774_v11 = vmul.f32 %v5960_v60, %v752_v59 }
 0x167   : >> { %v5088_v1 = vpop.eup %5087  ;;  %v755_v18 = vmul.f32 %v5086_v0, %v5929_v52  ;;  %v797_v52 = vadd.f32 %v5967_v7, %v775_v4 }
 0x168   : >> { %4382 = vmatprep.mubr.msk.bf16.mxu0 %vm547_vm1, %v805_v62  ;;  %v796_v3 = vadd.f32 %v5967_v7, %v774_v11  ;;  %v754_v12 = vmul.f32 %v5088_v1, %v5920_v25 }
 0x169   : >> { %v777_v10 = vmul.f32 %v5960_v60, %v755_v18 }
 0x16a   : >> { %v806_v5 = vpack.c.bf16 %v796_v3, %v795_v2  ;;  %v776_v8 = vmul.f32 %v5960_v60, %v754_v12 }
 0x16b   : >> { %v5090_v24 = vpop.eup %5089  ;;  %v799_v53 = vadd.f32 %v5967_v7, %v777_v10 }
 0x16c   : >> { %v756_v6 = vmul.f32 %v5090_v24, %v5933_v56  ;;  %v798_v13 = vadd.f32 %v5967_v7, %v776_v8  ;;  %4383 = vmatmul.mubr.msk.bf16.gmra.mrb[8].mxu0 %vm547_vm1, %v806_v5  ;;  %v6027_v56 = vld [vmem:[%s816_s17] ss:$0 sm:$0xff]  ;;  %s5566_s17 = smov 40  }
 0x16e   : >> { %v778_v14 = vmul.f32 %v5960_v60, %v756_v6  ;;  %v807_v25 = vpack.c.bf16 %v798_v13, %v797_v52 }
 0x170   : >> { %v800_v16 = vadd.f32 %v5967_v7, %v778_v14  ;;  %4386 = vmatprep.mubr.msk.bf16.mxu0 %vm547_vm1, %v807_v25 }
 0x172   : >> { %v808_v19 = vpack.c.bf16 %v800_v16, %v799_v53 }
 0x174   : >> { %4387 = vmatmul.mubr.msk.bf16.gmra.mrb[12].mxu0 %vm547_vm1, %v808_v19 }
 0x22f   : >> { %v4376_v20 = vpop.f32.mrb[0].mxu0 }
 0x230   : >> { %v903_v31 = vadd.f32 %v4376_v20, %v6027_v56  ;;  %v894_v60 = vpop.f32.mrb[1].mxu0 }
 0x231   : >> { %v895_v21 = vadd.f32 %v6027_v56, %v894_v60  ;;  %v4377_v22 = vpop.f32.mrb[2].mxu0 }
 0x232   : >> { %v906_v7 = vadd.f32 %v4377_v22, %v6027_v56  ;;  %v897_v23 = vpop.f32.mrb[3].mxu0  ;;  %v959_v35 = vmul.f32 0.35355338, %v903_v31 }
 0x233   : >> { %v898_v29 = vadd.f32 %v6027_v56, %v897_v23  ;;  %v957_v17 = vmul.f32 0.35355338, %v895_v21 }
 0x234   : >> { %v960_v36 = vmul.f32 0.35355338, %v906_v7  ;;  %v6033_v37 = vpack.c.bf16 %v906_v7, %v903_v31 }
 0x235   : >> { %v958_v9 = vmul.f32 0.35355338, %v898_v29  ;;  %v6035_v63 = vpack.c.bf16 %v898_v29, %v895_v21 }
 0x236   : >> { %v6037_v54 = vpack.c.bf16 %v960_v36, %v959_v35  ;;  %999 = vrot.lane.b32.xlu1 %v6033_v37, %s5556_s27 }
 0x237   : >> { %v6041_v41 = vpack.c.bf16 %v958_v9, %v957_v17  ;;  %997 = vrot.lane.b32.xlu0 %v6035_v63, %s5556_s27  ;;  %v4380_v42 = vpop.f32.mrb[4].mxu0 }
 0x238   : >> { %v919_v43 = vadd.f32 %v4380_v42, %v6027_v56  ;;  %v910_v47 = vpop.f32.mrb[5].mxu0 }
 0x239   : >> { %v911_v55 = vadd.f32 %v6027_v56, %v910_v47  ;;  %v4381_v57 = vpop.f32.mrb[6].mxu0  ;;  %4406 = vmatprep.mubr.msk.bf16.mxu1 %vm1013_vm2, %v6041_v41 }
 0x23a   : >> { %v922_v58 = vadd.f32 %v4381_v57, %v6027_v56  ;;  %v913_v59 = vpop.f32.mrb[7].mxu0  ;;  %v963_v30 = vmul.f32 0.35355338, %v919_v43 }
 0x23b   : >> { %v914_v61 = vadd.f32 %v6027_v56, %v913_v59  ;;  %v961_v11 = vmul.f32 0.35355338, %v911_v55 }
 0x23c   : >> { %v964_v0 = vmul.f32 0.35355338, %v922_v58  ;;  %v6051_v62 = vpack.c.bf16 %v922_v58, %v919_v43 }
 0x23d   : >> { %v962_v1 = vmul.f32 0.35355338, %v914_v61  ;;  %v6053_v18 = vpack.c.bf16 %v914_v61, %v911_v55 }
 0x23e   : >> { %v6055_v2 = vpack.c.bf16 %v964_v0, %v963_v30 }
 0x23f   : >> { %v6057_v3 = vpack.c.bf16 %v962_v1, %v961_v11  ;;  %1001 = vrot.lane.b32.xlu1 %v6053_v18, %s5556_s27  ;;  %v4384_v12 = vpop.f32.mrb[8].mxu0 }
 0x240   : >> { %v935_v4 = vadd.f32 %v4384_v12, %v6027_v56  ;;  %v926_v24 = vpop.f32.mrb[9].mxu0 }
 0x241   : >> { %v927_v5 = vadd.f32 %v6027_v56, %v926_v24  ;;  %v4385_v8 = vpop.f32.mrb[10].mxu0 }
 0x242   : >> { %v938_v6 = vadd.f32 %v4385_v8, %v6027_v56  ;;  %v929_v10 = vpop.f32.mrb[11].mxu0  ;;  %v967_v13 = vmul.f32 0.35355338, %v935_v4 }
 0x243   : >> { %v930_v52 = vadd.f32 %v6027_v56, %v929_v10  ;;  %1003 = vrot.lane.b32.xlu1 %v6051_v62, %s5556_s27  ;;  %v965_v53 = vmul.f32 0.35355338, %v927_v5 }
 0x244   : >> { %v968_v14 = vmul.f32 0.35355338, %v938_v6  ;;  %v6067_v25 = vpack.c.bf16 %v938_v6, %v935_v4 }
 0x245   : >> { %v966_v16 = vmul.f32 0.35355338, %v930_v52  ;;  %v6069_v19 = vpack.c.bf16 %v930_v52, %v927_v5 }
 0x246   : >> { %v6071_v20 = vpack.c.bf16 %v968_v14, %v967_v13 }
 0x247   : >> { %v6073_v31 = vpack.c.bf16 %v966_v16, %v965_v53  ;;  %1007 = vrot.lane.b32.xlu1 %v6067_v25, %s5556_s27  ;;  %1005 = vrot.lane.b32.xlu0 %v6069_v19, %s5556_s27  ;;  %v4388_v60 = vpop.f32.mrb[12].mxu0 }
 0x248   : >> { %v951_v21 = vadd.f32 %v4388_v60, %v6027_v56  ;;  %v942_v22 = vpop.f32.mrb[13].mxu0 }
 0x249   : >> { %v943_v7 = vadd.f32 %v6027_v56, %v942_v22  ;;  %v4389_v23 = vpop.f32.mrb[14].mxu0 }
 0x24a   : >> { %v954_v29 = vadd.f32 %v4389_v23, %v6027_v56  ;;  %v945_v35 = vpop.f32.mrb[15].mxu0  ;;  %v971_v17 = vmul.f32 0.35355338, %v951_v21 }
 0x24b   : >> { %v946_v36 = vadd.f32 %v6027_v56, %v945_v35  ;;  %v969_v43 = vmul.f32 0.35355338, %v943_v7 }
 0x24c   : >> { %v972_v9 = vmul.f32 0.35355338, %v954_v29  ;;  %v6083_v42 = vpack.c.bf16 %v954_v29, %v951_v21 }
 0x24d   : >> { %v970_v47 = vmul.f32 0.35355338, %v946_v36  ;;  %v6085_v55 = vpack.c.bf16 %v946_v36, %v943_v7 }
 0x24e   : >> { %v6087_v57 = vpack.c.bf16 %v972_v9, %v971_v17  ;;  %1011 = vrot.lane.b32.xlu1 %v6083_v42, %s5556_s27 }
 0x24f   : >> { %v6091_v58 = vpack.c.bf16 %v970_v47, %v969_v43  ;;  %1009 = vrot.lane.b32.xlu0 %v6085_v55, %s5556_s27  ;;  %s5567_s27 = smov 8  }
 0x252   : >> { %1313 = vrot.lane.b32.xlu1 %v6033_v37, %s5557_s18 }
 0x253   : >> { %1311 = vrot.lane.b32.xlu0 %v6035_v63, %s5557_s18 }
 0x256   : >> { %1317 = vrot.lane.b32.xlu1 %v6051_v62, %s5557_s18 }
 0x257   : >> { %1315 = vrot.lane.b32.xlu0 %v6053_v18, %s5557_s18 }
 0x25a   : >> { %1321 = vrot.lane.b32.xlu1 %v6067_v25, %s5557_s18 }
 0x25b   : >> { %1319 = vrot.lane.b32.xlu0 %v6069_v19, %s5557_s18 }
 0x25e   : >> { %1325 = vrot.lane.b32.xlu1 %v6083_v42, %s5557_s18 }
 0x25f   : >> { %1456 = vrot.lane.b32.xlu0 %v6035_v63, %s5558_s20 }
 0x262   : >> { %1458 = vrot.lane.b32.xlu1 %v6033_v37, %s5558_s20 }
 0x263   : >> { %1323 = vrot.lane.b32.xlu0 %v6085_v55, %s5557_s18  ;;  %s5568_s18 = smov 16  }
 0x2a8   : >> { %v1000_v61 = vpop.permute.xlu1 %999 }
 0x2a9   : >> { %v998_v56 = vpop.permute.xlu0 %997  ;;  %v1042_v0 = vsel %vm1013_vm2, %v1000_v61, 0 }
 0x2aa   : >> { %4734 = vmatprep.subr.msk.bf16.mxu1 %vm1013_vm2, %v998_v56  ;;  %v1039_v59 = vsel %vm1013_vm2, %v998_v56, 0 }
 0x2ab   : >> { %4391 = vmatpush3.bf16.xpose.msra.mxu1 %v1039_v59 }
 0x2ac   : >> { %4735 = vmatprep.subr.msk.bf16.mxu1 %vm1013_vm2, %v1000_v61 }
 0x2b1   : >> { %v1002_v30 = vpop.permute.xlu1 %1001 }
 0x2b2   : >> { %v1045_v1 = vsel %vm1013_vm2, %v1002_v30, 0 }
 0x2b3   : >> { %4393 = vmatpush3.bf16.xpose.msra.mxu1 %v1042_v0 }
 0x2b4   : >> { %4736 = vmatprep.subr.msk.bf16.mxu1 %vm1013_vm2, %v1002_v30 }
 0x2b5   : >> { %v1004_v11 = vpop.permute.xlu1 %1003 }
 0x2b6   : >> { %v1048_v8 = vsel %vm1013_vm2, %v1004_v11, 0 }
 0x2b9   : >> { %v1006_v12 = vpop.permute.xlu0 %1005  ;;  %v1008_v4 = vpop.permute.xlu1 %1007 }
 0x2ba   : >> { %v1051_v13 = vsel %vm1013_vm2, %v1006_v12, 0  ;;  %v1054_v16 = vsel %vm1013_vm2, %v1008_v4, 0 }
 0x2bb   : >> { %4395 = vmatpush3.bf16.xpose.msra.mxu1 %v1045_v1 }
 0x2bc   : >> { %4737 = vmatprep.subr.msk.bf16.mxu1 %vm1013_vm2, %v1004_v11 }
 0x2c0   : >> { %v1012_v24 = vpop.permute.xlu1 %1011 }
 0x2c1   : >> { %v1010_v5 = vpop.permute.xlu0 %1009  ;;  %v1060_v29 = vsel %vm1013_vm2, %v1012_v24, 0 }
 0x2c2   : >> { %v1057_v22 = vsel %vm1013_vm2, %v1010_v5, 0 }
 0x2c3   : >> { %4397 = vmatpush3.bf16.xpose.msra.mxu1 %v1048_v8 }
 0x2c4   : >> { %4738 = vmatprep.subr.msk.bf16.mxu1 %vm1013_vm2, %v1006_v12  ;;  %v1314_v10 = vpop.permute.xlu1 %1313 }
 0x2c5   : >> { %v1312_v6 = vpop.permute.xlu0 %1311 }
 0x2c6   : >> { %4422 = vmatprep.subr.bf16.mxu0 %v1312_v6 }
 0x2c7   : >> { %4423 = vmatpush3.bf16.msra.mxu0 %v1312_v6 }
 0x2c8   : >> { %4424 = vmatprep.subr.bf16.mxu0 %v1314_v10  ;;  %v1318_v14 = vpop.permute.xlu1 %1317 }
 0x2c9   : >> { %v1316_v52 = vpop.permute.xlu0 %1315 }
 0x2cb   : >> { %4399 = vmatpush3.bf16.xpose.msra.mxu1 %v1051_v13  ;;  %4425 = vmatpush3.bf16.msra.mxu0 %v1314_v10 }
 0x2cc   : >> { %4739 = vmatprep.subr.msk.bf16.mxu1 %vm1013_vm2, %v1008_v4  ;;  %4426 = vmatprep.subr.bf16.mxu0 %v1316_v52  ;;  %v1322_v21 = vpop.permute.xlu1 %1321 }
 0x2cd   : >> { %v1320_v53 = vpop.permute.xlu0 %1319 }
 0x2cf   : >> { %4427 = vmatpush3.bf16.msra.mxu0 %v1316_v52 }
 0x2d0   : >> { %4428 = vmatprep.subr.bf16.mxu0 %v1318_v14  ;;  %v1326_v23 = vpop.permute.xlu1 %1325 }
 0x2d1   : >> { %v6120_v60 = vpop.permute.xlu0 %1456 }
 0x2d3   : >> { %4401 = vmatpush3.bf16.xpose.msra.mxu1 %v1054_v16  ;;  %4429 = vmatpush3.bf16.msra.mxu0 %v1318_v14 }
 0x2d4   : >> { %4740 = vmatprep.subr.msk.bf16.mxu1 %vm1013_vm2, %v1010_v5  ;;  %4430 = vmatprep.subr.bf16.mxu0 %v1320_v53 }
 0x2d5   : >> { %v1324_v7 = vpop.permute.xlu0 %1323 }
 0x2d7   : >> { %4431 = vmatpush3.bf16.msra.mxu0 %v1320_v53 }
 0x2d8   : >> { %4432 = vmatprep.subr.bf16.mxu0 %v1322_v21 }
 0x2db   : >> { %4403 = vmatpush3.bf16.xpose.msra.mxu1 %v1057_v22  ;;  %4433 = vmatpush3.bf16.msra.mxu0 %v1322_v21 }
 0x2dc   : >> { %4741 = vmatprep.subr.msk.bf16.mxu1 %vm1013_vm2, %v1012_v24  ;;  %4434 = vmatprep.subr.bf16.mxu0 %v1324_v7 }
 0x2df   : >> { %4435 = vmatpush3.bf16.msra.mxu0 %v1324_v7 }
 0x2e0   : >> { %4436 = vmatprep.subr.bf16.mxu0 %v1326_v23 }
 0x2e3   : >> { %4405 = vmatpush3.bf16.xpose.msra.mxu1 %v1060_v29  ;;  %4437 = vmatpush3.bf16.msra.mxu0 %v1326_v23 }
 0x2e4   : >> { %4742 = vmatprep.subr.msk.bf16.mxu0 %vm1013_vm2, %v6120_v60 }
 0x2ea   : >> { %4407 = vmatmul.mubr.msk.bf16.vlgmr.msra.gmra.mrb[0].mxu1 %vm1013_vm2, %v6037_v54 }
 0x2eb   : >> { %4410 = vmatprep.mubr.msk.bf16.mxu1 %vm1013_vm2, %v6057_v3 }
 0x2f2   : >> { %4411 = vmatmul.mubr.msk.bf16.gmra.mrb[4].mxu1 %vm1013_vm2, %v6055_v2 }
 0x2f3   : >> { %4414 = vmatprep.mubr.msk.bf16.mxu1 %vm1013_vm2, %v6073_v31 }
 0x2fa   : >> { %4415 = vmatmul.mubr.msk.bf16.gmra.mrb[8].mxu1 %vm1013_vm2, %v6071_v20 }
 0x2fb   : >> { %4418 = vmatprep.mubr.msk.bf16.mxu1 %vm1013_vm2, %v6091_v58 }
 0x302   : >> { %4419 = vmatmul.mubr.msk.bf16.gmra.mrb[12].mxu1 %vm1013_vm2, %v6087_v57 }
 0x3bd   : >> { %v4408_v35 = vpop.f32.mrb[0].mxu1 }
 0x3be   : >> { %v1105_v36 = vadd.f32 %v4408_v35, %v5699_v15  ;;  %v1096_v17 = vpop.f32.mrb[1].mxu1 }
 0x3bf   : >> { %v4409_v9 = vpop.f32.mrb[2].mxu1  ;;  %v1097_v56 = vadd.f32 %v1096_v17, %v5699_v15 }
 0x3c0   : >> { %1163 = vmax.xlane.f32.xlu0 %v1105_v36  ;;  %v1099_v43 = vpop.f32.mrb[3].mxu1  ;;  %v1108_v61 = vadd.f32 %v4409_v9, %v5699_v15  ;;  %v6197_v9 = vpop.permute.xlu1 %1458 }
 0x3c1   : >> { %v1100_v47 = vadd.f32 %v1099_v43, %v5699_v15 }
 0x3c3   : >> { %1161 = vmax.xlane.f32.xlu1 %v1100_v47 }
 0x3c4   : >> { %1159 = vmax.xlane.f32.xlu0 %v1097_v56 }
 0x3c5   : >> { %v4412_v59 = vpop.f32.mrb[4].mxu1 }
 0x3c6   : >> { %v1112_v30 = vpop.f32.mrb[5].mxu1  ;;  %v6149_v12 = vadd.f32 %v4412_v59, %v5699_v15 }
 0x3c7   : >> { %v4413_v0 = vpop.f32.mrb[6].mxu1  ;;  %v6157_v5 = vadd.f32 %v1112_v30, %v5699_v15 }
 0x3c8   : >> { %v6146_v11 = vadd.f32 %v4413_v0, %v5699_v15  ;;  %v1115_v1 = vpop.f32.mrb[7].mxu1  ;;  %1165 = vmax.xlane.f32.xlu0 %v1108_v61 }
 0x3c9   : >> { %v6153_v4 = vadd.f32 %v1115_v1, %v5699_v15 }
 0x3ca   : >> { %1173 = vmax.xlane.f32.xlu1 %v6146_v11 }
 0x3cc   : >> { %1171 = vmax.xlane.f32.xlu0 %v6149_v12 }
 0x3cd   : >> { %v4416_v24 = vpop.f32.mrb[8].mxu1 }
 0x3ce   : >> { %v1128_v8 = vpop.f32.mrb[9].mxu1  ;;  %1169 = vmax.xlane.f32.xlu1 %v6153_v4  ;;  %v6165_v13 = vadd.f32 %v4416_v24, %v5699_v15 }
 0x3cf   : >> { %v4417_v6 = vpop.f32.mrb[10].mxu1  ;;  %v6173_v16 = vadd.f32 %v1128_v8, %v5699_v15 }
 0x3d0   : >> { %v6161_v10 = vadd.f32 %v4417_v6, %v5699_v15  ;;  %v1131_v52 = vpop.f32.mrb[11].mxu1  ;;  %1167 = vmax.xlane.f32.xlu0 %v6157_v5 }
 0x3d1   : >> { %v6169_v14 = vadd.f32 %v1131_v52, %v5699_v15 }
 0x3d2   : >> { %1181 = vmax.xlane.f32.xlu1 %v6161_v10 }
 0x3d4   : >> { %1179 = vmax.xlane.f32.xlu0 %v6165_v13 }
 0x3d5   : >> { %v4420_v53 = vpop.f32.mrb[12].mxu1 }
 0x3d6   : >> { %v1144_v21 = vpop.f32.mrb[13].mxu1  ;;  %1177 = vmax.xlane.f32.xlu1 %v6169_v14  ;;  %v6178_v23 = vadd.f32 %v4420_v53, %v5699_v15 }
 0x3d7   : >> { %v4421_v22 = vpop.f32.mrb[14].mxu1  ;;  %v6182_v29 = vadd.f32 %v1144_v21, %v5699_v15 }
 0x3d8   : >> { %v1147_v7 = vpop.f32.mrb[15].mxu1  ;;  %1175 = vmax.xlane.f32.xlu0 %v6173_v16  ;;  %v6190_v35 = vadd.f32 %v4421_v22, %v5699_v15 }
 0x3d9   : >> { %v6194_v17 = vadd.f32 %v1147_v7, %v5699_v15 }
 0x3dc   : >> { %1187 = vmax.xlane.f32.xlu0 %v6178_v23 }
 0x3e0   : >> { %1183 = vmax.xlane.f32.xlu0 %v6182_v29 }
 0x3e7   : >> { %1462 = vrot.lane.b32.xlu1 %v6051_v62, %s5558_s20 }
 0x3f6   : >> { %1460 = vrot.lane.b32.xlu0 %v6053_v18, %s5558_s20 }
 0x40b   : >> { %1189 = vmax.xlane.f32.xlu1 %v6190_v35 }
 0x40f   : >> { %1185 = vmax.xlane.f32.xlu1 %v6194_v17 }
 0x44d   : >> { %v1164_v43 = vpop.xlane.xlu0 %1163 }
 0x44e   : >> { %v1193_v59 = vsub.f32 %v1105_v36, %v1164_v43 }
 0x450   : >> { %v1211_v30 = vmul.f32 1.442695, %v1193_v59  ;;  %v1162_v0 = vpop.xlane.xlu1 %1161 }
 0x451   : >> { %v1192_v1 = vsub.f32 %v1100_v47, %v1162_v0  ;;  %v1160_v24 = vpop.xlane.xlu0 %1159 }
 0x452   : >> { %5091 = vpow2.f32 %v1211_v30  ;;  %v1191_v8 = vsub.f32 %v1097_v56, %v1160_v24 }
 0x453   : >> { %v1209_v6 = vmul.f32 1.442695, %v1192_v1 }
 0x454   : >> { %v1207_v52 = vmul.f32 1.442695, %v1191_v8 }
 0x455   : >> { %5093 = vpow2.f32 %v1209_v6  ;;  %v1166_v53 = vpop.xlane.xlu0 %1165 }
 0x456   : >> { %5095 = vpow2.f32 %v1207_v52  ;;  %v1194_v21 = vsub.f32 %v1108_v61, %v1166_v53 }
 0x457   : >> { %v1174_v43 = vpop.xlane.xlu1 %1173 }
 0x458   : >> { %v1213_v22 = vmul.f32 1.442695, %v1194_v21  ;;  %v1198_v21 = vsub.f32 %v6146_v11, %v1174_v43 }
 0x459   : >> { %v1172_v56 = vpop.xlane.xlu0 %1171 }
 0x45a   : >> { %5097 = vpow2.f32 %v1213_v22  ;;  %v1197_v30 = vsub.f32 %v6149_v12, %v1172_v56  ;;  %v1221_v48 = vmul.f32 1.442695, %v1198_v21 }
 0x45b   : >> { %v1170_v0 = vpop.xlane.xlu1 %1169 }
 0x45c   : >> { %v6199_v7 = vpop.eup %5091  ;;  %v1219_v24 = vmul.f32 1.442695, %v1197_v30  ;;  %v1196_v6 = vsub.f32 %v6153_v4, %v1170_v0 }
 0x45d   : >> { %1243 = vadd.xlane.f32.xlu1 %v6199_v7  ;;  %v1168_v61 = vpop.xlane.xlu0 %1167 }
 0x45e   : >> { %v1195_v8 = vsub.f32 %v6157_v5, %v1168_v61  ;;  %5099 = vpow2.f32 %v1219_v24  ;;  %v1217_v49 = vmul.f32 1.442695, %v1196_v6 }
 0x45f   : >> { %v6202_v51 = vpop.eup %5093  ;;  %v1182_v52 = vpop.xlane.xlu1 %1181 }
 0x460   : >> { %v6204_v36 = vpop.eup %5095  ;;  %1241 = vadd.xlane.f32.xlu0 %v6202_v51  ;;  %v1215_v22 = vmul.f32 1.442695, %v1195_v8  ;;  %v1202_v11 = vsub.f32 %v6161_v10, %v1182_v52 }
 0x461   : >> { %1239 = vadd.xlane.f32.xlu1 %v6204_v36  ;;  %v1180_v59 = vpop.xlane.xlu0 %1179 }
 0x462   : >> { %v1201_v50 = vsub.f32 %v6165_v13, %v1180_v59  ;;  %5101 = vpow2.f32 %v1215_v22 }
 0x463   : >> { %v1178_v45 = vpop.xlane.xlu1 %1177  ;;  %5103 = vpow2.f32 %v1217_v49 }
 0x464   : >> { %v6208_v47 = vpop.eup %5097  ;;  %v1227_v56 = vmul.f32 1.442695, %v1201_v50  ;;  %5105 = vpow2.f32 %v1221_v48  ;;  %v1229_v50 = vmul.f32 1.442695, %v1202_v11 }
 0x465   : >> { %1245 = vadd.xlane.f32.xlu1 %v6208_v47  ;;  %v1176_v1 = vpop.xlane.xlu0 %1175 }
 0x466   : >> { %v1199_v5 = vsub.f32 %v6173_v16, %v1176_v1  ;;  %5107 = vpow2.f32 %v1227_v56  ;;  %v1200_v16 = vsub.f32 %v6169_v14, %v1178_v45 }
 0x467   : >> { %v6226_v13 = vpop.permute.xlu1 %1462 }
 0x468   : >> { %v1223_v43 = vmul.f32 1.442695, %v1199_v5  ;;  %v6224_v0 = vpop.eup %5099  ;;  %v1225_v59 = vmul.f32 1.442695, %v1200_v16 }
 0x469   : >> { %v1188_v53 = vpop.xlane.xlu0 %1187 }
 0x46a   : >> { %v1205_v12 = vsub.f32 %v6178_v23, %v1188_v53 }
 0x46c   : >> { %v1235_v4 = vmul.f32 1.442695, %v1205_v12  ;;  %v6230_v48 = vpop.eup %5101 }
 0x46d   : >> { %v1184_v61 = vpop.xlane.xlu0 %1183 }
 0x46e   : >> { %v1203_v30 = vsub.f32 %v6182_v29, %v1184_v61  ;;  %5109 = vpow2.f32 %v1235_v4  ;;  %v6232_v29 = vpop.eup %5103 }
 0x46f   : >> { %5111 = vpow2.f32 %v1223_v43  ;;  %v6237_v24 = vpop.eup %5105 }
 0x470   : >> { %v1231_v49 = vmul.f32 1.442695, %v1203_v30  ;;  %v6239_v45 = vpop.eup %5107 }
 0x471   : >> { %v1461_v56 = vpop.permute.xlu0 %1460 }
 0x472   : >> { %5113 = vpow2.f32 %v1231_v49 }
 0x473   : >> { %5115 = vpow2.f32 %v1229_v50 }
 0x476   : >> { %1466 = vrot.lane.b32.xlu1 %v6067_v25, %s5558_s20  ;;  %1464 = vrot.lane.b32.xlu0 %v6069_v19, %s5558_s20 }
 0x478   : >> { %v6244_v6 = vpop.eup %5109 }
 0x479   : >> { %v6246_v52 = vpop.eup %5111 }
 0x47c   : >> { %v6250_v53 = vpop.eup %5113 }
 0x47d   : >> { %v6252_v21 = vpop.eup %5115 }
 0x495   : >> { %1251 = vadd.xlane.f32.xlu0 %v6224_v0 }
 0x498   : >> { %v1190_v23 = vpop.xlane.xlu1 %1189 }
 0x499   : >> { %v1206_v10 = vsub.f32 %v6190_v35, %v1190_v23  ;;  %1247 = vadd.xlane.f32.xlu0 %v6230_v48 }
 0x49a   : >> { %1249 = vadd.xlane.f32.xlu1 %v6232_v29 }
 0x49b   : >> { %v1237_v1 = vmul.f32 1.442695, %v1206_v10 }
 0x49c   : >> { %v1186_v8 = vpop.xlane.xlu1 %1185 }
 0x49d   : >> { %5117 = vpow2.f32 %v1237_v1  ;;  %v1204_v14 = vsub.f32 %v6194_v17, %v1186_v8  ;;  %1253 = vadd.xlane.f32.xlu0 %v6237_v24 }
 0x49e   : >> { %1259 = vadd.xlane.f32.xlu1 %v6239_v45  ;;  %5119 = vpow2.f32 %v1225_v59 }
 0x49f   : >> { %v1233_v35 = vmul.f32 1.442695, %v1204_v14  ;;  %v1497_v14 = vsel %vm1013_vm2, %v6120_v60, 0 }
 0x4a1   : >> { %1267 = vadd.xlane.f32.xlu0 %v6244_v6  ;;  %5121 = vpow2.f32 %v1233_v35 }
 0x4a2   : >> { %1255 = vadd.xlane.f32.xlu1 %v6246_v52 }
 0x4a5   : >> { %1263 = vadd.xlane.f32.xlu0 %v6250_v53 }
 0x4a6   : >> { %1261 = vadd.xlane.f32.xlu1 %v6252_v21 }
 0x4a7   : >> { %v6256_v17 = vpop.eup %5117 }
 0x4a8   : >> { %v6258_v22 = vpop.eup %5119 }
 0x4a9   : >> { %1269 = vadd.xlane.f32.xlu0 %v6256_v17 }
 0x4aa   : >> { %1257 = vadd.xlane.f32.xlu1 %v6258_v22 }
 0x4ab   : >> { %v6262_v12 = vpop.eup %5121 }
 0x4ae   : >> { %1265 = vadd.xlane.f32.xlu1 %v6262_v12 }
 0x4bf   : >> { %1468 = vrot.lane.b32.xlu0 %v6085_v55, %s5558_s20  ;;  %1470 = vrot.lane.b32.xlu1 %v6083_v42, %s5558_s20  ;;  %s3203_s20 = scalar_lea.vmem %s7602_s8, %s5553_s22 }
 0x4c3   : >> { %1440 = vrot.lane.b32.xlu0 %v6041_v41, %s5559_s21  ;;  %1442 = vrot.lane.b32.xlu1 %v6037_v54, %s5559_s21 }
 0x4c7   : >> { %1444 = vrot.lane.b32.xlu0 %v6057_v3, %s5559_s21  ;;  %1446 = vrot.lane.b32.xlu1 %v6055_v2, %s5559_s21 }
 0x4cb   : >> { %1448 = vrot.lane.b32.xlu0 %v6073_v31, %s5559_s21  ;;  %1450 = vrot.lane.b32.xlu1 %v6071_v20, %s5559_s21 }
 0x4cf   : >> { %1452 = vrot.lane.b32.xlu0 %v6091_v58, %s5559_s21  ;;  %1454 = vrot.lane.b32.xlu1 %v6087_v57, %s5559_s21 }
 0x4d3   : >> { %1769 = vrot.lane.b32.xlu0 %v6035_v63, %s5560_s23  ;;  %1771 = vrot.lane.b32.xlu1 %v6033_v37, %s5560_s23 }
 0x4d7   : >> { %1773 = vrot.lane.b32.xlu0 %v6053_v18, %s5560_s23  ;;  %1775 = vrot.lane.b32.xlu1 %v6051_v62, %s5560_s23 }
 0x4db   : >> { %1777 = vrot.lane.b32.xlu0 %v6069_v19, %s5560_s23  ;;  %1779 = vrot.lane.b32.xlu1 %v6067_v25, %s5560_s23 }
 0x4df   : >> { %1781 = vrot.lane.b32.xlu0 %v6085_v55, %s5560_s23  ;;  %1783 = vrot.lane.b32.xlu1 %v6083_v42, %s5560_s23  ;;  %s3041_s23 = scalar_lea.vmem %s7600_s6, %s5943_s26 }
 0x4e3   : >> { %1906 = vrot.lane.b32.xlu0 %v6035_v63, %s5561_s30  ;;  %1908 = vrot.lane.b32.xlu1 %v6033_v37, %s5561_s30 }
 0x4ea   : >> { %v1244_v5 = vpop.xlane.xlu1 %1243 }
 0x4ed   : >> { %v1242_v61 = vpop.xlane.xlu0 %1241 }
 0x4ee   : >> { %5123 = vrcp.f32 %v1242_v61  ;;  %v1240_v4 = vpop.xlane.xlu1 %1239 }
 0x4ef   : >> { %5125 = vrcp.f32 %v1240_v4 }
 0x4f0   : >> { %5127 = vrcp.f32 %v1244_v5 }
 0x4f1   : >> { %v1465_v60 = vpop.permute.xlu0 %1464 }
 0x4f2   : >> { %v1246_v30 = vpop.xlane.xlu1 %1245  ;;  %v1509_v35 = vsel %vm1013_vm2, %v1465_v60, 0 }
 0x4f3   : >> { %5129 = vrcp.f32 %v1246_v30 }
 0x4f8   : >> { %v5124_v11 = vpop.eup %5123 }
 0x4f9   : >> { %v5126_v43 = vpop.eup %5125  ;;  %v1288_v49 = vmul.f32 %v5124_v11, %v6202_v51  ;;  %v1500_v51 = vsel %vm1013_vm2, %v6197_v9, 0 }
 0x4fa   : >> { %v1287_v50 = vmul.f32 %v5126_v43, %v6204_v36  ;;  %v5128_v16 = vpop.eup %5127  ;;  %v1506_v36 = vsel %vm1013_vm2, %v6226_v13, 0 }
 0x4fb   : >> { %v1289_v59 = vmul.f32 %v5128_v16, %v6199_v7  ;;  %v1503_v7 = vsel %vm1013_vm2, %v1461_v56, 0 }
 0x4fc   : >> { %v1303_v23 = vpack.c.bf16 %v1288_v49, %v1287_v50 }
 0x4fd   : >> { %v5130_v10 = vpop.eup %5129 }
 0x4fe   : >> { %v1290_v1 = vmul.f32 %v5130_v10, %v6208_v47  ;;  %4438 = vmatprep.mubr.bf16.mxu0 %v1303_v23 }
 0x500   : >> { %v1304_v8 = vpack.c.bf16 %v1290_v1, %v1289_v59 }
 0x502   : >> { %4439 = vmatmul.mubr.bf16.vlgmr.msra.gmra.mrb[16].mxu0 %v1304_v8 }
 0x503   : >> { %4455 = vmatpush3.bf16.xpose.msra.mxu0 %v1497_v14 }
 0x504   : >> { %4743 = vmatprep.subr.msk.bf16.mxu0 %vm1013_vm2, %v6197_v9  ;;  %v1467_v9 = vpop.permute.xlu1 %1466 }
 0x505   : >> { %v1512_v4 = vsel %vm1013_vm2, %v1467_v9, 0 }
 0x50b   : >> { %4457 = vmatpush3.bf16.xpose.msra.mxu0 %v1500_v51 }
 0x50c   : >> { %4744 = vmatprep.subr.msk.bf16.mxu0 %vm1013_vm2, %v1461_v56 }
 0x513   : >> { %4459 = vmatpush3.bf16.xpose.msra.mxu0 %v1503_v7 }
 0x514   : >> { %4745 = vmatprep.subr.msk.bf16.mxu0 %vm1013_vm2, %v6226_v13 }
 0x51b   : >> { %4461 = vmatpush3.bf16.xpose.msra.mxu0 %v1506_v36 }
 0x51c   : >> { %4746 = vmatprep.subr.msk.bf16.mxu0 %vm1013_vm2, %v1465_v60 }
 0x522   : >> { %v1252_v47 = vpop.xlane.xlu0 %1251 }
 0x523   : >> { %4463 = vmatpush3.bf16.xpose.msra.mxu0 %v1509_v35 }
 0x524   : >> { %4747 = vmatprep.subr.msk.bf16.mxu0 %vm1013_vm2, %v1467_v9 }
 0x526   : >> { %v1248_v5 = vpop.xlane.xlu0 %1247 }
 0x527   : >> { %5131 = vrcp.f32 %v1248_v5  ;;  %v1250_v56 = vpop.xlane.xlu1 %1249 }
 0x528   : >> { %5133 = vrcp.f32 %v1250_v56 }
 0x529   : >> { %5135 = vrcp.f32 %v1252_v47 }
 0x52a   : >> { %v1254_v61 = vpop.xlane.xlu0 %1253 }
 0x52b   : >> { %5137 = vrcp.f32 %v1254_v61  ;;  %4465 = vmatpush3.bf16.xpose.msra.mxu0 %v1512_v4  ;;  %v1260_v13 = vpop.xlane.xlu1 %1259 }
 0x52e   : >> { %v1268_v30 = vpop.xlane.xlu0 %1267 }
 0x52f   : >> { %v1256_v11 = vpop.xlane.xlu1 %1255 }
 0x531   : >> { %v5132_v43 = vpop.eup %5131 }
 0x532   : >> { %v5134_v49 = vpop.eup %5133  ;;  %v1264_v50 = vpop.xlane.xlu0 %1263  ;;  %v1291_v16 = vmul.f32 %v5132_v43, %v6230_v48 }
 0x533   : >> { %v5136_v23 = vpop.eup %5135  ;;  %v1262_v10 = vpop.xlane.xlu1 %1261  ;;  %v1292_v59 = vmul.f32 %v5134_v49, %v6232_v29 }
 0x534   : >> { %5139 = vrcp.f32 %v1262_v10  ;;  %v1293_v51 = vmul.f32 %v5136_v23, %v6224_v0 }
 0x535   : >> { %v5138_v1 = vpop.eup %5137  ;;  %v1305_v8 = vpack.c.bf16 %v1292_v59, %v1291_v16  ;;  %5141 = vrcp.f32 %v1256_v11 }
 0x536   : >> { %v1270_v14 = vpop.xlane.xlu0 %1269  ;;  %v1294_v7 = vmul.f32 %v5138_v1, %v6237_v24  ;;  %5143 = vrcp.f32 %v1260_v13 }
 0x537   : >> { %4442 = vmatprep.mubr.bf16.mxu0 %v1305_v8  ;;  %v1258_v36 = vpop.xlane.xlu1 %1257 }
 0x538   : >> { %5145 = vrcp.f32 %v1258_v36  ;;  %v1306_v60 = vpack.c.bf16 %v1294_v7, %v1293_v51 }
 0x539   : >> { %5147 = vrcp.f32 %v1264_v50 }
 0x53a   : >> { %v1469_v48 = vpop.permute.xlu0 %1468  ;;  %4443 = vmatmul.mubr.bf16.gmra.mrb[20].mxu0 %v1306_v60 }
 0x53b   : >> { %4748 = vmatprep.subr.msk.bf16.mxu0 %vm1013_vm2, %v1469_v48  ;;  %v1266_v29 = vpop.xlane.xlu1 %1265  ;;  %v1515_v47 = vsel %vm1013_vm2, %v1469_v48, 0 }
 0x53c   : >> { %5149 = vrcp.f32 %v1266_v29  ;;  %4467 = vmatpush3.bf16.xpose.msra.mxu0 %v1515_v47 }
 0x53d   : >> { %5151 = vrcp.f32 %v1270_v14 }
 0x53e   : >> { %v1441_v35 = vpop.permute.xlu0 %1440  ;;  %v5140_v0 = vpop.eup %5139  ;;  %5153 = vrcp.f32 %v1268_v30 }
 0x53f   : >> { %v1471_v24 = vpop.permute.xlu1 %1470  ;;  %v5142_v9 = vpop.eup %5141  ;;  %v1298_v4 = vmul.f32 %v5140_v0, %v6252_v21 }
 0x540   : >> { %4749 = vmatprep.subr.msk.bf16.mxu0 %vm1013_vm2, %v1471_v24  ;;  %v5144_v5 = vpop.eup %5143  ;;  %v1518_v11 = vsel %vm1013_vm2, %v1471_v24, 0  ;;  %v1295_v43 = vmul.f32 %v5142_v9, %v6246_v52 }
 0x541   : >> { %v1297_v30 = vmul.f32 %v5144_v5, %v6239_v45 }
 0x542   : >> { %v5146_v56 = vpop.eup %5145  ;;  %v1445_v61 = vpop.permute.xlu0 %1444 }
 0x543   : >> { %v1443_v13 = vpop.permute.xlu1 %1442  ;;  %v1296_v49 = vmul.f32 %v5146_v56, %v6258_v22  ;;  %v5148_v50 = vpop.eup %5147  ;;  %v1308_v59 = vpack.c.bf16 %v1298_v4, %v1297_v30 }
 0x544   : >> { %4469 = vmatpush3.bf16.xpose.msra.mxu0 %v1518_v11  ;;  %v1299_v21 = vmul.f32 %v5148_v50, %v6250_v53 }
 0x545   : >> { %v1307_v16 = vpack.c.bf16 %v1296_v49, %v1295_v43 }
 0x546   : >> { %v5150_v23 = vpop.eup %5149  ;;  %v1449_v10 = vpop.permute.xlu0 %1448 }
 0x547   : >> { %v5152_v1 = vpop.eup %5151  ;;  %4446 = vmatprep.mubr.bf16.mxu0 %v1307_v16  ;;  %v1447_v8 = vpop.permute.xlu1 %1446  ;;  %v1300_v14 = vmul.f32 %v5150_v23, %v6262_v12 }
 0x548   : >> { %4447 = vmatmul.mubr.bf16.gmra.mrb[24].mxu0 %v1308_v59  ;;  %v5154_v51 = vpop.eup %5153  ;;  %v1302_v22 = vmul.f32 %v5152_v1, %v6256_v17 }
 0x549   : >> { %v1309_v52 = vpack.c.bf16 %v1300_v14, %v1299_v21  ;;  %v1301_v45 = vmul.f32 %v5154_v51, %v6244_v6 }
 0x54a   : >> { %v1453_v7 = vpop.permute.xlu0 %1452 }
 0x54b   : >> { %4450 = vmatprep.mubr.bf16.mxu0 %v1309_v52  ;;  %v1451_v36 = vpop.permute.xlu1 %1450  ;;  %v1310_v48 = vpack.c.bf16 %v1302_v22, %v1301_v45 }
 0x54e   : >> { %v1770_v60 = vpop.permute.xlu0 %1769 }
 0x54f   : >> { %4486 = vmatprep.subr.bf16.mxu1 %v1770_v60  ;;  %v1455_v29 = vpop.permute.xlu1 %1454 }
 0x550   : >> { %4451 = vmatmul.mubr.bf16.gmra.mrb[28].mxu0 %v1310_v48  ;;  %4487 = vmatpush3.bf16.msra.mxu1 %v1770_v60 }
 0x551   : >> { %4470 = vmatprep.mubr.msk.bf16.mxu0 %vm1013_vm2, %v1441_v35 }
 0x552   : >> { %v1774_v12 = vpop.permute.xlu0 %1773 }
 0x553   : >> { %v1772_v53 = vpop.permute.xlu1 %1771 }
 0x554   : >> { %4488 = vmatprep.subr.bf16.mxu1 %v1772_v53 }
 0x555   : >> { %4489 = vmatpush3.bf16.msra.mxu1 %v1772_v53 }
 0x556   : >> { %4490 = vmatprep.subr.bf16.mxu1 %v1774_v12  ;;  %v1778_v6 = vpop.permute.xlu0 %1777 }
 0x557   : >> { %v1776_v17 = vpop.permute.xlu1 %1775 }
 0x558   : >> { %4471 = vmatmul.mubr.msk.bf16.vlgmr.msra.gmra.mrb[32].mxu0 %vm1013_vm2, %v1443_v13 }
 0x559   : >> { %4474 = vmatprep.mubr.msk.bf16.mxu0 %vm1013_vm2, %v1445_v61  ;;  %4491 = vmatpush3.bf16.msra.mxu1 %v1774_v12 }
 0x55a   : >> { %4492 = vmatprep.subr.bf16.mxu1 %v1776_v17  ;;  %v1782_v35 = vpop.permute.xlu0 %1781 }
 0x55b   : >> { %v1780_v47 = vpop.permute.xlu1 %1779 }
 0x55d   : >> { %4493 = vmatpush3.bf16.msra.mxu1 %v1776_v17 }
 0x55e   : >> { %4494 = vmatprep.subr.bf16.mxu1 %v1778_v6  ;;  %v6332_v24 = vpop.permute.xlu0 %1906 }
 0x55f   : >> { %v1784_v0 = vpop.permute.xlu1 %1783 }
 0x560   : >> { %4475 = vmatmul.mubr.msk.bf16.gmra.mrb[36].mxu0 %vm1013_vm2, %v1447_v8 }
 0x561   : >> { %4478 = vmatprep.mubr.msk.bf16.mxu0 %vm1013_vm2, %v1449_v10  ;;  %4495 = vmatpush3.bf16.msra.mxu1 %v1778_v6 }
 0x562   : >> { %4496 = vmatprep.subr.bf16.mxu1 %v1780_v47 }
 0x565   : >> { %4497 = vmatpush3.bf16.msra.mxu1 %v1780_v47 }
 0x566   : >> { %4498 = vmatprep.subr.bf16.mxu1 %v1782_v35 }
 0x568   : >> { %4479 = vmatmul.mubr.msk.bf16.gmra.mrb[40].mxu0 %vm1013_vm2, %v1451_v36 }
 0x569   : >> { %4482 = vmatprep.mubr.msk.bf16.mxu0 %vm1013_vm2, %v1453_v7  ;;  %4499 = vmatpush3.bf16.msra.mxu1 %v1782_v35 }
 0x56a   : >> { %4500 = vmatprep.subr.bf16.mxu1 %v1784_v0 }
 0x56d   : >> { %4501 = vmatpush3.bf16.msra.mxu1 %v1784_v0 }
 0x56e   : >> { %4750 = vmatprep.subr.msk.bf16.mxu1 %vm1013_vm2, %v6332_v24 }
 0x570   : >> { %4483 = vmatmul.mubr.msk.bf16.gmra.mrb[44].mxu0 %vm1013_vm2, %v1455_v29 }
 0x5d5   : >> { %v6337_v9 = vpop.f32.mrb[16].mxu0 }
 0x5d6   : >> { %7646 = vst [vmem:[#allocation18_spill] sm:$0xff] %v6337_v9  ;;  %v6339_v5 = vpop.f32.mrb[17].mxu0 }
 0x5d7   : >> { %7647 = vst [vmem:[#allocation19_spill] sm:$0xff] %v6339_v5  ;;  %v6341_v56 = vpop.f32.mrb[18].mxu0 }
 0x5d8   : >> { %7648 = vst [vmem:[#allocation20_spill] sm:$0xff] %v6341_v56  ;;  %v6343_v61 = vpop.f32.mrb[19].mxu0 }
 0x5d9   : >> { %7649 = vst [vmem:[#allocation21_spill] sm:$0xff] %v6343_v61 }
 0x60d   : >> { %v6345_v4 = vpop.f32.mrb[20].mxu0 }
 0x60e   : >> { %7650 = vst [vmem:[#allocation22_spill] sm:$0xff] %v6345_v4  ;;  %v6347_v13 = vpop.f32.mrb[21].mxu0 }
 0x60f   : >> { %7651 = vst [vmem:[#allocation23_spill] sm:$0xff] %v6347_v13  ;;  %v6349_v11 = vpop.f32.mrb[22].mxu0 }
 0x610   : >> { %7652 = vst [vmem:[#allocation24_spill] sm:$0xff] %v6349_v11  ;;  %v6351_v43 = vpop.f32.mrb[23].mxu0 }
 0x611   : >> { %7653 = vst [vmem:[#allocation25_spill] sm:$0xff] %v6351_v43 }
 0x61b   : >> { %v6353_v49 = vpop.f32.mrb[24].mxu0 }
 0x61c   : >> { %7654 = vst [vmem:[#allocation26_spill] sm:$0xff] %v6353_v49  ;;  %v6355_v50 = vpop.f32.mrb[25].mxu0 }
 0x61d   : >> { %7655 = vst [vmem:[#allocation27_spill] sm:$0xff] %v6355_v50  ;;  %v6357_v30 = vpop.f32.mrb[26].mxu0 }
 0x61e   : >> { %7656 = vst [vmem:[#allocation28_spill] sm:$0xff] %v6357_v30  ;;  %v6359_v16 = vpop.f32.mrb[27].mxu0 }
 0x61f   : >> { %7657 = vst [vmem:[#allocation29_spill] sm:$0xff] %v6359_v16 }
 0x623   : >> { %v6361_v23 = vpop.f32.mrb[28].mxu0 }
 0x624   : >> { %7658 = vst [vmem:[#allocation30_spill] sm:$0xff] %v6361_v23  ;;  %v6363_v10 = vpop.f32.mrb[29].mxu0 }
 0x625   : >> { %7659 = vst [vmem:[#allocation31_spill] sm:$0xff] %v6363_v10  ;;  %v6365_v59 = vpop.f32.mrb[30].mxu0 }
 0x626   : >> { %7660 = vst [vmem:[#allocation32_spill] sm:$0xff] %v6365_v59  ;;  %v6367_v1 = vpop.f32.mrb[31].mxu0 }
 0x627   : >> { %7661 = vst [vmem:[#allocation33_spill] sm:$0xff] %v6367_v1 }
 0x62b   : >> { %v4472_v8 = vpop.f32.mrb[32].mxu0 }
 0x62c   : >> { %v1563_v21 = vadd.f32 %v4472_v8, %v5699_v15  ;;  %v1554_v14 = vpop.f32.mrb[33].mxu0 }
 0x62d   : >> { %v4473_v51 = vpop.f32.mrb[34].mxu0  ;;  %v1555_v22 = vadd.f32 %v1554_v14, %v5699_v15 }
 0x62e   : >> { %1621 = vmax.xlane.f32.xlu0 %v1563_v21  ;;  %v1557_v52 = vpop.f32.mrb[35].mxu0  ;;  %v1566_v45 = vadd.f32 %v4473_v51, %v5699_v15 }
 0x62f   : >> { %v1558_v7 = vadd.f32 %v1557_v52, %v5699_v15 }
 0x631   : >> { %1619 = vmax.xlane.f32.xlu1 %v1558_v7 }
 0x632   : >> { %1617 = vmax.xlane.f32.xlu0 %v1555_v22 }
 0x633   : >> { %v4476_v36 = vpop.f32.mrb[36].mxu0 }
 0x634   : >> { %v1570_v60 = vpop.f32.mrb[37].mxu0  ;;  %v6377_v12 = vadd.f32 %v4476_v36, %v5699_v15 }
 0x635   : >> { %v4477_v48 = vpop.f32.mrb[38].mxu0  ;;  %v6385_v47 = vadd.f32 %v1570_v60, %v5699_v15 }
 0x636   : >> { %v6374_v29 = vadd.f32 %v4477_v48, %v5699_v15  ;;  %1623 = vmax.xlane.f32.xlu0 %v1566_v45  ;;  %v1573_v53 = vpop.f32.mrb[39].mxu0 }
 0x637   : >> { %v6381_v17 = vadd.f32 %v1573_v53, %v5699_v15 }
 0x638   : >> { %1631 = vmax.xlane.f32.xlu1 %v6374_v29 }
 0x63a   : >> { %1629 = vmax.xlane.f32.xlu0 %v6377_v12 }
 0x63b   : >> { %v4480_v6 = vpop.f32.mrb[40].mxu0 }
 0x63c   : >> { %1627 = vmax.xlane.f32.xlu1 %v6381_v17  ;;  %v1586_v35 = vpop.f32.mrb[41].mxu0  ;;  %v6393_v51 = vadd.f32 %v4480_v6, %v5699_v15 }
 0x63d   : >> { %v4481_v0 = vpop.f32.mrb[42].mxu0  ;;  %v6401_v60 = vadd.f32 %v1586_v35, %v5699_v15 }
 0x63e   : >> { %v6389_v8 = vadd.f32 %v4481_v0, %v5699_v15  ;;  %1625 = vmax.xlane.f32.xlu0 %v6385_v47  ;;  %v1589_v14 = vpop.f32.mrb[43].mxu0 }
 0x63f   : >> { %v6397_v52 = vadd.f32 %v1589_v14, %v5699_v15 }
 0x640   : >> { %1639 = vmax.xlane.f32.xlu1 %v6389_v8 }
 0x642   : >> { %1637 = vmax.xlane.f32.xlu0 %v6393_v51 }
 0x643   : >> { %v4484_v36 = vpop.f32.mrb[44].mxu0 }
 0x644   : >> { %1635 = vmax.xlane.f32.xlu1 %v6397_v52  ;;  %v1602_v48 = vpop.f32.mrb[45].mxu0  ;;  %v6406_v6 = vadd.f32 %v4484_v36, %v5699_v15 }
 0x645   : >> { %v4485_v53 = vpop.f32.mrb[46].mxu0  ;;  %v6410_v14 = vadd.f32 %v1602_v48, %v5699_v15  ;;  %v6425_v48 = vpop.permute.xlu1 %1908 }
 0x646   : >> { %1633 = vmax.xlane.f32.xlu0 %v6401_v60  ;;  %v1605_v0 = vpop.f32.mrb[47].mxu0  ;;  %v6418_v35 = vadd.f32 %v4485_v53, %v5699_v15 }
 0x647   : >> { %v6422_v36 = vadd.f32 %v1605_v0, %v5699_v15 }
 0x64a   : >> { %1645 = vmax.xlane.f32.xlu0 %v6406_v6 }
 0x64e   : >> { %1641 = vmax.xlane.f32.xlu0 %v6410_v14 }
 0x655   : >> { %1912 = vrot.lane.b32.xlu1 %v6051_v62, %s5561_s30 }
 0x664   : >> { %1910 = vrot.lane.b32.xlu0 %v6053_v18, %s5561_s30 }
 0x679   : >> { %1647 = vmax.xlane.f32.xlu1 %v6418_v35 }
 0x67d   : >> { %1643 = vmax.xlane.f32.xlu1 %v6422_v36 }
 0x6bb   : >> { %v1622_v46 = vpop.xlane.xlu0 %1621 }
 0x6bc   : >> { %v1651_v44 = vsub.f32 %v1563_v21, %v1622_v46 }
 0x6be   : >> { %v1669_v40 = vmul.f32 1.442695, %v1651_v44  ;;  %v1620_v38 = vpop.xlane.xlu1 %1619 }
 0x6bf   : >> { %v1650_v39 = vsub.f32 %v1558_v7, %v1620_v38  ;;  %v1618_v34 = vpop.xlane.xlu0 %1617 }
 0x6c0   : >> { %5155 = vpow2.f32 %v1669_v40  ;;  %v1649_v33 = vsub.f32 %v1555_v22, %v1618_v34 }
 0x6c1   : >> { %v1667_v32 = vmul.f32 1.442695, %v1650_v39 }
 0x6c2   : >> { %v1665_v53 = vmul.f32 1.442695, %v1649_v33 }
 0x6c3   : >> { %5157 = vpow2.f32 %v1667_v32  ;;  %v1624_v27 = vpop.xlane.xlu0 %1623 }
 0x6c4   : >> { %5159 = vpow2.f32 %v1665_v53  ;;  %v1652_v28 = vsub.f32 %v1566_v45, %v1624_v27 }
 0x6c6   : >> { %v1671_v0 = vmul.f32 1.442695, %v1652_v28  ;;  %v1632_v28 = vpop.xlane.xlu1 %1631 }
 0x6c7   : >> { %v1630_v32 = vpop.xlane.xlu0 %1629  ;;  %v1656_v53 = vsub.f32 %v6374_v29, %v1632_v28 }
 0x6c8   : >> { %5161 = vpow2.f32 %v1671_v0  ;;  %v1655_v38 = vsub.f32 %v6377_v12, %v1630_v32 }
 0x6c9   : >> { %v1679_v59 = vmul.f32 1.442695, %v1656_v53 }
 0x6ca   : >> { %v6427_v26 = vpop.eup %5155  ;;  %v1628_v39 = vpop.xlane.xlu1 %1627  ;;  %v1677_v46 = vmul.f32 1.442695, %v1655_v38 }
 0x6cb   : >> { %1701 = vadd.xlane.f32.xlu1 %v6427_v26  ;;  %v1626_v27 = vpop.xlane.xlu0 %1625  ;;  %v1654_v7 = vsub.f32 %v6381_v17, %v1628_v39 }
 0x6cc   : >> { %v1653_v21 = vsub.f32 %v6385_v47, %v1626_v27  ;;  %5163 = vpow2.f32 %v1677_v46 }
 0x6cd   : >> { %v6430_v10 = vpop.eup %5157  ;;  %v1675_v1 = vmul.f32 1.442695, %v1654_v7 }
 0x6ce   : >> { %v6432_v44 = vpop.eup %5159  ;;  %1699 = vadd.xlane.f32.xlu0 %v6430_v10  ;;  %v1640_v22 = vpop.xlane.xlu1 %1639  ;;  %v1673_v0 = vmul.f32 1.442695, %v1653_v21 }
 0x6cf   : >> { %1697 = vadd.xlane.f32.xlu1 %v6432_v44  ;;  %v1638_v33 = vpop.xlane.xlu0 %1637  ;;  %v1660_v29 = vsub.f32 %v6389_v8, %v1640_v22 }
 0x6d0   : >> { %v1659_v23 = vsub.f32 %v6393_v51, %v1638_v33  ;;  %5165 = vpow2.f32 %v1673_v0 }
 0x6d1   : >> { %5167 = vpow2.f32 %v1675_v1 }
 0x6d2   : >> { %v6436_v34 = vpop.eup %5161  ;;  %v1636_v50 = vpop.xlane.xlu1 %1635  ;;  %v1685_v32 = vmul.f32 1.442695, %v1659_v23  ;;  %5169 = vpow2.f32 %v1679_v59  ;;  %v1687_v23 = vmul.f32 1.442695, %v1660_v29 }
 0x6d3   : >> { %1703 = vadd.xlane.f32.xlu1 %v6436_v34  ;;  %v1634_v40 = vpop.xlane.xlu0 %1633 }
 0x6d4   : >> { %v1657_v47 = vsub.f32 %v6401_v60, %v1634_v40  ;;  %5171 = vpow2.f32 %v1685_v32  ;;  %v1658_v60 = vsub.f32 %v6397_v52, %v1636_v50 }
 0x6d6   : >> { %v1681_v28 = vmul.f32 1.442695, %v1657_v47  ;;  %v6452_v39 = vpop.eup %5163  ;;  %v6454_v51 = vpop.permute.xlu1 %1912  ;;  %v1683_v33 = vmul.f32 1.442695, %v1658_v60 }
 0x6d7   : >> { %v1646_v45 = vpop.xlane.xlu0 %1645 }
 0x6d8   : >> { %v1663_v12 = vsub.f32 %v6406_v6, %v1646_v45 }
 0x6da   : >> { %v1693_v17 = vmul.f32 1.442695, %v1663_v12  ;;  %v6458_v59 = vpop.eup %5165 }
 0x6db   : >> { %v1642_v27 = vpop.xlane.xlu0 %1641 }
 0x6dc   : >> { %v1661_v38 = vsub.f32 %v6410_v14, %v1642_v27  ;;  %5173 = vpow2.f32 %v1693_v17  ;;  %v6460_v14 = vpop.eup %5167 }
 0x6dd   : >> { %5175 = vpow2.f32 %v1681_v28  ;;  %v6465_v46 = vpop.eup %5169 }
 0x6de   : >> { %v1689_v1 = vmul.f32 1.442695, %v1661_v38  ;;  %v6467_v50 = vpop.eup %5171 }
 0x6df   : >> { %v1911_v32 = vpop.permute.xlu0 %1910 }
 0x6e0   : >> { %5177 = vpow2.f32 %v1689_v1 }
 0x6e1   : >> { %5179 = vpow2.f32 %v1687_v23 }
 0x6e4   : >> { %1916 = vrot.lane.b32.xlu1 %v6067_v25, %s5561_s30  ;;  %1914 = vrot.lane.b32.xlu0 %v6069_v19, %s5561_s30 }
 0x6e6   : >> { %v6472_v7 = vpop.eup %5173 }
 0x6e7   : >> { %v6474_v22 = vpop.eup %5175 }
 0x6ea   : >> { %v6478_v45 = vpop.eup %5177 }
 0x6eb   : >> { %v6480_v53 = vpop.eup %5179 }
 0x703   : >> { %1709 = vadd.xlane.f32.xlu0 %v6452_v39 }
 0x706   : >> { %v1648_v6 = vpop.xlane.xlu1 %1647 }
 0x707   : >> { %v1664_v8 = vsub.f32 %v6418_v35, %v1648_v6  ;;  %1705 = vadd.xlane.f32.xlu0 %v6458_v59 }
 0x708   : >> { %1707 = vadd.xlane.f32.xlu1 %v6460_v14 }
 0x709   : >> { %v1695_v40 = vmul.f32 1.442695, %v1664_v8 }
 0x70a   : >> { %v1644_v21 = vpop.xlane.xlu1 %1643 }
 0x70b   : >> { %5181 = vpow2.f32 %v1695_v40  ;;  %v1662_v52 = vsub.f32 %v6422_v36, %v1644_v21  ;;  %1711 = vadd.xlane.f32.xlu0 %v6465_v46 }
 0x70c   : >> { %1717 = vadd.xlane.f32.xlu1 %v6467_v50  ;;  %5183 = vpow2.f32 %v1683_v33 }
 0x70d   : >> { %v1691_v35 = vmul.f32 1.442695, %v1662_v52  ;;  %v1947_v52 = vsel %vm1013_vm2, %v6332_v24, 0 }
 0x70f   : >> { %1725 = vadd.xlane.f32.xlu0 %v6472_v7  ;;  %5185 = vpow2.f32 %v1691_v35 }
 0x710   : >> { %1713 = vadd.xlane.f32.xlu1 %v6474_v22 }
 0x713   : >> { %1721 = vadd.xlane.f32.xlu0 %v6478_v45 }
 0x714   : >> { %1719 = vadd.xlane.f32.xlu1 %v6480_v53 }
 0x715   : >> { %v6484_v36 = vpop.eup %5181 }
 0x716   : >> { %v6486_v0 = vpop.eup %5183 }
 0x717   : >> { %1727 = vadd.xlane.f32.xlu0 %v6484_v36 }
 0x718   : >> { %1715 = vadd.xlane.f32.xlu1 %v6486_v0 }
 0x719   : >> { %v6490_v12 = vpop.eup %5185 }
 0x71c   : >> { %1723 = vadd.xlane.f32.xlu1 %v6490_v12 }
 0x72d   : >> { %1918 = vrot.lane.b32.xlu0 %v6085_v55, %s5561_s30  ;;  %1920 = vrot.lane.b32.xlu1 %v6083_v42, %s5561_s30  ;;  %s5569_s30 = smov 24  }
 0x731   : >> { %1890 = vrot.lane.b32.xlu0 %v6041_v41, %s5562_s25  ;;  %1892 = vrot.lane.b32.xlu1 %v6037_v54, %s5562_s25 }
 0x735   : >> { %1894 = vrot.lane.b32.xlu0 %v6057_v3, %s5562_s25  ;;  %1896 = vrot.lane.b32.xlu1 %v6055_v2, %s5562_s25 }
 0x739   : >> { %1898 = vrot.lane.b32.xlu0 %v6073_v31, %s5562_s25  ;;  %1900 = vrot.lane.b32.xlu1 %v6071_v20, %s5562_s25 }
 0x73d   : >> { %1902 = vrot.lane.b32.xlu0 %v6091_v58, %s5562_s25  ;;  %1904 = vrot.lane.b32.xlu1 %v6087_v57, %s5562_s25 }
 0x741   : >> { %2219 = vrot.lane.b32.xlu0 %v6035_v63, %s5563_s28  ;;  %2221 = vrot.lane.b32.xlu1 %v6033_v37, %s5563_s28 }
 0x745   : >> { %2223 = vrot.lane.b32.xlu0 %v6053_v18, %s5563_s28  ;;  %2225 = vrot.lane.b32.xlu1 %v6051_v62, %s5563_s28 }
 0x749   : >> { %2227 = vrot.lane.b32.xlu0 %v6069_v19, %s5563_s28  ;;  %2229 = vrot.lane.b32.xlu1 %v6067_v25, %s5563_s28 }
 0x74d   : >> { %2231 = vrot.lane.b32.xlu0 %v6085_v55, %s5563_s28  ;;  %2233 = vrot.lane.b32.xlu1 %v6083_v42, %s5563_s28 }
 0x751   : >> { %2356 = vrot.lane.b32.xlu0 %v6035_v63, %s5564_s15  ;;  %2358 = vrot.lane.b32.xlu1 %v6033_v37, %s5564_s15 }
 0x758   : >> { %v1702_v47 = vpop.xlane.xlu1 %1701 }
 0x75b   : >> { %v1700_v27 = vpop.xlane.xlu0 %1699 }
 0x75c   : >> { %5187 = vrcp.f32 %v1700_v27  ;;  %v1698_v17 = vpop.xlane.xlu1 %1697 }
 0x75d   : >> { %5189 = vrcp.f32 %v1698_v17 }
 0x75e   : >> { %5191 = vrcp.f32 %v1702_v47 }
 0x75f   : >> { %v1915_v24 = vpop.permute.xlu0 %1914 }
 0x760   : >> { %v1704_v38 = vpop.xlane.xlu1 %1703  ;;  %v1959_v35 = vsel %vm1013_vm2, %v1915_v24, 0 }
 0x761   : >> { %5193 = vrcp.f32 %v1704_v38 }
 0x766   : >> { %v5188_v29 = vpop.eup %5187 }
 0x767   : >> { %v5190_v28 = vpop.eup %5189  ;;  %v1746_v1 = vmul.f32 %v5188_v29, %v6430_v10  ;;  %v1950_v10 = vsel %vm1013_vm2, %v6425_v48, 0 }
 0x768   : >> { %v1745_v23 = vmul.f32 %v5190_v28, %v6432_v44  ;;  %v5192_v60 = vpop.eup %5191  ;;  %v1956_v44 = vsel %vm1013_vm2, %v6454_v51, 0 }
 0x769   : >> { %v1747_v33 = vmul.f32 %v5192_v60, %v6427_v26  ;;  %v1953_v26 = vsel %vm1013_vm2, %v1911_v32, 0 }
 0x76a   : >> { %v1761_v6 = vpack.c.bf16 %v1746_v1, %v1745_v23 }
 0x76b   : >> { %v5194_v8 = vpop.eup %5193 }
 0x76c   : >> { %v1748_v40 = vmul.f32 %v5194_v8, %v6436_v34  ;;  %4502 = vmatprep.mubr.bf16.mxu1 %v1761_v6 }
 0x76e   : >> { %v1762_v21 = vpack.c.bf16 %v1748_v40, %v1747_v33 }
 0x770   : >> { %4503 = vmatmul.mubr.bf16.vlgmr.msra.gmra.mrb[16].mxu1 %v1762_v21 }
 0x771   : >> { %4519 = vmatpush3.bf16.xpose.msra.mxu1 %v1947_v52 }
 0x772   : >> { %4751 = vmatprep.subr.msk.bf16.mxu1 %vm1013_vm2, %v6425_v48  ;;  %v1917_v48 = vpop.permute.xlu1 %1916 }
 0x773   : >> { %v1962_v17 = vsel %vm1013_vm2, %v1917_v48, 0 }
 0x779   : >> { %4521 = vmatpush3.bf16.xpose.msra.mxu1 %v1950_v10 }
 0x77a   : >> { %4752 = vmatprep.subr.msk.bf16.mxu1 %vm1013_vm2, %v1911_v32 }
 0x781   : >> { %4523 = vmatpush3.bf16.xpose.msra.mxu1 %v1953_v26 }
 0x782   : >> { %4753 = vmatprep.subr.msk.bf16.mxu1 %vm1013_vm2, %v6454_v51 }
 0x789   : >> { %4525 = vmatpush3.bf16.xpose.msra.mxu1 %v1956_v44 }
 0x78a   : >> { %4754 = vmatprep.subr.msk.bf16.mxu1 %vm1013_vm2, %v1915_v24 }
 0x790   : >> { %v1710_v34 = vpop.xlane.xlu0 %1709 }
 0x791   : >> { %4527 = vmatpush3.bf16.xpose.msra.mxu1 %v1959_v35 }
 0x792   : >> { %4755 = vmatprep.subr.msk.bf16.mxu1 %vm1013_vm2, %v1917_v48 }
 0x794   : >> { %v1706_v47 = vpop.xlane.xlu0 %1705 }
 0x795   : >> { %5195 = vrcp.f32 %v1706_v47  ;;  %v1708_v32 = vpop.xlane.xlu1 %1707 }
 0x796   : >> { %5197 = vrcp.f32 %v1708_v32 }
 0x797   : >> { %5199 = vrcp.f32 %v1710_v34 }
 0x798   : >> { %v1712_v27 = vpop.xlane.xlu0 %1711 }
 0x799   : >> { %5201 = vrcp.f32 %v1712_v27  ;;  %4529 = vmatpush3.bf16.xpose.msra.mxu1 %v1962_v17  ;;  %v1718_v51 = vpop.xlane.xlu1 %1717 }
 0x79c   : >> { %v1726_v38 = vpop.xlane.xlu0 %1725 }
 0x79d   : >> { %v1714_v29 = vpop.xlane.xlu1 %1713 }
 0x79f   : >> { %v5196_v28 = vpop.eup %5195 }
 0x7a0   : >> { %v5198_v1 = vpop.eup %5197  ;;  %v1722_v23 = vpop.xlane.xlu0 %1721  ;;  %v1749_v60 = vmul.f32 %v5196_v28, %v6458_v59 }
 0x7a1   : >> { %v5200_v6 = vpop.eup %5199  ;;  %v1720_v8 = vpop.xlane.xlu1 %1719  ;;  %v1750_v33 = vmul.f32 %v5198_v1, %v6460_v14 }
 0x7a2   : >> { %5203 = vrcp.f32 %v1720_v8  ;;  %v1751_v10 = vmul.f32 %v5200_v6, %v6452_v39 }
 0x7a3   : >> { %v5202_v40 = vpop.eup %5201  ;;  %v1763_v21 = vpack.c.bf16 %v1750_v33, %v1749_v60  ;;  %5205 = vrcp.f32 %v1714_v29 }
 0x7a4   : >> { %v1728_v52 = vpop.xlane.xlu0 %1727  ;;  %v1752_v26 = vmul.f32 %v5202_v40, %v6465_v46  ;;  %5207 = vrcp.f32 %v1718_v51 }
 0x7a5   : >> { %4506 = vmatprep.mubr.bf16.mxu1 %v1763_v21  ;;  %v1716_v44 = vpop.xlane.xlu1 %1715 }
 0x7a6   : >> { %5209 = vrcp.f32 %v1716_v44  ;;  %v1764_v24 = vpack.c.bf16 %v1752_v26, %v1751_v10 }
 0x7a7   : >> { %5211 = vrcp.f32 %v1722_v23 }
 0x7a8   : >> { %v1919_v59 = vpop.permute.xlu0 %1918  ;;  %4507 = vmatmul.mubr.bf16.gmra.mrb[20].mxu1 %v1764_v24 }
 0x7a9   : >> { %4756 = vmatprep.subr.msk.bf16.mxu1 %vm1013_vm2, %v1919_v59  ;;  %v1724_v14 = vpop.xlane.xlu1 %1723  ;;  %v1965_v34 = vsel %vm1013_vm2, %v1919_v59, 0 }
 0x7aa   : >> { %5213 = vrcp.f32 %v1724_v14  ;;  %4531 = vmatpush3.bf16.xpose.msra.mxu1 %v1965_v34 }
 0x7ab   : >> { %5215 = vrcp.f32 %v1728_v52 }
 0x7ac   : >> { %v1891_v35 = vpop.permute.xlu0 %1890  ;;  %v5204_v39 = vpop.eup %5203  ;;  %5217 = vrcp.f32 %v1726_v38 }
 0x7ad   : >> { %v1921_v46 = vpop.permute.xlu1 %1920  ;;  %v5206_v48 = vpop.eup %5205  ;;  %v1756_v17 = vmul.f32 %v5204_v39, %v6480_v53 }
 0x7ae   : >> { %4757 = vmatprep.subr.msk.bf16.mxu1 %vm1013_vm2, %v1921_v46  ;;  %v5208_v47 = vpop.eup %5207  ;;  %v1968_v29 = vsel %vm1013_vm2, %v1921_v46, 0  ;;  %v1753_v28 = vmul.f32 %v5206_v48, %v6474_v22 }
 0x7af   : >> { %v1755_v38 = vmul.f32 %v5208_v47, %v6467_v50 }
 0x7b0   : >> { %v5210_v32 = vpop.eup %5209  ;;  %v1895_v27 = vpop.permute.xlu0 %1894 }
 0x7b1   : >> { %v1893_v51 = vpop.permute.xlu1 %1892  ;;  %v1754_v1 = vmul.f32 %v5210_v32, %v6486_v0  ;;  %v5212_v23 = vpop.eup %5211  ;;  %v1766_v33 = vpack.c.bf16 %v1756_v17, %v1755_v38 }
 0x7b2   : >> { %4533 = vmatpush3.bf16.xpose.msra.mxu1 %v1968_v29  ;;  %v1757_v53 = vmul.f32 %v5212_v23, %v6478_v45 }
 0x7b3   : >> { %v1765_v60 = vpack.c.bf16 %v1754_v1, %v1753_v28 }
 0x7b4   : >> { %v5214_v6 = vpop.eup %5213  ;;  %v1899_v8 = vpop.permute.xlu0 %1898 }
 0x7b5   : >> { %v5216_v40 = vpop.eup %5215  ;;  %4510 = vmatprep.mubr.bf16.mxu1 %v1765_v60  ;;  %v1897_v21 = vpop.permute.xlu1 %1896  ;;  %v1758_v52 = vmul.f32 %v5214_v6, %v6490_v12 }
 0x7b6   : >> { %4511 = vmatmul.mubr.bf16.gmra.mrb[24].mxu1 %v1766_v33  ;;  %v5218_v10 = vpop.eup %5217  ;;  %v1760_v0 = vmul.f32 %v5216_v40, %v6484_v36 }
 0x7b7   : >> { %v1767_v22 = vpack.c.bf16 %v1758_v52, %v1757_v53  ;;  %v1759_v50 = vmul.f32 %v5218_v10, %v6472_v7 }
 0x7b8   : >> { %v1903_v26 = vpop.permute.xlu0 %1902 }
 0x7b9   : >> { %4514 = vmatprep.mubr.bf16.mxu1 %v1767_v22  ;;  %v1901_v44 = vpop.permute.xlu1 %1900  ;;  %v1768_v59 = vpack.c.bf16 %v1760_v0, %v1759_v50 }
 0x7bc   : >> { %v2220_v24 = vpop.permute.xlu0 %2219 }
 0x7bd   : >> { %4550 = vmatprep.subr.bf16.mxu0 %v2220_v24  ;;  %v1905_v14 = vpop.permute.xlu1 %1904 }
 0x7be   : >> { %4515 = vmatmul.mubr.bf16.gmra.mrb[28].mxu1 %v1768_v59  ;;  %4551 = vmatpush3.bf16.msra.mxu0 %v2220_v24 }
 0x7bf   : >> { %4534 = vmatprep.mubr.msk.bf16.mxu1 %vm1013_vm2, %v1891_v35 }
 0x7c0   : >> { %v2224_v12 = vpop.permute.xlu0 %2223 }
 0x7c1   : >> { %v2222_v45 = vpop.permute.xlu1 %2221 }
 0x7c2   : >> { %4552 = vmatprep.subr.bf16.mxu0 %v2222_v45 }
 0x7c3   : >> { %4553 = vmatpush3.bf16.msra.mxu0 %v2222_v45 }
 0x7c4   : >> { %4554 = vmatprep.subr.bf16.mxu0 %v2224_v12  ;;  %v2228_v7 = vpop.permute.xlu0 %2227 }
 0x7c5   : >> { %v2226_v36 = vpop.permute.xlu1 %2225 }
 0x7c6   : >> { %4535 = vmatmul.mubr.msk.bf16.vlgmr.msra.gmra.mrb[32].mxu1 %vm1013_vm2, %v1893_v51 }
 0x7c7   : >> { %4538 = vmatprep.mubr.msk.bf16.mxu1 %vm1013_vm2, %v1895_v27  ;;  %4555 = vmatpush3.bf16.msra.mxu0 %v2224_v12 }
 0x7c8   : >> { %4556 = vmatprep.subr.bf16.mxu0 %v2226_v36  ;;  %v2232_v35 = vpop.permute.xlu0 %2231 }
 0x7c9   : >> { %v2230_v34 = vpop.permute.xlu1 %2229 }
 0x7cb   : >> { %4557 = vmatpush3.bf16.msra.mxu0 %v2226_v36 }
 0x7cc   : >> { %4558 = vmatprep.subr.bf16.mxu0 %v2228_v7  ;;  %v6560_v46 = vpop.permute.xlu0 %2356 }
 0x7cd   : >> { %v2234_v39 = vpop.permute.xlu1 %2233 }
 0x7ce   : >> { %4539 = vmatmul.mubr.msk.bf16.gmra.mrb[36].mxu1 %vm1013_vm2, %v1897_v21 }
 0x7cf   : >> { %4542 = vmatprep.mubr.msk.bf16.mxu1 %vm1013_vm2, %v1899_v8  ;;  %4559 = vmatpush3.bf16.msra.mxu0 %v2228_v7 }
 0x7d0   : >> { %4560 = vmatprep.subr.bf16.mxu0 %v2230_v34 }
 0x7d3   : >> { %4561 = vmatpush3.bf16.msra.mxu0 %v2230_v34 }
 0x7d4   : >> { %4562 = vmatprep.subr.bf16.mxu0 %v2232_v35 }
 0x7d6   : >> { %4543 = vmatmul.mubr.msk.bf16.gmra.mrb[40].mxu1 %vm1013_vm2, %v1901_v44 }
 0x7d7   : >> { %4546 = vmatprep.mubr.msk.bf16.mxu1 %vm1013_vm2, %v1903_v26  ;;  %4563 = vmatpush3.bf16.msra.mxu0 %v2232_v35 }
 0x7d8   : >> { %4564 = vmatprep.subr.bf16.mxu0 %v2234_v39 }
 0x7db   : >> { %4565 = vmatpush3.bf16.msra.mxu0 %v2234_v39 }
 0x7dc   : >> { %4758 = vmatprep.subr.msk.bf16.mxu0 %vm1013_vm2, %v6560_v46 }
 0x7de   : >> { %4547 = vmatmul.mubr.msk.bf16.gmra.mrb[44].mxu1 %vm1013_vm2, %v1905_v14 }
 0x843   : >> { %v6565_v48 = vpop.f32.mrb[16].mxu1 }
 0x844   : >> { %v6567_v47 = vpop.f32.mrb[17].mxu1 }
 0x845   : >> { %v6569_v32 = vpop.f32.mrb[18].mxu1 }
 0x846   : >> { %v6573_v17 = vpop.f32.mrb[19].mxu1 }
 0x87b   : >> { %v6577_v29 = vpop.f32.mrb[20].mxu1 }
 0x87c   : >> { %v6579_v28 = vpop.f32.mrb[21].mxu1 }
 0x87d   : >> { %v6581_v1 = vpop.f32.mrb[22].mxu1 }
 0x87e   : >> { %v6585_v38 = vpop.f32.mrb[23].mxu1 }
 0x889   : >> { %v6589_v6 = vpop.f32.mrb[24].mxu1 }
 0x88a   : >> { %v6591_v8 = vpop.f32.mrb[25].mxu1 }
 0x88b   : >> { %7662 = vst [vmem:[#allocation34_spill] sm:$0xff] %v6591_v8  ;;  %v6593_v33 = vpop.f32.mrb[26].mxu1 }
 0x88c   : >> { %v6597_v21 = vpop.f32.mrb[27].mxu1 }
 0x891   : >> { %v6601_v52 = vpop.f32.mrb[28].mxu1 }
 0x892   : >> { %7663 = vst [vmem:[#allocation35_spill] sm:$0xff] %v6601_v52  ;;  %v6603_v10 = vpop.f32.mrb[29].mxu1 }
 0x893   : >> { %7664 = vst [vmem:[#allocation36_spill] sm:$0xff] %v6603_v10  ;;  %v6605_v22 = vpop.f32.mrb[30].mxu1 }
 0x894   : >> { %7665 = vst [vmem:[#allocation37_spill] sm:$0xff] %v6605_v22  ;;  %v6609_v0 = vpop.f32.mrb[31].mxu1 }
 0x895   : >> { %7666 = vst [vmem:[#allocation38_spill] sm:$0xff] %v6609_v0 }
 0x899   : >> { %v4536_v50 = vpop.f32.mrb[32].mxu1 }
 0x89a   : >> { %v2013_v24 = vadd.f32 %v4536_v50, %v5699_v15  ;;  %v2004_v59 = vpop.f32.mrb[33].mxu1 }
 0x89b   : >> { %v4537_v14 = vpop.f32.mrb[34].mxu1  ;;  %v2005_v36 = vadd.f32 %v2004_v59, %v5699_v15 }
 0x89c   : >> { %2071 = vmax.xlane.f32.xlu0 %v2013_v24  ;;  %v2007_v45 = vpop.f32.mrb[35].mxu1  ;;  %v2016_v34 = vadd.f32 %v4537_v14, %v5699_v15 }
 0x89d   : >> { %v2008_v12 = vadd.f32 %v2007_v45, %v5699_v15 }
 0x89f   : >> { %2069 = vmax.xlane.f32.xlu1 %v2008_v12 }
 0x8a0   : >> { %2067 = vmax.xlane.f32.xlu0 %v2005_v36 }
 0x8a1   : >> { %v4540_v7 = vpop.f32.mrb[36].mxu1 }
 0x8a2   : >> { %v2020_v35 = vpop.f32.mrb[37].mxu1  ;;  %v6621_v26 = vadd.f32 %v4540_v7, %v5699_v15 }
 0x8a3   : >> { %v4541_v39 = vpop.f32.mrb[38].mxu1  ;;  %v6629_v14 = vadd.f32 %v2020_v35, %v5699_v15 }
 0x8a4   : >> { %v6618_v44 = vadd.f32 %v4541_v39, %v5699_v15  ;;  %2073 = vmax.xlane.f32.xlu0 %v2016_v34  ;;  %v2023_v50 = vpop.f32.mrb[39].mxu1 }
 0x8a5   : >> { %v6625_v45 = vadd.f32 %v2023_v50, %v5699_v15 }
 0x8a6   : >> { %2081 = vmax.xlane.f32.xlu1 %v6618_v44 }
 0x8a8   : >> { %2079 = vmax.xlane.f32.xlu0 %v6621_v26 }
 0x8a9   : >> { %v4544_v59 = vpop.f32.mrb[40].mxu1 }
 0x8aa   : >> { %2077 = vmax.xlane.f32.xlu1 %v6625_v45  ;;  %v2036_v39 = vpop.f32.mrb[41].mxu1  ;;  %v6637_v51 = vadd.f32 %v4544_v59, %v5699_v15 }
 0x8ab   : >> { %v4545_v53 = vpop.f32.mrb[42].mxu1  ;;  %v6645_v40 = vadd.f32 %v2036_v39, %v5699_v15 }
 0x8ac   : >> { %v6633_v60 = vadd.f32 %v4545_v53, %v5699_v15  ;;  %2075 = vmax.xlane.f32.xlu0 %v6629_v14  ;;  %v2039_v7 = vpop.f32.mrb[43].mxu1 }
 0x8ad   : >> { %v6641_v50 = vadd.f32 %v2039_v7, %v5699_v15 }
 0x8ae   : >> { %2089 = vmax.xlane.f32.xlu1 %v6633_v60 }
 0x8b0   : >> { %2087 = vmax.xlane.f32.xlu0 %v6637_v51 }
 0x8b1   : >> { %v4548_v35 = vpop.f32.mrb[44].mxu1 }
 0x8b2   : >> { %2085 = vmax.xlane.f32.xlu1 %v6641_v50  ;;  %v2052_v53 = vpop.f32.mrb[45].mxu1  ;;  %v6650_v59 = vadd.f32 %v4548_v35, %v5699_v15 }
 0x8b3   : >> { %v4549_v23 = vpop.f32.mrb[46].mxu1  ;;  %v6654_v7 = vadd.f32 %v2052_v53, %v5699_v15  ;;  %v6669_v53 = vpop.permute.xlu1 %2358 }
 0x8b4   : >> { %2083 = vmax.xlane.f32.xlu0 %v6645_v40  ;;  %v2055_v27 = vpop.f32.mrb[47].mxu1  ;;  %v6662_v39 = vadd.f32 %v4549_v23, %v5699_v15 }
 0x8b5   : >> { %v6666_v35 = vadd.f32 %v2055_v27, %v5699_v15 }
 0x8b8   : >> { %2095 = vmax.xlane.f32.xlu0 %v6650_v59 }
 0x8bc   : >> { %2091 = vmax.xlane.f32.xlu0 %v6654_v7 }
 0x8c3   : >> { %2362 = vrot.lane.b32.xlu1 %v6051_v62, %s5564_s15 }
 0x8d2   : >> { %2360 = vrot.lane.b32.xlu0 %v6053_v18, %s5564_s15 }
 0x8e7   : >> { %2097 = vmax.xlane.f32.xlu1 %v6662_v39 }
 0x8eb   : >> { %2093 = vmax.xlane.f32.xlu1 %v6666_v35 }
 0x929   : >> { %v2072_v16 = vpop.xlane.xlu0 %2071 }
 0x92a   : >> { %v2101_v49 = vsub.f32 %v2013_v24, %v2072_v16 }
 0x92c   : >> { %v2119_v30 = vmul.f32 1.442695, %v2101_v49  ;;  %v2070_v13 = vpop.xlane.xlu1 %2069 }
 0x92d   : >> { %v2100_v43 = vsub.f32 %v2008_v12, %v2070_v13  ;;  %v2068_v11 = vpop.xlane.xlu0 %2067 }
 0x92e   : >> { %5219 = vpow2.f32 %v2119_v30  ;;  %v2099_v4 = vsub.f32 %v2005_v36, %v2068_v11 }
 0x92f   : >> { %v2117_v5 = vmul.f32 1.442695, %v2100_v43 }
 0x930   : >> { %v2115_v23 = vmul.f32 1.442695, %v2099_v4 }
 0x931   : >> { %5221 = vpow2.f32 %v2117_v5  ;;  %v2074_v61 = vpop.xlane.xlu0 %2073 }
 0x932   : >> { %5223 = vpow2.f32 %v2115_v23  ;;  %v2102_v9 = vsub.f32 %v2016_v34, %v2074_v61 }
 0x933   : >> { %v2082_v61 = vpop.xlane.xlu1 %2081 }
 0x934   : >> { %v2121_v27 = vmul.f32 1.442695, %v2102_v9  ;;  %v2106_v23 = vsub.f32 %v6618_v44, %v2082_v61 }
 0x935   : >> { %v2080_v5 = vpop.xlane.xlu0 %2079 }
 0x936   : >> { %5225 = vpow2.f32 %v2121_v27  ;;  %v2105_v11 = vsub.f32 %v6621_v26, %v2080_v5  ;;  %v2129_v22 = vmul.f32 1.442695, %v2106_v23 }
 0x937   : >> { %v2078_v43 = vpop.xlane.xlu1 %2077 }
 0x938   : >> { %v6671_v56 = vpop.eup %5219  ;;  %v2127_v16 = vmul.f32 1.442695, %v2105_v11  ;;  %v2104_v12 = vsub.f32 %v6625_v45, %v2078_v43 }
 0x939   : >> { %2151 = vadd.xlane.f32.xlu1 %v6671_v56  ;;  %v2076_v9 = vpop.xlane.xlu0 %2075 }
 0x93a   : >> { %v2103_v24 = vsub.f32 %v6629_v14, %v2076_v9  ;;  %5227 = vpow2.f32 %v2127_v16  ;;  %v2125_v0 = vmul.f32 1.442695, %v2104_v12 }
 0x93b   : >> { %v6674_v10 = vpop.eup %5221  ;;  %v2090_v36 = vpop.xlane.xlu1 %2089 }
 0x93c   : >> { %v6676_v49 = vpop.eup %5223  ;;  %2149 = vadd.xlane.f32.xlu0 %v6674_v10  ;;  %v2123_v27 = vmul.f32 1.442695, %v2103_v24  ;;  %v2110_v44 = vsub.f32 %v6633_v60, %v2090_v36 }
 0x93d   : >> { %2147 = vadd.xlane.f32.xlu1 %v6676_v49  ;;  %v2088_v4 = vpop.xlane.xlu0 %2087 }
 0x93e   : >> { %v2109_v52 = vsub.f32 %v6637_v51, %v2088_v4  ;;  %5229 = vpow2.f32 %v2123_v27 }
 0x93f   : >> { %v2086_v8 = vpop.xlane.xlu1 %2085  ;;  %5231 = vpow2.f32 %v2125_v0 }
 0x940   : >> { %v6680_v13 = vpop.eup %5225  ;;  %v2135_v5 = vmul.f32 1.442695, %v2109_v52  ;;  %5233 = vpow2.f32 %v2129_v22  ;;  %v2137_v52 = vmul.f32 1.442695, %v2110_v44 }
 0x941   : >> { %2153 = vadd.xlane.f32.xlu1 %v6680_v13  ;;  %v2084_v30 = vpop.xlane.xlu0 %2083 }
 0x942   : >> { %v2107_v14 = vsub.f32 %v6645_v40, %v2084_v30  ;;  %5235 = vpow2.f32 %v2135_v5  ;;  %v2108_v40 = vsub.f32 %v6641_v50, %v2086_v8 }
 0x943   : >> { %v6698_v51 = vpop.permute.xlu1 %2362 }
 0x944   : >> { %v2131_v61 = vmul.f32 1.442695, %v2107_v14  ;;  %v6696_v43 = vpop.eup %5227  ;;  %v2133_v4 = vmul.f32 1.442695, %v2108_v40 }
 0x945   : >> { %v2096_v34 = vpop.xlane.xlu0 %2095 }
 0x946   : >> { %v2113_v26 = vsub.f32 %v6650_v59, %v2096_v34 }
 0x948   : >> { %v2143_v45 = vmul.f32 1.442695, %v2113_v26  ;;  %v6702_v22 = vpop.eup %5229 }
 0x949   : >> { %v2092_v9 = vpop.xlane.xlu0 %2091 }
 0x94a   : >> { %v2111_v11 = vsub.f32 %v6654_v7, %v2092_v9  ;;  %5237 = vpow2.f32 %v2143_v45  ;;  %v6704_v7 = vpop.eup %5231 }
 0x94b   : >> { %5239 = vpow2.f32 %v2131_v61  ;;  %v6709_v16 = vpop.eup %5233 }
 0x94c   : >> { %v2139_v0 = vmul.f32 1.442695, %v2111_v11  ;;  %v6711_v8 = vpop.eup %5235  ;;  %v2397_v11 = vsel %vm1013_vm2, %v6560_v46, 0 }
 0x94e   : >> { %5241 = vpow2.f32 %v2139_v0 }
 0x94f   : >> { %5243 = vpow2.f32 %v2137_v52 }
 0x952   : >> { %2366 = vrot.lane.b32.xlu1 %v6067_v25, %s5564_s15  ;;  %2364 = vrot.lane.b32.xlu0 %v6069_v19, %s5564_s15 }
 0x954   : >> { %v6716_v12 = vpop.eup %5237 }
 0x955   : >> { %v6718_v36 = vpop.eup %5239 }
 0x958   : >> { %v6722_v34 = vpop.eup %5241 }
 0x959   : >> { %v6724_v23 = vpop.eup %5243 }
 0x971   : >> { %2159 = vadd.xlane.f32.xlu0 %v6696_v43 }
 0x974   : >> { %v2098_v59 = vpop.xlane.xlu1 %2097 }
 0x975   : >> { %v2114_v60 = vsub.f32 %v6662_v39, %v2098_v59  ;;  %2155 = vadd.xlane.f32.xlu0 %v6702_v22 }
 0x976   : >> { %2157 = vadd.xlane.f32.xlu1 %v6704_v7 }
 0x977   : >> { %v2145_v30 = vmul.f32 1.442695, %v2114_v60 }
 0x978   : >> { %v2094_v24 = vpop.xlane.xlu1 %2093 }
 0x979   : >> { %5245 = vpow2.f32 %v2145_v30  ;;  %v2112_v50 = vsub.f32 %v6666_v35, %v2094_v24  ;;  %2161 = vadd.xlane.f32.xlu0 %v6709_v16 }
 0x97a   : >> { %2167 = vadd.xlane.f32.xlu1 %v6711_v8  ;;  %5247 = vpow2.f32 %v2133_v4 }
 0x97b   : >> { %v2141_v39 = vmul.f32 1.442695, %v2112_v50 }
 0x97d   : >> { %2175 = vadd.xlane.f32.xlu0 %v6716_v12  ;;  %5249 = vpow2.f32 %v2141_v39 }
 0x97e   : >> { %2163 = vadd.xlane.f32.xlu1 %v6718_v36 }
 0x981   : >> { %2171 = vadd.xlane.f32.xlu0 %v6722_v34 }
 0x982   : >> { %2169 = vadd.xlane.f32.xlu1 %v6724_v23 }
 0x983   : >> { %v6728_v35 = vpop.eup %5245 }
 0x984   : >> { %v6730_v27 = vpop.eup %5247 }
 0x985   : >> { %2177 = vadd.xlane.f32.xlu0 %v6728_v35 }
 0x986   : >> { %2165 = vadd.xlane.f32.xlu1 %v6730_v27 }
 0x987   : >> { %v6734_v26 = vpop.eup %5249 }
 0x98a   : >> { %2173 = vadd.xlane.f32.xlu1 %v6734_v26 }
 0x99b   : >> { %2368 = vrot.lane.b32.xlu0 %v6085_v55, %s5564_s15  ;;  %2370 = vrot.lane.b32.xlu1 %v6083_v42, %s5564_s15  ;;  %s3046_s15 = scalar_lea.vmem %s7601_s7, %s5553_s22 }
 0x99f   : >> { %2340 = vrot.lane.b32.xlu0 %v6041_v41, %s5565_s16  ;;  %2342 = vrot.lane.b32.xlu1 %v6037_v54, %s5565_s16  ;;  %v2361_v54 = vpop.permute.xlu0 %2360 }
 0x9a3   : >> { %2344 = vrot.lane.b32.xlu0 %v6057_v3, %s5565_s16  ;;  %2346 = vrot.lane.b32.xlu1 %v6055_v2, %s5565_s16 }
 0x9a7   : >> { %2348 = vrot.lane.b32.xlu0 %v6073_v31, %s5565_s16  ;;  %2350 = vrot.lane.b32.xlu1 %v6071_v20, %s5565_s16 }
 0x9ab   : >> { %2352 = vrot.lane.b32.xlu0 %v6091_v58, %s5565_s16  ;;  %2354 = vrot.lane.b32.xlu1 %v6087_v57, %s5565_s16 }
 0x9af   : >> { %2669 = vrot.lane.b32.xlu0 %v6035_v63, %s5566_s17  ;;  %2671 = vrot.lane.b32.xlu1 %v6033_v37, %s5566_s17 }
 0x9b3   : >> { %2673 = vrot.lane.b32.xlu0 %v6053_v18, %s5566_s17 }
 0x9c6   : >> { %v2152_v41 = vpop.xlane.xlu1 %2151 }
 0x9c9   : >> { %v2150_v2 = vpop.xlane.xlu0 %2149 }
 0x9ca   : >> { %5251 = vrcp.f32 %v2150_v2  ;;  %v2148_v3 = vpop.xlane.xlu1 %2147 }
 0x9cb   : >> { %5253 = vrcp.f32 %v2148_v3 }
 0x9cc   : >> { %5255 = vrcp.f32 %v2152_v41 }
 0x9cd   : >> { %v2365_v46 = vpop.permute.xlu0 %2364 }
 0x9ce   : >> { %v2154_v20 = vpop.xlane.xlu1 %2153  ;;  %v2409_v44 = vsel %vm1013_vm2, %v2365_v46, 0 }
 0x9cf   : >> { %5257 = vrcp.f32 %v2154_v20 }
 0x9d4   : >> { %v5252_v31 = vpop.eup %5251 }
 0x9d5   : >> { %v5254_v57 = vpop.eup %5253  ;;  %v2196_v58 = vmul.f32 %v5252_v31, %v6674_v10  ;;  %v2400_v10 = vsel %vm1013_vm2, %v6669_v53, 0 }
 0x9d6   : >> { %v2195_v63 = vmul.f32 %v5254_v57, %v6676_v49  ;;  %v5256_v5 = vpop.eup %5255  ;;  %v2406_v49 = vsel %vm1013_vm2, %v6698_v51, 0 }
 0x9d7   : >> { %v2197_v18 = vmul.f32 %v5256_v5, %v6671_v56  ;;  %v2403_v56 = vsel %vm1013_vm2, %v2361_v54, 0 }
 0x9d8   : >> { %v2211_v37 = vpack.c.bf16 %v2196_v58, %v2195_v63 }
 0x9d9   : >> { %v5258_v14 = vpop.eup %5257 }
 0x9da   : >> { %v2198_v9 = vmul.f32 %v5258_v14, %v6680_v13  ;;  %4566 = vmatprep.mubr.bf16.mxu0 %v2211_v37 }
 0x9dc   : >> { %v2212_v45 = vpack.c.bf16 %v2198_v9, %v2197_v18 }
 0x9de   : >> { %4567 = vmatmul.mubr.bf16.vlgmr.msra.gmra.mrb[48].mxu0 %v2212_v45 }
 0x9df   : >> { %4583 = vmatpush3.bf16.xpose.msra.mxu0 %v2397_v11 }
 0x9e0   : >> { %4759 = vmatprep.subr.msk.bf16.mxu0 %vm1013_vm2, %v6669_v53  ;;  %v2367_v53 = vpop.permute.xlu1 %2366 }
 0x9e1   : >> { %v2412_v40 = vsel %vm1013_vm2, %v2367_v53, 0 }
 0x9e7   : >> { %4585 = vmatpush3.bf16.xpose.msra.mxu0 %v2400_v10 }
 0x9e8   : >> { %4760 = vmatprep.subr.msk.bf16.mxu0 %vm1013_vm2, %v2361_v54 }
 0x9ef   : >> { %4587 = vmatpush3.bf16.xpose.msra.mxu0 %v2403_v56 }
 0x9f0   : >> { %4761 = vmatprep.subr.msk.bf16.mxu0 %vm1013_vm2, %v6698_v51 }
 0x9f7   : >> { %4589 = vmatpush3.bf16.xpose.msra.mxu0 %v2406_v49 }
 0x9f8   : >> { %4762 = vmatprep.subr.msk.bf16.mxu0 %vm1013_vm2, %v2365_v46 }
 0x9fe   : >> { %v2160_v13 = vpop.xlane.xlu0 %2159 }
 0x9ff   : >> { %4591 = vmatpush3.bf16.xpose.msra.mxu0 %v2409_v44 }
 0xa00   : >> { %4763 = vmatprep.subr.msk.bf16.mxu0 %vm1013_vm2, %v2367_v53 }
 0xa02   : >> { %v2156_v61 = vpop.xlane.xlu0 %2155 }
 0xa03   : >> { %5259 = vrcp.f32 %v2156_v61  ;;  %v2158_v0 = vpop.xlane.xlu1 %2157 }
 0xa04   : >> { %5261 = vrcp.f32 %v2158_v0 }
 0xa05   : >> { %5263 = vrcp.f32 %v2160_v13 }
 0xa06   : >> { %v2162_v52 = vpop.xlane.xlu0 %2161 }
 0xa07   : >> { %5265 = vrcp.f32 %v2162_v52  ;;  %4593 = vmatpush3.bf16.xpose.msra.mxu0 %v2412_v40  ;;  %v2168_v51 = vpop.xlane.xlu1 %2167 }
 0xa0a   : >> { %v2176_v59 = vpop.xlane.xlu0 %2175 }
 0xa0b   : >> { %v2164_v60 = vpop.xlane.xlu1 %2163 }
 0xa0d   : >> { %v5260_v4 = vpop.eup %5259 }
 0xa0e   : >> { %v5262_v30 = vpop.eup %5261  ;;  %v2172_v24 = vpop.xlane.xlu0 %2171  ;;  %v2199_v50 = vmul.f32 %v5260_v4, %v6702_v22 }
 0xa0f   : >> { %v5264_v39 = vpop.eup %5263  ;;  %v2170_v54 = vpop.xlane.xlu1 %2169  ;;  %v2200_v41 = vmul.f32 %v5262_v30, %v6704_v7 }
 0xa10   : >> { %5267 = vrcp.f32 %v2170_v54  ;;  %v2201_v31 = vmul.f32 %v5264_v39, %v6696_v43 }
 0xa11   : >> { %v5266_v2 = vpop.eup %5265  ;;  %v2213_v3 = vpack.c.bf16 %v2200_v41, %v2199_v50  ;;  %5269 = vrcp.f32 %v2164_v60 }
 0xa12   : >> { %v2178_v20 = vpop.xlane.xlu0 %2177  ;;  %v2202_v57 = vmul.f32 %v5266_v2, %v6709_v16  ;;  %5271 = vrcp.f32 %v2168_v51 }
 0xa13   : >> { %4570 = vmatprep.mubr.bf16.mxu0 %v2213_v3  ;;  %v2166_v58 = vpop.xlane.xlu1 %2165 }
 0xa14   : >> { %5273 = vrcp.f32 %v2166_v58  ;;  %v2214_v63 = vpack.c.bf16 %v2202_v57, %v2201_v31 }
 0xa15   : >> { %5275 = vrcp.f32 %v2172_v24 }
 0xa16   : >> { %v2369_v22 = vpop.permute.xlu0 %2368  ;;  %4571 = vmatmul.mubr.bf16.gmra.mrb[52].mxu0 %v2214_v63 }
 0xa17   : >> { %4764 = vmatprep.subr.msk.bf16.mxu0 %vm1013_vm2, %v2369_v22  ;;  %v2174_v7 = vpop.xlane.xlu1 %2173  ;;  %v2415_v5 = vsel %vm1013_vm2, %v2369_v22, 0 }
 0xa18   : >> { %5277 = vrcp.f32 %v2174_v7  ;;  %4595 = vmatpush3.bf16.xpose.msra.mxu0 %v2415_v5 }
 0xa19   : >> { %5279 = vrcp.f32 %v2178_v20 }
 0xa1a   : >> { %v2341_v37 = vpop.permute.xlu0 %2340  ;;  %v5268_v43 = vpop.eup %5267  ;;  %5281 = vrcp.f32 %v2176_v59 }
 0xa1b   : >> { %v2371_v16 = vpop.permute.xlu1 %2370  ;;  %v5270_v14 = vpop.eup %5269  ;;  %v2206_v11 = vmul.f32 %v5268_v43, %v6724_v23 }
 0xa1c   : >> { %4765 = vmatprep.subr.msk.bf16.mxu0 %vm1013_vm2, %v2371_v16  ;;  %v5272_v18 = vpop.eup %5271  ;;  %v2418_v56 = vsel %vm1013_vm2, %v2371_v16, 0  ;;  %v2203_v49 = vmul.f32 %v5270_v14, %v6718_v36 }
 0xa1d   : >> { %v2205_v44 = vmul.f32 %v5272_v18, %v6711_v8 }
 0xa1e   : >> { %v5274_v9 = vpop.eup %5273  ;;  %v2345_v45 = vpop.permute.xlu0 %2344 }
 0xa1f   : >> { %v2343_v10 = vpop.permute.xlu1 %2342  ;;  %v2204_v46 = vmul.f32 %v5274_v9, %v6730_v27  ;;  %v5276_v13 = vpop.eup %5275  ;;  %v2216_v52 = vpack.c.bf16 %v2206_v11, %v2205_v44 }
 0xa20   : >> { %4597 = vmatpush3.bf16.xpose.msra.mxu0 %v2418_v56  ;;  %v2207_v23 = vmul.f32 %v5276_v13, %v6722_v34 }
 0xa21   : >> { %v2215_v53 = vpack.c.bf16 %v2204_v46, %v2203_v49 }
 0xa22   : >> { %v5278_v61 = vpop.eup %5277  ;;  %v2349_v0 = vpop.permute.xlu0 %2348 }
 0xa23   : >> { %v5280_v40 = vpop.eup %5279  ;;  %4574 = vmatprep.mubr.bf16.mxu0 %v2215_v53  ;;  %v2347_v51 = vpop.permute.xlu1 %2346  ;;  %v2208_v59 = vmul.f32 %v5278_v61, %v6734_v26 }
 0xa24   : >> { %4575 = vmatmul.mubr.bf16.gmra.mrb[56].mxu0 %v2216_v52  ;;  %v5282_v60 = vpop.eup %5281  ;;  %v2210_v27 = vmul.f32 %v5280_v40, %v6728_v35 }
 0xa25   : >> { %v2217_v36 = vpack.c.bf16 %v2208_v59, %v2207_v23  ;;  %v2209_v8 = vmul.f32 %v5282_v60, %v6716_v12 }
 0xa26   : >> { %v2353_v4 = vpop.permute.xlu0 %2352 }
 0xa27   : >> { %4578 = vmatprep.mubr.bf16.mxu0 %v2217_v36  ;;  %v2351_v30 = vpop.permute.xlu1 %2350  ;;  %v2218_v50 = vpack.c.bf16 %v2210_v27, %v2209_v8 }
 0xa2a   : >> { %v2670_v24 = vpop.permute.xlu0 %2669 }
 0xa2b   : >> { %4614 = vmatprep.subr.bf16.mxu0 %v2670_v24  ;;  %4718 = vmatprep.subr.bf16.mxu1 %v2670_v24  ;;  %v2355_v39 = vpop.permute.xlu1 %2354 }
 0xa2c   : >> { %4579 = vmatmul.mubr.bf16.gmra.mrb[60].mxu0 %v2218_v50  ;;  %4726 = vmatpush3.bf16.msra.mxu1 %v2670_v24 }
 0xa2d   : >> { %4598 = vmatprep.mubr.msk.bf16.mxu0 %vm1013_vm2, %v2341_v37 }
 0xa2e   : >> { %v2674_v26 = vpop.permute.xlu0 %2673 }
 0xa2f   : >> { %v2672_v34 = vpop.permute.xlu1 %2671 }
 0xa30   : >> { %4719 = vmatprep.subr.bf16.mxu1 %v2672_v34 }
 0xa31   : >> { %4727 = vmatpush3.bf16.msra.mxu1 %v2672_v34 }
 0xa32   : >> { %4720 = vmatprep.subr.bf16.mxu1 %v2674_v26 }
 0xa34   : >> { %4599 = vmatmul.mubr.msk.bf16.vlgmr.msra.gmra.mrb[64].mxu0 %vm1013_vm2, %v2343_v10 }
 0xa35   : >> { %4615 = vmatpush3.bf16.msra.mxu0 %v2670_v24  ;;  %4602 = vmatprep.mubr.msk.bf16.mxu0 %vm1013_vm2, %v2345_v45 }
 0xa36   : >> { %4616 = vmatprep.subr.bf16.mxu0 %v2672_v34  ;;  %4728 = vmatpush3.bf16.msra.mxu1 %v2674_v26 }
 0xa39   : >> { %4617 = vmatpush3.bf16.msra.mxu0 %v2672_v34 }
 0xa3a   : >> { %4618 = vmatprep.subr.bf16.mxu0 %v2674_v26 }
 0xa3c   : >> { %4603 = vmatmul.mubr.msk.bf16.gmra.mrb[68].mxu0 %vm1013_vm2, %v2347_v51 }
 0xa3d   : >> { %4619 = vmatpush3.bf16.msra.mxu0 %v2674_v26  ;;  %4606 = vmatprep.mubr.msk.bf16.mxu0 %vm1013_vm2, %v2349_v0 }
 0xa44   : >> { %4607 = vmatmul.mubr.msk.bf16.gmra.mrb[72].mxu0 %vm1013_vm2, %v2351_v30 }
 0xa45   : >> { %4610 = vmatprep.mubr.msk.bf16.mxu0 %vm1013_vm2, %v2353_v4 }
 0xa4c   : >> { %4611 = vmatmul.mubr.msk.bf16.gmra.mrb[76].mxu0 %vm1013_vm2, %v2355_v39 }
 0xab1   : >> { %v6799_v12 = vpop.f32.mrb[48].mxu0 }
 0xab2   : >> { %v6801_v35 = vpop.f32.mrb[49].mxu0 }
 0xab3   : >> { %v6803_v54 = vpop.f32.mrb[50].mxu0 }
 0xab4   : >> { %v6807_v2 = vpop.f32.mrb[51].mxu0 }
 0xab5   : >> { %v4935_v3 = vpack.i.bf16 %v6807_v2, %v6801_v35 }
 0xae9   : >> { %v6811_v20 = vpop.f32.mrb[52].mxu0 }
 0xaea   : >> { %v6813_v31 = vpop.f32.mrb[53].mxu0 }
 0xaeb   : >> { %v6815_v57 = vpop.f32.mrb[54].mxu0 }
 0xaec   : >> { %v6819_v63 = vpop.f32.mrb[55].mxu0  ;;  %v7670_v35 = vpack.i.bf16 %v6815_v57, %v6811_v20  ;;  %v7672_v20 = vpack.i.bf16 %v6573_v17, %v6567_v47  ;;  %v7675_v57 = vld [vmem:[#allocation34_spill] sm:$0xff] }
 0xaf7   : >> { %v6823_v7 = vpop.f32.mrb[56].mxu0 }
 0xaf8   : >> { %v6825_v5 = vpop.f32.mrb[57].mxu0 }
 0xaf9   : >> { %v6827_v37 = vpop.f32.mrb[58].mxu0 }
 0xafa   : >> { %v6831_v16 = vpop.f32.mrb[59].mxu0 }
 0xaff   : >> { %v6835_v18 = vpop.f32.mrb[60].mxu0 }
 0xb00   : >> { %v6837_v9 = vpop.f32.mrb[61].mxu0 }
 0xb01   : >> { %v6839_v45 = vpop.f32.mrb[62].mxu0 }
 0xb02   : >> { %v6843_v10 = vpop.f32.mrb[63].mxu0 }
 0xb07   : >> { %v4600_v49 = vpop.f32.mrb[64].mxu0 }
 0xb08   : >> { %v2463_v46 = vadd.f32 %v4600_v49, %v5699_v15  ;;  %v2454_v13 = vpop.f32.mrb[65].mxu0 }
 0xb09   : >> { %v4601_v44 = vpop.f32.mrb[66].mxu0  ;;  %v2455_v0 = vadd.f32 %v2454_v13, %v5699_v15 }
 0xb0a   : >> { %2521 = vmax.xlane.f32.xlu0 %v2463_v46  ;;  %v2457_v53 = vpop.f32.mrb[67].mxu0  ;;  %v2466_v40 = vadd.f32 %v4601_v44, %v5699_v15 }
 0xb0b   : >> { %v2458_v61 = vadd.f32 %v2457_v53, %v5699_v15 }
 0xb0d   : >> { %2519 = vmax.xlane.f32.xlu1 %v2458_v61 }
 0xb0e   : >> { %2517 = vmax.xlane.f32.xlu0 %v2455_v0 }
 0xb0f   : >> { %v4604_v52 = vpop.f32.mrb[68].mxu0 }
 0xb10   : >> { %v2470_v51 = vpop.f32.mrb[69].mxu0  ;;  %v2479_v36 = vadd.f32 %v4604_v52, %v5699_v15 }
 0xb11   : >> { %v4605_v23 = vpop.f32.mrb[70].mxu0  ;;  %v2471_v30 = vadd.f32 %v2470_v51, %v5699_v15 }
 0xb12   : >> { %v6852_v59 = vadd.f32 %v4605_v23, %v5699_v15  ;;  %2523 = vmax.xlane.f32.xlu0 %v2466_v40  ;;  %v2473_v60 = vpop.f32.mrb[71].mxu0 }
 0xb13   : >> { %v2474_v4 = vadd.f32 %v2473_v60, %v5699_v15 }
 0xb14   : >> { %2531 = vmax.xlane.f32.xlu1 %v6852_v59 }
 0xb16   : >> { %2529 = vmax.xlane.f32.xlu0 %v2479_v36 }
 0xb17   : >> { %v4608_v27 = vpop.f32.mrb[72].mxu0 }
 0xb18   : >> { %2527 = vmax.xlane.f32.xlu1 %v2474_v4  ;;  %v2486_v8 = vpop.f32.mrb[73].mxu0  ;;  %v2495_v34 = vadd.f32 %v4608_v27, %v5699_v15 }
 0xb19   : >> { %v4609_v24 = vpop.f32.mrb[74].mxu0  ;;  %v6867_v13 = vadd.f32 %v2486_v8, %v5699_v15 }
 0xb1a   : >> { %v6859_v50 = vadd.f32 %v4609_v24, %v5699_v15  ;;  %2525 = vmax.xlane.f32.xlu0 %v2471_v30  ;;  %v2489_v39 = vpop.f32.mrb[75].mxu0 }
 0xb1b   : >> { %v6864_v26 = vadd.f32 %v2489_v39, %v5699_v15 }
 0xb1c   : >> { %2539 = vmax.xlane.f32.xlu1 %v6859_v50 }
 0xb1e   : >> { %2537 = vmax.xlane.f32.xlu0 %v2495_v34 }
 0xb1f   : >> { %v4612_v49 = vpop.f32.mrb[76].mxu0 }
 0xb20   : >> { %2535 = vmax.xlane.f32.xlu1 %v6864_v26  ;;  %v2502_v44 = vpop.f32.mrb[77].mxu0  ;;  %v6872_v51 = vadd.f32 %v4612_v49, %v5699_v15 }
 0xb21   : >> { %v4613_v53 = vpop.f32.mrb[78].mxu0  ;;  %v6876_v23 = vadd.f32 %v2502_v44, %v5699_v15 }
 0xb22   : >> { %2533 = vmax.xlane.f32.xlu0 %v6867_v13  ;;  %v2505_v52 = vpop.f32.mrb[79].mxu0  ;;  %v6884_v60 = vadd.f32 %v4613_v53, %v5699_v15 }
 0xb23   : >> { %v6888_v27 = vadd.f32 %v2505_v52, %v5699_v15 }
 0xb26   : >> { %2545 = vmax.xlane.f32.xlu0 %v6872_v51 }
 0xb2a   : >> { %2541 = vmax.xlane.f32.xlu0 %v6876_v23 }
 0xb31   : >> { %2677 = vrot.lane.b32.xlu1 %v6069_v19, %s5566_s17 }
 0xb40   : >> { %2675 = vrot.lane.b32.xlu0 %v6051_v62, %s5566_s17 }
 0xb55   : >> { %2547 = vmax.xlane.f32.xlu1 %v6884_v60 }
 0xb59   : >> { %2543 = vmax.xlane.f32.xlu1 %v6888_v27 }
 0xb6a   : >> { %2679 = vrot.lane.b32.xlu1 %v6067_v25, %s5566_s17 }
 0xb97   : >> { %v2522_v8 = vpop.xlane.xlu0 %2521 }
 0xb98   : >> { %v2551_v24 = vsub.f32 %v2463_v46, %v2522_v8 }
 0xb9a   : >> { %v2569_v39 = vmul.f32 1.442695, %v2551_v24  ;;  %v2520_v49 = vpop.xlane.xlu1 %2519 }
 0xb9b   : >> { %v2518_v19 = vpop.xlane.xlu0 %2517  ;;  %v2550_v53 = vsub.f32 %v2458_v61, %v2520_v49 }
 0xb9c   : >> { %5283 = vpow2.f32 %v2569_v39  ;;  %v2549_v62 = vsub.f32 %v2455_v0, %v2518_v19 }
 0xb9d   : >> { %v2567_v43 = vmul.f32 1.442695, %v2550_v53 }
 0xb9e   : >> { %v2565_v44 = vmul.f32 1.442695, %v2549_v62 }
 0xb9f   : >> { %v2524_v56 = vpop.xlane.xlu0 %2523 }
 0xba0   : >> { %5285 = vpow2.f32 %v2565_v44  ;;  %v2552_v11 = vsub.f32 %v2466_v40, %v2524_v56 }
 0xba1   : >> { %v2532_v14 = vpop.xlane.xlu1 %2531 }
 0xba2   : >> { %v2571_v52 = vmul.f32 1.442695, %v2552_v11  ;;  %v2556_v61 = vsub.f32 %v6852_v59, %v2532_v14 }
 0xba3   : >> { %v2530_v22 = vpop.xlane.xlu0 %2529 }
 0xba4   : >> { %5287 = vpow2.f32 %v2571_v52  ;;  %v2555_v58 = vsub.f32 %v2479_v36, %v2530_v22  ;;  %v2579_v36 = vmul.f32 1.442695, %v2556_v61 }
 0xba5   : >> { %v2528_v41 = vpop.xlane.xlu1 %2527  ;;  %5289 = vpow2.f32 %v2567_v43 }
 0xba6   : >> { %v6893_v25 = vpop.eup %5283  ;;  %v2577_v46 = vmul.f32 1.442695, %v2555_v58  ;;  %v2554_v8 = vsub.f32 %v2474_v4, %v2528_v41 }
 0xba7   : >> { %v2526_v24 = vpop.xlane.xlu0 %2525  ;;  %2601 = vadd.xlane.f32.xlu1 %v6893_v25 }
 0xba8   : >> { %5291 = vpow2.f32 %v2577_v46  ;;  %v2575_v0 = vmul.f32 1.442695, %v2554_v8  ;;  %v2553_v56 = vsub.f32 %v2471_v30, %v2526_v24 }
 0xba9   : >> { %v2540_v39 = vpop.xlane.xlu1 %2539 }
 0xbaa   : >> { %v6897_v40 = vpop.eup %5285  ;;  %v2573_v11 = vmul.f32 1.442695, %v2553_v56  ;;  %5293 = vpow2.f32 %v2575_v0  ;;  %v2560_v43 = vsub.f32 %v6859_v50, %v2540_v39 }
 0xbab   : >> { %v2538_v22 = vpop.xlane.xlu0 %2537  ;;  %2597 = vadd.xlane.f32.xlu1 %v6897_v40 }
 0xbac   : >> { %5295 = vpow2.f32 %v2573_v11  ;;  %v2559_v41 = vsub.f32 %v2495_v34, %v2538_v22  ;;  %v2587_v44 = vmul.f32 1.442695, %v2560_v43  ;;  %v7667_v43 = vpack.i.bf16 %v6569_v32, %v6565_v48 }
 0xbad   : >> { %5297 = vpow2.f32 %v2579_v36  ;;  %v2536_v59 = vpop.xlane.xlu1 %2535  ;;  %v7669_v48 = vpack.i.bf16 %v6581_v1, %v6577_v29  ;;  %v7671_v29 = vpack.i.bf16 %v6593_v33, %v6589_v6  ;;  %v7673_v6 = vpack.i.bf16 %v6585_v38, %v6579_v28 }
 0xbae   : >> { %v6900_v58 = vpop.eup %5287  ;;  %v2585_v4 = vmul.f32 1.442695, %v2559_v41  ;;  %v2558_v34 = vsub.f32 %v6864_v26, %v2536_v59  ;;  %v7674_v33 = vpack.i.bf16 %v6819_v63, %v6813_v31 }
 0xbaf   : >> { %v2534_v14 = vpop.xlane.xlu0 %2533  ;;  %2603 = vadd.xlane.f32.xlu1 %v6900_v58  ;;  %v6905_v19 = vpop.eup %5289 }
 0xbb0   : >> { %v2557_v30 = vsub.f32 %v6867_v13, %v2534_v14  ;;  %5299 = vpow2.f32 %v2585_v4  ;;  %v2583_v8 = vmul.f32 1.442695, %v2558_v34 }
 0xbb1   : >> { %v2678_v11 = vpop.permute.xlu1 %2677 }
 0xbb2   : >> { %v6907_v49 = vpop.eup %5291  ;;  %v2581_v62 = vmul.f32 1.442695, %v2557_v30 }
 0xbb3   : >> { %v2546_v53 = vpop.xlane.xlu0 %2545  ;;  %2609 = vadd.xlane.f32.xlu0 %v6907_v49  ;;  %2599 = vadd.xlane.f32.xlu1 %v6905_v19 }
 0xbb4   : >> { %5301 = vpow2.f32 %v2581_v62  ;;  %v2563_v50 = vsub.f32 %v6872_v51, %v2546_v53  ;;  %v6913_v52 = vpop.eup %5293 }
 0xbb5   : >> { %5303 = vpow2.f32 %v2587_v44 }
 0xbb6   : >> { %v6915_v13 = vpop.eup %5295  ;;  %v2593_v46 = vmul.f32 1.442695, %v2563_v50 }
 0xbb7   : >> { %2605 = vadd.xlane.f32.xlu0 %v6915_v13  ;;  %v2542_v24 = vpop.xlane.xlu0 %2541  ;;  %2607 = vadd.xlane.f32.xlu1 %v6913_v52  ;;  %v6920_v61 = vpop.eup %5297 }
 0xbb8   : >> { %5305 = vpow2.f32 %v2593_v46  ;;  %v2561_v26 = vsub.f32 %v6876_v23, %v2542_v24 }
 0xbb9   : >> { %5307 = vpow2.f32 %v2583_v8 }
 0xbba   : >> { %v2589_v0 = vmul.f32 1.442695, %v2561_v26  ;;  %v6923_v56 = vpop.eup %5299 }
 0xbbb   : >> { %v2676_v51 = vpop.permute.xlu0 %2675  ;;  %2611 = vadd.xlane.f32.xlu0 %v6920_v61 }
 0xbbc   : >> { %5309 = vpow2.f32 %v2589_v0  ;;  %4620 = vmatprep.subr.bf16.mxu0 %v2676_v51  ;;  %4721 = vmatprep.subr.bf16.mxu1 %v2676_v51 }
 0xbbd   : >> { %4621 = vmatpush3.bf16.msra.mxu0 %v2676_v51  ;;  %4729 = vmatpush3.bf16.msra.mxu1 %v2676_v51 }
 0xbbe   : >> { %v6925_v39 = vpop.eup %5301  ;;  %4622 = vmatprep.subr.bf16.mxu0 %v2678_v11  ;;  %4722 = vmatprep.subr.bf16.mxu1 %v2678_v11 }
 0xbbf   : >> { %2617 = vadd.xlane.f32.xlu0 %v6923_v56  ;;  %2613 = vadd.xlane.f32.xlu1 %v6925_v39  ;;  %v6929_v23 = vpop.eup %5303 }
 0xbc1   : >> { %4623 = vmatpush3.bf16.msra.mxu0 %v2678_v11  ;;  %4730 = vmatpush3.bf16.msra.mxu1 %v2678_v11 }
 0xbc2   : >> { %v6931_v22 = vpop.eup %5305 }
 0xbc3   : >> { %2625 = vadd.xlane.f32.xlu1 %v6931_v22  ;;  %2619 = vadd.xlane.f32.xlu0 %v6929_v23  ;;  %v6935_v36 = vpop.eup %5307 }
 0xbc6   : >> { %v6937_v41 = vpop.eup %5309 }
 0xbc7   : >> { %2621 = vadd.xlane.f32.xlu1 %v6937_v41  ;;  %2615 = vadd.xlane.f32.xlu0 %v6935_v36 }
 0xbd8   : >> { %2683 = vrot.lane.b32.xlu1 %v6083_v42, %s5566_s17  ;;  %v7668_v42 = vpack.i.bf16 %v6803_v54, %v6799_v12 }
 0xbdc   : >> { %4931 = vrot.lane.b32.xlu1 %v7667_v43, %s5567_s27 }
 0xbdd   : >> { %2681 = vrot.lane.b32.xlu0 %v6085_v55, %s5566_s17  ;;  %s3785_s17 = scalar_lea.vmem %s7607_s13, %s5553_s22 }
 0xbe0   : >> { %4936 = vrot.lane.b32.xlu1 %v4935_v3, %s5568_s18 }
 0xbe2   : >> { %v2548_v4 = vpop.xlane.xlu1 %2547 }
 0xbe3   : >> { %v2564_v12 = vsub.f32 %v6884_v60, %v2548_v4  ;;  %v7676_v60 = vpack.i.bf16 %v6597_v21, %v7675_v57 }
 0xbe4   : >> { %4941 = vrot.lane.b32.xlu1 %v7668_v42, %s5568_s18 }
 0xbe5   : >> { %v2595_v1 = vmul.f32 1.442695, %v2564_v12 }
 0xbe6   : >> { %v2544_v14 = vpop.xlane.xlu1 %2543 }
 0xbe7   : >> { %v2562_v55 = vsub.f32 %v6888_v27, %v2544_v14 }
 0xbe8   : >> { %4951 = vrot.lane.b32.xlu1 %v7669_v48, %s5567_s27 }
 0xbe9   : >> { %v2591_v54 = vmul.f32 1.442695, %v2562_v55 }
 0xbea   : >> { %v2680_v32 = vpop.permute.xlu1 %2679 }
 0xbeb   : >> { %4624 = vmatprep.subr.bf16.mxu0 %v2680_v32  ;;  %4723 = vmatprep.subr.bf16.mxu1 %v2680_v32  ;;  %5311 = vpow2.f32 %v2591_v54 }
 0xbec   : >> { %4961 = vrot.lane.b32.xlu1 %v7670_v35, %s5568_s18  ;;  %4625 = vmatpush3.bf16.msra.mxu0 %v2680_v32  ;;  %5313 = vpow2.f32 %v2595_v1 }
 0xbed   : >> { %4731 = vmatpush3.bf16.msra.mxu1 %v2680_v32 }
 0xbf0   : >> { %4971 = vrot.lane.b32.xlu1 %v7671_v29, %s5567_s27 }
 0xbf5   : >> { %v6971_v2 = vpop.eup %5311 }
 0xbf6   : >> { %v6974_v3 = vpop.eup %5313 }
 0xbfc   : >> { %2623 = vadd.xlane.f32.xlu0 %v6971_v2 }
 0xc00   : >> { %2627 = vadd.xlane.f32.xlu0 %v6974_v3 }
 0xc16   : >> { %4926 = vrot.lane.b32.xlu0 %v7672_v20, %s5567_s27 }
 0xc1a   : >> { %4946 = vrot.lane.b32.xlu0 %v7673_v6, %s5567_s27 }
 0xc1e   : >> { %4956 = vrot.lane.b32.xlu0 %v7674_v33, %s5568_s18 }
 0xc22   : >> { %4966 = vrot.lane.b32.xlu0 %v7676_v60, %s5567_s27 }
 0xc34   : >> { %v2602_v27 = vpop.xlane.xlu1 %2601 }
 0xc38   : >> { %v2598_v59 = vpop.xlane.xlu1 %2597 }
 0xc39   : >> { %5315 = vrcp.f32 %v2598_v59 }
 0xc3c   : >> { %v2604_v30 = vpop.xlane.xlu1 %2603 }
 0xc40   : >> { %v2610_v47 = vpop.xlane.xlu0 %2609  ;;  %v2600_v17 = vpop.xlane.xlu1 %2599 }
 0xc41   : >> { %5317 = vrcp.f32 %v2600_v17 }
 0xc43   : >> { %v5316_v44 = vpop.eup %5315 }
 0xc44   : >> { %v2606_v62 = vpop.xlane.xlu0 %2605  ;;  %v2608_v28 = vpop.xlane.xlu1 %2607  ;;  %v2645_v21 = vmul.f32 %v5316_v44, %v6897_v40 }
 0xc45   : >> { %5319 = vrcp.f32 %v2606_v62 }
 0xc46   : >> { %5321 = vrcp.f32 %v2608_v28 }
 0xc47   : >> { %5323 = vrcp.f32 %v2604_v30 }
 0xc48   : >> { %v2612_v38 = vpop.xlane.xlu0 %2611 }
 0xc49   : >> { %5325 = vrcp.f32 %v2612_v38  ;;  %v5047_v38 = vld [vmem:[%s3041_s23] sm:$0xff]  }
 0xc4a   : >> { %5327 = vrcp.f32 %v2602_v27 }
 0xc4b   : >> { %v5318_v31 = vpop.eup %5317  ;;  %5329 = vrcp.f32 %v2610_v47 }
 0xc4c   : >> { %v2618_v63 = vpop.xlane.xlu0 %2617  ;;  %v2614_v34 = vpop.xlane.xlu1 %2613  ;;  %v2646_v53 = vmul.f32 %v5318_v31, %v6905_v19 }
 0xc4d   : >> { %5331 = vrcp.f32 %v2614_v34 }
 0xc4e   : >> { %v2661_v46 = vpack.c.bf16 %v2646_v53, %v2645_v21 }
 0xc4f   : >> { %v5320_v50 = vpop.eup %5319 }
 0xc50   : >> { %v5322_v8 = vpop.eup %5321  ;;  %v2620_v24 = vpop.xlane.xlu0 %2619  ;;  %v2649_v0 = vmul.f32 %v5320_v50, %v6915_v13  ;;  %4630 = vmatprep.mubr.bf16.mxu0 %v2661_v46 }
 0xc51   : >> { %v2626_v26 = vpop.xlane.xlu1 %2625  ;;  %v2650_v51 = vmul.f32 %v5322_v8, %v6913_v52  ;;  %v5324_v40 = vpop.eup %5323 }
 0xc52   : >> { %v2648_v52 = vmul.f32 %v5324_v40, %v6900_v58 }
 0xc53   : >> { %v2663_v11 = vpack.c.bf16 %v2650_v51, %v2649_v0  ;;  %v5326_v19 = vpop.eup %5325  ;;  %v7677_v0 = vpack.i.bf16 %v6827_v37, %v6823_v7  ;;  %v7683_v7 = vld [vmem:[#allocation36_spill] sm:$0xff] }
 0xc54   : >> { %v2616_v43 = vpop.xlane.xlu0 %2615  ;;  %v5328_v14 = vpop.eup %5327  ;;  %v2652_v13 = vmul.f32 %v5326_v19, %v6920_v61  ;;  %v7679_v19 = vld [vmem:[#allocation37_spill] sm:$0xff] }
 0xc55   : >> { %v2622_v4 = vpop.xlane.xlu1 %2621  ;;  %5333 = vrcp.f32 %v2616_v43  ;;  %4634 = vmatprep.mubr.bf16.mxu1 %v2663_v11  ;;  %v5330_v48 = vpop.eup %5329  ;;  %v2647_v35 = vmul.f32 %v5328_v14, %v6893_v25  ;;  %v7678_v11 = vpack.i.bf16 %v6831_v16, %v6825_v5  ;;  %v7685_v5 = vpack.i.bf16 %v6839_v45, %v6835_v18 }
 0xc56   : >> { %5335 = vrcp.f32 %v2620_v24  ;;  %v2651_v12 = vmul.f32 %v5330_v48, %v6907_v49  ;;  %v7682_v48 = vld [vmem:[#allocation38_spill] sm:$0xff]  ;;  %v7686_v16 = vpack.i.bf16 %v6843_v10, %v6837_v9 }
 0xc57   : >> { %5337 = vrcp.f32 %v2618_v63  ;;  %v5332_v32 = vpop.eup %5331  ;;  %v2662_v29 = vpack.c.bf16 %v2648_v52, %v2647_v35  ;;  %v7684_v37 = vpack.i.bf16 %v7682_v48, %v7683_v7 }
 0xc58   : >> { %v2682_v42 = vpop.permute.xlu0 %2681  ;;  %v2664_v1 = vpack.c.bf16 %v2652_v13, %v2651_v12  ;;  %v2653_v6 = vmul.f32 %v5332_v32, %v6925_v39  ;;  %5339 = vrcp.f32 %v2622_v4 }
 0xc59   : >> { %4626 = vmatprep.subr.bf16.mxu0 %v2682_v42  ;;  %4724 = vmatprep.subr.bf16.mxu1 %v2682_v42  ;;  %v2684_v55 = vpop.permute.xlu1 %2683 }
 0xc5a   : >> { %4627 = vmatpush3.bf16.msra.mxu0 %v2682_v42  ;;  %4732 = vmatpush3.bf16.msra.mxu1 %v2682_v42  ;;  %v7680_v42 = vld [vmem:[#allocation35_spill] sm:$0xff] }
 0xc5b   : >> { %4628 = vmatprep.subr.bf16.mxu0 %v2684_v55  ;;  %4725 = vmatprep.subr.bf16.mxu1 %v2684_v55  ;;  %v7681_v14 = vpack.i.bf16 %v7679_v19, %v7680_v42  ;;  %v7691_v42 = vld [vmem:[#allocation22_spill] sm:$0xff] }
 0xc5e   : >> { %4629 = vmatpush3.bf16.msra.mxu0 %v2684_v55  ;;  %4733 = vmatpush3.bf16.msra.mxu1 %v2684_v55 }
 0xc5f   : >> { %v5334_v54 = vpop.eup %5333  ;;  %4646 = vmatprep.subr.bf16.mxu1 %v5047_v38 }
 0xc60   : >> { %v5336_v20 = vpop.eup %5335  ;;  %v2654_v33 = vmul.f32 %v5334_v54, %v6935_v36  ;;  %v4932_v54 = vpop.permute.xlu1 %4931 }
 0xc61   : >> { %4631 = vmatmul.mubr.bf16.vlgmr.msra.gmra.mrb[80].mxu0 %v2662_v29  ;;  %4635 = vmatmul.mubr.bf16.vlgmr.msra.gmra.mrb[48].mxu1 %v2664_v1  ;;  %v5338_v58 = vpop.eup %5337  ;;  %v2656_v57 = vmul.f32 %v5336_v20, %v6929_v23 }
 0xc62   : >> { %v2665_v61 = vpack.c.bf16 %v2654_v33, %v2653_v6  ;;  %v2655_v25 = vmul.f32 %v5338_v58, %v6923_v56  ;;  %v5340_v39 = vpop.eup %5339  ;;  %4647 = vmatpush3.bf16.msra.mxu1 %v5047_v38  ;;  %v4934_v58 = vunpack.i.h.bf16 %v4932_v54 }
 0xc63   : >> { %v2657_v59 = vmul.f32 %v5340_v39, %v6937_v41  ;;  %v5048_v41 = vld [vmem:[%s3041_s23 + $0x8] sm:$0xff]  }
 0xc64   : >> { %4638 = vmatprep.mubr.bf16.mxu1 %v2665_v61  ;;  %v2666_v49 = vpack.c.bf16 %v2656_v57, %v2655_v25  ;;  %4648 = vmatprep.subr.bf16.mxu1 %v5048_v41  ;;  %v4937_v29 = vpop.permute.xlu1 %4936  ;;  %v4933_v61 = vunpack.i.l.bf16 %v4932_v54  ;;  %v7693_v54 = vld [vmem:[#allocation25_spill] sm:$0xff] }
 0xc66   : >> { %4649 = vmatpush3.bf16.msra.mxu1 %v5048_v41 }
 0xc68   : >> { %v4942_v1 = vpop.permute.xlu1 %4941 }
 0xc69   : >> { %4639 = vmatmul.mubr.bf16.gmra.mrb[52].mxu1 %v2666_v49  ;;  %v4944_v25 = vunpack.i.h.bf16 %v4942_v1  ;;  %v4943_v49 = vunpack.i.l.bf16 %v4942_v1  ;;  %v7694_v1 = vld [vmem:[#allocation23_spill] sm:$0xff] }
 0xc6c   : >> { %v4952_v6 = vpop.permute.xlu1 %4951 }
 0xc70   : >> { %v4962_v45 = vpop.permute.xlu1 %4961 }
 0xc74   : >> { %v7037_v9 = vpop.permute.xlu1 %4971 }
 0xc89   : >> { %v2624_v60 = vpop.xlane.xlu0 %2623 }
 0xc8a   : >> { %5341 = vrcp.f32 %v2624_v60 }
 0xc8b   : >> { %5343 = vrcp.f32 %v2626_v26 }
 0xc8d   : >> { %v2628_v27 = vpop.xlane.xlu0 %2627 }
 0xc8e   : >> { %5345 = vrcp.f32 %v2628_v27  ;;  %v7687_v27 = vld [vmem:[#allocation20_spill] sm:$0xff] }
 0xc8f   : >> { %v2985_v39 = vsel %vm1013_vm2, %v7687_v27, %v4934_v58 }
 0xc90   : >> { %v3002_v41 = vsel %vm2998_vm3, %v2985_v39, %v4944_v25 }
 0xc91   : >> { %v4927_v20 = vpop.permute.xlu0 %4926 }
 0xc92   : >> { %v4929_v10 = vunpack.i.h.bf16 %v4927_v20  ;;  %v4928_v57 = vunpack.i.l.bf16 %v4927_v20 }
 0xc94   : >> { %v5342_v36 = vpop.eup %5341 }
 0xc95   : >> { %v2658_v30 = vmul.f32 %v5342_v36, %v6971_v2  ;;  %v5344_v47 = vpop.eup %5343  ;;  %v4947_v18 = vpop.permute.xlu0 %4946  ;;  %v7688_v36 = vld [vmem:[#allocation18_spill] sm:$0xff] }
 0xc96   : >> { %v2659_v56 = vmul.f32 %v5344_v47, %v6931_v22  ;;  %v4938_v47 = vunpack.i.l.bf16 %v4937_v29  ;;  %v4948_v19 = vunpack.i.l.bf16 %v4947_v18 }
 0xc97   : >> { %v2667_v23 = vpack.c.bf16 %v2658_v30, %v2657_v59  ;;  %v2984_v59 = vsel %vm1013_vm2, %v7688_v36, %v4933_v61  ;;  %v4939_v30 = vunpack.i.h.bf16 %v4937_v29 }
 0xc98   : >> { %v5346_v17 = vpop.eup %5345  ;;  %v3001_v38 = vsel %vm2998_vm3, %v2984_v59, %v4943_v49  ;;  %v2986_v20 = vsel %vm1013_vm2, %v7694_v1, %v4948_v19 }
 0xc99   : >> { %4642 = vmatprep.mubr.bf16.mxu1 %v2667_v23  ;;  %v2660_v62 = vmul.f32 %v5346_v17, %v6974_v3  ;;  %v4957_v33 = vpop.permute.xlu0 %4956  ;;  %v7689_v23 = vld [vmem:[#allocation21_spill] sm:$0xff] }
 0xc9a   : >> { %v2983_v17 = vsel %vm1013_vm2, %v7689_v23, %v4929_v10  ;;  %v4959_v48 = vunpack.i.h.bf16 %v4957_v33  ;;  %v4958_v7 = vunpack.i.l.bf16 %v4957_v33  ;;  %v4973_v10 = vunpack.i.l.bf16 %v7037_v9 }
 0xc9b   : >> { %v2668_v28 = vpack.c.bf16 %v2660_v62, %v2659_v56  ;;  %v7690_v56 = vld [vmem:[#allocation19_spill] sm:$0xff] }
 0xc9c   : >> { %v2982_v62 = vsel %vm1013_vm2, %v7690_v56, %v4928_v57 }
 0xc9d   : >> { %4643 = vmatmul.mubr.bf16.gmra.mrb[56].mxu1 %v2668_v28  ;;  %v7039_v60 = vpop.permute.xlu0 %4966 }
 0xc9e   : >> { %v4969_v39 = vunpack.i.h.bf16 %v7039_v60  ;;  %v4968_v36 = vunpack.i.l.bf16 %v7039_v60 }
 0xd34   : >> { %v4632_v2 = vpop.f32.mrb[80].mxu0  ;;  %v4636_v44 = vpop.f32.mrb[48].mxu1 }
 0xd35   : >> { %v2727_v31 = vpop.f32.mrb[81].mxu0  ;;  %v2743_v63 = vpop.f32.mrb[49].mxu1 }
 0xd36   : >> { %v4633_v34 = vpop.f32.mrb[82].mxu0  ;;  %v4637_v22 = vpop.f32.mrb[50].mxu1 }
 0xd37   : >> { %v4975_v21 = vpack.i.bf16 %v4633_v34, %v4632_v2  ;;  %v4995_v3 = vpack.i.bf16 %v4637_v22, %v4636_v44  ;;  %v2730_v53 = vpop.f32.mrb[83].mxu0  ;;  %v2746_v50 = vpop.f32.mrb[51].mxu1  ;;  %v4953_v34 = vunpack.i.l.bf16 %v4952_v6 }
 0xd38   : >> { %v4980_v46 = vpack.i.bf16 %v2730_v53, %v2727_v31  ;;  %v5000_v8 = vpack.i.bf16 %v2746_v50, %v2743_v63  ;;  %v4954_v63 = vunpack.i.h.bf16 %v4952_v6  ;;  %v2999_v50 = vsel %vm2998_vm3, %v2982_v62, %v4938_v47  ;;  %v7695_v62 = vld [vmem:[#allocation28_spill] sm:$0xff] }
 0xd39   : >> { %4976 = vrot.lane.b32.xlu1 %v4975_v21, %s5569_s30 }
 0xd3a   : >> { %4981 = vrot.lane.b32.xlu0 %v4980_v46, %s5569_s30  ;;  %v3000_v46 = vsel %vm2998_vm3, %v2983_v17, %v4939_v30 }
 0xd3c   : >> { %v4640_v24 = vpop.f32.mrb[52].mxu1 }
 0xd3d   : >> { %v2759_v26 = vpop.f32.mrb[53].mxu1  ;;  %4991 = vrot.lane.b32.xlu1 %v7677_v0, %s5568_s18 }
 0xd3e   : >> { %v4641_v51 = vpop.f32.mrb[54].mxu1  ;;  %4986 = vrot.lane.b32.xlu0 %v7678_v11, %s5568_s18  ;;  %v4964_v11 = vunpack.i.h.bf16 %v4962_v45 }
 0xd3f   : >> { %v5015_v43 = vpack.i.bf16 %v4641_v51, %v4640_v24  ;;  %v2762_v4 = vpop.f32.mrb[55].mxu1 }
 0xd40   : >> { %v5020_v40 = vpack.i.bf16 %v2762_v4, %v2759_v26 }
 0xd41   : >> { %4996 = vrot.lane.b32.xlu1 %v4995_v3, %s5569_s30 }
 0xd42   : >> { %5001 = vrot.lane.b32.xlu0 %v5000_v8, %s5569_s30  ;;  %v4963_v8 = vunpack.i.l.bf16 %v4962_v45  ;;  %v3003_v45 = vsel %vm2998_vm3, %v2986_v20, %v4958_v7 }
 0xd45   : >> { %5011 = vrot.lane.b32.xlu1 %v7681_v14, %s5567_s27  ;;  %v2988_v14 = vsel %vm1013_vm2, %v7691_v42, %v4953_v34 }
 0xd46   : >> { %5006 = vrot.lane.b32.xlu0 %v7684_v37, %s5567_s27  ;;  %v7692_v37 = vld [vmem:[#allocation24_spill] sm:$0xff]  ;;  %s3468_s27 = scalar_lea.vmem %s7604_s10, %s5943_s26 }
 0xd49   : >> { %5016 = vrot.lane.b32.xlu1 %v5015_v43, %s5569_s30 }
 0xd4a   : >> { %5021 = vrot.lane.b32.xlu0 %v5020_v40, %s5569_s30  ;;  %v4949_v40 = vunpack.i.h.bf16 %v4947_v18 }
 0xd4c   : >> { %v2987_v29 = vsel %vm1013_vm2, %v7693_v54, %v4949_v40 }
 0xd4d   : >> { %5031 = vrot.lane.b32.xlu1 %v7685_v5, %s5568_s18  ;;  %v2989_v5 = vsel %vm1013_vm2, %v7692_v37, %v4954_v63  ;;  %v3004_v33 = vsel %vm2998_vm3, %v2987_v29, %v4959_v48  ;;  %v7702_v29 = vld [vmem:[#allocation31_spill] sm:$0xff] }
 0xd4e   : >> { %5026 = vrot.lane.b32.xlu0 %v7686_v16, %s5568_s18  ;;  %v3005_v16 = vsel %vm2998_vm3, %v2988_v14, %v4963_v8 }
 0xd70   : >> { %v4644_v55 = vpop.f32.mrb[56].mxu1 }
 0xd71   : >> { %v2775_v52 = vpop.f32.mrb[57].mxu1 }
 0xd72   : >> { %v4645_v13 = vpop.f32.mrb[58].mxu1 }
 0xd73   : >> { %v5040_v32 = vpack.i.bf16 %v4645_v13, %v4644_v55  ;;  %v2778_v35 = vpop.f32.mrb[59].mxu1  ;;  %v4974_v13 = vunpack.i.h.bf16 %v7037_v9 }
 0xd74   : >> { %v5035_v12 = vpack.i.bf16 %v2778_v35, %v2775_v52  ;;  %v3006_v52 = vsel %vm2998_vm3, %v2989_v5, %v4964_v11 }
 0xd75   : >> { %5041 = vrot.lane.b32.xlu1 %v5040_v32, %s5569_s30  ;;  %v2993_v9 = vsel %vm1013_vm2, %v7695_v62, %v4974_v13  ;;  %v7700_v13 = vld [vmem:[#allocation30_spill] sm:$0xff] }
 0xd76   : >> { %5036 = vrot.lane.b32.xlu0 %v5035_v12, %s5569_s30  ;;  %s3205_s30 = scalar_lea.vmem %s7603_s9, %s5553_s22 }
 0xdab   : >> { %v4977_v28 = vpop.permute.xlu1 %4976 }
 0xdac   : >> { %v4979_v2 = vunpack.i.h.bf16 %v4977_v28  ;;  %v4978_v44 = vunpack.i.l.bf16 %v4977_v28  ;;  %v4982_v31 = vpop.permute.xlu0 %4981  ;;  %v7696_v28 = vld [vmem:[#allocation26_spill] sm:$0xff] }
 0xdad   : >> { %v4984_v22 = vunpack.i.h.bf16 %v4982_v31  ;;  %v4983_v21 = vunpack.i.l.bf16 %v4982_v31 }
 0xdae   : >> { %v3018_v3 = vsel %vm3015_vm4, %v3001_v38, %v4978_v44  ;;  %v3019_v53 = vsel %vm3015_vm4, %v3002_v41, %v4979_v2  ;;  %v2992_v38 = vsel %vm1013_vm2, %v7696_v28, %v4973_v10  ;;  %v7697_v2 = vld [vmem:[#allocation29_spill] sm:$0xff]  ;;  %v7698_v44 = vld [vmem:[#allocation27_spill] sm:$0xff] }
 0xdaf   : >> { %v3033_v24 = vpack.c.bf16 %v3019_v53, %v3018_v3  ;;  %v3016_v26 = vsel %vm3015_vm4, %v2999_v50, %v4983_v21  ;;  %v3017_v0 = vsel %vm3015_vm4, %v3000_v46, %v4984_v22  ;;  %v4992_v51 = vpop.permute.xlu1 %4991  ;;  %v2991_v60 = vsel %vm1013_vm2, %v7697_v2, %v4969_v39 }
 0xdb0   : >> { %v3032_v43 = vpack.c.bf16 %v3017_v0, %v3016_v26  ;;  %v4987_v4 = vpop.permute.xlu0 %4986  ;;  %v4994_v47 = vunpack.i.h.bf16 %v4992_v51  ;;  %v4993_v23 = vunpack.i.l.bf16 %v4992_v51  ;;  %v2990_v31 = vsel %vm1013_vm2, %v7698_v44, %v4968_v36 }
 0xdb1   : >> { %v4989_v17 = vunpack.i.h.bf16 %v4987_v4  ;;  %v4988_v56 = vunpack.i.l.bf16 %v4987_v4 }
 0xdb2   : >> { %4650 = vmatprep.mubr.msk.bf16.mxu1 %vm547_vm1, %v3032_v43  ;;  %v3009_v21 = vsel %vm2998_vm3, %v2992_v38, %v4993_v23  ;;  %v3010_v3 = vsel %vm2998_vm3, %v2993_v9, %v4994_v47  ;;  %v7703_v38 = vld [vmem:[#allocation17_spill] sm:$0xff] }
 0xdb3   : >> { %v4997_v55 = vpop.permute.xlu1 %4996  ;;  %4651 = vmatmul.mubr.msk.bf16.vlgmr.msra.gmra.mrb[60].mxu1 %vm547_vm1, %v3033_v24  ;;  %v3008_v46 = vsel %vm2998_vm3, %v2991_v60, %v4989_v17  ;;  %v3007_v8 = vsel %vm2998_vm3, %v2990_v31, %v4988_v56  ;;  %v7704_v60 = vld [vmem:[#allocation15_spill] sm:$0xff]  ;;  %v7705_v31 = vld [vmem:[#allocation16_spill] sm:$0xff] }
 0xdb4   : >> { %v4999_v32 = vunpack.i.h.bf16 %v4997_v55  ;;  %v4998_v35 = vunpack.i.l.bf16 %v4997_v55  ;;  %v5002_v12 = vpop.permute.xlu0 %5001  ;;  %v7699_v55 = vld [vmem:[#allocation32_spill] sm:$0xff] }
 0xdb5   : >> { %v5004_v6 = vunpack.i.h.bf16 %v5002_v12  ;;  %v5003_v18 = vunpack.i.l.bf16 %v5002_v12  ;;  %v7701_v12 = vld [vmem:[#allocation33_spill] sm:$0xff] }
 0xdb6   : >> { %v3022_v58 = vsel %vm3015_vm4, %v3005_v16, %v4998_v35  ;;  %v3023_v61 = vsel %vm3015_vm4, %v3006_v52, %v4999_v32 }
 0xdb7   : >> { %v3035_v57 = vpack.c.bf16 %v3023_v61, %v3022_v58  ;;  %v3021_v25 = vsel %vm3015_vm4, %v3004_v33, %v5004_v6  ;;  %v3020_v49 = vsel %vm3015_vm4, %v3003_v45, %v5003_v18  ;;  %v5012_v27 = vpop.permute.xlu1 %5011 }
 0xdb8   : >> { %v3034_v59 = vpack.c.bf16 %v3021_v25, %v3020_v49  ;;  %v5007_v30 = vpop.permute.xlu0 %5006  ;;  %v5014_v40 = vunpack.i.h.bf16 %v5012_v27  ;;  %v5013_v19 = vunpack.i.l.bf16 %v5012_v27 }
 0xdb9   : >> { %v5009_v14 = vunpack.i.h.bf16 %v5007_v30  ;;  %v5008_v48 = vunpack.i.l.bf16 %v5007_v30  ;;  %v7121_v30 = vld [vmem:[%s3046_s15] ss:$0 sm:$0xff]  ;;  %s3473_s15 = scalar_lea.vmem %s7605_s11, %s5553_s22  ;;  %s526_s22 = sadd.s32 1, %s5553_s22  }
 0xdba   : >> { %4654 = vmatprep.mubr.msk.bf16.mxu1 %vm547_vm1, %v3034_v59  ;;  %v2997_v52 = vsel %vm1013_vm2, %v7699_v55, %v5014_v40  ;;  %v2996_v32 = vsel %vm1013_vm2, %v7700_v13, %v5013_v19  ;;  %v7708_v40 = vld [vmem:[#allocation12_spill] sm:$0xff]  ;;  %v7710_v55 = vld [vmem:[#allocation11_spill] sm:$0xff]  ;;  %p7517_p4 = scmp.ge.s32.totalorder %s526_s22, 12  }
 0xdbb   : >> { %v5017_v41 = vpop.permute.xlu1 %5016  ;;  %4655 = vmatmul.mubr.msk.bf16.gmra.mrb[64].mxu1 %vm547_vm1, %v3035_v57  ;;  %v2995_v54 = vsel %vm1013_vm2, %v7701_v12, %v5009_v14  ;;  %v2994_v1 = vsel %vm1013_vm2, %v7702_v29, %v5008_v48  ;;  %v7709_v14 = vld [vmem:[#allocation10_spill] sm:$0xff] }
 0xdbc   : >> { %v5019_v63 = vunpack.i.h.bf16 %v5017_v41  ;;  %v5018_v34 = vunpack.i.l.bf16 %v5017_v41  ;;  %v5022_v22 = vpop.permute.xlu0 %5021 }
 0xdbd   : >> { %v5024_v53 = vunpack.i.h.bf16 %v5022_v22  ;;  %v5023_v50 = vunpack.i.l.bf16 %v5022_v22 }
 0xdbe   : >> { %v3026_v24 = vsel %vm3015_vm4, %v3009_v21, %v5018_v34  ;;  %v3027_v26 = vsel %vm3015_vm4, %v3010_v3, %v5019_v63 }
 0xdbf   : >> { %v3037_v0 = vpack.c.bf16 %v3027_v26, %v3026_v24  ;;  %v3024_v51 = vsel %vm3015_vm4, %v3007_v8, %v5023_v50  ;;  %v3025_v11 = vsel %vm3015_vm4, %v3008_v46, %v5024_v53  ;;  %v5032_v4 = vpop.permute.xlu1 %5031  ;;  %v7706_v50 = vld [vmem:[#allocation14_spill] sm:$0xff] }
 0xdc0   : >> { %v3036_v43 = vpack.c.bf16 %v3025_v11, %v3024_v51  ;;  %v5027_v42 = vpop.permute.xlu0 %5026  ;;  %v5034_v7 = vunpack.i.h.bf16 %v5032_v4  ;;  %v5033_v37 = vunpack.i.l.bf16 %v5032_v4 }
 0xdc1   : >> { %v5029_v5 = vunpack.i.h.bf16 %v5027_v42  ;;  %v5028_v16 = vunpack.i.l.bf16 %v5027_v42 }
 0xdc2   : >> { %4658 = vmatprep.mubr.msk.bf16.mxu1 %vm547_vm1, %v3036_v43  ;;  %v3013_v45 = vsel %vm2998_vm3, %v2996_v32, %v5033_v37  ;;  %v3014_v33 = vsel %vm2998_vm3, %v2997_v52, %v5034_v7  ;;  %v7707_v43 = vld [vmem:[#allocation13_spill] sm:$0xff] }
 0xdc3   : >> { %4659 = vmatmul.mubr.msk.bf16.gmra.mrb[68].mxu1 %vm547_vm1, %v3037_v0  ;;  %v3011_v10 = vsel %vm2998_vm3, %v2994_v1, %v5028_v16  ;;  %v3012_v57 = vsel %vm2998_vm3, %v2995_v54, %v5029_v5 }
 0xde7   : >> { %v5042_v35 = vpop.permute.xlu1 %5041 }
 0xde8   : >> { %v5044_v20 = vunpack.i.h.bf16 %v5042_v35  ;;  %v5043_v6 = vunpack.i.l.bf16 %v5042_v35  ;;  %v5037_v18 = vpop.permute.xlu0 %5036 }
 0xde9   : >> { %v5039_v58 = vunpack.i.h.bf16 %v5037_v18  ;;  %v5038_v61 = vunpack.i.l.bf16 %v5037_v18  ;;  %v7712_v18 = vld [vmem:[#allocation8_spill] sm:$0xff] }
 0xdea   : >> { %v3030_v25 = vsel %vm3015_vm4, %v3013_v45, %v5043_v6  ;;  %v3031_v49 = vsel %vm3015_vm4, %v3014_v33, %v5044_v20  ;;  %v7711_v20 = vld [vmem:[#allocation9_spill] sm:$0xff] }
 0xdeb   : >> { %v3039_v27 = vpack.c.bf16 %v3031_v49, %v3030_v25  ;;  %v3028_v39 = vsel %vm3015_vm4, %v3011_v10, %v5038_v61  ;;  %v3029_v36 = vsel %vm3015_vm4, %v3012_v57, %v5039_v58  ;;  %v7713_v58 = vld [vmem:[#allocation6_spill] sm:$0xff]  ;;  %v7714_v57 = vld [vmem:[#allocation7_spill] sm:$0xff] }
 0xdec   : >> { %v3038_v59 = vpack.c.bf16 %v3029_v36, %v3028_v39 }
 0xdee   : >> { %4662 = vmatprep.mubr.msk.bf16.mxu1 %vm547_vm1, %v3038_v59 }
 0xdef   : >> { %4663 = vmatmul.mubr.msk.bf16.gmra.mrb[72].mxu1 %vm547_vm1, %v3039_v27 }
 0xe86   : >> { %v4652_v47 = vpop.f32.mrb[60].mxu1 }
 0xe87   : >> { %v3133_v23 = vadd.f32 %v4652_v47, %v7121_v30  ;;  %v3124_v17 = vpop.f32.mrb[61].mxu1 }
 0xe88   : >> { %v3125_v56 = vadd.f32 %v7121_v30, %v3124_v17  ;;  %v4653_v62 = vpop.f32.mrb[62].mxu1 }
 0xe89   : >> { %v3136_v9 = vadd.f32 %v4653_v62, %v7121_v30  ;;  %v3127_v28 = vpop.f32.mrb[63].mxu1  ;;  %v7131_v44 = vadd.f32 %v7704_v60, %v3133_v23 }
 0xe8a   : >> { %v7127_v41 = vadd.f32 %v7703_v38, %v3125_v56  ;;  %v3128_v2 = vadd.f32 %v7121_v30, %v3127_v28 }
 0xe8b   : >> { %v7142_v46 = vadd.f32 %v7706_v50, %v3136_v9  ;;  %v3213_v26 = vsel %vm547_vm1, %v7131_v44, 0.0  ;;  %v7715_v9 = vld [vmem:[#allocation5_spill] sm:$0xff] }
 0xe8c   : >> { %v7134_v63 = vadd.f32 %v7705_v31, %v3128_v2  ;;  %v3207_v34 = vsel %vm547_vm1, %v7127_v41, 0.0  ;;  %v7716_v2 = vld [vmem:[#allocation3_spill] sm:$0xff]  ;;  %v7717_v31 = vld [vmem:[#allocation4_spill] sm:$0xff] }
 0xe8d   : >> { %3208 = vadd.xlane.f32.xlu0 %v3207_v34  ;;  %v3216_v42 = vsel %vm547_vm1, %v7142_v46, 0.0 }
 0xe8e   : >> { %v4656_v22 = vpop.f32.mrb[64].mxu1  ;;  %v3210_v21 = vsel %vm547_vm1, %v7134_v63, 0.0 }
 0xe8f   : >> { %v3149_v3 = vadd.f32 %v4656_v22, %v7121_v30  ;;  %v3140_v53 = vpop.f32.mrb[65].mxu1  ;;  %3211 = vadd.xlane.f32.xlu1 %v3210_v21  ;;  %v7718_v21 = vld [vmem:[#allocation2_spill] sm:$0xff] }
 0xe90   : >> { %v3141_v8 = vadd.f32 %v7121_v30, %v3140_v53  ;;  %v4657_v24 = vpop.f32.mrb[66].mxu1 }
 0xe91   : >> { %v3152_v0 = vadd.f32 %v4657_v24, %v7121_v30  ;;  %v3143_v51 = vpop.f32.mrb[67].mxu1  ;;  %3214 = vadd.xlane.f32.xlu0 %v3213_v26  ;;  %v7164_v52 = vadd.f32 %v7710_v55, %v3149_v3 }
 0xe92   : >> { %v3144_v11 = vadd.f32 %v7121_v30, %v3143_v51  ;;  %v7150_v4 = vadd.f32 %v7707_v43, %v3141_v8 }
 0xe93   : >> { %v7158_v48 = vadd.f32 %v7709_v14, %v3152_v0  ;;  %v3225_v33 = vsel %vm547_vm1, %v7164_v52, 0.0 }
 0xe94   : >> { %v7153_v19 = vadd.f32 %v7708_v40, %v3144_v11  ;;  %v3219_v35 = vsel %vm547_vm1, %v7150_v4, 0.0 }
 0xe95   : >> { %3217 = vadd.xlane.f32.xlu0 %v3216_v42  ;;  %v3228_v1 = vsel %vm547_vm1, %v7158_v48, 0.0 }
 0xe96   : >> { %v4660_v7 = vpop.f32.mrb[68].mxu1  ;;  %v3222_v37 = vsel %vm547_vm1, %v7153_v19, 0.0 }
 0xe97   : >> { %v3165_v5 = vadd.f32 %v4660_v7, %v7121_v30  ;;  %v3156_v16 = vpop.f32.mrb[69].mxu1  ;;  %3223 = vadd.xlane.f32.xlu1 %v3222_v37 }
 0xe98   : >> { %v3157_v13 = vadd.f32 %v7121_v30, %v3156_v16  ;;  %v4661_v32 = vpop.f32.mrb[70].mxu1 }
 0xe99   : >> { %v3168_v12 = vadd.f32 %v4661_v32, %v7121_v30  ;;  %v3159_v54 = vpop.f32.mrb[71].mxu1  ;;  %3220 = vadd.xlane.f32.xlu0 %v3219_v35  ;;  %v7187_v25 = vadd.f32 %v7714_v57, %v3165_v5 }
 0xe9a   : >> { %v3160_v29 = vadd.f32 %v7121_v30, %v3159_v54  ;;  %v7174_v6 = vadd.f32 %v7711_v20, %v3157_v13 }
 0xe9b   : >> { %3229 = vadd.xlane.f32.xlu1 %v3228_v1  ;;  %v7182_v61 = vadd.f32 %v7713_v58, %v3168_v12  ;;  %v3237_v39 = vsel %vm547_vm1, %v7187_v25, 0.0 }
 0xe9c   : >> { %v7177_v45 = vadd.f32 %v7712_v18, %v3160_v29  ;;  %v3231_v49 = vsel %vm547_vm1, %v7174_v6, 0.0 }
 0xe9d   : >> { %3226 = vadd.xlane.f32.xlu0 %v3225_v33  ;;  %v3240_v27 = vsel %vm547_vm1, %v7182_v61, 0.0 }
 0xe9e   : >> { %v3234_v10 = vsel %vm547_vm1, %v7177_v45, 0.0 }
 0xe9f   : >> { %3235 = vadd.xlane.f32.xlu1 %v3234_v10 }
 0xea1   : >> { %3232 = vadd.xlane.f32.xlu0 %v3231_v49 }
 0xea3   : >> { %3241 = vadd.xlane.f32.xlu1 %v3240_v27 }
 0xea5   : >> { %3238 = vadd.xlane.f32.xlu0 %v3237_v39 }
 0xec2   : >> { %v4664_v36 = vpop.f32.mrb[72].mxu1 }
 0xec3   : >> { %v3181_v59 = vadd.f32 %v4664_v36, %v7121_v30  ;;  %v3172_v47 = vpop.f32.mrb[73].mxu1 }
 0xec4   : >> { %v3173_v23 = vadd.f32 %v7121_v30, %v3172_v47  ;;  %v4665_v17 = vpop.f32.mrb[74].mxu1 }
 0xec5   : >> { %v3184_v56 = vadd.f32 %v4665_v17, %v7121_v30  ;;  %v3175_v62 = vpop.f32.mrb[75].mxu1  ;;  %v7203_v60 = vadd.f32 %v7716_v2, %v3181_v59 }
 0xec6   : >> { %v7199_v28 = vadd.f32 %v7715_v9, %v3173_v23  ;;  %v3176_v38 = vadd.f32 %v7121_v30, %v3175_v62 }
 0xec7   : >> { %v7211_v3 = vadd.f32 %v7718_v21, %v3184_v56  ;;  %v3249_v30 = vsel %vm547_vm1, %v7203_v60, 0.0 }
 0xec8   : >> { %v7206_v34 = vadd.f32 %v7717_v31, %v3176_v38  ;;  %v3243_v22 = vsel %vm547_vm1, %v7199_v28, 0.0 }
 0xec9   : >> { %3244 = vadd.xlane.f32.xlu0 %v3243_v22  ;;  %v3252_v50 = vsel %vm547_vm1, %v7211_v3, 0.0 }
 0xeca   : >> { %v3246_v53 = vsel %vm547_vm1, %v7206_v34, 0.0 }
 0xecb   : >> { %3247 = vadd.xlane.f32.xlu1 %v3246_v53 }
 0xecd   : >> { %3250 = vadd.xlane.f32.xlu0 %v3249_v30 }
 0xecf   : >> { %3253 = vadd.xlane.f32.xlu1 %v3252_v50 }
 0xf1a   : >> { %v3209_v8 = vpop.xlane.xlu0 %3208 }
 0xf1b   : >> { %v3255_v24 = vmul.f32 0.03125, %v3209_v8 }
 0xf1c   : >> { %v3212_v26 = vpop.xlane.xlu1 %3211 }
 0xf1d   : >> { %v7220_v0 = vsub.f32 %v7127_v41, %v3255_v24  ;;  %v3256_v51 = vmul.f32 0.03125, %v3212_v26 }
 0xf1e   : >> { %v3215_v11 = vpop.xlane.xlu0 %3214 }
 0xf1f   : >> { %v7223_v43 = vsub.f32 %v7134_v63, %v3256_v51  ;;  %v3257_v40 = vmul.f32 0.03125, %v3215_v11  ;;  %v3287_v42 = vmul.f32 %v7220_v0, %v7220_v0 }
 0xf21   : >> { %v7228_v14 = vsub.f32 %v7131_v44, %v3257_v40  ;;  %v3303_v7 = vsel %vm547_vm1, %v3287_v42, 0.0  ;;  %v3288_v37 = vmul.f32 %v7223_v43, %v7223_v43 }
 0xf22   : >> { %3304 = vadd.xlane.f32.xlu0 %v3303_v7  ;;  %v3218_v5 = vpop.xlane.xlu0 %3217 }
 0xf23   : >> { %v3258_v16 = vmul.f32 0.03125, %v3218_v5  ;;  %v3306_v55 = vsel %vm547_vm1, %v3288_v37, 0.0  ;;  %v3289_v13 = vmul.f32 %v7228_v14, %v7228_v14 }
 0xf24   : >> { %3307 = vadd.xlane.f32.xlu1 %v3306_v55  ;;  %v3224_v32 = vpop.xlane.xlu1 %3223 }
 0xf25   : >> { %v7237_v35 = vsub.f32 %v7142_v46, %v3258_v16  ;;  %v3260_v12 = vmul.f32 0.03125, %v3224_v32  ;;  %v3309_v54 = vsel %vm547_vm1, %v3289_v13, 0.0  ;;  %v5049_v32 = vld [vmem:[%s3468_s27] sm:$0xff]  }
 0xf26   : >> { %3310 = vadd.xlane.f32.xlu0 %v3309_v54  ;;  %v3221_v29 = vpop.xlane.xlu0 %3220  ;;  %4666 = vmatprep.subr.bf16.mxu0 %v5049_v32 }
 0xf27   : >> { %v7241_v1 = vsub.f32 %v7153_v19, %v3260_v12  ;;  %v3259_v20 = vmul.f32 0.03125, %v3221_v29  ;;  %v3290_v18 = vmul.f32 %v7237_v35, %v7237_v35  ;;  %4667 = vmatpush3.bf16.msra.mxu0 %v5049_v32  ;;  %v5050_v12 = vld [vmem:[%s3468_s27 + $0x8] sm:$0xff]  }
 0xf28   : >> { %v3230_v33 = vpop.xlane.xlu1 %3229  ;;  %4668 = vmatprep.subr.bf16.mxu0 %v5050_v12 }
 0xf29   : >> { %v7246_v58 = vsub.f32 %v7150_v4, %v3259_v20  ;;  %v3262_v10 = vmul.f32 0.03125, %v3230_v33  ;;  %v3312_v57 = vsel %vm547_vm1, %v3290_v18, 0.0  ;;  %v3292_v49 = vmul.f32 %v7241_v1, %v7241_v1 }
 0xf2a   : >> { %3313 = vadd.xlane.f32.xlu1 %v3312_v57  ;;  %v3227_v27 = vpop.xlane.xlu0 %3226 }
 0xf2b   : >> { %v7252_v39 = vsub.f32 %v7158_v48, %v3262_v10  ;;  %v3261_v36 = vmul.f32 0.03125, %v3227_v27  ;;  %v3291_v59 = vmul.f32 %v7246_v58, %v7246_v58  ;;  %v3318_v23 = vsel %vm547_vm1, %v3292_v49, 0.0  ;;  %4669 = vmatpush3.bf16.msra.mxu0 %v5050_v12 }
 0xf2c   : >> { %v3236_v47 = vpop.xlane.xlu1 %3235 }
 0xf2d   : >> { %v7258_v17 = vsub.f32 %v7164_v52, %v3261_v36  ;;  %v3264_v56 = vmul.f32 0.03125, %v3236_v47  ;;  %v3315_v62 = vsel %vm547_vm1, %v3291_v59, 0.0  ;;  %v3294_v9 = vmul.f32 %v7252_v39, %v7252_v39 }
 0xf2e   : >> { %3319 = vadd.xlane.f32.xlu1 %v3318_v23  ;;  %3316 = vadd.xlane.f32.xlu0 %v3315_v62  ;;  %v3233_v38 = vpop.xlane.xlu0 %3232 }
 0xf2f   : >> { %v7264_v2 = vsub.f32 %v7177_v45, %v3264_v56  ;;  %v3263_v31 = vmul.f32 0.03125, %v3233_v38  ;;  %v3293_v22 = vmul.f32 %v7258_v17, %v7258_v17  ;;  %v3324_v53 = vsel %vm547_vm1, %v3294_v9, 0.0 }
 0xf30   : >> { %v3242_v21 = vpop.xlane.xlu1 %3241 }
 0xf31   : >> { %v7270_v30 = vsub.f32 %v7174_v6, %v3263_v31  ;;  %v3266_v50 = vmul.f32 0.03125, %v3242_v21  ;;  %v3321_v8 = vsel %vm547_vm1, %v3293_v22, 0.0  ;;  %v3296_v24 = vmul.f32 %v7264_v2, %v7264_v2 }
 0xf32   : >> { %3325 = vadd.xlane.f32.xlu1 %v3324_v53  ;;  %3322 = vadd.xlane.f32.xlu0 %v3321_v8  ;;  %v3239_v26 = vpop.xlane.xlu0 %3238 }
 0xf33   : >> { %v7276_v51 = vsub.f32 %v7182_v61, %v3266_v50  ;;  %v3265_v11 = vmul.f32 0.03125, %v3239_v26  ;;  %v3295_v40 = vmul.f32 %v7270_v30, %v7270_v30  ;;  %v3330_v7 = vsel %vm547_vm1, %v3296_v24, 0.0 }
 0xf35   : >> { %v7281_v42 = vsub.f32 %v7187_v25, %v3265_v11  ;;  %v3327_v37 = vsel %vm547_vm1, %v3295_v40, 0.0  ;;  %v3298_v5 = vmul.f32 %v7276_v51, %v7276_v51 }
 0xf36   : >> { %3331 = vadd.xlane.f32.xlu1 %v3330_v7  ;;  %3328 = vadd.xlane.f32.xlu0 %v3327_v37 }
 0xf37   : >> { %v3297_v16 = vmul.f32 %v7281_v42, %v7281_v42  ;;  %v3336_v55 = vsel %vm547_vm1, %v3298_v5, 0.0 }
 0xf39   : >> { %v3333_v13 = vsel %vm547_vm1, %v3297_v16, 0.0 }
 0xf3a   : >> { %3337 = vadd.xlane.f32.xlu1 %v3336_v55  ;;  %3334 = vadd.xlane.f32.xlu0 %v3333_v13 }
 0xf56   : >> { %v3245_v54 = vpop.xlane.xlu0 %3244 }
 0xf57   : >> { %v3267_v29 = vmul.f32 0.03125, %v3245_v54 }
 0xf58   : >> { %v3248_v20 = vpop.xlane.xlu1 %3247 }
 0xf59   : >> { %v7296_v18 = vsub.f32 %v7199_v28, %v3267_v29  ;;  %v3268_v33 = vmul.f32 0.03125, %v3248_v20  ;;  %v7323_v20 = vld [vmem:[%s3203_s20] ss:$0 sm:$0xff] }
 0xf5a   : >> { %v3251_v10 = vpop.xlane.xlu0 %3250 }
 0xf5b   : >> { %v7299_v57 = vsub.f32 %v7206_v34, %v3268_v33  ;;  %v3269_v49 = vmul.f32 0.03125, %v3251_v10  ;;  %v3299_v27 = vmul.f32 %v7296_v18, %v7296_v18 }
 0xf5c   : >> { %v3254_v36 = vpop.xlane.xlu1 %3253 }
 0xf5d   : >> { %v7304_v59 = vsub.f32 %v7203_v60, %v3269_v49  ;;  %v3270_v47 = vmul.f32 0.03125, %v3254_v36  ;;  %v3339_v23 = vsel %vm547_vm1, %v3299_v27, 0.0  ;;  %v3300_v56 = vmul.f32 %v7299_v57, %v7299_v57 }
 0xf5e   : >> { %3340 = vadd.xlane.f32.xlu0 %v3339_v23 }
 0xf5f   : >> { %v7310_v62 = vsub.f32 %v7211_v3, %v3270_v47  ;;  %v3342_v9 = vsel %vm547_vm1, %v3300_v56, 0.0  ;;  %v3301_v38 = vmul.f32 %v7304_v59, %v7304_v59 }
 0xf60   : >> { %3343 = vadd.xlane.f32.xlu1 %v3342_v9 }
 0xf61   : >> { %v3345_v31 = vsel %vm547_vm1, %v3301_v38, 0.0  ;;  %v3302_v22 = vmul.f32 %v7310_v62, %v7310_v62 }
 0xf62   : >> { %3346 = vadd.xlane.f32.xlu0 %v3345_v31 }
 0xf63   : >> { %v3348_v21 = vsel %vm547_vm1, %v3302_v22, 0.0  ;;  %v7332_v22 = vld [vmem:[%s3205_s30] ss:$0 sm:$0xff] }
 0xf64   : >> { %3349 = vadd.xlane.f32.xlu1 %v3348_v21 }
 0xfaf   : >> { %v3305_v53 = vpop.xlane.xlu0 %3304 }
 0xfb0   : >> { %v3351_v50 = vmul.f32 0.03125, %v3305_v53 }
 0xfb1   : >> { %v3308_v8 = vpop.xlane.xlu1 %3307 }
 0xfb2   : >> { %v3367_v24 = vadd.f32 1e-06, %v3351_v50  ;;  %v3352_v26 = vmul.f32 0.03125, %v3308_v8 }
 0xfb3   : >> { %v3311_v11 = vpop.xlane.xlu0 %3310 }
 0xfb4   : >> { %5347 = vrsqrt.f32 %v3367_v24  ;;  %v3368_v40 = vadd.f32 1e-06, %v3352_v26  ;;  %v3353_v7 = vmul.f32 0.03125, %v3311_v11 }
 0xfb6   : >> { %5349 = vrsqrt.f32 %v3368_v40  ;;  %v3369_v37 = vadd.f32 1e-06, %v3353_v7 }
 0xfb7   : >> { %v3314_v5 = vpop.xlane.xlu1 %3313 }
 0xfb8   : >> { %5351 = vrsqrt.f32 %v3369_v37  ;;  %v3354_v16 = vmul.f32 0.03125, %v3314_v5 }
 0xfba   : >> { %v3370_v55 = vadd.f32 1e-06, %v3354_v16 }
 0xfbb   : >> { %v3320_v13 = vpop.xlane.xlu1 %3319  ;;  %v3317_v32 = vpop.xlane.xlu0 %3316 }
 0xfbc   : >> { %5353 = vrsqrt.f32 %v3370_v55  ;;  %v3356_v12 = vmul.f32 0.03125, %v3320_v13  ;;  %v3355_v54 = vmul.f32 0.03125, %v3317_v32 }
 0xfbe   : >> { %v5348_v29 = vpop.eup %5347  ;;  %v3372_v33 = vadd.f32 1e-06, %v3356_v12  ;;  %v3371_v10 = vadd.f32 1e-06, %v3355_v54 }
 0xfbf   : >> { %v3399_v49 = vmul.f32 %v5348_v29, %v7220_v0  ;;  %v3326_v27 = vpop.xlane.xlu1 %3325  ;;  %v3323_v36 = vpop.xlane.xlu0 %3322 }
 0xfc0   : >> { %v5350_v47 = vpop.eup %5349  ;;  %5355 = vrsqrt.f32 %v3372_v33  ;;  %v3358_v23 = vmul.f32 0.03125, %v3326_v27  ;;  %v3357_v56 = vmul.f32 0.03125, %v3323_v36 }
 0xfc1   : >> { %v3400_v9 = vmul.f32 %v5350_v47, %v7223_v43  ;;  %5357 = vrsqrt.f32 %v3371_v10  ;;  %v3421_v38 = vmul.f32 %v7323_v20, %v3399_v49 }
 0xfc2   : >> { %v5352_v31 = vpop.eup %5351  ;;  %v3374_v21 = vadd.f32 1e-06, %v3358_v23  ;;  %v3373_v53 = vadd.f32 1e-06, %v3357_v56 }
 0xfc3   : >> { %v3401_v50 = vmul.f32 %v5352_v31, %v7228_v14  ;;  %v3332_v8 = vpop.xlane.xlu1 %3331  ;;  %v3329_v0 = vpop.xlane.xlu0 %3328  ;;  %v3422_v24 = vmul.f32 %v7323_v20, %v3400_v9  ;;  %v3443_v43 = vadd.f32 %v7332_v22, %v3421_v38 }
 0xfc4   : >> { %5359 = vrsqrt.f32 %v3374_v21  ;;  %v3360_v26 = vmul.f32 0.03125, %v3332_v8  ;;  %v3359_v11 = vmul.f32 0.03125, %v3329_v0 }
 0xfc5   : >> { %5361 = vrsqrt.f32 %v3373_v53  ;;  %v3444_v40 = vadd.f32 %v7332_v22, %v3422_v24  ;;  %v3423_v16 = vmul.f32 %v7323_v20, %v3401_v50 }
 0xfc6   : >> { %v5354_v7 = vpop.eup %5353  ;;  %v3376_v37 = vadd.f32 1e-06, %v3360_v26  ;;  %v3375_v5 = vadd.f32 1e-06, %v3359_v11 }
 0xfc7   : >> { %v3402_v55 = vmul.f32 %v5354_v7, %v7237_v35  ;;  %v3338_v14 = vpop.xlane.xlu1 %3337  ;;  %v3335_v13 = vpop.xlane.xlu0 %3334  ;;  %v3459_v32 = vpack.c.bf16 %v3444_v40, %v3443_v43  ;;  %v3445_v47 = vadd.f32 %v7332_v22, %v3423_v16 }
 0xfc8   : >> { %5363 = vrsqrt.f32 %v3376_v37  ;;  %v3362_v12 = vmul.f32 0.03125, %v3338_v14  ;;  %v3361_v54 = vmul.f32 0.03125, %v3335_v13 }
 0xfc9   : >> { %v3424_v29 = vmul.f32 %v7323_v20, %v3402_v55  ;;  %5365 = vrsqrt.f32 %v3375_v5  ;;  %4670 = vmatprep.mubr.msk.bf16.mxu0 %vm547_vm1, %v3459_v32 }
 0xfca   : >> { %v5356_v33 = vpop.eup %5355  ;;  %v3378_v10 = vadd.f32 1e-06, %v3362_v12  ;;  %v3377_v49 = vadd.f32 1e-06, %v3361_v54 }
 0xfcb   : >> { %v5358_v27 = vpop.eup %5357  ;;  %v3404_v36 = vmul.f32 %v5356_v33, %v7241_v1  ;;  %v3446_v35 = vadd.f32 %v7332_v22, %v3424_v29 }
 0xfcc   : >> { %v3403_v23 = vmul.f32 %v5358_v27, %v7246_v58  ;;  %5367 = vrsqrt.f32 %v3378_v10 }
 0xfcd   : >> { %5369 = vrsqrt.f32 %v3377_v49  ;;  %v3460_v56 = vpack.c.bf16 %v3446_v35, %v3445_v47  ;;  %v3426_v9 = vmul.f32 %v7323_v20, %v3404_v36 }
 0xfce   : >> { %v5360_v38 = vpop.eup %5359  ;;  %v3425_v31 = vmul.f32 %v7323_v20, %v3403_v23 }
 0xfcf   : >> { %v5362_v21 = vpop.eup %5361  ;;  %v3406_v53 = vmul.f32 %v5360_v38, %v7252_v39  ;;  %4671 = vmatmul.mubr.msk.bf16.vlgmr.msra.gmra.mrb[84].mxu0 %vm547_vm1, %v3460_v56  ;;  %v3448_v1 = vadd.f32 %v7332_v22, %v3426_v9 }
 0xfd0   : >> { %v3405_v50 = vmul.f32 %v5362_v21, %v7258_v17  ;;  %v3447_v8 = vadd.f32 %v7332_v22, %v3425_v31 }
 0xfd1   : >> { %v3428_v58 = vmul.f32 %v7323_v20, %v3406_v53 }
 0xfd2   : >> { %v5364_v0 = vpop.eup %5363  ;;  %v3461_v24 = vpack.c.bf16 %v3448_v1, %v3447_v8  ;;  %v3427_v26 = vmul.f32 %v7323_v20, %v3405_v50 }
 0xfd3   : >> { %v5366_v11 = vpop.eup %5365  ;;  %v3408_v43 = vmul.f32 %v5364_v0, %v7264_v2  ;;  %v3450_v40 = vadd.f32 %v7332_v22, %v3428_v58 }
 0xfd4   : >> { %v3407_v39 = vmul.f32 %v5366_v11, %v7270_v30  ;;  %4674 = vmatprep.mubr.msk.bf16.mxu0 %vm547_vm1, %v3461_v24  ;;  %v3449_v7 = vadd.f32 %v7332_v22, %v3427_v26 }
 0xfd5   : >> { %v3430_v17 = vmul.f32 %v7323_v20, %v3408_v43 }
 0xfd6   : >> { %v5368_v37 = vpop.eup %5367  ;;  %v3462_v5 = vpack.c.bf16 %v3450_v40, %v3449_v7  ;;  %v3429_v16 = vmul.f32 %v7323_v20, %v3407_v39 }
 0xfd7   : >> { %v5370_v55 = vpop.eup %5369  ;;  %v3410_v14 = vmul.f32 %v5368_v37, %v7276_v51  ;;  %v3452_v13 = vadd.f32 %v7332_v22, %v3430_v17  ;;  %v5052_v37 = vld [vmem:[%s5953_s19 + $0x8] sm:$0xff]  }
 0xfd8   : >> { %v3409_v2 = vmul.f32 %v5370_v55, %v7281_v42  ;;  %4675 = vmatmul.mubr.msk.bf16.gmra.mrb[88].mxu0 %vm547_vm1, %v3462_v5  ;;  %v3451_v30 = vadd.f32 %v7332_v22, %v3429_v16  ;;  %v5054_v5 = vld [vmem:[%s5953_s19 + $0x18] sm:$0xff]   ;;  %v5056_v16 = vld [vmem:[%s5953_s19 + $0x28] sm:$0xff]   ;;  %v5057_v55 = vld [vmem:[%s5953_s19 + $0x30] sm:$0xff]  }
 0xfd9   : >> { %v3432_v32 = vmul.f32 %v7323_v20, %v3410_v14  ;;  %v5058_v14 = vld [vmem:[%s5953_s19 + $0x38] sm:$0xff]  }
 0xfda   : >> { %v3463_v12 = vpack.c.bf16 %v3452_v13, %v3451_v30  ;;  %v3431_v54 = vmul.f32 %v7323_v20, %v3409_v2  ;;  %v7399_v13 = vld [vmem:[%s3473_s15] ss:$0 sm:$0xff] }
 0xfdb   : >> { %v3454_v29 = vadd.f32 %v7332_v22, %v3432_v32 }
 0xfdc   : >> { %4678 = vmatprep.mubr.msk.bf16.mxu0 %vm547_vm1, %v3463_v12  ;;  %v3453_v33 = vadd.f32 %v7332_v22, %v3431_v54 }
 0xfde   : >> { %v3464_v51 = vpack.c.bf16 %v3454_v29, %v3453_v33 }
 0xfe0   : >> { %4679 = vmatmul.mubr.msk.bf16.gmra.mrb[92].mxu0 %vm547_vm1, %v3464_v51 }
 0xfeb   : >> { %v3341_v10 = vpop.xlane.xlu0 %3340 }
 0xfec   : >> { %v3363_v42 = vmul.f32 0.03125, %v3341_v10 }
 0xfed   : >> { %v3344_v49 = vpop.xlane.xlu1 %3343 }
 0xfee   : >> { %v3379_v27 = vadd.f32 1e-06, %v3363_v42  ;;  %v3364_v36 = vmul.f32 0.03125, %v3344_v49 }
 0xfef   : >> { %v3347_v47 = vpop.xlane.xlu0 %3346 }
 0xff0   : >> { %5371 = vrsqrt.f32 %v3379_v27  ;;  %v3380_v35 = vadd.f32 1e-06, %v3364_v36  ;;  %v3365_v23 = vmul.f32 0.03125, %v3347_v47 }
 0xff1   : >> { %v3350_v56 = vpop.xlane.xlu1 %3349 }
 0xff2   : >> { %5373 = vrsqrt.f32 %v3380_v35  ;;  %v3381_v9 = vadd.f32 1e-06, %v3365_v23  ;;  %v3366_v38 = vmul.f32 0.03125, %v3350_v56 }
 0xff4   : >> { %5375 = vrsqrt.f32 %v3381_v9  ;;  %v3382_v31 = vadd.f32 1e-06, %v3366_v38 }
 0xff6   : >> { %5377 = vrsqrt.f32 %v3382_v31 }
 0xffa   : >> { %v5372_v21 = vpop.eup %5371 }
 0xffb   : >> { %v3411_v53 = vmul.f32 %v5372_v21, %v7296_v18 }
 0xffc   : >> { %v5374_v1 = vpop.eup %5373 }
 0xffd   : >> { %v3412_v50 = vmul.f32 %v5374_v1, %v7299_v57  ;;  %v3433_v8 = vmul.f32 %v7323_v20, %v3411_v53 }
 0xffe   : >> { %v5376_v58 = vpop.eup %5375 }
 0xfff   : >> { %v3413_v0 = vmul.f32 %v5376_v58, %v7304_v59  ;;  %v3434_v24 = vmul.f32 %v7323_v20, %v3412_v50  ;;  %v3455_v43 = vadd.f32 %v7332_v22, %v3433_v8 }
0x1000   : >> { %v5378_v26 = vpop.eup %5377 }
0x1001   : >> { %v3414_v11 = vmul.f32 %v5378_v26, %v7310_v62  ;;  %v3456_v18 = vadd.f32 %v7332_v22, %v3434_v24  ;;  %v3435_v40 = vmul.f32 %v7323_v20, %v3413_v0  ;;  %v5051_v62 = vld [vmem:[%s5953_s19] sm:$0xff]  }
0x1002   : >> { %4686 = vmatprep.subr.bf16.mxu1 %v5051_v62 }
0x1003   : >> { %v3465_v57 = vpack.c.bf16 %v3456_v18, %v3455_v43  ;;  %v3436_v39 = vmul.f32 %v7323_v20, %v3414_v11  ;;  %v3457_v7 = vadd.f32 %v7332_v22, %v3435_v40  ;;  %4687 = vmatpush3.bf16.msra.mxu1 %v5051_v62  ;;  %v5053_v20 = vld [vmem:[%s5953_s19 + $0x10] sm:$0xff]  }
0x1004   : >> { %4688 = vmatprep.subr.bf16.mxu1 %v5052_v37 }
0x1005   : >> { %4682 = vmatprep.mubr.msk.bf16.mxu0 %vm547_vm1, %v3465_v57  ;;  %v3458_v59 = vadd.f32 %v7332_v22, %v3436_v39  ;;  %v5055_v22 = vld [vmem:[%s5953_s19 + $0x20] sm:$0xff]  }
0x1007   : >> { %v3466_v17 = vpack.c.bf16 %v3458_v59, %v3457_v7  ;;  %4689 = vmatpush3.bf16.msra.mxu1 %v5052_v37 }
0x1008   : >> { %4690 = vmatprep.subr.bf16.mxu1 %v5053_v20 }
0x1009   : >> { %4683 = vmatmul.mubr.msk.bf16.gmra.mrb[96].mxu0 %vm547_vm1, %v3466_v17 }
0x100b   : >> { %4691 = vmatpush3.bf16.msra.mxu1 %v5053_v20 }
0x100c   : >> { %4692 = vmatprep.subr.bf16.mxu1 %v5054_v5 }
0x100f   : >> { %4693 = vmatpush3.bf16.msra.mxu1 %v5054_v5 }
0x1010   : >> { %4694 = vmatprep.subr.bf16.mxu1 %v5055_v22 }
0x1013   : >> { %4695 = vmatpush3.bf16.msra.mxu1 %v5055_v22 }
0x1014   : >> { %4696 = vmatprep.subr.bf16.mxu1 %v5056_v16 }
0x1017   : >> { %4697 = vmatpush3.bf16.msra.mxu1 %v5056_v16 }
0x1018   : >> { %4698 = vmatprep.subr.bf16.mxu1 %v5057_v55 }
0x101b   : >> { %4699 = vmatpush3.bf16.msra.mxu1 %v5057_v55 }
0x101c   : >> { %4700 = vmatprep.subr.bf16.mxu1 %v5058_v14 }
0x101f   : >> { %4701 = vmatpush3.bf16.msra.mxu1 %v5058_v14 }
0x10a2   : >> { %v4672_v2 = vpop.f32.mrb[84].mxu0 }
0x10a3   : >> { %v3560_v30 = vadd.f32 %v4672_v2, %v7399_v13  ;;  %v3551_v32 = vpop.f32.mrb[85].mxu0 }
0x10a4   : >> { %v7403_v12 = vadd.f32 %v7399_v13, %v3551_v32  ;;  %v4673_v54 = vpop.f32.mrb[86].mxu0 }
0x10a5   : >> { %v3632_v29 = vmul.f32 0.044715, %v3560_v30  ;;  %v7406_v33 = vadd.f32 %v4673_v54, %v7399_v13  ;;  %v3554_v51 = vpop.f32.mrb[87].mxu0 }
0x10a6   : >> { %v3630_v10 = vmul.f32 0.044715, %v7403_v12  ;;  %v7410_v42 = vadd.f32 %v7399_v13, %v3554_v51 }
0x10a7   : >> { %v3648_v49 = vmul.f32 %v3632_v29, %v3560_v30  ;;  %v3633_v27 = vmul.f32 0.044715, %v7406_v33 }
0x10a8   : >> { %v3646_v36 = vmul.f32 %v3630_v10, %v7403_v12  ;;  %v3631_v47 = vmul.f32 0.044715, %v7410_v42  ;;  %v3616_v10 = vmul.f32 0.5, %v3560_v30 }
0x10a9   : >> { %v3664_v35 = vmul.f32 %v3648_v49, %v3560_v30  ;;  %v3649_v23 = vmul.f32 %v3633_v27, %v7406_v33 }
0x10aa   : >> { %v3662_v56 = vmul.f32 %v3646_v36, %v7403_v12  ;;  %v3647_v9 = vmul.f32 %v3631_v47, %v7410_v42 }
0x10ab   : >> { %v3680_v38 = vadd.f32 %v3664_v35, %v3560_v30  ;;  %v3665_v31 = vmul.f32 %v3649_v23, %v7406_v33  ;;  %v4676_v21 = vpop.f32.mrb[88].mxu0 }
0x10ac   : >> { %v3663_v53 = vmul.f32 %v3647_v9, %v7410_v42  ;;  %v7421_v1 = vadd.f32 %v4676_v21, %v7399_v13  ;;  %v3567_v50 = vpop.f32.mrb[89].mxu0  ;;  %v3678_v8 = vadd.f32 %v3662_v56, %v7403_v12 }
0x10ad   : >> { %v3696_v58 = vmul.f32 0.7978846, %v3680_v38  ;;  %v3681_v0 = vadd.f32 %v3665_v31, %v7406_v33  ;;  %v7426_v24 = vadd.f32 %v7399_v13, %v3567_v50  ;;  %v4677_v26 = vpop.f32.mrb[90].mxu0 }
0x10ae   : >> { %v3636_v11 = vmul.f32 0.044715, %v7421_v1  ;;  %v7430_v43 = vadd.f32 %v4677_v26, %v7399_v13  ;;  %v3570_v18 = vpop.f32.mrb[91].mxu0  ;;  %v3679_v40 = vadd.f32 %v3663_v53, %v7410_v42  ;;  %v3694_v57 = vmul.f32 0.7978846, %v3678_v8 }
0x10af   : >> { %5379 = vtanh.f32 %v3696_v58  ;;  %v3697_v39 = vmul.f32 0.7978846, %v3681_v0  ;;  %v3634_v7 = vmul.f32 0.044715, %v7426_v24  ;;  %v7435_v59 = vadd.f32 %v7399_v13, %v3570_v18 }
0x10b0   : >> { %v3652_v17 = vmul.f32 %v3636_v11, %v7421_v1  ;;  %v3637_v62 = vmul.f32 0.044715, %v7430_v43  ;;  %v3695_v37 = vmul.f32 0.7978846, %v3679_v40  ;;  %5381 = vtanh.f32 %v3694_v57 }
0x10b1   : >> { %5383 = vtanh.f32 %v3697_v39  ;;  %v3650_v20 = vmul.f32 %v3634_v7, %v7426_v24  ;;  %v3635_v5 = vmul.f32 0.044715, %v7435_v59 }
0x10b2   : >> { %v3668_v22 = vmul.f32 %v3652_v17, %v7421_v1  ;;  %v3653_v16 = vmul.f32 %v3637_v62, %v7430_v43  ;;  %5385 = vtanh.f32 %v3695_v37 }
0x10b3   : >> { %v3666_v55 = vmul.f32 %v3650_v20, %v7426_v24  ;;  %v3651_v14 = vmul.f32 %v3635_v5, %v7435_v59  ;;  %v4680_v2 = vpop.f32.mrb[92].mxu0 }
0x10b4   : >> { %v3669_v32 = vmul.f32 %v3653_v16, %v7430_v43  ;;  %v7447_v54 = vadd.f32 %v4680_v2, %v7399_v13  ;;  %v3583_v29 = vpop.f32.mrb[93].mxu0  ;;  %v3684_v51 = vadd.f32 %v3668_v22, %v7421_v1  ;;  %v3617_v22 = vmul.f32 0.5, %v7406_v33 }
0x10b5   : >> { %v3667_v49 = vmul.f32 %v3651_v14, %v7435_v59  ;;  %v7452_v27 = vadd.f32 %v7399_v13, %v3583_v29  ;;  %v4681_v36 = vpop.f32.mrb[94].mxu0  ;;  %v3682_v47 = vadd.f32 %v3666_v55, %v7426_v24  ;;  %v3614_v55 = vmul.f32 0.5, %v7403_v12 }
0x10b6   : >> { %v3640_v35 = vmul.f32 0.044715, %v7447_v54  ;;  %v7457_v23 = vadd.f32 %v4681_v36, %v7399_v13  ;;  %v3586_v56 = vpop.f32.mrb[95].mxu0  ;;  %v3685_v9 = vadd.f32 %v3669_v32, %v7430_v43  ;;  %v3700_v38 = vmul.f32 0.7978846, %v3684_v51 }
0x10b7   : >> { %v3638_v31 = vmul.f32 0.044715, %v7452_v27  ;;  %v7462_v30 = vadd.f32 %v7399_v13, %v3586_v56  ;;  %v3683_v21 = vadd.f32 %v3667_v49, %v7435_v59  ;;  %v3698_v53 = vmul.f32 0.7978846, %v3682_v47 }
0x10b8   : >> { %v3656_v50 = vmul.f32 %v3640_v35, %v7447_v54  ;;  %v3641_v8 = vmul.f32 0.044715, %v7457_v23  ;;  %v3701_v58 = vmul.f32 0.7978846, %v3685_v9  ;;  %5387 = vtanh.f32 %v3700_v38 }
0x10b9   : >> { %v5380_v0 = vpop.eup %5379  ;;  %v3654_v26 = vmul.f32 %v3638_v31, %v7452_v27  ;;  %v3639_v11 = vmul.f32 0.044715, %v7462_v30  ;;  %v3699_v18 = vmul.f32 0.7978846, %v3683_v21  ;;  %5389 = vtanh.f32 %v3698_v53 }
0x10ba   : >> { %v5382_v40 = vpop.eup %5381  ;;  %v3672_v57 = vmul.f32 %v3656_v50, %v7447_v54  ;;  %v3657_v39 = vmul.f32 %v3641_v8, %v7457_v23  ;;  %v3728_v7 = vadd.f32 1.0, %v5380_v0  ;;  %5391 = vtanh.f32 %v3701_v58 }
0x10bb   : >> { %v5384_v17 = vpop.eup %5383  ;;  %v3670_v62 = vmul.f32 %v3654_v26, %v7452_v27  ;;  %v3655_v37 = vmul.f32 %v3639_v11, %v7462_v30  ;;  %v3726_v20 = vadd.f32 1.0, %v5382_v40  ;;  %5393 = vtanh.f32 %v3699_v18 }
0x10bc   : >> { %v5386_v5 = vpop.eup %5385  ;;  %v3673_v16 = vmul.f32 %v3657_v39, %v7457_v23  ;;  %v3729_v14 = vadd.f32 1.0, %v5384_v17  ;;  %v3615_v32 = vmul.f32 0.5, %v7410_v42  ;;  %v3744_v49 = vmul.f32 %v3728_v7, %v3616_v10 }
0x10bd   : >> { %v3671_v2 = vmul.f32 %v3655_v37, %v7462_v30  ;;  %v3727_v29 = vadd.f32 1.0, %v5386_v5  ;;  %v3742_v51 = vmul.f32 %v3726_v20, %v3614_v55  ;;  %v3686_v47 = vadd.f32 %v3670_v62, %v7452_v27 }
0x10be   : >> { %v3745_v36 = vmul.f32 %v3729_v14, %v3617_v22  ;;  %v3688_v33 = vadd.f32 %v3672_v57, %v7447_v54  ;;  %v3689_v9 = vadd.f32 %v3673_v16, %v7457_v23  ;;  %v3620_v11 = vmul.f32 0.5, %v7421_v1 }
0x10bf   : >> { %v3743_v35 = vmul.f32 %v3727_v29, %v3615_v32  ;;  %v3687_v56 = vadd.f32 %v3671_v2, %v7462_v30  ;;  %v3702_v12 = vmul.f32 0.7978846, %v3686_v47  ;;  %v3621_v18 = vmul.f32 0.5, %v7430_v43 }
0x10c0   : >> { %v3759_v38 = vpack.c.bf16 %v3745_v36, %v3744_v49  ;;  %v3704_v53 = vmul.f32 0.7978846, %v3688_v33  ;;  %v3705_v50 = vmul.f32 0.7978846, %v3689_v9  ;;  %v3618_v57 = vmul.f32 0.5, %v7426_v24 }
0x10c1   : >> { %v3758_v31 = vpack.c.bf16 %v3743_v35, %v3742_v51  ;;  %v3703_v21 = vmul.f32 0.7978846, %v3687_v56  ;;  %5395 = vtanh.f32 %v3702_v12  ;;  %v3619_v39 = vmul.f32 0.5, %v7435_v59 }
0x10c2   : >> { %v5388_v42 = vpop.eup %5387  ;;  %v3622_v43 = vmul.f32 0.5, %v7452_v27  ;;  %v3623_v2 = vmul.f32 0.5, %v7462_v30  ;;  %v3624_v59 = vmul.f32 0.5, %v7447_v54  ;;  %v3625_v36 = vmul.f32 0.5, %v7457_v23 }
0x10c3   : >> { %v5390_v8 = vpop.eup %5389  ;;  %4702 = vmatprep.mubr.bf16.mxu1 %v3758_v31  ;;  %v3732_v10 = vadd.f32 1.0, %v5388_v42  ;;  %5397 = vtanh.f32 %v3703_v21 }
0x10c4   : >> { %v5392_v58 = vpop.eup %5391  ;;  %4703 = vmatmul.mubr.bf16.vlgmr.msra.gmra.mrb[76].mxu1 %v3759_v38  ;;  %v3730_v0 = vadd.f32 1.0, %v5390_v8  ;;  %5399 = vtanh.f32 %v3704_v53 }
0x10c5   : >> { %v5394_v26 = vpop.eup %5393  ;;  %v3733_v40 = vadd.f32 1.0, %v5392_v58  ;;  %5401 = vtanh.f32 %v3705_v50  ;;  %v3748_v17 = vmul.f32 %v3732_v10, %v3620_v11 }
0x10c6   : >> { %v3731_v7 = vadd.f32 1.0, %v5394_v26  ;;  %v3746_v37 = vmul.f32 %v3730_v0, %v3618_v57 }
0x10c7   : >> { %v3749_v62 = vmul.f32 %v3733_v40, %v3621_v18 }
0x10c8   : >> { %v3747_v20 = vmul.f32 %v3731_v7, %v3619_v39 }
0x10c9   : >> { %v3761_v5 = vpack.c.bf16 %v3749_v62, %v3748_v17 }
0x10ca   : >> { %v3760_v22 = vpack.c.bf16 %v3747_v20, %v3746_v37 }
0x10cb   : >> { %v5396_v16 = vpop.eup %5395 }
0x10cc   : >> { %4706 = vmatprep.mubr.bf16.mxu1 %v3760_v22  ;;  %v3734_v1 = vadd.f32 1.0, %v5396_v16 }
0x10cd   : >> { %v5398_v55 = vpop.eup %5397  ;;  %4707 = vmatmul.mubr.bf16.gmra.mrb[80].mxu1 %v3761_v5 }
0x10ce   : >> { %v5400_v14 = vpop.eup %5399  ;;  %v3735_v24 = vadd.f32 1.0, %v5398_v55  ;;  %v3750_v51 = vmul.f32 %v3734_v1, %v3622_v43 }
0x10cf   : >> { %v5402_v32 = vpop.eup %5401  ;;  %v3736_v29 = vadd.f32 1.0, %v5400_v14 }
0x10d0   : >> { %v3751_v49 = vmul.f32 %v3735_v24, %v3623_v2  ;;  %v3737_v47 = vadd.f32 1.0, %v5402_v32 }
0x10d1   : >> { %v3752_v56 = vmul.f32 %v3736_v29, %v3624_v59 }
0x10d2   : >> { %v3762_v35 = vpack.c.bf16 %v3751_v49, %v3750_v51  ;;  %v3753_v33 = vmul.f32 %v3737_v47, %v3625_v36 }
0x10d4   : >> { %4710 = vmatprep.mubr.bf16.mxu1 %v3762_v35  ;;  %v3763_v9 = vpack.c.bf16 %v3753_v33, %v3752_v56 }
0x10d6   : >> { %4711 = vmatmul.mubr.bf16.gmra.mrb[84].mxu1 %v3763_v9  ;;  %v4179_v9 = vld [vmem:[%s3785_s17] ss:$0 sm:$0xff] }
0x10dc   : >> { %v4684_v38 = vpop.f32.mrb[96].mxu0 }
0x10dd   : >> { %v3608_v27 = vadd.f32 %v4684_v38, %v7399_v13  ;;  %v3599_v30 = vpop.f32.mrb[97].mxu0 }
0x10de   : >> { %v3600_v12 = vadd.f32 %v7399_v13, %v3599_v30  ;;  %v4685_v31 = vpop.f32.mrb[98].mxu0 }
0x10df   : >> { %v3644_v54 = vmul.f32 0.044715, %v3608_v27  ;;  %v3611_v21 = vadd.f32 %v4685_v31, %v7399_v13  ;;  %v3602_v53 = vpop.f32.mrb[99].mxu0  ;;  %v3628_v2 = vmul.f32 0.5, %v3608_v27 }
0x10e0   : >> { %v3642_v50 = vmul.f32 0.044715, %v3600_v12  ;;  %v3603_v23 = vadd.f32 %v7399_v13, %v3602_v53  ;;  %v3626_v59 = vmul.f32 0.5, %v3600_v12 }
0x10e1   : >> { %v3660_v42 = vmul.f32 %v3644_v54, %v3608_v27  ;;  %v3645_v8 = vmul.f32 0.044715, %v3611_v21  ;;  %v3629_v24 = vmul.f32 0.5, %v3611_v21 }
0x10e2   : >> { %v3658_v10 = vmul.f32 %v3642_v50, %v3600_v12  ;;  %v3643_v58 = vmul.f32 0.044715, %v3603_v23  ;;  %v3627_v29 = vmul.f32 0.5, %v3603_v23 }
0x10e3   : >> { %v3676_v0 = vmul.f32 %v3660_v42, %v3608_v27  ;;  %v3661_v26 = vmul.f32 %v3645_v8, %v3611_v21 }
0x10e4   : >> { %v3674_v11 = vmul.f32 %v3658_v10, %v3600_v12  ;;  %v3659_v18 = vmul.f32 %v3643_v58, %v3603_v23 }
0x10e5   : >> { %v3677_v40 = vmul.f32 %v3661_v26, %v3611_v21  ;;  %v3692_v57 = vadd.f32 %v3676_v0, %v3608_v27 }
0x10e6   : >> { %v3675_v39 = vmul.f32 %v3659_v18, %v3603_v23  ;;  %v3690_v7 = vadd.f32 %v3674_v11, %v3600_v12 }
0x10e7   : >> { %v3693_v17 = vadd.f32 %v3677_v40, %v3611_v21  ;;  %v3708_v62 = vmul.f32 0.7978846, %v3692_v57 }
0x10e8   : >> { %v3691_v37 = vadd.f32 %v3675_v39, %v3603_v23  ;;  %v3706_v20 = vmul.f32 0.7978846, %v3690_v7 }
0x10e9   : >> { %v3709_v5 = vmul.f32 0.7978846, %v3693_v17  ;;  %5403 = vtanh.f32 %v3708_v62 }
0x10ea   : >> { %v3707_v22 = vmul.f32 0.7978846, %v3691_v37  ;;  %5405 = vtanh.f32 %v3706_v20 }
0x10eb   : >> { %5407 = vtanh.f32 %v3709_v5 }
0x10ec   : >> { %5409 = vtanh.f32 %v3707_v22 }
0x10f3   : >> { %v5404_v13 = vpop.eup %5403 }
0x10f4   : >> { %v5406_v16 = vpop.eup %5405  ;;  %v3740_v55 = vadd.f32 1.0, %v5404_v13 }
0x10f5   : >> { %v5408_v1 = vpop.eup %5407  ;;  %v3738_v14 = vadd.f32 1.0, %v5406_v16 }
0x10f6   : >> { %v5410_v43 = vpop.eup %5409  ;;  %v3741_v32 = vadd.f32 1.0, %v5408_v1  ;;  %v3756_v49 = vmul.f32 %v3740_v55, %v3628_v2 }
0x10f7   : >> { %v3739_v51 = vadd.f32 1.0, %v5410_v43  ;;  %v3754_v47 = vmul.f32 %v3738_v14, %v3626_v59 }
0x10f8   : >> { %v3757_v36 = vmul.f32 %v3741_v32, %v3629_v24 }
0x10f9   : >> { %v3755_v35 = vmul.f32 %v3739_v51, %v3627_v29 }
0x10fa   : >> { %v3765_v56 = vpack.c.bf16 %v3757_v36, %v3756_v49 }
0x10fb   : >> { %v3764_v33 = vpack.c.bf16 %v3755_v35, %v3754_v47 }
0x10fd   : >> { %4714 = vmatprep.mubr.bf16.mxu1 %v3764_v33 }
0x10fe   : >> { %4715 = vmatmul.mubr.bf16.gmra.mrb[88].mxu1 %v3765_v56 }
0x1197   : >> { %v4704_v38 = vpop.f32.mrb[76].mxu1 }
0x1198   : >> { %v3884_v27 = vadd.f32 %v4704_v38, %v4179_v9  ;;  %v3875_v30 = vpop.f32.mrb[77].mxu1 }
0x1199   : >> { %v3876_v31 = vadd.f32 %v4179_v9, %v3875_v30  ;;  %v4705_v12 = vpop.f32.mrb[78].mxu1 }
0x119a   : >> { %v7499_v54 = vadd.f32 %v3884_v27, %v7131_v44   ;;  %v3887_v21 = vadd.f32 %v4705_v12, %v4179_v9  ;;  %v3878_v53 = vpop.f32.mrb[79].mxu1 }
0x119b   : >> { %v3938_v23 = vadd.f32 %v3876_v31, %v7127_v41   ;;  %v3879_v50 = vadd.f32 %v4179_v9, %v3878_v53 }
0x119c   : >> { %v3941_v42 = vadd.f32 %v3887_v21, %v7142_v46   ;;  %3957 = vst.msk [vmem:[%s5688_s24 + $0x10] sm:$0xff] (%p7517_p4), %vm547_vm1, %v7499_v54 }
0x119d   : >> { %v3939_v8 = vadd.f32 %v3879_v50, %v7134_v63   ;;  %3955 = vst.msk [vmem:[%s5688_s24] sm:$0xff] (%p7517_p4), %vm547_vm1, %v3938_v23 }
0x119e   : > { %3958 = vst.msk [vmem:[%s5688_s24 + $0x18] sm:$0xff] (%p7517_p4), %vm547_vm1, %v3941_v42 }
0x119f   : >> { %v7734_v27 = vmov %v3939_v8  ;;  %3956 = vst.msk [vmem:[%s5688_s24 + $0x8] sm:$0xff] (%p7517_p4), %vm547_vm1, %v3939_v8 }
0x11a0   : >> { %v4708_v10 = vpop.f32.mrb[80].mxu1 }
0x11a1   : >> { %v3900_v58 = vadd.f32 %v4708_v10, %v4179_v9  ;;  %v3891_v0 = vpop.f32.mrb[81].mxu1 }
0x11a2   : >> { %v3892_v26 = vadd.f32 %v4179_v9, %v3891_v0  ;;  %v4709_v11 = vpop.f32.mrb[82].mxu1 }
0x11a3   : >> { %v3944_v18 = vadd.f32 %v3900_v58, %v7164_v52   ;;  %v3903_v40 = vadd.f32 %v4709_v11, %v4179_v9  ;;  %v3894_v57 = vpop.f32.mrb[83].mxu1 }
0x11a4   : >> { %v3942_v7 = vadd.f32 %v3892_v26, %v7150_v4   ;;  %v3895_v44 = vadd.f32 %v4179_v9, %v3894_v57  ;;  %v7735_v26 = vmov %v3938_v23 }
0x11a5   : >> { %v3945_v17 = vadd.f32 %v3903_v40, %v7158_v48   ;;  %v7729_v38 = vmov %v3944_v18  ;;  %3961 = vst.msk [vmem:[%s5688_s24 + $0x30] sm:$0xff] (%p7517_p4), %vm547_vm1, %v3944_v18 }
0x11a6   : >> { %v3943_v41 = vadd.f32 %v3895_v44, %v7153_v19   ;;  %v7731_v33 = vmov %v3942_v7  ;;  %3959 = vst.msk [vmem:[%s5688_s24 + $0x20] sm:$0xff] (%p7517_p4), %vm547_vm1, %v3942_v7 }
0x11a7   : > { %3962 = vst.msk [vmem:[%s5688_s24 + $0x38] sm:$0xff] (%p7517_p4), %vm547_vm1, %v3945_v17 }
0x11a8   : > { %3960 = vst.msk [vmem:[%s5688_s24 + $0x28] sm:$0xff] (%p7517_p4), %vm547_vm1, %v3943_v41 }
0x11a9   : >> { %v4712_v39 = vpop.f32.mrb[84].mxu1 }
0x11aa   : >> { %v3916_v46 = vadd.f32 %v4712_v39, %v4179_v9  ;;  %v3907_v62 = vpop.f32.mrb[85].mxu1  ;;  %v7728_v39 = vmov %v3945_v17 }
0x11ab   : >> { %v3908_v63 = vadd.f32 %v4179_v9, %v3907_v62  ;;  %v4713_v37 = vpop.f32.mrb[86].mxu1 }
0x11ac   : >> { %v3948_v20 = vadd.f32 %v3916_v46, %v7187_v25   ;;  %v3919_v5 = vadd.f32 %v4713_v37, %v4179_v9  ;;  %v3910_v22 = vpop.f32.mrb[87].mxu1 }
0x11ad   : >> { %v3946_v52 = vadd.f32 %v3908_v63, %v7174_v6   ;;  %v3911_v13 = vadd.f32 %v4179_v9, %v3910_v22 }
0x11ae   : >> { %v3949_v16 = vadd.f32 %v3919_v5, %v7182_v61   ;;  %3965 = vst.msk [vmem:[%s5688_s24 + $0x50] sm:$0xff] (%p7517_p4), %vm547_vm1, %v3948_v20 }
0x11af   : >> { %v3947_v4 = vadd.f32 %v3911_v13, %v7177_v45   ;;  %v7725_v45 = vmov %v3948_v20  ;;  %v7727_v40 = vmov %v3946_v52  ;;  %3963 = vst.msk [vmem:[%s5688_s24 + $0x40] sm:$0xff] (%p7517_p4), %vm547_vm1, %v3946_v52 }
0x11b0   : >> { %v7724_v46 = vmov %v3949_v16  ;;  %3966 = vst.msk [vmem:[%s5688_s24 + $0x58] sm:$0xff] (%p7517_p4), %vm547_vm1, %v3949_v16 }
0x11b1   : >> { %v7726_v44 = vmov %v3947_v4  ;;  %3964 = vst.msk [vmem:[%s5688_s24 + $0x48] sm:$0xff] (%p7517_p4), %vm547_vm1, %v3947_v4 }
0x11d1   : >> { %v4716_v55 = vpop.f32.mrb[88].mxu1 }
0x11d2   : >> { %v3932_v48 = vadd.f32 %v4716_v55, %v4179_v9  ;;  %v3923_v1 = vpop.f32.mrb[89].mxu1 }
0x11d3   : >> { %v3924_v19 = vadd.f32 %v4179_v9, %v3923_v1  ;;  %v4717_v14 = vpop.f32.mrb[90].mxu1  ;;  %525 = sbr.rel (!%p7517_p4) target bundleno = 23 (0x17), region = 125 }
0x11d4   : >> { %v3952_v43 = vadd.f32 %v3932_v48, %v7203_v60   ;;  %v3935_v2 = vadd.f32 %v4717_v14, %v4179_v9  ;;  %v3926_v24 = vpop.f32.mrb[91].mxu1 }
0x11d5   : >> { %v3950_v25 = vadd.f32 %v3924_v19, %v7199_v28   ;;  %v3927_v32 = vadd.f32 %v4179_v9, %v3926_v24  ;;  %v7733_v28 = vmov %v7499_v54 }
0x11d6   : >> { %v3953_v59 = vadd.f32 %v3935_v2, %v7211_v3   ;;  %v7721_v50 = vmov %v3952_v43  ;;  %3969 = vst.msk [vmem:[%s5688_s24 + $0x70] sm:$0xff] (%p7517_p4), %vm547_vm1, %v3952_v43 }
0x11d7   : >> { %v3951_v6 = vadd.f32 %v3927_v32, %v7206_v34   ;;  %v7723_v48 = vmov %v3950_v25  ;;  %v7730_v34 = vmov %v3943_v41  ;;  %v7732_v32 = vmov %v3941_v42  ;;  %3967 = vst.msk [vmem:[%s5688_s24 + $0x60] sm:$0xff] (%p7517_p4), %vm547_vm1, %v3950_v25 }
0x11d8   : >> { %v7720_v51 = vmov %v3953_v59  ;;  %3970 = vst.msk [vmem:[%s5688_s24 + $0x78] sm:$0xff] (%p7517_p4), %vm547_vm1, %v3953_v59 }
0x11d9   : >> { %v7722_v49 = vmov %v3951_v6  ;;  %3968 = vst.msk [vmem:[%s5688_s24 + $0x68] sm:$0xff] (%p7517_p4), %vm547_vm1, %v3951_v6 }
0x11da PF: > { %s24_s29 = sadd.s32 1, %s5485_s29  }
0x11db   : > { %p21_p5 = scmp.ge.s32.totalorder %s24_s29, 4  }
0x11dd   :  { %23 = sbr.rel (!%p21_p5) target bundleno = 1 (0x1), region = 136 }

// kernel: forward.3
= control target key start
LH: loop header
LB: loop body
LE: loop exit
PB: predicated region body
PF: predicated region fallthrough
CT: control target
= control target key end

     0   :  { %14 = vsyncpa [#allocation3], 0  ;;  %s6845_s0 = inlined_call_operand.vmem [shape: f32[2,128,32], index: 0, kind: input, shape index: {}]   ;;  %s6846_s1 = inlined_call_operand.vmem [shape: bf16[128,512], index: 1, kind: input, shape index: {}]   ;;  %s6847_s2 = inlined_call_operand.vmem [shape: bf16[64,288], index: 2, kind: input, shape index: {}]   ;;  %s6848_s3 = inlined_call_operand.vmem [shape: f32[64,1], index: 3, kind: input, shape index: {}]   ;;  %s6849_s4 = inlined_call_operand.vmem [shape: f32[64,1], index: 4, kind: input, shape index: {}]   ;;  %s6850_s5 = inlined_call_operand.vmem [shape: bf16[64,576], index: 5, kind: input, shape index: {}]   ;;  %s6851_s6 = inlined_call_operand.vmem [shape: f32[64,1], index: 6, kind: input, shape index: {}]   ;;  %s6852_s7 = inlined_call_operand.vmem [shape: f32[64,1], index: 7, kind: input, shape index: {}]   ;;  %s6853_s8 = inlined_call_operand.vmem [shape: f32[64,4], index: 8, kind: input, shape index: {}]   ;;  %s6854_s9 = inlined_call_operand.hbm [shape: f32[2,64,128], index: 9, kind: output, shape index: {}]  }
   0x1   :  { %16 = vsyncpa [#allocation3 + $0x1], 0  ;;  %s4690_s30 = smov 0   ;;  %s4692_s10 = smov 0  }
   0x2   :  { %s4694_s11 = smov 0   ;;  %s4696_s12 = smov 0  }
   0x3 LB: > { %s4711_s13 = sadd.s32 4294967295, %s4628_s12   ;;  %s3582_s14 = sadd.s32 4294967294, %s4628_s12   ;;  %s4628_s12 = sphi %s4696_s12, %s7115_s12   ;;  %s4624_s11 = sphi %s4694_s11, %s7114_s11   ;;  %s4620_s10 = sphi %s4692_s10, %s7113_s10   ;;  %s4616_s30 = sphi %s4690_s30, %s7112_s30  }
   0x4   : > { %s4715_s15 = sadd.s32 1, %s4628_s12   ;;  %s223_s16 = sadd.s32 1, %s4624_s11 }
   0x5   : > { %s220_s17 = ssub.s32 %s4628_s12, %s4715_s15  ;;  %p233_p0 = scmp.ne.s32.totalorder %s4624_s11, %s4620_s10 }
   0x6   : > { %p221_p1 = scmp.eq.s32.totalorder %s220_s17, 0  ;;  %p234_p2 = scmp.eq.s32.totalorder %s4711_s13, 1 }
   0x7   : > { %p239_p3 = scmp.ne.s32.totalorder %s4620_s10, %s4616_s30  ;;  %p240_p4 = scmp.eq.s32.totalorder %s3582_s14, 1 }
   0x8   : > { %s4726_s18 = scalar_select %p221_p1, %s4624_s11, %s223_s16  }
   0x9   : > { %p4728_p5 = por %p234_p2, %p233_p0  ;;  %p4732_p6 = por %p240_p4, %p239_p3 }
   0xa   : > { %p3585_p7 = scmp.ge.s32.totalorder %s4628_s12, 1  ;;  %p290_p8 = scmp.lt.s32.totalorder %s4628_s12, 3 }
   0xc   : > { %p291_p9 = pnand %p3585_p7, %p290_p8 }
   0xe   : > { %294 = sbr.rel (%p291_p9) target bundleno = 1373 (0x55d), region = 56 }
  0x15   : > { %p326_p10 = scmp.lt.s32.totalorder %s4711_s13, 1  ;;  %v4474_v0 = vld [vmem:[%s6846_s1 + $0x4] ss:$16 sps:$4 sm:$0xff]   ;;  %v4476_v1 = vld [vmem:[%s6846_s1 + $0xc] ss:$16 sps:$4 sm:$0xff]   ;;  %v6855_v2 = vmov 0  }
  0x16   : > { %596 = vmatprep.mubr.bf16.mxu0 %v6855_v2  ;;  %649 = vmatprep.mubr.bf16.mxu1 %v6855_v2  ;;  %v4478_v3 = vld [vmem:[%s6846_s1] ss:$16 sps:$4 sm:$0xff]   ;;  %v4479_v4 = vld [vmem:[%s6846_s1 + $0x8] ss:$16 sps:$4 sm:$0xff]   ;;  %v4480_v5 = vld [vmem:[%s6846_s1 + $0x24] ss:$16 sps:$4 sm:$0xff]  }
  0x17   : > { %s327_s25 = scalar_select %p326_p10, %s4711_s13, 1  ;;  %564 = vmatprep.subr.bf16.mxu0 %v4474_v0  ;;  %4307 = vset.pattern.permute.xlu1 %v6855_v2  ;;  %v4482_v6 = vld [vmem:[%s6846_s1 + $0x2c] ss:$16 sps:$4 sm:$0xff]   ;;  %v4484_v7 = vld [vmem:[%s6846_s1 + $0x20] ss:$16 sps:$4 sm:$0xff]  }
  0x18   : > { %617 = vmatprep.subr.bf16.mxu1 %v4476_v1  ;;  %565 = vmatpush1.bf16.msra.mxu0 %v4478_v3  ;;  %v4485_v8 = vld [vmem:[%s6846_s1 + $0x28] ss:$16 sps:$4 sm:$0xff]   ;;  %v4486_v17 = vld [vmem:[%s6846_s1 + $0x44] ss:$16 sps:$4 sm:$0xff]   ;;  %v4488_v20 = vld [vmem:[%s6846_s1 + $0x4c] ss:$16 sps:$4 sm:$0xff]  }
  0x19   : > { %s4070_s17 = sshll.u32 %s327_s25, 7  ;;  %618 = vmatpush1.bf16.msra.mxu1 %v4479_v4  ;;  %566 = vmatprep.subr.bf16.mxu0 %v4480_v5  ;;  %v4490_v21 = vld [vmem:[%s6846_s1 + $0x40] ss:$16 sps:$4 sm:$0xff]   ;;  %v4491_v23 = vld [vmem:[%s6846_s1 + $0x48] ss:$16 sps:$4 sm:$0xff]   ;;  %s4632_s22 = smov 127  }
  0x1a   : > { %s4767_s28 = scalar_lea.vmem %s6845_s0, %s4070_s17  ;;  %619 = vmatprep.subr.bf16.mxu1 %v4482_v6  ;;  %v4492_v24 = vld [vmem:[%s6846_s1 + $0x64] ss:$16 sps:$4 sm:$0xff]   ;;  %v4494_v25 = vld [vmem:[%s6846_s1 + $0x6c] ss:$16 sps:$4 sm:$0xff]   ;;  %v4496_v26 = vld [vmem:[%s6846_s1 + $0x60] ss:$16 sps:$4 sm:$0xff]  }
  0x1b   : > { %v332_v9 = vld [vmem:[%s4767_s28] sm:$0xff]  ;;  %v333_v10 = vld [vmem:[%s4767_s28 + $0x8] sm:$0xff]  ;;  %v334_v11 = vld [vmem:[%s4767_s28 + $0x10] sm:$0xff]  ;;  %s323_s21 = sand.u32 1, %s4620_s10   ;;  %s4071_s26 = sshll.u32 %s4711_s13, 10 }
  0x1c   : > { %v348_v12 = vpack.c.bf16 %v333_v10, %v332_v9  ;;  %v335_v13 = vld [vmem:[%s4767_s28 + $0x18] sm:$0xff]  ;;  %567 = vmatpush1.bf16.msra.mxu0 %v4484_v7  ;;  %v336_v15 = vld [vmem:[%s4767_s28 + $0x20] sm:$0xff]  ;;  %v337_v16 = vld [vmem:[%s4767_s28 + $0x28] sm:$0xff]  ;;  %s6728_s23 = sshll.u32 %s323_s21, 6  ;;  %s6804_s13 = scalar_lea.sflag [#allocation3], %s323_s21 }
  0x1d   : > { %620 = vmatpush1.bf16.msra.mxu1 %v4485_v8  ;;  %v349_v14 = vpack.c.bf16 %v335_v13, %v334_v11  ;;  %v338_v18 = vld [vmem:[%s4767_s28 + $0x30] sm:$0xff]  ;;  %v339_v19 = vld [vmem:[%s4767_s28 + $0x38] sm:$0xff]  ;;  %v350_v22 = vpack.c.bf16 %v337_v16, %v336_v15  ;;  %568 = vmatprep.subr.bf16.mxu0 %v4486_v17  ;;  %v340_v28 = vld [vmem:[%s4767_s28 + $0x40] sm:$0xff]  ;;  %s6747_s24 = scalar_lea.vmem [#allocation2], %s6728_s23 }
  0x1e   : > { %388 = vxpose.xlu0.c.b16.start [1/8] (narrow) %v348_v12, 32  ;;  %621 = vmatprep.subr.bf16.mxu1 %v4488_v20  ;;  %v4497_v27 = vld [vmem:[%s6846_s1 + $0x68] ss:$16 sps:$4 sm:$0xff]   ;;  %v4498_v30 = vld [vmem:[%s6846_s1 + $0x84] ss:$16 sps:$4 sm:$0xff]   ;;  %v351_v31 = vpack.c.bf16 %v339_v19, %v338_v18  ;;  %s3520_s27 = sshll.u32 %s6747_s24, 4  ;;  %s6797_s27 = int_to_ptr.vmem [resolvable:$true] %s3520_s27 }
  0x1f   : > { %v341_v29 = vld [vmem:[%s4767_s28 + $0x48] sm:$0xff]  ;;  %v4502_v33 = vld [vmem:[%s6846_s1 + $0x80] ss:$16 sps:$4 sm:$0xff]   ;;  %v4504_v35 = vld [vmem:[%s6846_s1 + $0xa4] ss:$16 sps:$4 sm:$0xff]   ;;  %s4566_s14 = scalar_lea.vmem %s6797_s27, 1024 }
  0x20   : > { %569 = vmatpush1.bf16.msra.mxu0 %v4490_v21  ;;  %v4500_v32 = vld [vmem:[%s6846_s1 + $0x8c] ss:$16 sps:$4 sm:$0xff]   ;;  %v4503_v34 = vld [vmem:[%s6846_s1 + $0x88] ss:$16 sps:$4 sm:$0xff]   ;;  %v342_v36 = vld [vmem:[%s4767_s28 + $0x50] sm:$0xff]  ;;  %v352_v38 = vpack.c.bf16 %v341_v29, %v340_v28  ;;  %v686_v29 = vlaneseq  ;;  %p4567_p11 = scmp.ne.s32.totalorder %s6797_s27, %s4566_s14 }
  0x21   : > { %622 = vmatpush1.bf16.msra.mxu1 %v4491_v23  ;;  %570 = vmatprep.subr.bf16.mxu0 %v4492_v24  ;;  %v4506_v37 = vld [vmem:[%s6846_s1 + $0xac] ss:$16 sps:$4 sm:$0xff]   ;;  %v4508_v40 = vld [vmem:[%s6846_s1 + $0xa0] ss:$16 sps:$4 sm:$0xff]   ;;  %v4509_v41 = vld [vmem:[%s6846_s1 + $0xa8] ss:$16 sps:$4 sm:$0xff]  }
  0x22   : > { %389 = vxpose.xlu0.c.b16.cont [2/8] (narrow) %v349_v14, 32  ;;  %623 = vmatprep.subr.bf16.mxu1 %v4494_v25  ;;  %v343_v39 = vld [vmem:[%s4767_s28 + $0x58] sm:$0xff]  ;;  %v4510_v42 = vld [vmem:[%s6846_s1 + $0xc4] ss:$16 sps:$4 sm:$0xff]   ;;  %v345_v45 = vld [vmem:[%s4767_s28 + $0x68] sm:$0xff]  ;;  %p4568_p12 = pnand %p4567_p11, %p4728_p5 }
  0x23   : > { %v4512_v43 = vld [vmem:[%s6846_s1 + $0xcc] ss:$16 sps:$4 sm:$0xff]   ;;  %v344_v44 = vld [vmem:[%s4767_s28 + $0x60] sm:$0xff]  ;;  %v353_v47 = vpack.c.bf16 %v343_v39, %v342_v36  ;;  %v4515_v48 = vld [vmem:[%s6846_s1 + $0xc8] ss:$16 sps:$4 sm:$0xff]  }
  0x24   : > { %571 = vmatpush1.bf16.msra.mxu0 %v4496_v26  ;;  %v4514_v46 = vld [vmem:[%s6846_s1 + $0xc0] ss:$16 sps:$4 sm:$0xff]   ;;  %v4516_v49 = vld [vmem:[%s6846_s1 + $0xe4] ss:$16 sps:$4 sm:$0xff]   ;;  %v4518_v50 = vld [vmem:[%s6846_s1 + $0xec] ss:$16 sps:$4 sm:$0xff]   ;;  %v354_v54 = vpack.c.bf16 %v345_v45, %v344_v44  ;;  %p4569_p13 = pneg %p4568_p12 }
  0x25   : > { %624 = vmatpush1.bf16.msra.mxu1 %v4497_v27  ;;  %572 = vmatprep.subr.bf16.mxu0 %v4498_v30  ;;  %v346_v51 = vld [vmem:[%s4767_s28 + $0x70] sm:$0xff]  ;;  %v347_v52 = vld [vmem:[%s4767_s28 + $0x78] sm:$0xff]  ;;  %s4631_s28 = smov 1   ;;  %v4898_v30 = vand.u32 127, %v686_v29 }
  0x26   : > { %390 = vxpose.xlu0.c.b16.cont [3/8] (narrow) %v350_v22, 32  ;;  %625 = vmatprep.subr.bf16.mxu1 %v4500_v32  ;;  %v4520_v53 = vld [vmem:[%s6846_s1 + $0xe0] ss:$16 sps:$4 sm:$0xff]   ;;  %v4521_v55 = vld [vmem:[%s6846_s1 + $0xe8] ss:$16 sps:$4 sm:$0xff]   ;;  %v355_v56 = vpack.c.bf16 %v347_v52, %v346_v51 }
  0x27   : > { %v4524_v28 = vld [vmem:[%s6847_s2 + $0x4] ss:$12 sps:$4 sm:$0xff]   ;;  %vm6863_vm2 = vcmp.lt.s32.totalorder %v4898_v30, 1  ;;  %vm6862_vm5 = vcmp.lt.s32.totalorder %v4898_v30, 127 }
  0x28   : > { %573 = vmatpush1.bf16.msra.mxu0 %v4502_v33 }
  0x29   : > { %626 = vmatpush1.bf16.msra.mxu1 %v4503_v34  ;;  %574 = vmatprep.subr.bf16.mxu0 %v4504_v35 }
  0x2a   : > { %391 = vxpose.xlu0.c.b16.cont [4/8] (narrow) %v351_v31, 32  ;;  %627 = vmatprep.subr.bf16.mxu1 %v4506_v37  ;;  %v688_v31 = vadd.s32 128, %v4898_v30 }
  0x2c   : > { %575 = vmatpush1.bf16.msra.mxu0 %v4508_v40  ;;  %v702_v32 = vand.u32 127, %v688_v31  ;;  %v805_v35 = vadd.s32 4294967167, %v688_v31 }
  0x2d   : > { %628 = vmatpush1.bf16.msra.mxu1 %v4509_v41  ;;  %576 = vmatprep.subr.bf16.mxu0 %v4510_v42 }
  0x2e   : > { %392 = vxpose.xlu0.c.b16.cont [5/8] (narrow) %v352_v38, 32  ;;  %629 = vmatprep.subr.bf16.mxu1 %v4512_v43  ;;  %v4903_v34 = vadd.s32 4294967295, %v702_v32  ;;  %vm809_vm1 = vcmp.ge.s32.totalorder %v805_v35, 0 }
  0x30   : > { %577 = vmatpush1.bf16.msra.mxu0 %v4514_v46  ;;  %vm793_vm0 = vcmp.ge.s32.totalorder %v4903_v34, 0  ;;  %v682_v34 = vld [vmem:[%s6849_s4 + $0x20] sm:$0xff] }
  0x31   : > { %630 = vmatpush1.bf16.msra.mxu1 %v4515_v48  ;;  %578 = vmatprep.subr.bf16.mxu0 %v4516_v49  ;;  %vm813_vm3 = vmand %vm793_vm0, %vm809_vm1 }
  0x32   : > { %393 = vxpose.xlu0.c.b16.cont [6/8] (narrow) %v353_v47, 32  ;;  %631 = vmatprep.subr.bf16.mxu1 %v4518_v50  ;;  %vm4929_vm4 = vmpackc.low %vm813_vm3, %vm813_vm3  ;;  %v6857_v47 = vmov 0.0|0.0  }
  0x33   : > { %vm5113_vm14 = vmpackc.low %vm793_vm0, %vm793_vm0 }
  0x34   : > { %579 = vmatpush1.bf16.msra.mxu0 %v4520_v53 }
  0x35   : > { %632 = vmatpush1.bf16.msra.mxu1 %v4521_v55 }
  0x36   : > { %394 = vxpose.xlu0.c.b16.cont [7/8] (narrow) %v354_v54, 32 }
  0x3a   : > { %395 = vxpose.xlu0.c.b16.end [8/8] (narrow) %v355_v56, 32 }
  0x43   : > { %4306 = vset.pattern.permute.xlu0 %v6855_v2 }
  0x84   : > { %v396_v57 = vpop.trf.xlu0 }
  0x85   : > { %597 = vmatmul.mubr.bf16.vlgmr.msra.gmra.mrb[0].mxu0 %v396_v57  ;;  %650 = vmatmul.mubr.bf16.vlgmr.msra.gmra.mrb[0].mxu1 %v396_v57  ;;  %v970_v57 = vadd.s32 1, %v702_v32  ;;  %v673_v32 = vld [vmem:[%s6848_s3 + $0x18] sm:$0xff] }
  0x86   : > { %606 = vmatprep.mubr.bf16.mxu0 %v6855_v2  ;;  %659 = vmatprep.mubr.bf16.mxu1 %v6855_v2 }
  0x87   : > { %vm978_vm6 = vcmp.lt.s32.totalorder %v970_v57, 128 }
  0x88   : > { %v397_v58 = vpop.trf.xlu0  ;;  %vm5008_vm9 = vmpackc.low %vm978_vm6, %vm978_vm6 }
  0x8d   : > { %607 = vmatmul.mubr.bf16.gmra.mrb[4].mxu0 %v397_v58  ;;  %660 = vmatmul.mubr.bf16.gmra.mrb[4].mxu1 %v397_v58  ;;  %v4967_v58 = vadd.s32 1, %v4898_v30 }
  0x8e   : > { %1463 = vmatprep.mubr.bf16.mxu0 %v4524_v28  ;;  %1609 = vmatprep.mubr.bf16.mxu1 %v4524_v28 }
  0x8f   : > { %vm977_vm7 = vcmp.lt.s32.totalorder %v4967_v58, 128 }
 0x158   : > { %v598_v59 = vpop.f32.mrb[0].mxu0  ;;  %v651_v60 = vpop.f32.mrb[0].mxu1 }
 0x159   : > { %v600_v61 = vpop.f32.mrb[1].mxu0  ;;  %v653_v62 = vpop.f32.mrb[1].mxu1 }
 0x15a   : > { %v602_v63 = vpop.f32.mrb[2].mxu0  ;;  %v655_v0 = vpop.f32.mrb[2].mxu1 }
 0x15b   : > { %v4231_v1 = vpack.i.bf16 %v602_v63, %v598_v59  ;;  %v4863_v3 = vpack.c.bf16 %v602_v63, %v598_v59  ;;  %v4296_v4 = vpack.i.bf16 %v655_v0, %v651_v60  ;;  %v604_v5 = vpop.f32.mrb[3].mxu0  ;;  %v657_v6 = vpop.f32.mrb[3].mxu1  ;;  %v4865_v7 = vpack.c.bf16 %v655_v0, %v651_v60  ;;  %v670_v63 = vld [vmem:[%s6848_s3] sm:$0xff] }
 0x15c   : > { %v4271_v8 = vpack.i.bf16 %v604_v5, %v600_v61  ;;  %v4867_v9 = vpack.c.bf16 %v604_v5, %v600_v61  ;;  %v4256_v10 = vpack.i.bf16 %v657_v6, %v653_v62  ;;  %v4869_v11 = vpack.c.bf16 %v657_v6, %v653_v62  ;;  %v671_v62 = vld [vmem:[%s6848_s3 + $0x8] sm:$0xff]  ;;  %v678_v5 = vld [vmem:[%s6849_s4] sm:$0xff] }
 0x15d   : > { %4227 = vrot.lane.b32.xlu1 %v4231_v1, %s4631_s28  ;;  %v985_v59 = vadd.s32 4294967169, %v4898_v30 }
 0x15f   : > { %vm989_vm8 = vcmp.ge.s32.totalorder %v985_v59, 0 }
 0x160   : > { %v608_v12 = vpop.f32.mrb[4].mxu0  ;;  %v661_v13 = vpop.f32.mrb[4].mxu1  ;;  %vm993_vm10 = vmand %vm977_vm7, %vm989_vm8 }
 0x161   : > { %v610_v14 = vpop.f32.mrb[5].mxu0  ;;  %v663_v15 = vpop.f32.mrb[5].mxu1  ;;  %4232 = vrot.lane.b32.xlu1 %v4231_v1, %s4632_s22  ;;  %vm5049_vm11 = vmpackc.low %vm993_vm10, %vm993_vm10 }
 0x162   : > { %v612_v16 = vpop.f32.mrb[6].mxu0  ;;  %v665_v17 = vpop.f32.mrb[6].mxu1 }
 0x163   : > { %v4261_v18 = vpack.i.bf16 %v612_v16, %v608_v12  ;;  %v4873_v19 = vpack.c.bf16 %v612_v16, %v608_v12  ;;  %v614_v20 = vpop.f32.mrb[7].mxu0  ;;  %v4301_v21 = vpack.i.bf16 %v665_v17, %v661_v13  ;;  %v667_v22 = vpop.f32.mrb[7].mxu1  ;;  %v4877_v25 = vpack.c.bf16 %v665_v17, %v661_v13  ;;  %v679_v12 = vld [vmem:[%s6849_s4 + $0x8] sm:$0xff]  ;;  %v4561_v16 = vld [vmem:[%s6850_s5 + $0x80] ss:$20 sps:$4 sm:$0xff]  }
 0x164   : > { %v4286_v23 = vpack.i.bf16 %v614_v20, %v610_v14  ;;  %v4875_v24 = vpack.c.bf16 %v614_v20, %v610_v14  ;;  %v4276_v26 = vpack.i.bf16 %v667_v22, %v663_v15  ;;  %v4879_v27 = vpack.c.bf16 %v667_v22, %v663_v15 }
 0x165   : > { %4237 = vrot.lane.b32.xlu1 %v4256_v10, %s4631_s28  ;;  %v5006_v15 = vadd.s32 256, %v4898_v30 }
 0x166   : > { %4267 = vrot.lane.b32.xlu0 %v4286_v23, %s4632_s22 }
 0x167   : > { %v709_v57 = vand.u32 127, %v5006_v15 }
 0x169   : > { %4242 = vrot.lane.b32.xlu1 %v4261_v18, %s4631_s28 }
 0x16a   : > { %4287 = vrot.lane.b32.xlu0 %v4286_v23, %s4631_s28 }
 0x16d   : > { %4247 = vrot.lane.b32.xlu1 %v4276_v26, %s4631_s28 }
 0x16e   : > { %4297 = vrot.lane.b32.xlu0 %v4296_v4, %s4632_s22 }
 0x171   : > { %4252 = vrot.lane.b32.xlu1 %v4271_v8, %s4632_s22 }
 0x172   : > { %1725 = vperm.xlu0 %4306, %v670_v63  }
 0x175   : > { %4257 = vrot.lane.b32.xlu1 %v4256_v10, %s4632_s22 }
 0x176   : > { %1802 = vperm.xlu0 %4306, %v679_v12  }
 0x179   : > { %4262 = vrot.lane.b32.xlu1 %v4261_v18, %s4632_s22  ;;  %v5014_v18 = vadd.s32 384, %v4898_v30 }
 0x17a   : > { %1740 = vperm.xlu0 %4306, %v673_v32  }
 0x17d   : > { %4272 = vrot.lane.b32.xlu1 %v4271_v8, %s4631_s28 }
 0x181   : > { %4277 = vrot.lane.b32.xlu1 %v4276_v26, %s4632_s22  ;;  %v672_v26 = vld [vmem:[%s6848_s3 + $0x10] sm:$0xff] }
 0x185   : > { %4282 = vrot.lane.b32.xlu1 %v4296_v4, %s4631_s28 }
 0x189   : > { %4292 = vrot.lane.b32.xlu1 %v4301_v21, %s4631_s28 }
 0x18d   : > { %4302 = vrot.lane.b32.xlu1 %v4301_v21, %s4632_s22 }
 0x191   : > { %1730 = vperm.xlu1 %4307, %v671_v62   ;;  %v680_v62 = vld [vmem:[%s6849_s4 + $0x10] sm:$0xff] }
 0x195   : > { %1797 = vperm.xlu1 %4307, %v678_v5   ;;  %v681_v5 = vld [vmem:[%s6849_s4 + $0x18] sm:$0xff] }
 0x196   : > { %1812 = vperm.xlu0 %4306, %v681_v5  }
 0x199   : > { %1735 = vperm.xlu1 %4307, %v672_v26  }
 0x19d   : > { %1807 = vperm.xlu1 %4307, %v680_v62   ;;  %v675_v62 = vld [vmem:[%s6848_s3 + $0x28] sm:$0xff] }
 0x19e   : > { %1750 = vperm.xlu0 %4306, %v675_v62  }
 0x1cf   : > { %v4901_v33 = vpop.permute.xlu1 %4227 }
 0x1d0   : > { %v4230_v38 = vunpack.i.h.bf16 %v4901_v33  ;;  %v4229_v39 = vunpack.i.l.bf16 %v4901_v33  ;;  %v6938_v33 = vmov 0 }
 0x1d1   : > { %v6939_v33 = vsel %vm5113_vm14, 4294967295, %v6938_v33 }
 0x1d2   : > { %6940 = vst [vmem:[#allocation5_spill] sm:$0xff] %v6939_v33 }
 0x1d3   : > { %v4905_v36 = vpop.permute.xlu1 %4232 }
 0x1d4   : > { %v4235_v1 = vunpack.i.h.bf16 %v4905_v36  ;;  %v4234_v4 = vunpack.i.l.bf16 %v4905_v36 }
 0x1d7   : > { %v4909_v37 = vpop.permute.xlu1 %4237 }
 0x1d8   : > { %v4240_v40 = vunpack.i.h.bf16 %v4909_v37  ;;  %v4239_v41 = vunpack.i.l.bf16 %v4909_v37  ;;  %v4988_v6 = vpop.permute.xlu0 %4267 }
 0x1d9   : > { %v4270_v20 = vunpack.i.h.bf16 %v4988_v6  ;;  %v4269_v21 = vunpack.i.l.bf16 %v4988_v6 }
 0x1da   : > { %v784_v42 = vsel %vm6863_vm2, %v4239_v41, %v4229_v39  ;;  %v785_v43 = vsel %vm6863_vm2, %v4240_v40, %v4230_v38 }
 0x1db   : > { %v4933_v45 = vpop.permute.xlu1 %4242  ;;  %v4935_v46 = vpack.c.bf16 %v785_v43, %v784_v42 }
 0x1dc   : > { %v4245_v49 = vunpack.i.h.bf16 %v4933_v45  ;;  %v4244_v50 = vunpack.i.l.bf16 %v4933_v45  ;;  %v4288_v12 = vpop.permute.xlu0 %4287 }
 0x1dd   : > { %3635 = vmatprep.subr.msk.bf16.mxu0 %vm4929_vm4, %v4935_v46  ;;  %v4290_v32 = vunpack.i.h.bf16 %v4288_v12 }
 0x1de   : > { %1432 = vmatpush1.bf16.msra.mxu0 %v6857_v47 }
 0x1df   : > { %v4941_v48 = vpop.permute.xlu1 %4247 }
 0x1e0   : > { %v6859_v51 = vunpack.i.h.bf16 %v4941_v48  ;;  %v4249_v52 = vunpack.i.l.bf16 %v4941_v48 }
 0x1e2   : > { %v786_v53 = vsel %vm6863_vm2, %v4249_v52, %v4244_v50  ;;  %v787_v54 = vsel %vm6863_vm2, %v6859_v51, %v4245_v49  ;;  %v676_v51 = vld [vmem:[%s6848_s3 + $0x30] sm:$0xff] }
 0x1e3   : > { %v4959_v55 = vpop.permute.xlu1 %4252  ;;  %v4961_v56 = vpack.c.bf16 %v787_v54, %v786_v53  ;;  %v5054_v53 = vadd.s32 4294967295, %v4898_v30  ;;  %v716_v54 = vand.u32 127, %v5014_v18 }
 0x1e4   : > { %v4255_v60 = vunpack.i.h.bf16 %v4959_v55  ;;  %v4254_v61 = vunpack.i.l.bf16 %v4959_v55 }
 0x1e5   : > { %3638 = vmatprep.subr.msk.bf16.mxu0 %vm4929_vm4, %v4961_v56  ;;  %vm792_vm12 = vcmp.ge.s32.totalorder %v5054_v53, 0  ;;  %v4522_v53 = vld [vmem:[%s6847_s2] ss:$12 sps:$4 sm:$0xff]  }
 0x1e6   : > { %1434 = vmatpush1.bf16.msra.mxu0 %v6857_v47  ;;  %v962_v13 = vsel %vm6862_vm5, %v4235_v1, %v4255_v60  ;;  %v961_v14 = vsel %vm6862_vm5, %v4234_v4, %v4254_v61  ;;  %vm1045_vm13 = vmand %vm792_vm12, %vm792_vm12 }
 0x1e7   : > { %v4980_v0 = vpop.permute.xlu1 %4257  ;;  %1435 = vmatprep.subr.bf16.mxu0 %v4863_v3  ;;  %v5032_v31 = vpack.c.bf16 %v962_v13, %v961_v14  ;;  %v5079_v14 = vadd.s32 4294967295, %v716_v54  ;;  %vm5140_vm0 = vmpackc.low %vm1045_vm13, %vm1045_vm13 }
 0x1e8   : > { %v4260_v8 = vunpack.i.h.bf16 %v4980_v0  ;;  %v4259_v10 = vunpack.i.l.bf16 %v4980_v0  ;;  %v6948_v0 = vmov 0 }
 0x1e9   : > { %vm795_vm15 = vcmp.ge.s32.totalorder %v5079_v14, 0  ;;  %v4530_v14 = vld [vmem:[%s6847_s2 + $0x30] ss:$12 sps:$4 sm:$0xff]  }
 0x1ea   : > { %1436 = vmatpush1.bf16.msra.mxu0 %v6857_v47  ;;  %v966_v28 = vsel %vm6862_vm5, %v4260_v8, %v4235_v1  ;;  %v965_v29 = vsel %vm6862_vm5, %v4259_v10, %v4234_v4  ;;  %vm5161_vm3 = vmpackc.low %vm795_vm15, %vm795_vm15 }
 0x1eb   : > { %v4263_v17 = vpop.permute.xlu1 %4262  ;;  %1437 = vmatprep.subr.bf16.mxu0 %v4873_v19  ;;  %v5058_v59 = vpack.c.bf16 %v966_v28, %v965_v29  ;;  %v674_v29 = vld [vmem:[%s6848_s3 + $0x20] sm:$0xff] }
 0x1ec   : > { %v4265_v22 = vunpack.i.h.bf16 %v4263_v17  ;;  %v4264_v23 = vunpack.i.l.bf16 %v4263_v17  ;;  %v790_v17 = vadd.s32 4294967295, %v709_v57  ;;  %1745 = vperm.xlu1 %4307, %v674_v29  }
 0x1ee   : > { %v963_v35 = vsel %vm6862_vm5, %v4264_v23, %v4269_v21  ;;  %v964_v36 = vsel %vm6862_vm5, %v4265_v22, %v4270_v20  ;;  %1438 = vmatpush1.bf16.msra.mxu0 %v6857_v47  ;;  %vm794_vm1 = vcmp.ge.s32.totalorder %v790_v17, 0  ;;  %v4555_v47 = vld [vmem:[%s6850_s5 + $0x30] ss:$20 sps:$4 sm:$0xff]  }
 0x1ef   : > { %v4273_v42 = vpop.permute.xlu1 %4272  ;;  %3641 = vmatprep.subr.msk.bf16.mxu0 %vm5008_vm9, %v5032_v31  ;;  %v5063_v4 = vpack.c.bf16 %v964_v36, %v963_v35  ;;  %v4289_v35 = vunpack.i.l.bf16 %v4288_v12  ;;  %vm5173_vm6 = vmpackc.low %vm794_vm1, %vm794_vm1 }
 0x1f0   : > { %v4275_v63 = vunpack.i.h.bf16 %v4273_v42  ;;  %v4274_v1 = vunpack.i.l.bf16 %v4273_v42  ;;  %1817 = vperm.xlu1 %4307, %v682_v34   ;;  %v677_v34 = vld [vmem:[%s6848_s3 + $0x38] sm:$0xff]  ;;  %vm5267_vm1 = vmpackc.low %vm977_vm7, %vm977_vm7 }
 0x1f1   : > { %v782_v29 = vsel %vm6863_vm2, %v4244_v50, %v4289_v35  ;;  %v4546_v50 = vld [vmem:[%s6850_s5 + $0x50] ss:$20 sps:$4 sm:$0xff]  }
 0x1f2   : > { %3644 = vmatpush1.bf16.msk.msra.mxu0 %vm5049_vm11, %v5058_v59  ;;  %v781_v36 = vsel %vm6863_vm2, %v4230_v38, %v4275_v63  ;;  %v780_v42 = vsel %vm6863_vm2, %v4229_v39, %v4274_v1 }
 0x1f3   : > { %v5071_v13 = vpop.permute.xlu1 %4277  ;;  %3647 = vmatprep.subr.msk.bf16.mxu0 %vm5008_vm9, %v5063_v4  ;;  %v5124_v2 = vpack.c.bf16 %v781_v36, %v780_v42  ;;  %v6941_v36 = vmov 0  ;;  %v683_v42 = vld [vmem:[%s6849_s4 + $0x28] sm:$0xff] }
 0x1f4   : > { %v4280_v26 = vunpack.i.h.bf16 %v5071_v13  ;;  %v4279_v28 = vunpack.i.l.bf16 %v5071_v13  ;;  %v6942_v36 = vsel %vm5140_vm0, 4294967295, %v6941_v36  ;;  %1822 = vperm.xlu0 %4306, %v683_v42   ;;  %1755 = vperm.xlu1 %4307, %v676_v51   ;;  %v972_v51 = vadd.s32 1, %v716_v54 }
 0x1f5   : > { %6943 = vst [vmem:[#allocation6_spill] sm:$0xff] %v6942_v36 }
 0x1f6   : > { %v967_v5 = vsel %vm6862_vm5, %v4279_v28, %v4264_v23  ;;  %v968_v12 = vsel %vm6862_vm5, %v4280_v26, %v4265_v22  ;;  %vm980_vm8 = vcmp.lt.s32.totalorder %v972_v51, 128 }
 0x1f7   : > { %v5117_v38 = vpack.c.bf16 %v968_v12, %v967_v5  ;;  %v5119_v39 = vpop.permute.xlu1 %4282  ;;  %v783_v5 = vsel %vm6863_vm2, %v4245_v49, %v4290_v32  ;;  %vm5259_vm10 = vmpackc.low %vm980_vm8, %vm980_vm8 }
 0x1f8   : > { %v4285_v22 = vunpack.i.h.bf16 %v5119_v39  ;;  %v4284_v23 = vunpack.i.l.bf16 %v5119_v39  ;;  %1760 = vperm.xlu0 %4306, %v677_v34   ;;  %v6949_v0 = vsel %vm5259_vm10, 4294967295, %v6948_v0 }
 0x1f9   : > { %3650 = vmatpush1.bf16.msk.msra.mxu0 %vm5049_vm11, %v5117_v38  ;;  %6950 = vst [vmem:[#allocation7_spill] sm:$0xff] %v6949_v0 }
 0x1fa   : > { %v776_v45 = vsel %vm6863_vm2, %v4274_v1, %v4284_v23  ;;  %v777_v49 = vsel %vm6863_vm2, %v4275_v63, %v4285_v22  ;;  %3653 = vmatprep.subr.msk.bf16.mxu0 %vm5113_vm14, %v5124_v2  ;;  %v5169_v1 = vpack.c.bf16 %v783_v5, %v782_v29  ;;  %v773_v13 = vsel %vm6863_vm2, %v4285_v22, %v4240_v40 }
 0x1fb   : > { %v5165_v17 = vpop.permute.xlu1 %4292  ;;  %v5167_v62 = vpack.c.bf16 %v777_v49, %v776_v45  ;;  %v4298_v45 = vpop.permute.xlu0 %4297  ;;  %v6957_v40 = vmov 0  ;;  %v6963_v22 = vmov 0 }
 0x1fc   : > { %v6860_v63 = vunpack.i.h.bf16 %v5165_v17  ;;  %v6861_v12 = vunpack.i.l.bf16 %v5165_v17  ;;  %v4300_v34 = vunpack.i.h.bf16 %v4298_v45 }
 0x1fd   : > { %3656 = vmatpush1.bf16.msk.msra.mxu0 %vm5140_vm0, %v4935_v46  ;;  %3705 = vmatprep.subr.msk.bf16.mxu1 %vm5161_vm3, %v5167_v62 }
 0x1fe   : > { %v778_v5 = vsel %vm6863_vm2, %v4289_v35, %v6861_v12  ;;  %v779_v29 = vsel %vm6863_vm2, %v4290_v32, %v6860_v63  ;;  %3659 = vmatprep.subr.msk.bf16.mxu0 %vm5113_vm14, %v5169_v1  ;;  %3708 = vmatpush1.bf16.msk.msra.mxu1 %vm5173_vm6, %v5124_v2  ;;  %v684_v35 = vld [vmem:[%s6849_s4 + $0x30] sm:$0xff]  ;;  %v685_v32 = vld [vmem:[%s6849_s4 + $0x38] sm:$0xff]  ;;  %v958_v54 = vsel %vm6862_vm5, %v4255_v60, %v4300_v34 }
 0x1ff   : > { %v5203_v42 = vpack.c.bf16 %v779_v29, %v778_v5  ;;  %v4303_v49 = vpop.permute.xlu1 %4302  ;;  %v4299_v5 = vunpack.i.l.bf16 %v4298_v45  ;;  %1827 = vperm.xlu1 %4307, %v684_v35   ;;  %v5226_v29 = vadd.s32 1, %v709_v57  ;;  %1832 = vperm.xlu0 %4306, %v685_v32   ;;  %v954_v55 = vsel %vm6862_vm5, %v4300_v34, %v4260_v8 }
 0x200   : > { %v4305_v45 = vunpack.i.h.bf16 %v4303_v49  ;;  %v4304_v12 = vunpack.i.l.bf16 %v4303_v49  ;;  %v6951_v8 = vmov 0 }
 0x201   : > { %3662 = vmatpush1.bf16.msk.msra.mxu0 %vm5140_vm0, %v4961_v56  ;;  %3711 = vmatprep.subr.msk.bf16.mxu1 %vm5161_vm3, %v5203_v42  ;;  %v957_v63 = vsel %vm6862_vm5, %v4254_v61, %v4299_v5  ;;  %v953_v57 = vsel %vm6862_vm5, %v4299_v5, %v4259_v10  ;;  %vm6864_vm13 = vcmp.lt.s32.totalorder %v5226_v29, 128  ;;  %v6952_v8 = vsel %vm5267_vm1, 4294967295, %v6951_v8 }
 0x202   : > { %1447 = vmatprep.subr.bf16.mxu0 %v4867_v9  ;;  %3714 = vmatpush1.bf16.msk.msra.mxu1 %vm5173_vm6, %v5169_v1  ;;  %v3664_v60 = vpack.c.bf16 %v958_v54, %v957_v63  ;;  %v960_v61 = vsel %vm6862_vm5, %v4270_v20, %v4305_v45  ;;  %6953 = vst [vmem:[#allocation8_spill] sm:$0xff] %v6952_v8  ;;  %vm5287_vm7 = vmpackc.low %vm6864_vm13, %vm6864_vm13  ;;  %v6954_v20 = vmov 0 }
 0x203   : > { %1581 = vmatprep.subr.bf16.mxu1 %v4865_v7  ;;  %v3688_v6 = vpack.c.bf16 %v954_v55, %v953_v57  ;;  %v956_v10 = vsel %vm6862_vm5, %v4305_v45, %v4280_v26  ;;  %v6955_v20 = vsel %vm5287_vm7, 4294967295, %v6954_v20  ;;  %v772_v26 = vsel %vm6863_vm2, %v4284_v23, %v4239_v41  ;;  %v4531_v23 = vld [vmem:[%s6847_s2 + $0x4c] ss:$12 sps:$4 sm:$0xff]  }
 0x204   : > { %6956 = vst [vmem:[#allocation9_spill] sm:$0xff] %v6955_v20  ;;  %v3728_v37 = vpack.c.bf16 %v773_v13, %v772_v26  ;;  %v6960_v41 = vunpack.i.l.bf16 %v5165_v17 }
 0x205   : > { %1448 = vmatpush1.bf16.msra.mxu0 %v4863_v3  ;;  %v959_v3 = vsel %vm6862_vm5, %v4269_v21, %v4304_v12 }
 0x206   : > { %1449 = vmatprep.subr.bf16.mxu0 %v4875_v24  ;;  %1582 = vmatpush1.bf16.msra.mxu1 %v4867_v9  ;;  %v3670_v58 = vpack.c.bf16 %v960_v61, %v959_v3 }
 0x207   : > { %1583 = vmatprep.subr.bf16.mxu1 %v4877_v25 }
 0x209   : > { %1450 = vmatpush1.bf16.msra.mxu0 %v4873_v19  ;;  %v955_v19 = vsel %vm6862_vm5, %v4304_v12, %v4279_v28  ;;  %vm5321_vm5 = vmpackc.low %vm792_vm12, %vm792_vm12  ;;  %v6962_v28 = vunpack.i.h.bf16 %v5165_v17  ;;  %v6974_v17 = vmov 0  }
 0x20a   : > { %3665 = vmatprep.subr.msk.bf16.mxu0 %vm5008_vm9, %v3664_v60  ;;  %1584 = vmatpush1.bf16.msra.mxu1 %v4875_v24  ;;  %v3694_v21 = vpack.c.bf16 %v956_v10, %v955_v19  ;;  %v6958_v40 = vsel %vm5321_vm5, 4294967295, %v6957_v40 }
 0x20b   : > { %3717 = vmatprep.subr.msk.bf16.mxu1 %vm5259_vm10, %v3688_v6  ;;  %6959 = vst [vmem:[#allocation10_spill] sm:$0xff] %v6958_v40 }
 0x20d   : > { %3668 = vmatpush1.bf16.msk.msra.mxu0 %vm5267_vm1, %v5032_v31  ;;  %v774_v31 = vsel %vm6863_vm2, %v6960_v41, %v4249_v52  ;;  %v1140_v52 = vadd.s32 1, %v5014_v18 }
 0x20e   : > { %3671 = vmatprep.subr.msk.bf16.mxu0 %vm5008_vm9, %v3670_v58  ;;  %3720 = vmatpush1.bf16.msk.msra.mxu1 %vm5287_vm7, %v3664_v60 }
 0x20f   : > { %3723 = vmatprep.subr.msk.bf16.mxu1 %vm5259_vm10, %v3694_v21  ;;  %vm1152_vm12 = vcmp.lt.s32.totalorder %v1140_v52, 512 }
 0x211   : > { %3674 = vmatpush1.bf16.msk.msra.mxu0 %vm5267_vm1, %v5063_v4  ;;  %v6961_v4 = vunpack.i.h.bf16 %v4941_v48 }
 0x212   : > { %3677 = vmatprep.subr.msk.bf16.mxu0 %vm5113_vm14, %v5167_v62  ;;  %3726 = vmatpush1.bf16.msk.msra.mxu1 %vm5287_vm7, %v3670_v58 }
 0x213   : > { %v775_v39 = vsel %vm6863_vm2, %v6962_v28, %v6961_v4  ;;  %3729 = vmatprep.subr.msk.bf16.mxu1 %vm5161_vm3, %v3728_v37  ;;  %vm1156_vm2 = vmand %vm980_vm8, %vm1152_vm12 }
 0x214   : > { %v3734_v48 = vpack.c.bf16 %v775_v39, %v774_v31  ;;  %vm5371_vm13 = vmpackc.low %vm1156_vm2, %vm1156_vm2 }
 0x215   : > { %3680 = vmatpush1.bf16.msk.msra.mxu0 %vm5321_vm5, %v5124_v2  ;;  %v1192_v2 = vadd.s32 127, %v5014_v18  ;;  %v6964_v22 = vsel %vm5371_vm13, 4294967295, %v6963_v22  ;;  %v1292_v18 = vadd.s32 129, %v5006_v15  ;;  %v6971_v15 = vmov 0 }
 0x216   : > { %3683 = vmatprep.subr.msk.bf16.mxu0 %vm5113_vm14, %v5203_v42  ;;  %3732 = vmatpush1.bf16.msk.msra.mxu1 %vm5173_vm6, %v5167_v62  ;;  %6965 = vst [vmem:[#allocation11_spill] sm:$0xff] %v6964_v22  ;;  %v5475_v62 = vpop.permute.xlu1 %1730 }
 0x217   : > { %3735 = vmatprep.subr.msk.bf16.mxu1 %vm5161_vm3, %v3734_v48  ;;  %vm1204_vm8 = vcmp.lt.s32.totalorder %v1192_v2, 512 }
 0x218   : > { %vm1208_vm2 = vmand %vm795_vm15, %vm1204_vm8  ;;  %vm1304_vm15 = vcmp.lt.s32.totalorder %v1292_v18, 512  ;;  %vm6970_vm8 = vcmp.lt.s32.totalorder %v5226_v29, 128 }
 0x219   : > { %3686 = vmatpush1.bf16.msk.msra.mxu0 %vm5321_vm5, %v5169_v1  ;;  %vm5400_vm12 = vmpackc.low %vm1208_vm2, %vm1208_vm2  ;;  %v5477_v1 = vpop.permute.xlu0 %1725 }
 0x21a   : > { %1459 = vmatprep.subr.bf16.mxu0 %v4865_v7  ;;  %3738 = vmatpush1.bf16.msk.msra.mxu1 %vm5173_vm6, %v5203_v42  ;;  %vm1308_vm2 = vmand %vm6970_vm8, %vm1304_vm15  ;;  %vm1418_vm15 = vcmask 261120   ;;  %v5479_v63 = vpop.permute.xlu1 %1797  ;;  %vm6983_vm8 = vcmp.lt.s32.totalorder %v4898_v30, 1 }
 0x21b   : > { %1593 = vmatprep.subr.bf16.mxu1 %v4869_v11 }
 0x21d   : > { %1460 = vmatpush1.bf16.msra.mxu0 %v4867_v9  ;;  %v4525_v9 = vld [vmem:[%s6847_s2 + $0x1c] ss:$12 sps:$4 sm:$0xff]   ;;  %v5481_v12 = vpop.permute.xlu0 %1802 }
 0x21e   : > { %1461 = vmatprep.subr.bf16.mxu0 %v4877_v25  ;;  %1594 = vmatpush1.bf16.msra.mxu1 %v4865_v7  ;;  %v4527_v7 = vld [vmem:[%s6847_s2 + $0x18] ss:$12 sps:$4 sm:$0xff]   ;;  %v5483_v42 = vpop.permute.xlu1 %1735 }
 0x21f   : > { %1595 = vmatprep.subr.bf16.mxu1 %v4879_v27 }
 0x221   : > { %1462 = vmatpush1.bf16.msra.mxu0 %v4875_v24  ;;  %v6966_v24 = vmov 0  ;;  %v5485_v35 = vpop.permute.xlu0 %1740 }
 0x222   : > { %3689 = vmatprep.subr.msk.bf16.mxu0 %vm5008_vm9, %v3688_v6  ;;  %1596 = vmatpush1.bf16.msra.mxu1 %v4877_v25  ;;  %v6967_v24 = vsel %vm5400_vm12, 4294967295, %v6966_v24  ;;  %v4528_v25 = vld [vmem:[%s6847_s2 + $0x34] ss:$12 sps:$4 sm:$0xff]   ;;  %v5487_v32 = vpop.permute.xlu1 %1807 }
 0x223   : > { %3741 = vmatprep.subr.msk.bf16.mxu1 %vm5371_vm13, %v5058_v59  ;;  %6968 = vst [vmem:[#allocation12_spill] sm:$0xff] %v6967_v24 }
 0x224   : > { %1464 = vmatmul.mubr.bf16.vlgmr.msra.gmra.mrb[8].mxu0 %v4522_v53 }
 0x225   : > { %3692 = vmatpush1.bf16.msk.msra.mxu0 %vm5267_vm1, %v3664_v60  ;;  %1473 = vmatprep.mubr.bf16.mxu0 %v4525_v9  ;;  %v5491_v51 = vpop.permute.xlu0 %1812 }
 0x226   : > { %3695 = vmatprep.subr.msk.bf16.mxu0 %vm5008_vm9, %v3694_v21  ;;  %3744 = vmatpush1.bf16.msk.msra.mxu1 %vm5287_vm7, %v3688_v6 }
 0x227   : > { %3747 = vmatprep.subr.msk.bf16.mxu1 %vm5371_vm13, %v5117_v38 }
 0x229   : > { %3698 = vmatpush1.bf16.msk.msra.mxu0 %vm5267_vm1, %v3670_v58  ;;  %v5501_v61 = vpop.permute.xlu0 %1750 }
 0x22a   : > { %3750 = vmatpush1.bf16.msk.msra.mxu1 %vm5287_vm7, %v3694_v21 }
 0x22b   : > { %3753 = vmatprep.subr.msk.bf16.mxu1 %vm5400_vm12, %v4935_v46  ;;  %v6969_v46 = vmov 0.0|0.0  }
 0x22c   : > { %1474 = vmatmul.mubr.bf16.gmra.mrb[12].mxu0 %v4527_v7 }
 0x22d   : > { %1483 = vmatprep.mubr.bf16.mxu0 %v4528_v25 }
 0x22e   : > { %3756 = vmatpush1.bf16.msk.msra.mxu1 %vm5173_vm6, %v3728_v37 }
 0x22f   : > { %3759 = vmatprep.subr.msk.bf16.mxu1 %vm5400_vm12, %v4961_v56  ;;  %v4533_v56 = vld [vmem:[%s6847_s2 + $0x48] ss:$12 sps:$4 sm:$0xff]   ;;  %vm5434_vm12 = vmpackc.low %vm1308_vm2, %vm1308_vm2 }
 0x230   : > { %v6972_v15 = vsel %vm5434_vm12, 4294967295, %v6971_v15  ;;  %vm6984_vm2 = vmmov %vm6983_vm8 }
 0x231   : > { %6973 = vst [vmem:[#allocation13_spill] sm:$0xff] %v6972_v15  ;;  %vm6998_vm5 = vmmov %vm6984_vm2 }
 0x232   : > { %3762 = vmatpush1.bf16.msk.msra.mxu1 %vm5173_vm6, %v3734_v48 }
 0x233   : > { %1605 = vmatprep.subr.bf16.mxu1 %v6969_v46 }
 0x234   : > { %1484 = vmatmul.mubr.bf16.gmra.mrb[16].mxu0 %v4530_v14 }
 0x235   : > { %1493 = vmatprep.mubr.bf16.mxu0 %v4531_v23 }
 0x236   : > { %1606 = vmatpush1.bf16.msra.mxu1 %v4869_v11  ;;  %v4534_v11 = vld [vmem:[%s6847_s2 + $0x8] ss:$12 sps:$4 sm:$0xff]  }
 0x237   : > { %1607 = vmatprep.subr.bf16.mxu1 %v6969_v46 }
 0x23a   : > { %1608 = vmatpush1.bf16.msra.mxu1 %v4879_v27  ;;  %v4535_v27 = vld [vmem:[%s6847_s2 + $0x20] ss:$12 sps:$4 sm:$0xff]  }
 0x23b   : > { %4086 = vmatprep.subr.msk.bf16.mxu1 %vm5434_vm12, %v5058_v59 }
 0x23c   : > { %1494 = vmatmul.mubr.bf16.gmra.mrb[20].mxu0 %v4533_v56 }
 0x23d   : > { %1536 = vmatprep.mubr.bf16.mxu0 %v6974_v17  ;;  %1610 = vmatmul.mubr.bf16.vlgmr.msra.gmra.mrb[8].mxu1 %v4522_v53 }
 0x23e   : > { %4087 = vmatpush3.bf16.msk.msra.mxu1 %vm5434_vm12, %v5058_v59  ;;  %1619 = vmatprep.mubr.bf16.mxu1 %v4525_v9  ;;  %v4536_v59 = vld [vmem:[%s6847_s2 + $0x38] ss:$12 sps:$4 sm:$0xff]  }
 0x23f   : > { %4088 = vmatprep.subr.msk.bf16.mxu1 %vm5434_vm12, %v5117_v38 }
 0x242   : > { %4089 = vmatpush3.bf16.msk.msra.mxu1 %vm5434_vm12, %v5117_v38  ;;  %v4537_v38 = vld [vmem:[%s6847_s2 + $0x50] ss:$12 sps:$4 sm:$0xff]   ;;  %vm6994_vm12 = vmmov %vm6984_vm2 }
 0x244   : > { %3699 = vmatmul.mubr.msk.bf16.vlgmr.msra.gmra.mrb[8].mxu0 %vm1418_vm15, %v4534_v11 }
 0x245   : > { %1546 = vmatprep.mubr.bf16.mxu0 %v6974_v17  ;;  %1620 = vmatmul.mubr.bf16.gmra.mrb[12].mxu1 %v4527_v7 }
 0x246   : > { %1629 = vmatprep.mubr.bf16.mxu1 %v4528_v25 }
 0x24c   : > { %3700 = vmatmul.mubr.msk.bf16.gmra.mrb[12].mxu0 %vm1418_vm15, %v4535_v27 }
 0x24d   : > { %1556 = vmatprep.mubr.bf16.mxu0 %v6974_v17  ;;  %1630 = vmatmul.mubr.bf16.gmra.mrb[16].mxu1 %v4530_v14 }
 0x24e   : > { %1639 = vmatprep.mubr.bf16.mxu1 %v4531_v23 }
 0x254   : > { %3701 = vmatmul.mubr.msk.bf16.gmra.mrb[16].mxu0 %vm1418_vm15, %v4536_v59 }
 0x255   : > { %1566 = vmatprep.mubr.bf16.mxu0 %v6974_v17  ;;  %1640 = vmatmul.mubr.bf16.gmra.mrb[20].mxu1 %v4533_v56 }
 0x256   : > { %4090 = vmatprep.mubr.msk.bf16.mxu1 %vm1418_vm15, %v4534_v11 }
 0x25c   : > { %3702 = vmatmul.mubr.msk.bf16.gmra.mrb[20].mxu0 %vm1418_vm15, %v4537_v38 }
 0x25d   : > { %4091 = vmatmul.mubr.msk.bf16.vlgmr.msra.gmra.mrb[24].mxu1 %vm1418_vm15, %v4535_v27 }
 0x25e   : > { %4094 = vmatprep.mubr.msk.bf16.mxu1 %vm1418_vm15, %v4536_v59 }
 0x265   : > { %4095 = vmatmul.mubr.msk.bf16.gmra.mrb[28].mxu1 %vm1418_vm15, %v4537_v38  ;;  %vm6985_vm15 = vmmov %vm6984_vm2 }
 0x26b   : > { %v5498_v55 = vpop.permute.xlu1 %1745 }
 0x26f   : > { %v5524_v11 = vpop.permute.xlu1 %1817 }
 0x310   : > { %v5489_v49 = vpop.f32.mrb[8].mxu1 }
 0x311   : > { %v1613_v34 = vpop.f32.mrb[9].mxu1 }
 0x312   : > { %v1766_v5 = vmul.f32 %v5477_v1, %v1613_v34  ;;  %v5494_v29 = vpop.f32.mrb[10].mxu1 }
 0x313   : > { %v1617_v54 = vpop.f32.mrb[11].mxu1 }
 0x314   : > { %v1838_v45 = vadd.f32 %v5479_v63, %v1766_v5  ;;  %v1770_v57 = vmul.f32 %v5475_v62, %v1617_v54  ;;  %v5527_v54 = vpop.permute.xlu0 %1822 }
 0x316   : > { %v1842_v60 = vadd.f32 %v5481_v12, %v1770_v57  ;;  %v1870_v10 = vmax.f32 %v1838_v45, 0.0 }
 0x317   : > { %v1538_v3 = vpop.f32.mrb[8].mxu0 }
 0x318   : > { %v1763_v6 = vmul.f32 %v5477_v1, %v1538_v3  ;;  %v1540_v19 = vpop.f32.mrb[9].mxu0  ;;  %v1874_v58 = vmax.f32 %v1842_v60, 0.0  ;;  %v5505_v13 = vpop.f32.mrb[12].mxu1 }
 0x319   : > { %v1764_v21 = vmul.f32 %v5477_v1, %v1540_v19  ;;  %v1542_v26 = vpop.f32.mrb[10].mxu0  ;;  %v1623_v31 = vpop.f32.mrb[13].mxu1 }
 0x31a   : > { %v1835_v37 = vadd.f32 %v5479_v63, %v1763_v6  ;;  %v1767_v41 = vmul.f32 %v5475_v62, %v1542_v26  ;;  %v1544_v4 = vpop.f32.mrb[11].mxu0  ;;  %v1774_v39 = vmul.f32 %v5483_v42, %v1623_v31  ;;  %v5512_v52 = vpop.f32.mrb[14].mxu1  ;;  %v5514_v2 = vpack.i.bf16 %v1874_v58, %v1870_v10 }
 0x31b   : > { %v1836_v28 = vadd.f32 %v5479_v63, %v1764_v21  ;;  %v1768_v48 = vmul.f32 %v5475_v62, %v1544_v4  ;;  %v1627_v9 = vpop.f32.mrb[15].mxu1  ;;  %v5517_v7 = vpack.c.bf16 %v1874_v58, %v1870_v10 }
 0x31c   : > { %v1839_v53 = vadd.f32 %v5481_v12, %v1767_v41  ;;  %v1846_v25 = vadd.f32 %v5487_v32, %v1774_v39  ;;  %v1778_v14 = vmul.f32 %v5485_v35, %v1627_v9  ;;  %4309 = vrot.lane.b32.xlu0 %v5514_v2, %s4631_s28  ;;  %v1867_v23 = vmax.f32 %v1835_v37, 0.0 }
 0x31d   : > { %6975 = vst [vmem:[#allocation14_spill] sm:$0xff] %v5517_v7  ;;  %v1840_v18 = vadd.f32 %v5481_v12, %v1768_v48  ;;  %v1868_v27 = vmax.f32 %v1836_v28, 0.0 }
 0x31e   : > { %v1871_v56 = vmax.f32 %v1839_v53, 0.0  ;;  %v1878_v59 = vmax.f32 %v1846_v25, 0.0  ;;  %v1850_v34 = vadd.f32 %v5491_v51, %v1778_v14 }
 0x31f   : > { %v1872_v38 = vmax.f32 %v1840_v18, 0.0  ;;  %v1548_v5 = vpop.f32.mrb[12].mxu0 }
 0x320   : > { %v1771_v45 = vmul.f32 %v5483_v42, %v1548_v5  ;;  %v1550_v57 = vpop.f32.mrb[13].mxu0  ;;  %v5530_v60 = vpack.i.bf16 %v1871_v56, %v1867_v23  ;;  %v5532_v3 = vpack.c.bf16 %v1871_v56, %v1867_v23  ;;  %v1882_v6 = vmax.f32 %v1850_v34, 0.0  ;;  %v5535_v10 = vpop.f32.mrb[16].mxu1 }
 0x321   : > { %v1772_v19 = vmul.f32 %v5483_v42, %v1550_v57  ;;  %v1552_v58 = vpop.f32.mrb[14].mxu0  ;;  %v5537_v21 = vpack.i.bf16 %v1872_v38, %v1868_v27  ;;  %v1633_v41 = vpop.f32.mrb[17].mxu1  ;;  %v5543_v4 = vpack.c.bf16 %v1872_v38, %v1868_v27 }
 0x322   : > { %v1843_v26 = vadd.f32 %v5487_v32, %v1771_v45  ;;  %v1775_v37 = vmul.f32 %v5485_v35, %v1552_v58  ;;  %4329 = vrot.lane.b32.xlu1 %v5530_v60, %s4631_s28  ;;  %v1554_v31 = vpop.f32.mrb[15].mxu0  ;;  %v1782_v39 = vmul.f32 %v5498_v55, %v1633_v41  ;;  %v5547_v48 = vpop.f32.mrb[18].mxu1  ;;  %v5550_v9 = vpack.i.bf16 %v1882_v6, %v1878_v59 }
 0x323   : > { %6976 = vst [vmem:[#allocation15_spill] sm:$0xff] %v5543_v4  ;;  %v1844_v28 = vadd.f32 %v5487_v32, %v1772_v19  ;;  %v1776_v53 = vmul.f32 %v5485_v35, %v1554_v31  ;;  %v1637_v18 = vpop.f32.mrb[19].mxu1  ;;  %v5553_v14 = vpack.c.bf16 %v1882_v6, %v1878_v59  ;;  %v5560_v38 = vpop.permute.xlu1 %1755 }
 0x324   : > { %v1847_v25 = vadd.f32 %v5491_v51, %v1775_v37  ;;  %v1854_v23 = vadd.f32 %v5524_v11, %v1782_v39  ;;  %v1786_v27 = vmul.f32 %v5501_v61, %v1637_v18  ;;  %4314 = vrot.lane.b32.xlu0 %v5550_v9, %s4631_s28  ;;  %v1875_v34 = vmax.f32 %v1843_v26, 0.0  ;;  %v5565_v58 = vpop.permute.xlu0 %1760 }
 0x325   : > { %6977 = vst [vmem:[#allocation16_spill] sm:$0xff] %v5553_v14  ;;  %v1848_v56 = vadd.f32 %v5491_v51, %v1776_v53  ;;  %v1876_v45 = vmax.f32 %v1844_v28, 0.0 }
 0x326   : > { %v1879_v5 = vmax.f32 %v1847_v25, 0.0  ;;  %4334 = vrot.lane.b32.xlu1 %v5537_v21, %s4631_s28  ;;  %v1886_v57 = vmax.f32 %v1854_v23, 0.0  ;;  %v1858_v6 = vadd.f32 %v5527_v54, %v1786_v27 }
 0x327   : > { %v1880_v59 = vmax.f32 %v1848_v56, 0.0  ;;  %v1558_v19 = vpop.f32.mrb[16].mxu0 }
 0x328   : > { %v1779_v37 = vmul.f32 %v5498_v55, %v1558_v19  ;;  %v1560_v41 = vpop.f32.mrb[17].mxu0  ;;  %v5568_v31 = vpack.i.bf16 %v1879_v5, %v1875_v34  ;;  %v5570_v39 = vpack.c.bf16 %v1879_v5, %v1875_v34  ;;  %v1890_v26 = vmax.f32 %v1858_v6, 0.0  ;;  %v5573_v25 = vpop.f32.mrb[20].mxu1 }
 0x329   : > { %v1780_v53 = vmul.f32 %v5498_v55, %v1560_v41  ;;  %v1562_v28 = vpop.f32.mrb[18].mxu0  ;;  %v5575_v18 = vpack.i.bf16 %v1880_v59, %v1876_v45  ;;  %v1643_v27 = vpop.f32.mrb[21].mxu1  ;;  %v5581_v17 = vpack.c.bf16 %v1880_v59, %v1876_v45 }
 0x32a   : > { %v1851_v23 = vadd.f32 %v5524_v11, %v1779_v37  ;;  %v1783_v56 = vmul.f32 %v5501_v61, %v1562_v28  ;;  %4349 = vrot.lane.b32.xlu1 %v5568_v31, %s4631_s28  ;;  %v1564_v19 = vpop.f32.mrb[19].mxu0  ;;  %v1790_v5 = vmul.f32 %v5560_v38, %v1643_v27  ;;  %v5585_v6 = vpop.f32.mrb[22].mxu1  ;;  %v5588_v15 = vpack.i.bf16 %v1890_v26, %v1886_v57 }
 0x32b   : > { %6978 = vst [vmem:[#allocation17_spill] sm:$0xff] %v5581_v17  ;;  %v1852_v34 = vadd.f32 %v5524_v11, %v1780_v53  ;;  %v1784_v41 = vmul.f32 %v5501_v61, %v1564_v19  ;;  %v5590_v37 = vpop.permute.xlu1 %1827  ;;  %v1647_v24 = vpop.f32.mrb[23].mxu1  ;;  %v5593_v40 = vpack.c.bf16 %v1890_v26, %v1886_v57 }
 0x32c   : > { %v1855_v28 = vadd.f32 %v5527_v54, %v1783_v56  ;;  %v1862_v45 = vadd.f32 %v5590_v37, %v1790_v5  ;;  %v1794_v53 = vmul.f32 %v5565_v58, %v1647_v24  ;;  %4319 = vrot.lane.b32.xlu0 %v5588_v15, %s4631_s28  ;;  %v5600_v27 = vpop.permute.xlu0 %1832  ;;  %v1883_v19 = vmax.f32 %v1851_v23, 0.0 }
 0x32d   : > { %6979 = vst [vmem:[#allocation18_spill] sm:$0xff] %v5593_v40  ;;  %v1856_v59 = vadd.f32 %v5527_v54, %v1784_v41  ;;  %v1884_v56 = vmax.f32 %v1852_v34, 0.0 }
 0x32e   : > { %v1887_v22 = vmax.f32 %v1855_v28, 0.0  ;;  %4354 = vrot.lane.b32.xlu1 %v5575_v18, %s4631_s28  ;;  %v1894_v8 = vmax.f32 %v1862_v45, 0.0  ;;  %v1866_v26 = vadd.f32 %v5600_v27, %v1794_v53 }
 0x32f   : > { %v1888_v57 = vmax.f32 %v1856_v59, 0.0  ;;  %v1568_v5 = vpop.f32.mrb[20].mxu0 }
 0x330   : > { %v1787_v41 = vmul.f32 %v5560_v38, %v1568_v5  ;;  %v1570_v40 = vpop.f32.mrb[21].mxu0  ;;  %v5606_v24 = vpack.i.bf16 %v1887_v22, %v1883_v19  ;;  %v5608_v14 = vpack.c.bf16 %v1887_v22, %v1883_v19  ;;  %v1898_v7 = vmax.f32 %v1866_v26, 0.0  ;;  %v4092_v28 = vpop.f32.mrb[24].mxu1 }
 0x331   : > { %v1788_v23 = vmul.f32 %v5560_v38, %v1570_v40  ;;  %v1572_v36 = vpop.f32.mrb[22].mxu0  ;;  %v5611_v33 = vpack.i.bf16 %v1888_v57, %v1884_v56  ;;  %v1695_v45 = vadd.f32 %v4092_v28, %v5505_v13  ;;  %v1684_v53 = vpop.f32.mrb[25].mxu1  ;;  %v5618_v22 = vpack.c.bf16 %v1888_v57, %v1884_v56 }
 0x332   : > { %v1859_v34 = vadd.f32 %v5590_v37, %v1787_v41  ;;  %v1791_v59 = vmul.f32 %v5565_v58, %v1572_v36  ;;  %4359 = vrot.lane.b32.xlu1 %v5606_v24, %s4631_s28  ;;  %v1574_v5 = vpop.f32.mrb[23].mxu0  ;;  %v1685_v40 = vadd.f32 %v1684_v53, %v5489_v49  ;;  %v4093_v26 = vpop.f32.mrb[26].mxu1  ;;  %v5623_v0 = vpack.i.bf16 %v1898_v7, %v1894_v8 }
 0x333   : > { %v1860_v19 = vadd.f32 %v5590_v37, %v1788_v23  ;;  %v1792_v20 = vmul.f32 %v5565_v58, %v1574_v5  ;;  %v1773_v13 = vmul.f32 %v5483_v42, %v1695_v45  ;;  %v1699_v28 = vadd.f32 %v4093_v26, %v5512_v52  ;;  %v1688_v17 = vpop.f32.mrb[27].mxu1 }
 0x334   : > { %v1891_v41 = vmax.f32 %v1859_v34, 0.0  ;;  %v1863_v36 = vadd.f32 %v5600_v27, %v1791_v59  ;;  %v1765_v56 = vmul.f32 %v5477_v1, %v1685_v40  ;;  %v1689_v49 = vadd.f32 %v1688_v17, %v5494_v29  ;;  %4324 = vrot.lane.b32.xlu0 %v5623_v0, %s4631_s28 }
 0x335   : > { %v1892_v4 = vmax.f32 %v1860_v19, 0.0  ;;  %v1864_v57 = vadd.f32 %v5600_v27, %v1792_v20  ;;  %v1845_v23 = vadd.f32 %v5487_v32, %v1773_v13  ;;  %v1777_v42 = vmul.f32 %v5485_v35, %v1699_v28 }
 0x336   : > { %v1895_v34 = vmax.f32 %v1863_v36, 0.0  ;;  %v1837_v45 = vadd.f32 %v5479_v63, %v1765_v56  ;;  %v1769_v52 = vmul.f32 %v5475_v62, %v1689_v49  ;;  %v5637_v53 = vpack.c.bf16 %v1898_v7, %v1894_v8 }
 0x337   : > { %v1896_v59 = vmax.f32 %v1864_v57, 0.0  ;;  %v1849_v1 = vadd.f32 %v5491_v51, %v1777_v42  ;;  %v1877_v5 = vmax.f32 %v1845_v23, 0.0 }
 0x338   : > { %6980 = vst [vmem:[#allocation19_spill] sm:$0xff] %v5637_v53  ;;  %v4363_v20 = vpack.i.bf16 %v1895_v34, %v1891_v41  ;;  %v1841_v17 = vadd.f32 %v5481_v12, %v1769_v52  ;;  %v4096_v29 = vpop.f32.mrb[28].mxu1  ;;  %v5643_v63 = vpack.c.bf16 %v1895_v34, %v1891_v41  ;;  %v1869_v8 = vmax.f32 %v1837_v45, 0.0  ;;  %v1913_v52 = vld [vmem:[%s6852_s7 + $0x30] sm:$0xff] }
 0x339   : > { %v4403_v19 = vpack.i.bf16 %v1896_v59, %v1892_v4  ;;  %v1881_v40 = vmax.f32 %v1849_v1, 0.0  ;;  %v1715_v32 = vadd.f32 %v4096_v29, %v5573_v25  ;;  %v1704_v26 = vpop.f32.mrb[29].mxu1  ;;  %v5645_v35 = vpack.c.bf16 %v1896_v59, %v1892_v4  ;;  %v1908_v59 = vld [vmem:[%s6852_s7 + $0x8] sm:$0xff]  ;;  %v1910_v1 = vld [vmem:[%s6852_s7 + $0x18] sm:$0xff] }
 0x33a   : > { %4364 = vrot.lane.b32.xlu1 %v4363_v20, %s4631_s28  ;;  %v1873_v62 = vmax.f32 %v1841_v17, 0.0  ;;  %v1705_v51 = vadd.f32 %v1704_v26, %v5535_v10  ;;  %v4097_v7 = vpop.f32.mrb[30].mxu1  ;;  %v5756_v17 = vld [vmem:[%s6853_s8 + $0x10] sm:$0xff]  ;;  %v1914_v29 = vld [vmem:[%s6852_s7 + $0x38] sm:$0xff] }
 0x33b   : > { %v1789_v13 = vmul.f32 %v5560_v38, %v1715_v32  ;;  %v1719_v12 = vadd.f32 %v4097_v7, %v5585_v6  ;;  %v1708_v36 = vpop.f32.mrb[31].mxu1  ;;  %v4338_v28 = vpack.i.bf16 %v1881_v40, %v1877_v5  ;;  %v5661_v49 = vpack.c.bf16 %v1881_v40, %v1877_v5  ;;  %v1912_v5 = vld [vmem:[%s6852_s7 + $0x28] sm:$0xff]  ;;  %v5777_v32 = vld [vmem:[%s6853_s8 + $0x30] sm:$0xff]  ;;  %v5782_v26 = vld [vmem:[%s6853_s8 + $0x18] sm:$0xff] }
 0x33c   : > { %v1781_v25 = vmul.f32 %v5498_v55, %v1705_v51  ;;  %v1709_v56 = vadd.f32 %v1708_v36, %v5547_v48  ;;  %v4343_v57 = vpack.i.bf16 %v1873_v62, %v1869_v8  ;;  %v5657_v10 = vpack.c.bf16 %v1873_v62, %v1869_v8  ;;  %v5770_v40 = vld [vmem:[%s6853_s8 + $0x8] sm:$0xff] }
 0x33d   : > { %v1861_v41 = vadd.f32 %v5590_v37, %v1789_v13  ;;  %v1793_v4 = vmul.f32 %v5565_v58, %v1719_v12  ;;  %4339 = vrot.lane.b32.xlu0 %v4338_v28, %s4631_s28  ;;  %6982 = vst [vmem:[#allocation21_spill] sm:$0xff] %v5661_v49  ;;  %v5793_v51 = vld [vmem:[%s6853_s8 + $0x28] sm:$0xff] }
 0x33e   : > { %4369 = vrot.lane.b32.xlu1 %v5611_v33, %s4631_s28  ;;  %6981 = vst [vmem:[#allocation20_spill] sm:$0xff] %v5657_v10  ;;  %v1853_v38 = vadd.f32 %v5524_v11, %v1781_v25  ;;  %v1785_v6 = vmul.f32 %v5501_v61, %v1709_v56 }
 0x33f   : > { %v1865_v55 = vadd.f32 %v5600_v27, %v1793_v4  ;;  %v1893_v37 = vmax.f32 %v1861_v41, 0.0  ;;  %v1906_v27 = vld [vmem:[%s6851_s6 + $0x38] sm:$0xff] }
 0x340   : > { %v1857_v48 = vadd.f32 %v5527_v54, %v1785_v6  ;;  %v1885_v58 = vmax.f32 %v1853_v38, 0.0  ;;  %v4540_v54 = vld [vmem:[%s6850_s5 + $0x4] ss:$20 sps:$4 sm:$0xff]  }
 0x341   : > { %v1897_v23 = vmax.f32 %v1865_v55, 0.0  ;;  %4344 = vrot.lane.b32.xlu0 %v4343_v57, %s4631_s28  ;;  %2708 = vmatprep.mubr.bf16.mxu0 %v4540_v54  ;;  %v5815_v41 = vld [vmem:[%s6853_s8 + $0x38] sm:$0xff] }
 0x342   : > { %4384 = vrot.lane.b32.xlu1 %v5530_v60, %s4632_s22  ;;  %v1889_v34 = vmax.f32 %v1857_v48, 0.0  ;;  %v1905_v60 = vld [vmem:[%s6851_s6 + $0x30] sm:$0xff]  ;;  %2927 = vmatprep.mubr.bf16.mxu1 %v4540_v54 }
 0x343   : > { %v4378_v42 = vpack.i.bf16 %v1897_v23, %v1893_v37  ;;  %v5668_v45 = vpack.c.bf16 %v1897_v23, %v1893_v37 }
 0x344   : > { %v4373_v11 = vpack.i.bf16 %v1889_v34, %v1885_v58  ;;  %v5670_v61 = vpack.c.bf16 %v1889_v34, %v1885_v58 }
 0x346   : > { %4394 = vrot.lane.b32.xlu1 %v5514_v2, %s4632_s22  ;;  %4374 = vrot.lane.b32.xlu0 %v4373_v11, %s4631_s28  ;;  %v1903_v2 = vld [vmem:[%s6851_s6 + $0x20] sm:$0xff] }
 0x34a   : > { %4404 = vrot.lane.b32.xlu1 %v4403_v19, %s4631_s28  ;;  %4379 = vrot.lane.b32.xlu0 %v4378_v42, %s4631_s28  ;;  %s6795_s28 = scalar_lea.hbm %s6854_s9, %s4071_s26 }
 0x34e   : > { %4409 = vrot.lane.b32.xlu1 %v5575_v18, %s4632_s22  ;;  %4389 = vrot.lane.b32.xlu0 %v5537_v21, %s4632_s22  ;;  %v1902_v21 = vld [vmem:[%s6851_s6 + $0x18] sm:$0xff]  ;;  %v1909_v18 = vld [vmem:[%s6852_s7 + $0x10] sm:$0xff] }
 0x352   : > { %4419 = vrot.lane.b32.xlu1 %v5606_v24, %s4632_s22  ;;  %4399 = vrot.lane.b32.xlu0 %v5568_v31, %s4632_s22  ;;  %v1904_v31 = vld [vmem:[%s6851_s6 + $0x28] sm:$0xff]  ;;  %v1911_v24 = vld [vmem:[%s6852_s7 + $0x20] sm:$0xff] }
 0x356   : > { %4429 = vrot.lane.b32.xlu1 %v5588_v15, %s4632_s22  ;;  %4414 = vrot.lane.b32.xlu0 %v5550_v9, %s4632_s22  ;;  %v1899_v15 = vld [vmem:[%s6851_s6] sm:$0xff] }
 0x357   : > { %v1907_v9 = vld [vmem:[%s6852_s7] sm:$0xff] }
 0x35a   : > { %4444 = vrot.lane.b32.xlu1 %v4403_v19, %s4632_s22  ;;  %4424 = vrot.lane.b32.xlu0 %v5611_v33, %s4632_s22  ;;  %v1901_v33 = vld [vmem:[%s6851_s6 + $0x10] sm:$0xff]  ;;  %v5765_v19 = vld [vmem:[%s6853_s8 + $0x20] sm:$0xff] }
 0x35e   : > { %4449 = vrot.lane.b32.xlu1 %v4343_v57, %s4632_s22  ;;  %4434 = vrot.lane.b32.xlu0 %v4363_v20, %s4632_s22  ;;  %v5747_v20 = vld [vmem:[%s6853_s8] sm:$0xff] }
 0x362   : > { %4459 = vrot.lane.b32.xlu1 %v4373_v11, %s4632_s22  ;;  %4439 = vrot.lane.b32.xlu0 %v5623_v0, %s4632_s22  ;;  %v1900_v0 = vld [vmem:[%s6851_s6 + $0x8] sm:$0xff] }
 0x366   : > { %3116 = vperm.xlu1 %4307, %v1899_v15   ;;  %4454 = vrot.lane.b32.xlu0 %v4338_v28, %s4632_s22 }
 0x36a   : > { %3126 = vperm.xlu1 %4307, %v1901_v33   ;;  %4464 = vrot.lane.b32.xlu0 %v4378_v42, %s4632_s22  ;;  %s4637_s22 = smov [#allocation2]  }
 0x36b   : > { %s4570_s16 = sshll.u32 %s4637_s22, 4  ;;  %s4571_s16 = int_to_ptr.vmem [resolvable:$false] %s4570_s16 }
 0x36c   : > { %s4572_s17 = scalar_lea.vmem %s4571_s16, 2048  ;;  %p4573_p0 = scmp.lt.s32.totalorder %s6797_s27, %s4571_s16 }
 0x36d   : > { %p4574_p1 = scmp.lt.s32.totalorder %s4572_s17, %s4566_s14 }
 0x36e   : > { %3136 = vperm.xlu1 %4307, %v1903_v2   ;;  %3121 = vperm.xlu0 %4306, %v1900_v0  }
 0x36f   : > { %p4575_p2 = por %p4574_p1, %p4573_p0 }
 0x371   : > { %p4576_p3 = pnand %p4575_p2, %p4569_p13 }
 0x372   : > { %3146 = vperm.xlu1 %4307, %v1905_v60   ;;  %3131 = vperm.xlu0 %4306, %v1902_v21  }
 0x376   : > { %3188 = vperm.xlu1 %4307, %v1907_v9   ;;  %3141 = vperm.xlu0 %4306, %v1904_v31  }
 0x37a   : > { %3198 = vperm.xlu1 %4307, %v1909_v18   ;;  %3151 = vperm.xlu0 %4306, %v1906_v27  }
 0x37e   : > { %3208 = vperm.xlu1 %4307, %v1911_v24   ;;  %3193 = vperm.xlu0 %4306, %v1908_v59  }
 0x382   : > { %3218 = vperm.xlu1 %4307, %v1913_v52   ;;  %3203 = vperm.xlu0 %4306, %v1910_v1  }
 0x386   : > { %3300 = vperm.xlu1 %4307, %v5747_v20   ;;  %3213 = vperm.xlu0 %4306, %v1912_v5  }
 0x38a   : > { %3310 = vperm.xlu1 %4307, %v5756_v17   ;;  %3223 = vperm.xlu0 %4306, %v1914_v29  }
 0x38e   : > { %3320 = vperm.xlu1 %4307, %v5765_v19   ;;  %3305 = vperm.xlu0 %4306, %v5770_v40   ;;  %v5784_v8 = vpop.permute.xlu0 %4309 }
 0x38f   : > { %v4312_v7 = vunpack.i.h.bf16 %v5784_v8  ;;  %v4311_v13 = vunpack.i.l.bf16 %v5784_v8 }
 0x392   : > { %3330 = vperm.xlu1 %4307, %v5777_v32   ;;  %3315 = vperm.xlu0 %4306, %v5782_v26  }
 0x394   : > { %v5788_v62 = vpop.permute.xlu1 %4329 }
 0x395   : > { %v4332_v12 = vunpack.i.h.bf16 %v5788_v62  ;;  %v4331_v36 = vunpack.i.l.bf16 %v5788_v62 }
 0x396   : > { %3325 = vperm.xlu0 %4306, %v5793_v51   ;;  %v4315_v4 = vpop.permute.xlu0 %4314 }
 0x397   : > { %v2004_v28 = vsel %vm6983_vm8, %v4312_v7, %v4332_v12  ;;  %v2003_v25 = vsel %vm6984_vm2, %v4311_v13, %v4331_v36  ;;  %v4317_v6 = vunpack.i.h.bf16 %v4315_v4  ;;  %v4316_v55 = vunpack.i.l.bf16 %v4315_v4  ;;  %vm6986_vm8 = vmmov %vm6984_vm2 }
 0x398   : > { %v5808_v56 = vpack.c.bf16 %v2004_v28, %v2003_v25  ;;  %v5810_v57 = vpop.permute.xlu1 %4334 }
 0x399   : > { %v4337_v25 = vunpack.i.h.bf16 %v5810_v57  ;;  %v4336_v4 = vunpack.i.l.bf16 %v5810_v57 }
 0x39a   : > { %3795 = vmatprep.subr.msk.bf16.mxu0 %vm4929_vm4, %v5808_v56  ;;  %3335 = vperm.xlu0 %4306, %v5815_v41  }
 0x39b   : > { %2677 = vmatpush1.bf16.msra.mxu0 %v6969_v46  ;;  %v1996_v44 = vsel %vm6984_vm2, %v4332_v12, %v4337_v25 }
 0x39c   : > { %v5822_v38 = vpop.permute.xlu1 %4349 }
 0x39d   : > { %v4352_v48 = vunpack.i.h.bf16 %v5822_v38  ;;  %v4351_v37 = vunpack.i.l.bf16 %v5822_v38 }
 0x39e   : > { %v5832_v11 = vpop.permute.xlu0 %4319 }
 0x39f   : > { %v2006_v23 = vsel %vm6985_vm15, %v4317_v6, %v4352_v48  ;;  %v2005_v58 = vsel %vm6986_vm8, %v4316_v55, %v4351_v37  ;;  %v4322_v33 = vunpack.i.h.bf16 %v5832_v11  ;;  %v4321_v2 = vunpack.i.l.bf16 %v5832_v11  ;;  %vm6987_vm15 = vmmov %vm6984_vm2 }
 0x3a0   : > { %v5830_v34 = vpack.c.bf16 %v2006_v23, %v2005_v58  ;;  %v4355_v42 = vpop.permute.xlu1 %4354  ;;  %vm6988_vm8 = vmmov %vm6984_vm2 }
 0x3a2   : > { %3798 = vmatprep.subr.msk.bf16.mxu0 %vm4929_vm4, %v5830_v34 }
 0x3a3   : > { %2679 = vmatpush1.bf16.msra.mxu0 %v6969_v46 }
 0x3a4   : > { %v5838_v15 = vpop.permute.xlu1 %4359 }
 0x3a5   : > { %v4362_v0 = vunpack.i.h.bf16 %v5838_v15  ;;  %v4361_v54 = vunpack.i.l.bf16 %v5838_v15 }
 0x3a6   : > { %v5854_v31 = vpop.permute.xlu0 %4324 }
 0x3a7   : > { %v2008_v60 = vsel %vm6984_vm2, %v4322_v33, %v4362_v0  ;;  %v2007_v21 = vsel %vm6987_vm15, %v4321_v2, %v4361_v54  ;;  %v4327_v27 = vunpack.i.h.bf16 %v5854_v31  ;;  %v4326_v24 = vunpack.i.l.bf16 %v5854_v31  ;;  %vm6989_vm15 = vmmov %vm6984_vm2 }
 0x3a8   : > { %v5852_v9 = vpack.c.bf16 %v2008_v60, %v2007_v21  ;;  %v4357_v60 = vunpack.i.h.bf16 %v4355_v42  ;;  %v4356_v21 = vunpack.i.l.bf16 %v4355_v42 }
 0x3aa   : > { %3801 = vmatprep.subr.msk.bf16.mxu0 %vm4929_vm4, %v5852_v9 }
 0x3ab   : > { %2681 = vmatpush1.bf16.msra.mxu0 %v6969_v46 }
 0x3ac   : > { %v5860_v18 = vpop.permute.xlu1 %4364 }
 0x3ad   : > { %v6894_v59 = vunpack.i.h.bf16 %v5860_v18  ;;  %v6891_v52 = vunpack.i.l.bf16 %v5860_v18 }
 0x3af   : > { %v2010_v1 = vsel %vm6988_vm8, %v4327_v27, %v6894_v59  ;;  %v2009_v5 = vsel %vm6984_vm2, %v4326_v24, %v6891_v52  ;;  %v4340_v62 = vpop.permute.xlu0 %4339  ;;  %vm6990_vm8 = vmmov %vm6984_vm2 }
 0x3b0   : > { %v5878_v29 = vpack.c.bf16 %v2010_v1, %v2009_v5  ;;  %v4370_v28 = vpop.permute.xlu1 %4369  ;;  %v4342_v38 = vunpack.i.h.bf16 %v4340_v62  ;;  %v4341_v23 = vunpack.i.l.bf16 %v4340_v62 }
 0x3b2   : > { %3804 = vmatprep.subr.msk.bf16.mxu0 %vm4929_vm4, %v5878_v29  ;;  %v1982_v58 = vsel %vm6989_vm15, %v4342_v38, %v4317_v6  ;;  %v1981_v15 = vsel %vm6990_vm8, %v4341_v23, %v4316_v55  ;;  %vm6991_vm4 = vmmov %vm6984_vm2 }
 0x3b3   : > { %2683 = vmatpush1.bf16.msra.mxu0 %v6969_v46  ;;  %v5890_v1 = vpack.c.bf16 %v1982_v58, %v1981_v15  ;;  %v4345_v5 = vpop.permute.xlu0 %4344  ;;  %v1995_v6 = vsel %vm6991_vm4, %v4331_v36, %v4336_v4  ;;  %vm6992_vm15 = vmmov %vm6984_vm2  ;;  %v4372_v58 = vunpack.i.h.bf16 %v4370_v28  ;;  %v4371_v15 = vunpack.i.l.bf16 %v4370_v28 }
 0x3b4   : > { %v5892_v57 = vpop.permute.xlu1 %4384  ;;  %2684 = vmatprep.subr.bf16.mxu0 %v5532_v3  ;;  %v4347_v62 = vunpack.i.h.bf16 %v4345_v5  ;;  %v4346_v52 = vunpack.i.l.bf16 %v4345_v5  ;;  %v1989_v55 = vsel %vm6992_vm15, %v4356_v21, %v4341_v23  ;;  %vm6993_vm8 = vmmov %vm6984_vm2 }
 0x3b5   : > { %v1990_v42 = vsel %vm6993_vm8, %v4357_v60, %v4342_v38  ;;  %vm6995_vm4 = vmmov %vm6984_vm2  ;;  %v1997_v38 = vsel %vm6998_vm5, %v4351_v37, %v4356_v21 }
 0x3b6   : > { %v1980_v59 = vsel %vm6994_vm12, %v4347_v62, %v4312_v7  ;;  %v1979_v12 = vsel %vm6984_vm2, %v4346_v52, %v4311_v13  ;;  %v1987_v36 = vsel %vm6995_vm4, %v4336_v4, %v4346_v52  ;;  %vm6996_vm15 = vmmov %vm6984_vm2  ;;  %v5927_v13 = vpack.c.bf16 %v1996_v44, %v1995_v6 }
 0x3b7   : > { %v1988_v23 = vsel %vm6996_vm15, %v4337_v25, %v4347_v62  ;;  %2685 = vmatpush1.bf16.msra.mxu0 %v6969_v46  ;;  %vm6997_vm8 = vmmov %vm6984_vm2  ;;  %v5922_v8 = vpack.c.bf16 %v1980_v59, %v1979_v12  ;;  %v5929_v25 = vpack.c.bf16 %v1990_v42, %v1989_v55 }
 0x3b8   : > { %v1998_v28 = vsel %vm6997_vm8, %v4352_v48, %v4357_v60  ;;  %v5920_v7 = vpack.c.bf16 %v1988_v23, %v1987_v36  ;;  %v5924_v5 = vpop.permute.xlu1 %4394  ;;  %2686 = vmatprep.subr.bf16.mxu0 %v5570_v39  ;;  %v4375_v52 = vpop.permute.xlu0 %4374  ;;  %vm6999_vm5 = vmmov %vm6984_vm2 }
 0x3b9   : > { %v4377_v4 = vunpack.i.h.bf16 %v4375_v52  ;;  %v4376_v62 = vunpack.i.l.bf16 %v4375_v52  ;;  %v5934_v48 = vpack.c.bf16 %v1998_v28, %v1997_v38  ;;  %v2000_v37 = vsel %vm6999_vm5, %v4362_v0, %v4372_v58  ;;  %vm7000_vm12 = vmmov %vm6984_vm2 }
 0x3ba   : > { %3931 = vmatprep.subr.msk.bf16.mxu1 %vm5161_vm3, %v5920_v7  ;;  %v1999_v59 = vsel %vm7000_vm12, %v4361_v54, %v4371_v15  ;;  %v6902_v60 = vunpack.i.h.bf16 %v5924_v5  ;;  %vm7001_vm4 = vmmov %vm6984_vm2  ;;  %v6901_v11 = vunpack.i.l.bf16 %v5924_v5  ;;  %v4386_v28 = vunpack.i.l.bf16 %v5892_v57 }
 0x3bb   : > { %3934 = vmatpush1.bf16.msk.msra.mxu1 %vm5173_vm6, %v5927_v13  ;;  %2687 = vmatpush1.bf16.msra.mxu0 %v6969_v46  ;;  %v1984_v21 = vsel %vm6984_vm2, %v4377_v4, %v4322_v33  ;;  %v1983_v0 = vsel %vm7001_vm4, %v4376_v62, %v4321_v2  ;;  %vm7002_vm15 = vmmov %vm6984_vm2  ;;  %v5966_v23 = vpack.c.bf16 %v2000_v37, %v1999_v59 }
 0x3bc   : > { %v1991_v54 = vsel %vm7002_vm15, %v4371_v15, %v4376_v62  ;;  %vm7003_vm8 = vmmov %vm6984_vm2  ;;  %3937 = vmatprep.subr.msk.bf16.mxu1 %vm5161_vm3, %v5929_v25  ;;  %v4405_v6 = vpop.permute.xlu1 %4404  ;;  %v5962_v42 = vpack.c.bf16 %v1984_v21, %v1983_v0  ;;  %v4380_v33 = vpop.permute.xlu0 %4379  ;;  %2688 = vmatprep.subr.bf16.mxu0 %v5608_v14  ;;  %vm7007_vm15 = vcmp.lt.s32.totalorder %v4898_v30, 127  ;;  %v7009_v21 = vunpack.i.h.bf16 %v5860_v18 }
 0x3bd   : > { %v1992_v44 = vsel %vm7003_vm8, %v4372_v58, %v4377_v4  ;;  %v4407_v2 = vunpack.i.h.bf16 %v4405_v6  ;;  %v4382_v12 = vunpack.i.h.bf16 %v4380_v33  ;;  %v4381_v15 = vunpack.i.l.bf16 %v4380_v33  ;;  %vm7004_vm5 = vmmov %vm6984_vm2 }
 0x3be   : > { %v5960_v55 = vpack.c.bf16 %v1992_v44, %v1991_v54  ;;  %v4406_v36 = vunpack.i.l.bf16 %v4405_v6  ;;  %v4387_v58 = vunpack.i.h.bf16 %v5892_v57  ;;  %vm7005_vm12 = vmmov %vm6984_vm2  ;;  %v2195_v31 = vsel %vm7007_vm15, %v6901_v11, %v4386_v28 }
 0x3bf   : > { %3940 = vmatpush1.bf16.msk.msra.mxu1 %vm5173_vm6, %v5934_v48  ;;  %2689 = vmatpush1.bf16.msra.mxu0 %v6969_v46  ;;  %v1986_v38 = vsel %vm7004_vm5, %v4382_v12, %v4327_v27  ;;  %v1985_v52 = vsel %vm7005_vm12, %v4381_v15, %v4326_v24  ;;  %v1994_v4 = vsel %vm6984_vm2, %v4407_v2, %v4382_v12  ;;  %vm7006_vm4 = vmmov %vm6984_vm2  ;;  %v7011_v54 = vunpack.i.l.bf16 %v5860_v18 }
 0x3c0   : > { %v1993_v57 = vsel %vm7006_vm4, %v4406_v36, %v4381_v15  ;;  %3943 = vmatprep.subr.msk.bf16.mxu1 %vm5161_vm3, %v5960_v55  ;;  %v5989_v62 = vpop.permute.xlu1 %4409  ;;  %vm7008_vm8 = vmmov %vm7007_vm15  ;;  %v5999_v24 = vpack.c.bf16 %v1986_v38, %v1985_v52  ;;  %v6003_v59 = vpop.permute.xlu0 %4389  ;;  %2690 = vmatprep.subr.bf16.mxu0 %v5643_v63  ;;  %v4634_v30 = vmov 1  }
 0x3c1   : > { %v2196_v27 = vsel %vm7008_vm8, %v6902_v60, %v4387_v58  ;;  %v6001_v37 = vpack.c.bf16 %v1994_v4, %v1993_v57  ;;  %vm7010_vm5 = vmmov %vm6984_vm2  ;;  %v6900_v6 = vunpack.i.h.bf16 %v6003_v59  ;;  %v6899_v33 = vunpack.i.l.bf16 %v6003_v59  ;;  %4468 = vset.pattern.permute.xlu1 %v4634_v30  ;;  %4469 = vset.pattern.permute.xlu0 %v4634_v30 }
 0x3c2   : > { %v2002_v0 = vsel %vm7010_vm5, %v7009_v21, %v4407_v2  ;;  %vm7012_vm12 = vmmov %vm6984_vm2  ;;  %v6031_v15 = vpack.c.bf16 %v2196_v27, %v2195_v31  ;;  %v6897_v4 = vunpack.i.h.bf16 %v5989_v62  ;;  %3355 = vperm.xlu1 %4468, %v5747_v20   ;;  %3359 = vperm.xlu0 %4469, %v5770_v40  }
 0x3c3   : > { %v2001_v44 = vsel %vm7012_vm12, %v7011_v54, %v4406_v36  ;;  %3946 = vmatpush1.bf16.msk.msra.mxu1 %vm5173_vm6, %v5966_v23  ;;  %2691 = vmatpush1.bf16.msra.mxu0 %v6969_v46  ;;  %vm7013_vm2 = vmmov %vm7008_vm8 }
 0x3c4   : > { %v2187_v2 = vsel %vm7013_vm2, %v4386_v28, %v6899_v33  ;;  %vm7014_vm4 = vmmov %vm7013_vm2  ;;  %3949 = vmatprep.subr.msk.bf16.mxu1 %vm5161_vm3, %v6001_v37  ;;  %v4420_v12 = vpop.permute.xlu1 %4419  ;;  %7015 = vst [vmem:[#allocation22_spill] sm:$0xff] %v6031_v15  ;;  %v6033_v36 = vpack.c.bf16 %v2002_v0, %v2001_v44  ;;  %v4400_v52 = vpop.permute.xlu0 %4399  ;;  %v6898_v28 = vunpack.i.l.bf16 %v5989_v62 }
 0x3c5   : > { %v2188_v18 = vsel %vm7014_vm4, %v4387_v58, %v6900_v6  ;;  %v4402_v57 = vunpack.i.h.bf16 %v4400_v52  ;;  %v4401_v21 = vunpack.i.l.bf16 %v4400_v52  ;;  %vm7017_vm15 = vmmov %vm7013_vm2  ;;  %v4422_v11 = vunpack.i.h.bf16 %v4420_v12 }
 0x3c6   : > { %v6035_v38 = vpack.c.bf16 %v2188_v18, %v2187_v2  ;;  %vm7018_vm8 = vmmov %vm7013_vm2  ;;  %v7020_v18 = vld [vmem:[#allocation15_spill] sm:$0xff]  ;;  %v4421_v60 = vunpack.i.l.bf16 %v4420_v12  ;;  %3363 = vperm.xlu1 %4468, %v5756_v17   ;;  %3371 = vperm.xlu0 %4469, %v5765_v19  }
 0x3c7   : > { %3952 = vmatpush1.bf16.msk.msra.mxu1 %vm5173_vm6, %v6033_v36  ;;  %v2189_v58 = vsel %vm7017_vm15, %v4401_v21, %v6898_v28  ;;  %v2190_v31 = vsel %vm7018_vm8, %v4402_v57, %v6897_v4  ;;  %vm7021_vm5 = vmmov %vm7013_vm2 }
 0x3c8   : > { %7016 = vst [vmem:[#allocation23_spill] sm:$0xff] %v6035_v38  ;;  %3807 = vmatprep.subr.msk.bf16.mxu0 %vm5008_vm9, %v6035_v38  ;;  %2903 = vmatprep.subr.bf16.mxu1 %v5657_v10  ;;  %v6057_v27 = vpop.permute.xlu1 %4429  ;;  %v6059_v0 = vpack.c.bf16 %v2190_v31, %v2189_v58  ;;  %v6061_v54 = vpop.permute.xlu0 %4414  ;;  %vm7022_vm12 = vmmov %vm7013_vm2 }
 0x3c9   : > { %3810 = vmatpush1.bf16.msk.msra.mxu0 %vm5049_vm11, %v6031_v15  ;;  %v6904_v44 = vunpack.i.h.bf16 %v6061_v54  ;;  %v6903_v2 = vunpack.i.l.bf16 %v6061_v54  ;;  %v6912_v31 = vunpack.i.h.bf16 %v6057_v27  ;;  %v4431_v4 = vunpack.i.l.bf16 %v6057_v27  ;;  %vm7025_vm4 = vmmov %vm7013_vm2 }
 0x3ca   : > { %7019 = vst [vmem:[#allocation24_spill] sm:$0xff] %v6059_v0  ;;  %3813 = vmatprep.subr.msk.bf16.mxu0 %vm5008_vm9, %v6059_v0  ;;  %vm7026_vm15 = vmmov %vm7013_vm2  ;;  %3367 = vperm.xlu1 %4468, %v5782_v26  }
 0x3cb   : > { %2904 = vmatpush1.bf16.msra.mxu1 %v7020_v18  ;;  %v2197_v52 = vsel %vm7021_vm5, %v6903_v2, %v4401_v21  ;;  %v2198_v58 = vsel %vm7022_vm12, %v6904_v44, %v4402_v57  ;;  %v7024_v57 = vld [vmem:[#allocation17_spill] sm:$0xff]  ;;  %v2199_v44 = vsel %vm7013_vm2, %v4431_v4, %v4421_v60  ;;  %vm7027_vm8 = vmmov %vm7013_vm2  ;;  %3379 = vperm.xlu0 %4469, %v5777_v32  }
 0x3cc   : > { %2905 = vmatprep.subr.bf16.mxu1 %v5661_v49  ;;  %v6080_v28 = vpop.permute.xlu1 %4444  ;;  %v6082_v33 = vpack.c.bf16 %v2198_v58, %v2197_v52  ;;  %v6084_v6 = vpop.permute.xlu0 %4424  ;;  %v2200_v52 = vsel %vm7025_vm4, %v6912_v31, %v4422_v11  ;;  %vm7031_vm5 = vmmov %vm7013_vm2 }
 0x3cd   : > { %v6919_v21 = vunpack.i.h.bf16 %v6084_v6  ;;  %v6918_v2 = vunpack.i.l.bf16 %v6084_v6  ;;  %v4447_v31 = vunpack.i.h.bf16 %v6080_v28  ;;  %v4446_v49 = vunpack.i.l.bf16 %v6080_v28  ;;  %vm7033_vm12 = vmmov %vm7013_vm2 }
 0x3ce   : > { %7023 = vst [vmem:[#allocation15_spill] sm:$0xff] %v6082_v33  ;;  %3816 = vmatpush1.bf16.msk.msra.mxu0 %vm5049_vm11, %v6082_v33  ;;  %vm7034_vm4 = vmmov %vm7013_vm2  ;;  %3375 = vperm.xlu1 %4468, %v5793_v51  }
 0x3cf   : > { %2906 = vmatpush1.bf16.msra.mxu1 %v7024_v57  ;;  %v2191_v12 = vsel %vm7026_vm15, %v4421_v60, %v6918_v2  ;;  %v2192_v58 = vsel %vm7027_vm8, %v4422_v11, %v6919_v21  ;;  %v6111_v60 = vpack.c.bf16 %v2200_v52, %v2199_v44  ;;  %v7030_v2 = vunpack.i.h.bf16 %v5924_v5  ;;  %vm7038_vm15 = vmmov %vm7013_vm2 }
 0x3d0   : > { %2907 = vmatprep.subr.bf16.mxu1 %v5670_v61  ;;  %v4450_v46 = vpop.permute.xlu1 %4449  ;;  %v6107_v33 = vpack.c.bf16 %v2192_v58, %v2191_v12  ;;  %v4435_v15 = vpop.permute.xlu0 %4434  ;;  %v7032_v21 = vunpack.i.l.bf16 %v5924_v5  ;;  %v7037_v58 = vunpack.i.h.bf16 %v6003_v59  ;;  %vm7040_vm8 = vmmov %vm7013_vm2 }
 0x3d1   : > { %v4452_v53 = vunpack.i.h.bf16 %v4450_v46  ;;  %v4451_v0 = vunpack.i.l.bf16 %v4450_v46  ;;  %v4437_v38 = vunpack.i.h.bf16 %v4435_v15  ;;  %v4436_v10 = vunpack.i.l.bf16 %v4435_v15  ;;  %7029 = vst [vmem:[#allocation25_spill] sm:$0xff] %v6111_v60 }
 0x3d2   : > { %7028 = vst [vmem:[#allocation17_spill] sm:$0xff] %v6107_v33  ;;  %3819 = vmatprep.subr.msk.bf16.mxu0 %vm5008_vm9, %v6107_v33  ;;  %3383 = vperm.xlu1 %4468, %v5815_v41  }
 0x3d3   : > { %v2172_v11 = vsel %vm7031_vm5, %v4452_v53, %v7030_v2  ;;  %v2171_v12 = vsel %vm7033_vm12, %v4451_v0, %v7032_v21  ;;  %v2193_v46 = vsel %vm7013_vm2, %v4436_v10, %v4446_v49  ;;  %v2194_v15 = vsel %vm7034_vm4, %v4437_v38, %v4447_v31  ;;  %2908 = vmatpush1.bf16.msra.mxu1 %v5618_v22  ;;  %vm7041_vm5 = vmmov %vm7013_vm2 }
 0x3d4   : > { %v6129_v28 = vpack.c.bf16 %v2194_v15, %v2193_v46  ;;  %v6131_v44 = vpack.c.bf16 %v2172_v11, %v2171_v12  ;;  %3822 = vmatpush1.bf16.msk.msra.mxu0 %vm5049_vm11, %v6111_v60  ;;  %2909 = vmatprep.subr.bf16.mxu1 %v5668_v45  ;;  %v4440_v5 = vpop.permute.xlu0 %4439  ;;  %v4460_v52 = vpop.permute.xlu1 %4459  ;;  %v2180_v33 = vsel %vm7038_vm15, %v7037_v58, %v4452_v53  ;;  %v7039_v46 = vunpack.i.l.bf16 %v6003_v59  ;;  %vm7042_vm12 = vmmov %vm7013_vm2  ;;  %v7065_v59 = vld [vmem:[#allocation14_spill] sm:$0xff] }
 0x3d5   : > { %v4442_v2 = vunpack.i.h.bf16 %v4440_v5  ;;  %v4441_v21 = vunpack.i.l.bf16 %v4440_v5  ;;  %v4462_v53 = vunpack.i.h.bf16 %v4460_v52  ;;  %v4461_v58 = vunpack.i.l.bf16 %v4460_v52  ;;  %vm7047_vm4 = vmmov %vm7013_vm2 }
 0x3d6   : > { %7035 = vst [vmem:[#allocation26_spill] sm:$0xff] %v6129_v28  ;;  %7036 = vst [vmem:[#allocation27_spill] sm:$0xff] %v6131_v44  ;;  %v2179_v11 = vsel %vm7040_vm8, %v7039_v46, %v4451_v0  ;;  %3825 = vmatprep.subr.msk.bf16.mxu0 %vm5008_vm9, %v6129_v28  ;;  %v7046_v52 = vunpack.i.l.bf16 %v6061_v54 }
 0x3d7   : > { %v2201_v12 = vsel %vm7041_vm5, %v4441_v21, %v4436_v10  ;;  %v2202_v15 = vsel %vm7042_vm12, %v4442_v2, %v4437_v38  ;;  %2910 = vmatpush1.bf16.msra.mxu1 %v5645_v35  ;;  %v6158_v46 = vpack.c.bf16 %v2180_v33, %v2179_v11  ;;  %v7045_v10 = vunpack.i.h.bf16 %v6061_v54  ;;  %vm7049_vm15 = vmmov %vm7013_vm2 }
 0x3d8   : > { %v6153_v5 = vpack.c.bf16 %v2202_v15, %v2201_v12  ;;  %3955 = vmatprep.subr.msk.bf16.mxu1 %vm5259_vm10, %v6131_v44  ;;  %v4455_v0 = vpop.permute.xlu0 %4454  ;;  %v7048_v15 = vunpack.i.l.bf16 %v5989_v62  ;;  %v7050_v11 = vunpack.i.h.bf16 %v5989_v62  ;;  %vm7051_vm8 = vmmov %vm7013_vm2  ;;  %v4543_v44 = vld [vmem:[%s6850_s5 + $0x28] ss:$20 sps:$4 sm:$0xff]  }
 0x3d9   : > { %v4457_v60 = vunpack.i.h.bf16 %v4455_v0  ;;  %v4456_v28 = vunpack.i.l.bf16 %v4455_v0  ;;  %vm7055_vm5 = vmmov %vm7013_vm2 }
 0x3da   : > { %7043 = vst [vmem:[#allocation28_spill] sm:$0xff] %v6153_v5  ;;  %3828 = vmatpush1.bf16.msk.msra.mxu0 %vm5049_vm11, %v6153_v5  ;;  %vm7053_vm11 = vmmov %vm7013_vm2 }
 0x3db   : > { %v2174_v38 = vsel %vm7013_vm2, %v4457_v60, %v7045_v10  ;;  %v2173_v12 = vsel %vm7047_vm4, %v4456_v28, %v7046_v52  ;;  %v2181_v33 = vsel %vm7049_vm15, %v7048_v15, %v4456_v28  ;;  %v2182_v43 = vsel %vm7051_vm8, %v7050_v11, %v4457_v60  ;;  %3958 = vmatpush1.bf16.msk.msra.mxu1 %vm5287_vm7, %v6158_v46  ;;  %vm7059_vm12 = vmmov %vm7013_vm2 }
 0x3dc   : > { %v2175_v54 = vsel %vm7053_vm11, %v4461_v58, %v4431_v4  ;;  %v7054_v10 = vunpack.i.h.bf16 %v6057_v27  ;;  %v6188_v5 = vpack.c.bf16 %v2182_v43, %v2181_v33  ;;  %v6190_v28 = vpack.c.bf16 %v2174_v38, %v2173_v12  ;;  %3831 = vmatprep.subr.msk.bf16.mxu0 %vm5113_vm14, %v5927_v13  ;;  %v4465_v60 = vpop.permute.xlu0 %4464  ;;  %vm7061_vm4 = vmmov %vm7013_vm2 }
 0x3dd   : > { %v4467_v15 = vunpack.i.h.bf16 %v4465_v60  ;;  %v4466_v11 = vunpack.i.l.bf16 %v4465_v60  ;;  %v7058_v4 = vunpack.i.h.bf16 %v6084_v6  ;;  %v7060_v38 = vunpack.i.l.bf16 %v6084_v6  ;;  %vm7062_vm15 = vmmov %vm7013_vm2  ;;  %v7068_v60 = vld [vmem:[#allocation23_spill] sm:$0xff] }
 0x3de   : > { %v2176_v52 = vsel %vm7055_vm5, %v4462_v53, %v7054_v10  ;;  %3834 = vmatpush1.bf16.msk.msra.mxu0 %vm5140_vm0, %v5808_v56  ;;  %3961 = vmatprep.subr.msk.bf16.mxu1 %vm5259_vm10, %v6190_v28  ;;  %vm7063_vm8 = vmmov %vm7013_vm2  ;;  %v7078_v30 = vld [vmem:[#allocation27_spill] sm:$0xff] }
 0x3df   : > { %v2184_v27 = vsel %vm7059_vm12, %v7058_v4, %v4462_v53  ;;  %v2183_v12 = vsel %vm7013_vm2, %v7060_v38, %v4461_v58  ;;  %v6209_v33 = vpack.c.bf16 %v2176_v52, %v2175_v54  ;;  %3837 = vmatprep.subr.msk.bf16.mxu0 %vm5113_vm14, %v5934_v48  ;;  %v2177_v43 = vsel %vm7061_vm4, %v4466_v11, %v4441_v21  ;;  %vm7064_vm11 = vmmov %vm7013_vm2  ;;  %v7066_v54 = vld [vmem:[#allocation20_spill] sm:$0xff]  ;;  %v4552_v38 = vld [vmem:[%s6850_s5 + $0xc] ss:$20 sps:$4 sm:$0xff]  }
 0x3e0   : > { %v2178_v10 = vsel %vm7062_vm15, %v4467_v15, %v4442_v2  ;;  %3964 = vmatpush1.bf16.msk.msra.mxu1 %vm5287_vm7, %v6188_v5  ;;  %v6224_v6 = vpack.c.bf16 %v2184_v27, %v2183_v12  ;;  %v2185_v21 = vsel %vm7063_vm8, %v4446_v49, %v4466_v11  ;;  %v2186_v2 = vsel %vm7064_vm11, %v4447_v31, %v4467_v15  ;;  %v4538_v49 = vld [vmem:[%s6850_s5] ss:$20 sps:$4 sm:$0xff]   ;;  %v7067_v52 = vld [vmem:[#allocation16_spill] sm:$0xff]  ;;  %v7071_v11 = vld [vmem:[#allocation18_spill] sm:$0xff] }
 0x3e1   : > { %3967 = vmatprep.subr.msk.bf16.mxu1 %vm5259_vm10, %v6209_v33  ;;  %v6233_v53 = vpack.c.bf16 %v2178_v10, %v2177_v43  ;;  %v6244_v58 = vpack.c.bf16 %v2186_v2, %v2185_v21  ;;  %v4541_v31 = vld [vmem:[%s6850_s5 + $0x2c] ss:$20 sps:$4 sm:$0xff]   ;;  %v7072_v27 = vld [vmem:[#allocation24_spill] sm:$0xff]  ;;  %v7073_v12 = vld [vmem:[#allocation19_spill] sm:$0xff] }
 0x3e2   : > { %3840 = vmatpush1.bf16.msk.msra.mxu0 %vm5140_vm0, %v5830_v34  ;;  %v4549_v4 = vld [vmem:[%s6850_s5 + $0x78] ss:$20 sps:$4 sm:$0xff]   ;;  %v7074_v43 = vld [vmem:[#allocation17_spill] sm:$0xff] }
 0x3e3   : > { %3843 = vmatprep.subr.msk.bf16.mxu0 %vm5113_vm14, %v5966_v23  ;;  %v7075_v10 = vld [vmem:[#allocation22_spill] sm:$0xff] }
 0x3e4   : > { %3970 = vmatpush1.bf16.msk.msra.mxu1 %vm5287_vm7, %v6224_v6  ;;  %v7077_v2 = vld [vmem:[#allocation26_spill] sm:$0xff] }
 0x3e5   : > { %3973 = vmatprep.subr.msk.bf16.mxu1 %vm5259_vm10, %v6233_v53 }
 0x3e6   : > { %3846 = vmatpush1.bf16.msk.msra.mxu0 %vm5140_vm0, %v5852_v9 }
 0x3e7   : > { %3849 = vmatprep.subr.msk.bf16.mxu0 %vm5113_vm14, %v6033_v36 }
 0x3e8   : > { %3976 = vmatpush1.bf16.msk.msra.mxu1 %vm5287_vm7, %v6244_v58 }
 0x3e9   : > { %3979 = vmatprep.subr.msk.bf16.mxu1 %vm5161_vm3, %v5922_v8 }
 0x3ea   : > { %3852 = vmatpush1.bf16.msk.msra.mxu0 %vm5140_vm0, %v5878_v29 }
 0x3eb   : > { %2749 = vmatprep.subr.bf16.mxu0 %v7020_v18 }
 0x3ec   : > { %3982 = vmatpush1.bf16.msk.msra.mxu1 %vm5173_vm6, %v5920_v7 }
 0x3ed   : > { %3985 = vmatprep.subr.msk.bf16.mxu1 %vm5161_vm3, %v5890_v1  ;;  %2709 = vmatmul.mubr.bf16.vlgmr.msra.gmra.mrb[24].mxu0 %v4538_v49 }
 0x3ee   : > { %2750 = vmatpush1.bf16.msra.mxu0 %v5532_v3  ;;  %2718 = vmatprep.mubr.bf16.mxu0 %v4541_v31  ;;  %v4544_v3 = vld [vmem:[%s6850_s5 + $0x54] ss:$20 sps:$4 sm:$0xff]  }
 0x3ef   : > { %2751 = vmatprep.subr.bf16.mxu0 %v7024_v57 }
 0x3f0   : > { %3988 = vmatpush1.bf16.msk.msra.mxu1 %vm5173_vm6, %v5929_v25 }
 0x3f1   : > { %3991 = vmatprep.subr.msk.bf16.mxu1 %vm5161_vm3, %v5962_v42 }
 0x3f2   : > { %2752 = vmatpush1.bf16.msra.mxu0 %v5570_v39  ;;  %v4635_v39 = vmov 2  }
 0x3f3   : > { %2753 = vmatprep.subr.bf16.mxu0 %v5618_v22  ;;  %4470 = vset.pattern.permute.xlu0 %v4635_v39 }
 0x3f4   : > { %3994 = vmatpush1.bf16.msk.msra.mxu1 %vm5173_vm6, %v5960_v55  ;;  %3403 = vperm.xlu0 %4470, %v5747_v20  }
 0x3f5   : > { %3997 = vmatprep.subr.msk.bf16.mxu1 %vm5161_vm3, %v5999_v24  ;;  %2719 = vmatmul.mubr.bf16.gmra.mrb[28].mxu0 %v4543_v44 }
 0x3f6   : > { %2754 = vmatpush1.bf16.msra.mxu0 %v5608_v14  ;;  %2728 = vmatprep.mubr.bf16.mxu0 %v4544_v3  ;;  %v4547_v14 = vld [vmem:[%s6850_s5 + $0x7c] ss:$20 sps:$4 sm:$0xff]  }
 0x3f7   : > { %2755 = vmatprep.subr.bf16.mxu0 %v5645_v35  ;;  %4471 = vset.pattern.permute.xlu1 %v4635_v39 }
 0x3f8   : > { %4000 = vmatpush1.bf16.msk.msra.mxu1 %vm5173_vm6, %v6001_v37  ;;  %3407 = vperm.xlu1 %4471, %v5770_v40  }
 0x3f9   : > { %2968 = vmatprep.subr.bf16.mxu1 %v7065_v59  ;;  %3415 = vperm.xlu0 %4470, %v5782_v26  }
 0x3fa   : > { %2756 = vmatpush1.bf16.msra.mxu0 %v5643_v63  ;;  %v7070_v63 = vld [vmem:[#allocation21_spill] sm:$0xff] }
 0x3fb   : > { %3855 = vmatprep.subr.msk.bf16.mxu0 %vm5008_vm9, %v6158_v46  ;;  %2928 = vmatmul.mubr.bf16.vlgmr.msra.gmra.mrb[32].mxu1 %v4538_v49  ;;  %v7079_v49 = vld [vmem:[#allocation15_spill] sm:$0xff] }
 0x3fc   : > { %2969 = vmatpush1.bf16.msra.mxu1 %v7066_v54  ;;  %2937 = vmatprep.mubr.bf16.mxu1 %v4541_v31  ;;  %v7080_v31 = vld [vmem:[#allocation10_spill] sm:$0xff] }
 0x3fd   : > { %2970 = vmatprep.subr.bf16.mxu1 %v7067_v52  ;;  %2729 = vmatmul.mubr.bf16.gmra.mrb[32].mxu0 %v4546_v50  ;;  %vm7081_vm0 = vnez %v7080_v31 }
 0x3fe   : > { %3858 = vmatpush1.bf16.msk.msra.mxu0 %vm5267_vm1, %v7068_v60  ;;  %2738 = vmatprep.mubr.bf16.mxu0 %v4547_v14 }
 0x3ff   : > { %3861 = vmatprep.subr.msk.bf16.mxu0 %vm5008_vm9, %v6188_v5  ;;  %3411 = vperm.xlu1 %4471, %v5756_v17  }
 0x400   : > { %2971 = vmatpush1.bf16.msra.mxu1 %v7070_v63  ;;  %3423 = vperm.xlu0 %4470, %v5793_v51  }
 0x401   : > { %2972 = vmatprep.subr.bf16.mxu1 %v7071_v11 }
 0x402   : > { %3864 = vmatpush1.bf16.msk.msra.mxu0 %vm5267_vm1, %v7072_v27 }
 0x403   : > { %3867 = vmatprep.subr.msk.bf16.mxu0 %vm5008_vm9, %v6224_v6  ;;  %2938 = vmatmul.mubr.bf16.gmra.mrb[36].mxu1 %v4543_v44 }
 0x404   : > { %2973 = vmatpush1.bf16.msra.mxu1 %v5670_v61  ;;  %2947 = vmatprep.mubr.bf16.mxu1 %v4544_v3 }
 0x405   : > { %2974 = vmatprep.subr.bf16.mxu1 %v7073_v12  ;;  %2739 = vmatmul.mubr.bf16.gmra.mrb[36].mxu0 %v4549_v4 }
 0x406   : > { %3870 = vmatpush1.bf16.msk.msra.mxu0 %vm5267_vm1, %v7074_v43  ;;  %2781 = vmatprep.mubr.bf16.mxu0 %v4552_v38 }
 0x407   : > { %3873 = vmatprep.subr.msk.bf16.mxu0 %vm5008_vm9, %v6244_v58  ;;  %3419 = vperm.xlu1 %4471, %v5765_v19  }
 0x408   : > { %2975 = vmatpush1.bf16.msra.mxu1 %v5668_v45  ;;  %3431 = vperm.xlu0 %4470, %v5815_v41  }
 0x409   : > { %4003 = vmatprep.subr.msk.bf16.mxu1 %vm5371_vm13, %v7075_v10 }
 0x40a   : > { %3876 = vmatpush1.bf16.msk.msra.mxu0 %vm5267_vm1, %v7077_v2 }
 0x40b   : > { %3879 = vmatprep.subr.msk.bf16.mxu0 %vm5113_vm14, %v5920_v7  ;;  %2948 = vmatmul.mubr.bf16.gmra.mrb[40].mxu1 %v4546_v50  ;;  %v7082_v7 = vld [vmem:[#allocation25_spill] sm:$0xff] }
 0x40c   : > { %4006 = vmatpush1.bf16.msk.msra.mxu1 %vm5287_vm7, %v7078_v30  ;;  %2957 = vmatprep.mubr.bf16.mxu1 %v4547_v14 }
 0x40d   : > { %4009 = vmatprep.subr.msk.bf16.mxu1 %vm5371_vm13, %v7079_v49  ;;  %3427 = vperm.xlu1 %4471, %v5777_v32  }
 0x40e   : > { %3882 = vmatpush1.bf16.msk.msra.mxu0 %vm7081_vm0, %v5927_v13  ;;  %v4636_v13 = vmov 3  }
 0x40f   : > { %3885 = vmatprep.subr.msk.bf16.mxu0 %vm5113_vm14, %v5929_v25  ;;  %4473 = vset.pattern.permute.xlu0 %v4636_v13  ;;  %v7083_v25 = vld [vmem:[#allocation28_spill] sm:$0xff] }
 0x410   : > { %4012 = vmatpush1.bf16.msk.msra.mxu1 %vm5287_vm7, %v6190_v28  ;;  %3455 = vperm.xlu0 %4473, %v5770_v40   ;;  %v7089_v40 = vmov 0  }
 0x411   : > { %4015 = vmatprep.subr.msk.bf16.mxu1 %vm5371_vm13, %v7082_v7  ;;  %4472 = vset.pattern.permute.xlu1 %v4636_v13 }
 0x412   : > { %3888 = vmatpush1.bf16.msk.msra.mxu0 %vm7081_vm0, %v5934_v48  ;;  %3451 = vperm.xlu1 %4472, %v5747_v20   ;;  %v7084_v48 = vld [vmem:[#allocation12_spill] sm:$0xff]  ;;  %v7086_v20 = vmov 0.0|0.0  }
 0x413   : > { %3891 = vmatprep.subr.msk.bf16.mxu0 %vm5113_vm14, %v5960_v55  ;;  %2958 = vmatmul.mubr.bf16.gmra.mrb[44].mxu1 %v4549_v4  ;;  %vm7085_vm3 = vnez %v7084_v48 }
 0x414   : > { %4018 = vmatpush1.bf16.msk.msra.mxu1 %vm5287_vm7, %v6209_v33  ;;  %3000 = vmatprep.mubr.bf16.mxu1 %v4552_v38 }
 0x415   : > { %4021 = vmatprep.subr.msk.bf16.mxu1 %vm5371_vm13, %v7083_v25  ;;  %3467 = vperm.xlu0 %4473, %v5765_v19   ;;  %v4559_v19 = vld [vmem:[%s6850_s5 + $0x84] ss:$20 sps:$4 sm:$0xff]  }
 0x416   : > { %3894 = vmatpush1.bf16.msk.msra.mxu0 %vm7081_vm0, %v5966_v23  ;;  %3459 = vperm.xlu1 %4472, %v5756_v17   ;;  %v4558_v17 = vld [vmem:[%s6850_s5 + $0x58] ss:$20 sps:$4 sm:$0xff]  }
 0x417   : > { %3897 = vmatprep.subr.msk.bf16.mxu0 %vm5113_vm14, %v6001_v37 }
 0x418   : > { %4024 = vmatpush1.bf16.msk.msra.mxu1 %vm5287_vm7, %v6233_v53 }
 0x419   : > { %4027 = vmatprep.subr.msk.bf16.mxu1 %vm7085_vm3, %v5808_v56  ;;  %3475 = vperm.xlu0 %4473, %v5777_v32   ;;  %v4562_v32 = vld [vmem:[%s6850_s5 + $0x10] ss:$20 sps:$4 sm:$0xff]   ;;  %v4565_v56 = vld [vmem:[%s6850_s5 + $0x88] ss:$20 sps:$4 sm:$0xff]  }
 0x41a   : > { %3900 = vmatpush1.bf16.msk.msra.mxu0 %vm7081_vm0, %v6033_v36  ;;  %3463 = vperm.xlu1 %4472, %v5782_v26   ;;  %v4563_v26 = vld [vmem:[%s6850_s5 + $0x38] ss:$20 sps:$4 sm:$0xff]  }
 0x41b   : > { %2773 = vmatprep.subr.bf16.mxu0 %v7066_v54 }
 0x41c   : > { %4030 = vmatpush1.bf16.msk.msra.mxu1 %vm5173_vm6, %v5922_v8 }
 0x41d   : > { %4033 = vmatprep.subr.msk.bf16.mxu1 %vm7085_vm3, %v5830_v34 }
 0x41e   : > { %2774 = vmatpush1.bf16.msra.mxu0 %v7020_v18  ;;  %3471 = vperm.xlu1 %4472, %v5793_v51   ;;  %v4564_v51 = vld [vmem:[%s6850_s5 + $0x60] ss:$20 sps:$4 sm:$0xff]  }
 0x41f   : > { %2775 = vmatprep.subr.bf16.mxu0 %v7070_v63 }
 0x420   : > { %4036 = vmatpush1.bf16.msk.msra.mxu1 %vm5173_vm6, %v5890_v1 }
 0x421   : > { %4039 = vmatprep.subr.msk.bf16.mxu1 %vm7085_vm3, %v5852_v9 }
 0x422   : > { %2776 = vmatpush1.bf16.msra.mxu0 %v7024_v57  ;;  %3479 = vperm.xlu1 %4472, %v5815_v41   ;;  %v6551_v41 = vpop.permute.xlu1 %3116 }
 0x423   : > { %2777 = vmatprep.subr.bf16.mxu0 %v5670_v61  ;;  %v4550_v61 = vld [vmem:[%s6850_s5 + $0x8] ss:$20 sps:$4 sm:$0xff]  }
 0x424   : > { %4042 = vmatpush1.bf16.msk.msra.mxu1 %vm5173_vm6, %v5962_v42 }
 0x425   : > { %4045 = vmatprep.subr.msk.bf16.mxu1 %vm7085_vm3, %v5878_v29  ;;  %v6557_v29 = vpop.permute.xlu0 %3121 }
 0x426   : > { %2778 = vmatpush1.bf16.msra.mxu0 %v5618_v22  ;;  %v4553_v22 = vld [vmem:[%s6850_s5 + $0x34] ss:$20 sps:$4 sm:$0xff]   ;;  %v6553_v34 = vpop.permute.xlu1 %3126 }
 0x427   : > { %2779 = vmatprep.subr.bf16.mxu0 %v5668_v45  ;;  %v7087_v45 = vld [vmem:[#allocation13_spill] sm:$0xff] }
 0x428   : > { %4048 = vmatpush1.bf16.msk.msra.mxu1 %vm5173_vm6, %v5999_v24  ;;  %vm7088_vm14 = vnez %v7087_v45 }
 0x429   : > { %2992 = vmatprep.subr.bf16.mxu1 %v7086_v20  ;;  %v6561_v8 = vpop.permute.xlu0 %3131 }
 0x42a   : > { %2780 = vmatpush1.bf16.msra.mxu0 %v5645_v35  ;;  %v4556_v35 = vld [vmem:[%s6850_s5 + $0x5c] ss:$20 sps:$4 sm:$0xff]   ;;  %v6555_v9 = vpop.permute.xlu1 %3136 }
 0x42b   : > { %3903 = vmatprep.subr.msk.bf16.mxu0 %vm5008_vm9, %v7078_v30 }
 0x42c   : > { %2993 = vmatpush1.bf16.msra.mxu1 %v7065_v59 }
 0x42d   : > { %2782 = vmatmul.mubr.bf16.vlgmr.msra.gmra.mrb[24].mxu0 %v4550_v61  ;;  %2994 = vmatprep.subr.bf16.mxu1 %v7086_v20  ;;  %v6565_v42 = vpop.permute.xlu0 %3141 }
 0x42e   : > { %3906 = vmatpush1.bf16.msk.msra.mxu0 %vm5267_vm1, %v6158_v46  ;;  %2791 = vmatprep.mubr.bf16.mxu0 %v4553_v22  ;;  %v6559_v1 = vpop.permute.xlu1 %3146 }
 0x42f   : > { %3909 = vmatprep.subr.msk.bf16.mxu0 %vm5008_vm9, %v6190_v28 }
 0x430   : > { %2995 = vmatpush1.bf16.msra.mxu1 %v7067_v52 }
 0x431   : > { %2996 = vmatprep.subr.bf16.mxu1 %v7086_v20  ;;  %v6569_v24 = vpop.permute.xlu0 %3151 }
 0x432   : > { %3912 = vmatpush1.bf16.msk.msra.mxu0 %vm5267_vm1, %v6188_v5  ;;  %v6563_v55 = vpop.permute.xlu1 %3188 }
 0x433   : > { %3915 = vmatprep.subr.msk.bf16.mxu0 %vm5008_vm9, %v6209_v33 }
 0x434   : > { %2997 = vmatpush1.bf16.msra.mxu1 %v7071_v11 }
 0x435   : > { %2792 = vmatmul.mubr.bf16.gmra.mrb[28].mxu0 %v4555_v47  ;;  %2998 = vmatprep.subr.bf16.mxu1 %v7086_v20  ;;  %v6573_v36 = vpop.permute.xlu0 %3193 }
 0x436   : > { %3918 = vmatpush1.bf16.msk.msra.mxu0 %vm5267_vm1, %v6224_v6  ;;  %2801 = vmatprep.mubr.bf16.mxu0 %v4556_v35  ;;  %v6567_v23 = vpop.permute.xlu1 %3198 }
 0x437   : > { %3921 = vmatprep.subr.msk.bf16.mxu0 %vm5008_vm9, %v6233_v53  ;;  %vm2663_vm9 = vcmask 523264  }
 0x438   : > { %2999 = vmatpush1.bf16.msra.mxu1 %v7073_v12 }
 0x439   : > { %4098 = vmatprep.subr.msk.bf16.mxu1 %vm7088_vm14, %v7075_v10  ;;  %v6577_v57 = vpop.permute.xlu0 %3203 }
 0x43a   : > { %3924 = vmatpush1.bf16.msk.msra.mxu0 %vm5267_vm1, %v6244_v58  ;;  %v6571_v37 = vpop.permute.xlu1 %3208 }
 0x43b   : > { %3001 = vmatmul.mubr.bf16.vlgmr.msra.gmra.mrb[32].mxu1 %v4550_v61 }
 0x43c   : > { %4099 = vmatpush3.bf16.msk.msra.mxu1 %vm7088_vm14, %v7075_v10  ;;  %3010 = vmatprep.mubr.bf16.mxu1 %v4553_v22 }
 0x43d   : > { %4100 = vmatprep.subr.msk.bf16.mxu1 %vm7088_vm14, %v7079_v49  ;;  %2802 = vmatmul.mubr.bf16.gmra.mrb[32].mxu0 %v4558_v17  ;;  %v6581_v46 = vpop.permute.xlu0 %3213 }
 0x43e   : > { %2811 = vmatprep.mubr.bf16.mxu0 %v4559_v19  ;;  %v6575_v18 = vpop.permute.xlu1 %3218 }
 0x43f   : > { %7090 = vst [vmem:[#allocation7_spill] sm:$0xff] %v6575_v18 }
 0x440   : > { %4101 = vmatpush3.bf16.msk.msra.mxu1 %vm7088_vm14, %v7079_v49 }
 0x441   : > { %4102 = vmatprep.subr.msk.bf16.mxu1 %vm7088_vm14, %v7082_v7  ;;  %v6585_v28 = vpop.permute.xlu0 %3223 }
 0x442   : > { %v6579_v5 = vpop.permute.xlu1 %3300  ;;  %7091 = vst [vmem:[#allocation9_spill] sm:$0xff] %v6585_v28 }
 0x443   : > { %3011 = vmatmul.mubr.bf16.gmra.mrb[36].mxu1 %v4555_v47 }
 0x444   : > { %4103 = vmatpush3.bf16.msk.msra.mxu1 %vm7088_vm14, %v7082_v7  ;;  %3020 = vmatprep.mubr.bf16.mxu1 %v4556_v35 }
 0x445   : > { %4104 = vmatprep.subr.msk.bf16.mxu1 %vm7088_vm14, %v7083_v25  ;;  %2812 = vmatmul.mubr.bf16.gmra.mrb[36].mxu0 %v4561_v16  ;;  %v6589_v33 = vpop.permute.xlu0 %3305 }
 0x446   : > { %2854 = vmatprep.mubr.bf16.mxu0 %v7089_v40  ;;  %v6583_v0 = vpop.permute.xlu1 %3310 }
 0x448   : > { %4105 = vmatpush3.bf16.msk.msra.mxu1 %vm7088_vm14, %v7083_v25 }
 0x449   : > { %v6595_v58 = vpop.permute.xlu0 %3315 }
 0x44a   : > { %v6587_v62 = vpop.permute.xlu1 %3320 }
 0x44b   : > { %3021 = vmatmul.mubr.bf16.gmra.mrb[40].mxu1 %v4558_v17 }
 0x44c   : > { %3030 = vmatprep.mubr.bf16.mxu1 %v4559_v19 }
 0x44d   : > { %3925 = vmatmul.mubr.msk.bf16.vlgmr.msra.gmra.mrb[24].mxu0 %vm2663_vm9, %v4562_v32  ;;  %v6599_v3 = vpop.permute.xlu0 %3325 }
 0x44e   : > { %2864 = vmatprep.mubr.bf16.mxu0 %v7089_v40  ;;  %v6591_v6 = vpop.permute.xlu1 %3330 }
 0x44f   : > { %7092 = vst [vmem:[#allocation5_spill] sm:$0xff] %v6591_v6 }
 0x451   : > { %v6603_v59 = vpop.permute.xlu0 %3335 }
 0x452   : > { %v6593_v53 = vpop.permute.xlu1 %3355  ;;  %7093 = vst [vmem:[#allocation6_spill] sm:$0xff] %v6603_v59 }
 0x453   : > { %3031 = vmatmul.mubr.bf16.gmra.mrb[44].mxu1 %v4561_v16 }
 0x454   : > { %4106 = vmatprep.mubr.msk.bf16.mxu1 %vm2663_vm9, %v4562_v32 }
 0x455   : > { %3926 = vmatmul.mubr.msk.bf16.gmra.mrb[28].mxu0 %vm2663_vm9, %v4563_v26  ;;  %v6605_v50 = vpop.permute.xlu0 %3359 }
 0x456   : > { %2874 = vmatprep.mubr.bf16.mxu0 %v7089_v40  ;;  %v6597_v44 = vpop.permute.xlu1 %3363 }
 0x459   : > { %v6609_v54 = vpop.permute.xlu0 %3371 }
 0x45a   : > { %v6601_v39 = vpop.permute.xlu1 %3367 }
 0x45b   : > { %4107 = vmatmul.mubr.msk.bf16.vlgmr.msra.gmra.mrb[48].mxu1 %vm2663_vm9, %v4563_v26 }
 0x45c   : > { %4110 = vmatprep.mubr.msk.bf16.mxu1 %vm2663_vm9, %v4564_v51 }
 0x45d   : > { %3927 = vmatmul.mubr.msk.bf16.gmra.mrb[32].mxu0 %vm2663_vm9, %v4564_v51  ;;  %v6613_v60 = vpop.permute.xlu0 %3379 }
 0x45e   : > { %2884 = vmatprep.mubr.bf16.mxu0 %v7089_v40  ;;  %v6607_v14 = vpop.permute.xlu1 %3375  ;;  %7095 = vst [vmem:[#allocation20_spill] sm:$0xff] %v6613_v60 }
 0x462   : > { %v6611_v52 = vpop.permute.xlu1 %3383 }
 0x463   : > { %4111 = vmatmul.mubr.msk.bf16.gmra.mrb[52].mxu1 %vm2663_vm9, %v4565_v56  ;;  %7094 = vst [vmem:[#allocation14_spill] sm:$0xff] %v6611_v52 }
 0x465   : > { %3928 = vmatmul.mubr.msk.bf16.gmra.mrb[36].mxu0 %vm2663_vm9, %v4565_v56 }
 0x473   : > { %v6617_v63 = vpop.permute.xlu0 %3403 }
 0x477   : > { %v6615_v15 = vpop.permute.xlu1 %3407 }
 0x478   : > { %v6625_v43 = vpop.permute.xlu0 %3415 }
 0x47e   : > { %v6619_v11 = vpop.permute.xlu1 %3411 }
 0x47f   : > { %v6631_v30 = vpop.permute.xlu0 %3423 }
 0x480   : > { %7097 = vst [vmem:[#allocation23_spill] sm:$0xff] %v6631_v30 }
 0x486   : > { %v6627_v10 = vpop.permute.xlu1 %3419 }
 0x487   : > { %7096 = vst [vmem:[#allocation16_spill] sm:$0xff] %v6627_v10  ;;  %v6640_v20 = vpop.permute.xlu0 %3431 }
 0x488   : > { %7099 = vst [vmem:[#allocation21_spill] sm:$0xff] %v6640_v20 }
 0x48c   : > { %v6636_v7 = vpop.permute.xlu1 %3427 }
 0x48d   : > { %7098 = vst [vmem:[#allocation8_spill] sm:$0xff] %v6636_v7 }
 0x491   : > { %v3452_v22 = vpop.permute.xlu1 %3451 }
 0x495   : > { %v3460_v7 = vpop.permute.xlu1 %3459 }
 0x50e   : > { %v6621_v4 = vpop.f32.mrb[32].mxu1 }
 0x50f   : > { %v3004_v27 = vpop.f32.mrb[33].mxu1 }
 0x510   : > { %v6623_v38 = vpop.f32.mrb[34].mxu1  ;;  %v3157_v35 = vmul.f32 %v6551_v41, %v3004_v27 }
 0x511   : > { %v3008_v12 = vpop.f32.mrb[35].mxu1 }
 0x512   : > { %v3161_v45 = vmul.f32 %v6557_v29, %v3008_v12 }
 0x514   : > { %v3233_v27 = vadd.f32 %v6573_v36, %v3161_v45  ;;  %v3456_v45 = vpop.permute.xlu0 %3455 }
 0x516   : > { %v6629_v21 = vpop.f32.mrb[36].mxu1 }
 0x517   : > { %v3014_v2 = vpop.f32.mrb[37].mxu1 }
 0x518   : > { %v3165_v49 = vmul.f32 %v6553_v34, %v3014_v2  ;;  %v6634_v31 = vpop.f32.mrb[38].mxu1 }
 0x519   : > { %v3018_v13 = vpop.f32.mrb[39].mxu1 }
 0x51a   : > { %v3237_v25 = vadd.f32 %v6567_v23, %v3165_v49  ;;  %v3169_v48 = vmul.f32 %v6561_v8, %v3018_v13  ;;  %v3229_v13 = vadd.f32 %v6563_v55, %v3157_v35 }
 0x51c   : > { %v3261_v10 = vmax.f32 %v3229_v13, 0.0  ;;  %v3269_v28 = vmax.f32 %v3237_v25, 0.0 }
 0x51e   : > { %v6642_v61 = vpop.f32.mrb[40].mxu1 }
 0x51f   : > { %v3024_v47 = vpop.f32.mrb[41].mxu1 }
 0x520   : > { %v6646_v17 = vpop.f32.mrb[42].mxu1  ;;  %v2856_v19 = vpop.f32.mrb[24].mxu0  ;;  %v3173_v59 = vmul.f32 %v6555_v9, %v3024_v47 }
 0x521   : > { %7100 = vst [vmem:[#allocation18_spill] sm:$0xff] %v6646_v17  ;;  %v3154_v16 = vmul.f32 %v6551_v41, %v2856_v19  ;;  %v3028_v40 = vpop.f32.mrb[43].mxu1  ;;  %v2858_v32 = vpop.f32.mrb[25].mxu0  ;;  %v3241_v19 = vadd.f32 %v6577_v57, %v3169_v48  ;;  %v3265_v48 = vmax.f32 %v3233_v27, 0.0 }
 0x522   : > { %v3155_v26 = vmul.f32 %v6551_v41, %v2858_v32  ;;  %v2860_v51 = vpop.f32.mrb[26].mxu0  ;;  %v3464_v27 = vpop.permute.xlu1 %3463 }
 0x523   : > { %v3226_v56 = vadd.f32 %v6563_v55, %v3154_v16  ;;  %v3158_v2 = vmul.f32 %v6557_v29, %v2860_v51  ;;  %v2862_v49 = vpop.f32.mrb[27].mxu0  ;;  %v3177_v16 = vmul.f32 %v6565_v42, %v3028_v40  ;;  %v3273_v40 = vmax.f32 %v3241_v19, 0.0 }
 0x524   : > { %v3227_v12 = vadd.f32 %v6563_v55, %v3155_v26  ;;  %v3159_v20 = vmul.f32 %v6557_v29, %v2862_v49 }
 0x525   : > { %v3258_v52 = vmax.f32 %v3226_v56, 0.0  ;;  %v3230_v32 = vadd.f32 %v6573_v36, %v3158_v2 }
 0x526   : > { %v3259_v51 = vmax.f32 %v3227_v12, 0.0  ;;  %v3231_v30 = vadd.f32 %v6573_v36, %v3159_v20  ;;  %v6661_v35 = vpop.f32.mrb[44].mxu1 }
 0x527   : > { %v3338_v26 = vmul.f32 %v6579_v5, %v3258_v52  ;;  %v3262_v60 = vmax.f32 %v3230_v32, 0.0  ;;  %v3034_v49 = vpop.f32.mrb[45].mxu1  ;;  %v6670_v5 = vadd.f32 %v6571_v37, %v3173_v59  ;;  %v6673_v52 = vadd.f32 %v6581_v46, %v3177_v16 }
 0x528   : > { %v3386_v56 = vmul.f32 %v6593_v53, %v3259_v51  ;;  %v3263_v6 = vmax.f32 %v3231_v30, 0.0  ;;  %v6665_v2 = vpop.f32.mrb[46].mxu1  ;;  %v2866_v47 = vpop.f32.mrb[28].mxu0  ;;  %v6681_v32 = vmul.f32 %v3452_v22, %v3261_v10  ;;  %v6683_v59 = vmul.f32 %v3456_v45, %v3265_v48 }
 0x529   : > { %v3339_v12 = vmul.f32 %v6589_v33, %v3262_v60  ;;  %v3162_v20 = vmul.f32 %v6553_v34, %v2866_v47  ;;  %v3038_v17 = vpop.f32.mrb[47].mxu1  ;;  %v2868_v18 = vpop.f32.mrb[29].mxu0  ;;  %v6692_v47 = vmul.f32 %v3464_v27, %v3273_v40  ;;  %v3281_v10 = vmax.f32 %v6673_v52, 0.0 }
 0x52a   : > { %v6675_v13 = vadd.f32 %v3386_v56, %v3338_v26  ;;  %v3387_v53 = vmul.f32 %v6605_v50, %v3263_v6  ;;  %v2870_v30 = vpop.f32.mrb[30].mxu0  ;;  %v3163_v33 = vmul.f32 %v6553_v34, %v2868_v18  ;;  %v6688_v26 = vmul.f32 %v3460_v7, %v3269_v28 }
 0x52b   : > { %v3234_v25 = vadd.f32 %v6567_v23, %v3162_v20  ;;  %v3166_v60 = vmul.f32 %v6561_v8, %v2870_v30  ;;  %v2872_v19 = vpop.f32.mrb[31].mxu0  ;;  %v3277_v18 = vmax.f32 %v6670_v5, 0.0  ;;  %v6703_v40 = vmul.f32 %v6569_v24, %v3038_v17 }
 0x52c   : > { %v6685_v51 = vadd.f32 %v3387_v53, %v3339_v12  ;;  %v3167_v16 = vmul.f32 %v6561_v8, %v2872_v19  ;;  %v3235_v50 = vadd.f32 %v6567_v23, %v3163_v33  ;;  %v6700_v53 = vmul.f32 %v6559_v1, %v3034_v49 }
 0x52d   : > { %v3266_v6 = vmax.f32 %v3234_v25, 0.0  ;;  %v3238_v56 = vadd.f32 %v6577_v57, %v3166_v60 }
 0x52e   : > { %v3239_v22 = vadd.f32 %v6577_v57, %v3167_v16  ;;  %v4108_v45 = vpop.f32.mrb[48].mxu1  ;;  %v3267_v12 = vmax.f32 %v3235_v50, 0.0 }
 0x52f   : > { %v3340_v48 = vmul.f32 %v6583_v0, %v3266_v6  ;;  %v3270_v20 = vmax.f32 %v3238_v56, 0.0  ;;  %v3086_v28 = vadd.f32 %v4108_v45, %v6629_v21  ;;  %v3075_v7 = vpop.f32.mrb[49].mxu1 }
 0x530   : > { %v3271_v30 = vmax.f32 %v3239_v22, 0.0  ;;  %v3076_v27 = vadd.f32 %v3075_v7, %v6621_v4  ;;  %v4109_v25 = vpop.f32.mrb[50].mxu1  ;;  %v2876_v33 = vpop.f32.mrb[32].mxu0  ;;  %v3388_v60 = vmul.f32 %v6597_v44, %v3267_v12 }
 0x531   : > { %v3341_v0 = vmul.f32 %v6595_v58, %v3270_v20  ;;  %v3164_v19 = vmul.f32 %v6553_v34, %v3086_v28  ;;  %v3090_v21 = vadd.f32 %v4109_v25, %v6634_v31  ;;  %v3079_v16 = vpop.f32.mrb[51].mxu1  ;;  %v2878_v49 = vpop.f32.mrb[33].mxu0  ;;  %v3170_v50 = vmul.f32 %v6555_v9, %v2876_v33 }
 0x532   : > { %v3389_v6 = vmul.f32 %v6601_v39, %v3271_v30  ;;  %v3156_v17 = vmul.f32 %v6551_v41, %v3076_v27  ;;  %v3080_v4 = vadd.f32 %v3079_v16, %v6623_v38  ;;  %v2880_v56 = vpop.f32.mrb[34].mxu0  ;;  %v3396_v22 = vadd.f32 %v3388_v60, %v3340_v48 }
 0x533   : > { %v3236_v44 = vadd.f32 %v6567_v23, %v3164_v19  ;;  %v3168_v58 = vmul.f32 %v6561_v8, %v3090_v21  ;;  %v3171_v34 = vmul.f32 %v6555_v9, %v2878_v49  ;;  %v2882_v31 = vpop.f32.mrb[35].mxu0  ;;  %v3242_v41 = vadd.f32 %v6571_v37, %v3170_v50 }
 0x534   : > { %v3397_v45 = vadd.f32 %v3389_v6, %v3341_v0  ;;  %v3228_v39 = vadd.f32 %v6563_v55, %v3156_v17  ;;  %v3160_v12 = vmul.f32 %v6557_v29, %v3080_v4  ;;  %v3174_v23 = vmul.f32 %v6565_v42, %v2880_v56 }
 0x535   : > { %v3268_v20 = vmax.f32 %v3236_v44, 0.0  ;;  %v3240_v38 = vadd.f32 %v6577_v57, %v3168_v58  ;;  %v3243_v48 = vadd.f32 %v6571_v37, %v3171_v34  ;;  %v3274_v28 = vmax.f32 %v3242_v41, 0.0 }
 0x536   : > { %v3260_v8 = vmax.f32 %v3228_v39, 0.0  ;;  %v3232_v7 = vadd.f32 %v6573_v36, %v3160_v12  ;;  %v3175_v30 = vmul.f32 %v6565_v42, %v2882_v31  ;;  %v4112_v27 = vpop.f32.mrb[52].mxu1  ;;  %v3246_v57 = vadd.f32 %v6581_v46, %v3174_v23 }
 0x537   : > { %v3436_v55 = vmul.f32 %v6619_v11, %v3268_v20  ;;  %v3272_v29 = vmax.f32 %v3240_v38, 0.0  ;;  %v3275_v25 = vmax.f32 %v3243_v48, 0.0  ;;  %v3095_v33 = vpop.f32.mrb[53].mxu1  ;;  %v3342_v0 = vmul.f32 %v6587_v62, %v3274_v28  ;;  %v7102_v20 = vld [vmem:[#allocation18_spill] sm:$0xff] }
 0x538   : > { %v3434_v60 = vmul.f32 %v6617_v63, %v3260_v8  ;;  %v3264_v19 = vmax.f32 %v3232_v7, 0.0  ;;  %v3247_v36 = vadd.f32 %v6581_v46, %v3175_v30  ;;  %v4113_v21 = vpop.f32.mrb[54].mxu1  ;;  %v2886_v16 = vpop.f32.mrb[36].mxu0  ;;  %v3278_v11 = vmax.f32 %v3246_v57, 0.0  ;;  %v7103_v30 = vld [vmem:[#allocation9_spill] sm:$0xff] }
 0x539   : > { %v3444_v49 = vadd.f32 %v3436_v55, %v3396_v22  ;;  %v3437_v6 = vmul.f32 %v6625_v43, %v3272_v29  ;;  %v3390_v17 = vmul.f32 %v6609_v54, %v3275_v25  ;;  %v3099_v50 = vpop.f32.mrb[55].mxu1  ;;  %v2888_v4 = vpop.f32.mrb[37].mxu0  ;;  %v3106_v62 = vadd.f32 %v4112_v27, %v6661_v35 }
 0x53a   : > { %v3442_v56 = vadd.f32 %v3434_v60, %v6675_v13  ;;  %v3435_v63 = vmul.f32 %v6615_v15, %v3264_v19  ;;  %v3279_v44 = vmax.f32 %v3247_v36, 0.0  ;;  %v2890_v58 = vpop.f32.mrb[38].mxu0  ;;  %v3343_v43 = vmul.f32 %v6599_v3, %v3278_v11  ;;  %v3468_v29 = vpop.permute.xlu0 %3467  ;;  %v7104_v60 = vld [vmem:[#allocation5_spill] sm:$0xff] }
 0x53b   : > { %v3492_v34 = vadd.f32 %v6688_v26, %v3444_v49  ;;  %v3445_v31 = vadd.f32 %v3437_v6, %v3397_v45  ;;  %v3398_v22 = vadd.f32 %v3390_v17, %v3342_v0  ;;  %v2892_v39 = vpop.f32.mrb[39].mxu0  ;;  %v3180_v13 = vmul.f32 %v6559_v1, %v3106_v62  ;;  %v7101_v26 = vld [vmem:[#allocation7_spill] sm:$0xff]  ;;  %v3472_v57 = vpop.permute.xlu1 %3471  ;;  %v7105_v6 = vld [vmem:[#allocation16_spill] sm:$0xff]  ;;  %v7109_v62 = vld [vmem:[#allocation14_spill] sm:$0xff] }
 0x53c   : > { %v3490_v54 = vadd.f32 %v6681_v32, %v3442_v56  ;;  %v3443_v41 = vadd.f32 %v3435_v63, %v6685_v51  ;;  %v3391_v12 = vmul.f32 %v6607_v14, %v3279_v44  ;;  %v3096_v3 = vadd.f32 %v3095_v33, %v6642_v61  ;;  %v7108_v63 = vld [vmem:[#allocation6_spill] sm:$0xff] }
 0x53d   : > { %3500 = vst [vmem:[%s6747_s24 + $0x10] sm:$0xff] %v3492_v34  ;;  %v3493_v15 = vadd.f32 %v6692_v47, %v3445_v31  ;;  %v3110_v35 = vadd.f32 %v4113_v21, %v6665_v2  ;;  %v3178_v32 = vmul.f32 %v6559_v1, %v2886_v16  ;;  %v3252_v45 = vadd.f32 %v7101_v26, %v3180_v13  ;;  %v7111_v13 = vld [vmem:[#allocation21_spill] sm:$0xff] }
 0x53e   : > { %3498 = vst [vmem:[%s6747_s24] sm:$0xff] %v3490_v54  ;;  %v3491_v14 = vadd.f32 %v6683_v59, %v3443_v41  ;;  %v3399_v51 = vadd.f32 %v3391_v12, %v3343_v43  ;;  %v3100_v38 = vadd.f32 %v3099_v50, %v7102_v20  ;;  %v3172_v48 = vmul.f32 %v6555_v9, %v3096_v3  ;;  %v3476_v11 = vpop.permute.xlu0 %3475  ;;  %v7110_v43 = vld [vmem:[#allocation8_spill] sm:$0xff] }
 0x53f   : > { %3501 = vst [vmem:[%s6747_s24 + $0x18] sm:$0xff] %v3493_v15  ;;  %v3184_v23 = vmul.f32 %v6569_v24, %v3110_v35  ;;  %v3250_v47 = vadd.f32 %v7101_v26, %v3178_v32  ;;  %v3179_v61 = vmul.f32 %v6559_v1, %v2888_v4  ;;  %v3253_v2 = vadd.f32 %v7101_v26, %v6700_v53  ;;  %v7107_v4 = vld [vmem:[#allocation23_spill] sm:$0xff]  ;;  %v3480_v31 = vpop.permute.xlu1 %3479 }
 0x540   : > { %3499 = vst [vmem:[%s6747_s24 + $0x8] sm:$0xff] %v3491_v14  ;;  %v3176_v59 = vmul.f32 %v6565_v42, %v3100_v38  ;;  %v3182_v8 = vmul.f32 %v6569_v24, %v2890_v58  ;;  %v3183_v28 = vmul.f32 %v6569_v24, %v2892_v39  ;;  %v3244_v7 = vadd.f32 %v6571_v37, %v3172_v48 }
 0x541   : > { %v3256_v9 = vadd.f32 %v7103_v30, %v3184_v23  ;;  %v3282_v27 = vmax.f32 %v3250_v47, 0.0  ;;  %v3251_v55 = vadd.f32 %v7101_v26, %v3179_v61  ;;  %v3257_v1 = vadd.f32 %v7103_v30, %v6703_v40  ;;  %v7106_v40 = vld [vmem:[#allocation20_spill] sm:$0xff] }
 0x542   : > { %v3248_v53 = vadd.f32 %v6581_v46, %v3176_v59  ;;  %v3254_v25 = vadd.f32 %v7103_v30, %v3182_v8  ;;  %v3255_v42 = vadd.f32 %v7103_v30, %v3183_v28  ;;  %v3284_v33 = vmax.f32 %v3252_v45, 0.0 }
 0x543   : > { %v3276_v24 = vmax.f32 %v3244_v7, 0.0  ;;  %v3344_v37 = vmul.f32 %v7104_v60, %v3282_v27  ;;  %v3283_v0 = vmax.f32 %v3251_v55, 0.0  ;;  %v3288_v19 = vmax.f32 %v3256_v9, 0.0 }
 0x544   : > { %v3280_v36 = vmax.f32 %v3248_v53, 0.0  ;;  %v3286_v21 = vmax.f32 %v3254_v25, 0.0  ;;  %v3287_v16 = vmax.f32 %v3255_v42, 0.0  ;;  %v3285_v49 = vmax.f32 %v3253_v2, 0.0 }
 0x545   : > { %v3438_v17 = vmul.f32 %v7105_v6, %v3276_v24  ;;  %v3392_v46 = vmul.f32 %v7106_v40, %v3283_v0  ;;  %v3289_v50 = vmax.f32 %v3257_v1, 0.0  ;;  %v3486_v34 = vmul.f32 %v3468_v29, %v3277_v18 }
 0x546   : > { %v3439_v56 = vmul.f32 %v7107_v4, %v3280_v36  ;;  %v3345_v44 = vmul.f32 %v7108_v63, %v3286_v21  ;;  %v3393_v58 = vmul.f32 %v7109_v62, %v3287_v16  ;;  %v3440_v39 = vmul.f32 %v7110_v43, %v3284_v33 }
 0x547   : > { %v3446_v54 = vadd.f32 %v3438_v17, %v3398_v22  ;;  %v3400_v41 = vadd.f32 %v3392_v46, %v3344_v37  ;;  %v3487_v12 = vmul.f32 %v3472_v57, %v3281_v10  ;;  %v3441_v15 = vmul.f32 %v7111_v13, %v3288_v19 }
 0x548   : > { %v3447_v3 = vadd.f32 %v3439_v56, %v3399_v51  ;;  %v3401_v35 = vadd.f32 %v3393_v58, %v3345_v44  ;;  %v3488_v5 = vmul.f32 %v3476_v11, %v3285_v49  ;;  %v3489_v14 = vmul.f32 %v3480_v31, %v3289_v50 }
 0x549   : > { %v3494_v18 = vadd.f32 %v3486_v34, %v3446_v54  ;;  %v3448_v32 = vadd.f32 %v3440_v39, %v3400_v41 }
 0x54a   : > { %v3495_v22 = vadd.f32 %v3487_v12, %v3447_v3  ;;  %v3449_v26 = vadd.f32 %v3441_v15, %v3401_v35 }
 0x54b   : > { %3502 = vst [vmem:[%s6747_s24 + $0x20] sm:$0xff] %v3494_v18  ;;  %v3496_v52 = vadd.f32 %v3488_v5, %v3448_v32 }
 0x54c   : > { %3503 = vst [vmem:[%s6747_s24 + $0x28] sm:$0xff] %v3495_v22  ;;  %v3497_v10 = vadd.f32 %v3489_v14, %v3449_v26 }
 0x54d   : > { %3504 = vst [vmem:[%s6747_s24 + $0x30] sm:$0xff] %v3496_v52 }
 0x54e   : > { %3505 = vst [vmem:[%s6747_s24 + $0x38] sm:$0xff] %v3497_v10 }
 0x54f   : > { %4579 = shalt.err (!%p4576_p3)
}
 0x550   : > { %s4580_s21 = scalar_lea.hbm %s6795_s28, 1024  ;;  %s4584_s26 = scalar_lea.hbm %s6854_s9, 2048 }
 0x551   : > { %p4581_p4 = scmp.ne.s32.totalorder %s6795_s28, %s4580_s21  ;;  %p4585_p9 = scmp.lt.u32.totalorder %s6795_s28, %s6854_s9 }
 0x552   : > { %p4586_p10 = scmp.lt.u32.totalorder %s4584_s26, %s4580_s21  ;;  %p4588_p12 = scmp.lt.u32.totalorder %s4580_s21, %s6795_s28 }
 0x553   : > { %p4582_p7 = pnand %p4581_p4, %p4728_p5 }
 0x554   : > { %p4587_p11 = por %p4586_p10, %p4585_p9 }
 0x555   : > { %p4583_p8 = pneg %p4582_p7 }
 0x556   : > { %p4589_p13 = por %p4588_p12, %p4587_p11 }
 0x558   : > { %p4590_p0 = pnand %p4589_p13, %p4583_p8 }
 0x55a   : > { %4593 = shalt.err (!%p4590_p0)
}
 0x55b   : > { %s4638_s14 = smov 128   ;;  %s4639_s22 = smov 8  }
 0x55c   : > { %4178 = dma.vmem_to_hbm [thread:$0]  (%p4728_p5), %s6797_s27, 1024, %s6795_s28, %s6804_s13, %s4638_s14, %s4638_s14, %s4639_s22  }
 0x55d PF: > { %p4184_p1 = scmp.ge.s32.totalorder %s4628_s12, 2  ;;  %s3535_s16 = sand.u32 1, %s4616_s30  }
 0x55e   : > { %s3536_s17 = scalar_lea.sflag [#allocation3], %s3535_s16 }
 0x55f   : > { %p4181_p2 = pnand %p4184_p1, %p4732_p6 }
 0x561   : > { %4611 = dma.done.wait (!%p4181_p2), %s3536_s17, 1024  }
 0x562   : > { %4613 = vsyncadd (!%p4181_p2), %s3536_s17, 4294966272  ;;  %p19_p3 = scmp.ge.s32.totalorder %s4715_s15, 4   ;;  %s7112_s30 = smov %s4620_s10 }
 0x563   : > { %s7113_s10 = smov %s4624_s11  ;;  %s7114_s11 = smov %s4726_s18 }
 0x564   : > { %s7115_s12 = smov %s4715_s15  ;;  %21 = sbr.rel (!%p19_p3) target bundleno = 3 (0x3), region = 91 }
 0x56b   :  { %3541 = vsyncpa [#allocation3], 1 }
 0x56c   :  { %3543 = vsyncpa [#allocation3 + $0x1], 1 }

</bundles_post_ra>
